<compile_context>
chip_gen: v6e
topology: v6e:2x2x1
jax: 0.10.0
libtpu: 0.0.40
codegen_flags: <defaults>
</compile_context>

<pallas_src>
import functools

import jax
import jax.numpy as jnp
from jax.experimental import pallas as pl
from jax.experimental.pallas import tpu as pltpu

_SCALING = 0.1   # default `scaling` of huber() in the reference module


# ---------------------------------------------------------------------------
# Per-generation tiling defaults
# ---------------------------------------------------------------------------

def _device_kind():
    try:
        return jax.devices()[0].device_kind.lower()
    except Exception:  # pragma: no cover - defensive (e.g. no devices yet)
        return ""


def _dual_tensorcore():
    # Chips exposing two TensorCores behind one JAX device benefit from a
    # leading "parallel" grid axis; on single-TC chips (v5e/v6e) that axis is
    # only a serial loop, so skip the split there.
    kind = _device_kind()
    return any(tag in kind for tag in ("v4", "v5p", "v7", "7x"))


def _default_block_rows():
    # Larger blocks on high-bandwidth dual-TC parts so per-step DMA time stays
    # above the ~0.35us grid-step overhead; 1024 rows already sits near the
    # HBM roofline on v5e/v6e.
    return 2048 if _dual_tensorcore() else 1024


# ---------------------------------------------------------------------------
# Fused loss kernel
# ---------------------------------------------------------------------------

def _mse_loss_kernel(*refs, has_fine, has_alpha, n_rows, rgb_cols,
                     inv_scale_sq, scaling):
    # refs layout: targets, rgb_coarse, [rgb_fine], [weights],
    #              o_rgb, o_alpha, acc_rgb, [acc_alpha]
    it = iter(refs)
    t_ref = next(it)
    c_ref = next(it)
    f_ref = next(it) if has_fine else None
    w_ref = next(it) if has_alpha else None
    o_rgb_ref = next(it)
    o_alpha_ref = next(it)
    acc_rgb = next(it)
    acc_alpha = next(it) if has_alpha else None

    core = pl.program_id(0)
    step = pl.program_id(1)
    n_steps = pl.num_programs(1)

    @pl.when(step == 0)
    def _():
        acc_rgb[...] = jnp.zeros_like(acc_rgb)
        if has_alpha:
            acc_alpha[...] = jnp.zeros_like(acc_alpha)

    br = acc_rgb.shape[0]
    # Global row index of each block row; masks the ragged last block (whose
    # out-of-bounds rows hold unspecified values) so it contributes exactly 0.
    row0 = (core * n_steps + step) * br
    rows = row0 + jax.lax.broadcasted_iota(jnp.int32, (br, 1), 0)
    valid = rows < n_rows

    def hub(x, y):
        d = x.astype(jnp.float32) - y.astype(jnp.float32)
        # 1 + d^2/s^2 >= 1, so torch's .clamp(0.0001) can never bind -> omitted.
        return jnp.abs((jnp.sqrt(1.0 + d * d * inv_scale_sq) - 1.0) * scaling)

    t_all = t_ref[...].astype(jnp.float32)            # (br, C), loaded once
    t_rgb = t_all[:, :rgb_cols]

    # rgb_coarse (+ rgb_fine) share one accumulator: both terms are divided by
    # the same element count and summed, so one acc RMW per vreg suffices.
    h = hub(c_ref[...], t_rgb)
    if has_fine:
        h = h + hub(f_ref[...], t_rgb)
    acc_rgb[...] += jnp.where(valid, h, 0.0)

    if has_alpha:
        pix_alpha = jnp.sum(w_ref[...].astype(jnp.float32), axis=1,
                            keepdims=True)            # (br, 1)
        ha = hub(pix_alpha, t_all[:, 3:4])
        acc_alpha[...] += jnp.where(valid, ha, 0.0)    # elementwise acc, no
                                                       # per-step XLU reduce

    @pl.when(step == n_steps - 1)
    def _():
        # One cross-lane reduction per core, at the very end only.
        o_rgb_ref[...] = jnp.sum(acc_rgb[...]).reshape(1, 1, 1)
        if has_alpha:
            o_alpha_ref[...] = jnp.sum(acc_alpha[...]).reshape(1, 1, 1)
        else:
            o_alpha_ref[...] = jnp.zeros((1, 1, 1), jnp.float32)


# ---------------------------------------------------------------------------
# Module forward pass (single pallas_call)
# ---------------------------------------------------------------------------

def mse_loss(inputs, targets, w_alpha=0.0, scaling=_SCALING, block_rows=None):
    """Forward pass of lib/utils/lossfunc.MSELoss (dict branching is trace-time)."""
    rgb_c = inputs['rgb_coarse']
    B, C = targets.shape
    R = rgb_c.shape[1]                       # 3 in the reference module

    has_fine = 'rgb_fine' in inputs
    has_alpha = (w_alpha > 0.0) and (C > 3)
    has_fine_w = has_alpha and ('weights_fine' in inputs)

    if block_rows is None:
        block_rows = _default_block_rows()
    if has_alpha:
        S = inputs['weights_coarse'].shape[1]
        # Keep the double-buffered weights tile well inside scoped VMEM.
        cap = max(8, ((4 << 20) // (4 * max(S, 128))) // 8 * 8)
        block_rows = min(block_rows, cap)

    if B <= block_rows:
        br, nb = B, 1                        # single block, no masking needed
    else:
        br = block_rows                      # multiple of 8
        nb = pl.cdiv(B, br)
    if _dual_tensorcore() and nb % 2 == 0:
        n_split, bpc = 2, nb // 2            # one partial per TensorCore
    else:
        n_split, bpc = 1, nb

    row_map = lambda c, i, _bpc=bpc: (c * _bpc + i, 0)

    args = [targets, rgb_c]
    in_specs = [pl.BlockSpec((br, C), row_map),
                pl.BlockSpec((br, R), row_map)]
    if has_fine:
        args.append(inputs['rgb_fine'])
        in_specs.append(pl.BlockSpec((br, R), row_map))
    if has_alpha:
        w = inputs['weights_coarse']
        args.append(w)
        in_specs.append(pl.BlockSpec((br, w.shape[1]), row_map))

    scratch = [pltpu.VMEM((br, R), jnp.float32)]
    if has_alpha:
        scratch.append(pltpu.VMEM((br, 1), jnp.float32))

    kernel = functools.partial(
        _mse_loss_kernel, has_fine=has_fine, has_alpha=has_alpha, n_rows=B,
        rgb_cols=R, inv_scale_sq=1.0 / (scaling * scaling), scaling=scaling)

    o_rgb, o_alpha = pl.pallas_call(
        kernel,
        out_shape=(jax.ShapeDtypeStruct((n_split, 1, 1), jnp.float32),
                   jax.ShapeDtypeStruct((n_split, 1, 1), jnp.float32)),
        grid=(n_split, bpc),
        in_specs=in_specs,
        out_specs=(pl.BlockSpec((1, 1, 1), lambda c, i: (c, 0, 0)),
                   pl.BlockSpec((1, 1, 1), lambda c, i: (c, 0, 0))),
        scratch_shapes=scratch,
        compiler_params=pltpu.CompilerParams(
            dimension_semantics=("parallel", "arbitrary")),
    )(*args)

    loss = jnp.sum(o_rgb) / jnp.float32(B * R)         # coarse (+ fine) means
    if has_alpha:
        alpha_term = (jnp.sum(o_alpha) / jnp.float32(B)) * w_alpha
        loss = loss + alpha_term
        if has_fine_w:
            # NOTE: the reference module re-uses `weights_coarse` here (its own
            # `weight = inputs['weights_fine']` is never used), so the second
            # alpha term is the identical scalar -- added twice, not doubled,
            # to preserve the reference's fp summation order.
            loss = loss + alpha_term
    return loss


class MSELoss:
    """Thin wrapper mirroring the PyTorch module interface."""

    def __init__(self, w_alpha=0.0):
        self.w_alpha = w_alpha

    def __call__(self, inputs, targets):
        return mse_loss(inputs, targets, w_alpha=self.w_alpha)


# ---------------------------------------------------------------------------
# Pure-JAX reference (correctness check only)
# ---------------------------------------------------------------------------

def _huber_ref(x, y, scaling=_SCALING):
    diff_sq = (x - y) ** 2
    loss = (jnp.sqrt(jnp.maximum(1.0 + diff_sq / scaling ** 2, 1e-4)) - 1.0) * scaling
    return jnp.abs(loss).mean()


def _mse_loss_ref(inputs, targets, w_alpha=0.0):
    loss = _huber_ref(inputs['rgb_coarse'], targets[:, :3])
    if 'rgb_fine' in inputs:
        loss = loss + _huber_ref(inputs['rgb_fine'], targets[:, :3])
    if w_alpha > 0.0 and targets.shape[1] > 3:
        weights = inputs['weights_coarse']
        loss = loss + _huber_ref(weights.sum(axis=1), targets[:, 3]) * w_alpha
        if 'weights_fine' in inputs:
            loss = loss + _huber_ref(weights.sum(axis=1), targets[:, 3]) * w_alpha
    return loss


if __name__ == "__main__":
    key = jax.random.PRNGKey(0)
    k1, k2, k3, k4, k5, k6, k7 = jax.random.split(key, 7)

    def check(inputs, targets, w_alpha, block_rows=None):
        loss_fn = jax.jit(functools.partial(mse_loss, w_alpha=w_alpha,
                                            block_rows=block_rows))
        loss = loss_fn(inputs, targets)
        jax.block_until_ready(loss)
        ref = _mse_loss_ref(inputs, targets, w_alpha=w_alpha)
        assert jnp.isfinite(loss), "loss is not finite"
        err = abs(float(loss) - float(ref))
        assert err < 1e-4 * max(1.0, abs(float(ref))), f"mismatch: {loss} vs {ref}"

    # 1) Full-featured case (coarse + fine rgb, alpha, weights_fine dedup path).
    B, S = 512, 64
    inputs = {
        "rgb_coarse": jax.random.uniform(k1, (B, 3), jnp.float32),
        "rgb_fine": jax.random.uniform(k2, (B, 3), jnp.float32),
        "weights_coarse": jax.random.uniform(k3, (B, S), jnp.float32) / S,
        "weights_fine": jax.random.uniform(k4, (B, S), jnp.float32) / S,
    }
    targets = jax.random.uniform(k5, (B, 4), jnp.float32)
    check(inputs, targets, w_alpha=0.5)

    # 2) Multi-block grid with a ragged last block (exercises the in-kernel mask).
    B2 = 500
    inputs2 = {
        "rgb_coarse": jax.random.uniform(k1, (B2, 3), jnp.float32),
        "rgb_fine": jax.random.uniform(k2, (B2, 3), jnp.float32),
        "weights_coarse": jax.random.uniform(k3, (B2, S), jnp.float32) / S,
        "weights_fine": jax.random.uniform(k4, (B2, S), jnp.float32) / S,
    }
    targets2 = jax.random.uniform(k5, (B2, 4), jnp.float32)
    check(inputs2, targets2, w_alpha=0.5, block_rows=64)

    # 3) Minimal case: coarse rgb only, no alpha supervision.
    B3 = 77
    inputs3 = {"rgb_coarse": jax.random.uniform(k6, (B3, 3), jnp.float32)}
    targets3 = jax.random.uniform(k7, (B3, 3), jnp.float32)
    check(inputs3, targets3, w_alpha=0.0)

    print("KERNEL_OK")
</pallas_src>

<mosaic_0001>
module attributes {stable_mosaic.version = 11 : i64} {
  func.func @_mse_loss_kernel(%arg0: i32, %arg1: i32, %arg2: memref<512x4xf32, #tpu.memory_space<vmem>>, %arg3: memref<512x3xf32, #tpu.memory_space<vmem>>, %arg4: memref<512x3xf32, #tpu.memory_space<vmem>>, %arg5: memref<512x64xf32, #tpu.memory_space<vmem>>, %arg6: memref<1x1x1xf32, #tpu.memory_space<vmem>>, %arg7: memref<1x1x1xf32, #tpu.memory_space<vmem>>, %arg8: memref<512x3xf32, #tpu.memory_space<vmem>>, %arg9: memref<512x1xf32, #tpu.memory_space<vmem>>) attributes {dimension_semantics = [#tpu.dimension_semantics<parallel>, #tpu.dimension_semantics<arbitrary>], iteration_bounds = array<i64: 1, 1>, scalar_prefetch = 0 : i64, scratch_operands = 2 : i64, tpu.core_type = #tpu.core_type<tc>, window_params = [{transform_indices = @transform_0, window_bounds = array<i64: 512, 4>}, {transform_indices = @transform_1, window_bounds = array<i64: 512, 3>}, {transform_indices = @transform_2, window_bounds = array<i64: 512, 3>}, {transform_indices = @transform_3, window_bounds = array<i64: 512, 64>}, {transform_indices = @transform_4, window_bounds = array<i64: 1, 1, 1>}, {transform_indices = @transform_5, window_bounds = array<i64: 1, 1, 1>}]} {
    %c0_i32 = arith.constant 0 : i32
    %0 = arith.cmpi eq, %arg1, %c0_i32 : i32
    %1 = arith.extui %0 : i1 to i32
    %c0_i32_0 = arith.constant 0 : i32
    %2 = arith.cmpi ne, %1, %c0_i32_0 : i32
    scf.if %2 {
      %cst_33 = arith.constant 0.000000e+00 : f32
      %71 = vector.broadcast %cst_33 : f32 to vector<512x3xf32>
      %c0_34 = arith.constant 0 : index
      %c0_35 = arith.constant 0 : index
      %72 = vector.load %arg8[%c0_34, %c0_35] : memref<512x3xf32, #tpu.memory_space<vmem>>, vector<512x3xf32>
      tpu.vector_store %arg8[%c0_34, %c0_35], %71 {strides = array<i32>} : memref<512x3xf32, #tpu.memory_space<vmem>>, vector<512x3xf32>,
      %cst_36 = arith.constant 0.000000e+00 : f32
      %73 = vector.broadcast %cst_36 : f32 to vector<512x1xf32>
      %c0_37 = arith.constant 0 : index
      %c0_38 = arith.constant 0 : index
      %74 = vector.load %arg9[%c0_37, %c0_38] : memref<512x1xf32, #tpu.memory_space<vmem>>, vector<512x1xf32>
      tpu.vector_store %arg9[%c0_37, %c0_38], %73 {strides = array<i32>} : memref<512x1xf32, #tpu.memory_space<vmem>>, vector<512x1xf32>,
    } else {
    }
    %c1_i32 = arith.constant 1 : i32
    %3 = arith.muli %arg0, %c1_i32 : i32
    %4 = arith.addi %3, %arg1 : i32
    %c512_i32 = arith.constant 512 : i32
    %5 = arith.muli %4, %c512_i32 : i32
    %6 = tpu.iota {dimensions = array<i32: 0>} : vector<512x1xi32>
    %7 = vector.broadcast %5 : i32 to vector<512x1xi32>
    %8 = arith.addi %7, %6 : vector<512x1xi32>
    %c512_i32_1 = arith.constant 512 : i32
    %9 = vector.broadcast %c512_i32_1 : i32 to vector<512x1xi32>
    %10 = arith.cmpi slt, %8, %9 : vector<512x1xi32>
    %c0 = arith.constant 0 : index
    %c0_2 = arith.constant 0 : index
    %11 = vector.load %arg2[%c0, %c0_2] : memref<512x4xf32, #tpu.memory_space<vmem>>, vector<512x4xf32>
    %12 = vector.extract_strided_slice %11 {offsets = [0, 0], sizes = [512, 3], strides = [1, 1]} : vector<512x4xf32> to vector<512x3xf32>
    %c0_3 = arith.constant 0 : index
    %c0_4 = arith.constant 0 : index
    %13 = vector.load %arg3[%c0_3, %c0_4] : memref<512x3xf32, #tpu.memory_space<vmem>>, vector<512x3xf32>
    %14 = arith.subf %13, %12 : vector<512x3xf32>
    %15 = arith.mulf %14, %14 : vector<512x3xf32>
    %cst = arith.constant 1.000000e+02 : f32
    %16 = vector.broadcast %cst : f32 to vector<512x3xf32>
    %17 = arith.mulf %15, %16 : vector<512x3xf32>
    %cst_5 = arith.constant 1.000000e+00 : f32
    %18 = vector.broadcast %cst_5 : f32 to vector<512x3xf32>
    %19 = arith.addf %18, %17 : vector<512x3xf32>
    %20 = math.sqrt %19 : vector<512x3xf32>
    %cst_6 = arith.constant 1.000000e+00 : f32
    %21 = vector.broadcast %cst_6 : f32 to vector<512x3xf32>
    %22 = arith.subf %20, %21 : vector<512x3xf32>
    %cst_7 = arith.constant 1.000000e-01 : f32
    %23 = vector.broadcast %cst_7 : f32 to vector<512x3xf32>
    %24 = arith.mulf %22, %23 : vector<512x3xf32>
    %25 = math.absf %24 : vector<512x3xf32>
    %c0_8 = arith.constant 0 : index
    %c0_9 = arith.constant 0 : index
    %26 = vector.load %arg4[%c0_8, %c0_9] : memref<512x3xf32, #tpu.memory_space<vmem>>, vector<512x3xf32>
    %27 = arith.subf %26, %12 : vector<512x3xf32>
    %28 = arith.mulf %27, %27 : vector<512x3xf32>
    %cst_10 = arith.constant 1.000000e+02 : f32
    %29 = vector.broadcast %cst_10 : f32 to vector<512x3xf32>
    %30 = arith.mulf %28, %29 : vector<512x3xf32>
    %cst_11 = arith.constant 1.000000e+00 : f32
    %31 = vector.broadcast %cst_11 : f32 to vector<512x3xf32>
    %32 = arith.addf %31, %30 : vector<512x3xf32>
    %33 = math.sqrt %32 : vector<512x3xf32>
    %cst_12 = arith.constant 1.000000e+00 : f32
    %34 = vector.broadcast %cst_12 : f32 to vector<512x3xf32>
    %35 = arith.subf %33, %34 : vector<512x3xf32>
    %cst_13 = arith.constant 1.000000e-01 : f32
    %36 = vector.broadcast %cst_13 : f32 to vector<512x3xf32>
    %37 = arith.mulf %35, %36 : vector<512x3xf32>
    %38 = math.absf %37 : vector<512x3xf32>
    %39 = arith.addf %25, %38 : vector<512x3xf32>
    %c0_14 = arith.constant 0 : index
    %c0_15 = arith.constant 0 : index
    %40 = vector.load %arg8[%c0_14, %c0_15] : memref<512x3xf32, #tpu.memory_space<vmem>>, vector<512x3xf32>
    %cst_16 = arith.constant 0.000000e+00 : f32
    %41 = vector.shape_cast %10 : vector<512x1xi1> to vector<512x1xi1>
    %42 = vector.broadcast %41 : vector<512x1xi1> to vector<512x3xi1>
    %43 = vector.broadcast %cst_16 : f32 to vector<512x3xf32>
    %44 = arith.select %42, %39, %43 : vector<512x3xi1>, vector<512x3xf32>
    %45 = arith.addf %40, %44 : vector<512x3xf32>
    %c0_17 = arith.constant 0 : index
    %c0_18 = arith.constant 0 : index
    %46 = vector.load %arg8[%c0_17, %c0_18] : memref<512x3xf32, #tpu.memory_space<vmem>>, vector<512x3xf32>
    tpu.vector_store %arg8[%c0_17, %c0_18], %45 {strides = array<i32>} : memref<512x3xf32, #tpu.memory_space<vmem>>, vector<512x3xf32>,
    %c0_19 = arith.constant 0 : index
    %c0_20 = arith.constant 0 : index
    %47 = vector.load %arg5[%c0_19, %c0_20] : memref<512x64xf32, #tpu.memory_space<vmem>>, vector<512x64xf32>
    %cst_21 = arith.constant dense<0.000000e+00> : vector<512xf32>
    %48 = vector.multi_reduction <add>, %47, %cst_21 [1] : vector<512x64xf32> to vector<512xf32>
    %49 = vector.shape_cast %48 : vector<512xf32> to vector<512x1xf32>
    %50 = vector.extract_strided_slice %11 {offsets = [0, 3], sizes = [512, 1], strides = [1, 1]} : vector<512x4xf32> to vector<512x1xf32>
    %51 = arith.subf %49, %50 : vector<512x1xf32>
    %52 = arith.mulf %51, %51 : vector<512x1xf32>
    %cst_22 = arith.constant 1.000000e+02 : f32
    %53 = vector.broadcast %cst_22 : f32 to vector<512x1xf32>
    %54 = arith.mulf %52, %53 : vector<512x1xf32>
    %cst_23 = arith.constant 1.000000e+00 : f32
    %55 = vector.broadcast %cst_23 : f32 to vector<512x1xf32>
    %56 = arith.addf %55, %54 : vector<512x1xf32>
    %57 = math.sqrt %56 : vector<512x1xf32>
    %cst_24 = arith.constant 1.000000e+00 : f32
    %58 = vector.broadcast %cst_24 : f32 to vector<512x1xf32>
    %59 = arith.subf %57, %58 : vector<512x1xf32>
    %cst_25 = arith.constant 1.000000e-01 : f32
    %60 = vector.broadcast %cst_25 : f32 to vector<512x1xf32>
    %61 = arith.mulf %59, %60 : vector<512x1xf32>
    %62 = math.absf %61 : vector<512x1xf32>
    %c0_26 = arith.constant 0 : index
    %c0_27 = arith.constant 0 : index
    %63 = vector.load %arg9[%c0_26, %c0_27] : memref<512x1xf32, #tpu.memory_space<vmem>>, vector<512x1xf32>
    %cst_28 = arith.constant 0.000000e+00 : f32
    %64 = vector.broadcast %cst_28 : f32 to vector<512x1xf32>
    %65 = arith.select %10, %62, %64 : vector<512x1xi1>, vector<512x1xf32>
    %66 = arith.addf %63, %65 : vector<512x1xf32>
    %c0_29 = arith.constant 0 : index
    %c0_30 = arith.constant 0 : index
    %67 = vector.load %arg9[%c0_29, %c0_30] : memref<512x1xf32, #tpu.memory_space<vmem>>, vector<512x1xf32>
    tpu.vector_store %arg9[%c0_29, %c0_30], %66 {strides = array<i32>} : memref<512x1xf32, #tpu.memory_space<vmem>>, vector<512x1xf32>,
    %c0_i32_31 = arith.constant 0 : i32
    %68 = arith.cmpi eq, %arg1, %c0_i32_31 : i32
    %69 = arith.extui %68 : i1 to i32
    %c0_i32_32 = arith.constant 0 : i32
    %70 = arith.cmpi ne, %69, %c0_i32_32 : i32
    scf.if %70 {
      %c0_33 = arith.constant 0 : index
      %c0_34 = arith.constant 0 : index
      %71 = vector.load %arg8[%c0_33, %c0_34] : memref<512x3xf32, #tpu.memory_space<vmem>>, vector<512x3xf32>
      %72 = vector.shape_cast %71 : vector<512x3xf32> to vector<1x512x3xf32>
      %cst_35 = arith.constant dense<0.000000e+00> : vector<1xf32>
      %73 = vector.multi_reduction <add>, %72, %cst_35 [1, 2] : vector<1x512x3xf32> to vector<1xf32>
      %74 = vector.shape_cast %73 : vector<1xf32> to vector<1x1x1xf32>
      %75 = vector.extract %74[0, 0, 0] : f32 from vector<1x1x1xf32>
      %76 = vector.broadcast %75 : f32 to vector<1x1x1xf32>
      %c0_36 = arith.constant 0 : index
      %c0_37 = arith.constant 0 : index
      %c0_38 = arith.constant 0 : index
      %77 = vector.load %arg6[%c0_36, %c0_37, %c0_38] : memref<1x1x1xf32, #tpu.memory_space<vmem>>, vector<1x1x1xf32>
      tpu.vector_store %arg6[%c0_36, %c0_37, %c0_38], %76 {strides = array<i32>} : memref<1x1x1xf32, #tpu.memory_space<vmem>>, vector<1x1x1xf32>,
      %c0_39 = arith.constant 0 : index
      %c0_40 = arith.constant 0 : index
      %78 = vector.load %arg9[%c0_39, %c0_40] : memref<512x1xf32, #tpu.memory_space<vmem>>, vector<512x1xf32>
      %79 = vector.shape_cast %78 : vector<512x1xf32> to vector<1x512x1xf32>
      %cst_41 = arith.constant dense<0.000000e+00> : vector<1xf32>
      %80 = vector.multi_reduction <add>, %79, %cst_41 [1, 2] : vector<1x512x1xf32> to vector<1xf32>
      %81 = vector.shape_cast %80 : vector<1xf32> to vector<1x1x1xf32>
      %82 = vector.extract %81[0, 0, 0] : f32 from vector<1x1x1xf32>
      %83 = vector.broadcast %82 : f32 to vector<1x1x1xf32>
      %c0_42 = arith.constant 0 : index
      %c0_43 = arith.constant 0 : index
      %c0_44 = arith.constant 0 : index
      %84 = vector.load %arg7[%c0_42, %c0_43, %c0_44] : memref<1x1x1xf32, #tpu.memory_space<vmem>>, vector<1x1x1xf32>
      tpu.vector_store %arg7[%c0_42, %c0_43, %c0_44], %83 {strides = array<i32>} : memref<1x1x1xf32, #tpu.memory_space<vmem>>, vector<1x1x1xf32>,
    } else {
    }
    return
  }
  func.func @transform_0(%arg0: i32, %arg1: i32) -> (i32, i32) {
    %c1_i32 = arith.constant 1 : i32
    %0 = arith.muli %arg0, %c1_i32 : i32
    %1 = arith.addi %0, %arg1 : i32
    %c0_i32 = arith.constant 0 : i32
    %c0_i32_0 = arith.constant 0 : i32
    return %1, %c0_i32 : i32, i32
  }
  func.func @transform_1(%arg0: i32, %arg1: i32) -> (i32, i32) {
    %c1_i32 = arith.constant 1 : i32
    %0 = arith.muli %arg0, %c1_i32 : i32
    %1 = arith.addi %0, %arg1 : i32
    %c0_i32 = arith.constant 0 : i32
    %c0_i32_0 = arith.constant 0 : i32
    return %1, %c0_i32 : i32, i32
  }
  func.func @transform_2(%arg0: i32, %arg1: i32) -> (i32, i32) {
    %c1_i32 = arith.constant 1 : i32
    %0 = arith.muli %arg0, %c1_i32 : i32
    %1 = arith.addi %0, %arg1 : i32
    %c0_i32 = arith.constant 0 : i32
    %c0_i32_0 = arith.constant 0 : i32
    return %1, %c0_i32 : i32, i32
  }
  func.func @transform_3(%arg0: i32, %arg1: i32) -> (i32, i32) {
    %c1_i32 = arith.constant 1 : i32
    %0 = arith.muli %arg0, %c1_i32 : i32
    %1 = arith.addi %0, %arg1 : i32
    %c0_i32 = arith.constant 0 : i32
    %c0_i32_0 = arith.constant 0 : i32
    return %1, %c0_i32 : i32, i32
  }
  func.func @transform_4(%arg0: i32, %arg1: i32) -> (i32, i32, i32) {
    %c0_i32 = arith.constant 0 : i32
    %c0_i32_0 = arith.constant 0 : i32
    %c0_i32_1 = arith.constant 0 : i32
    return %arg0, %c0_i32, %c0_i32_0 : i32, i32, i32
  }
  func.func @transform_5(%arg0: i32, %arg1: i32) -> (i32, i32, i32) {
    %c0_i32 = arith.constant 0 : i32
    %c0_i32_0 = arith.constant 0 : i32
    %c0_i32_1 = arith.constant 0 : i32
    return %arg0, %c0_i32, %c0_i32_0 : i32, i32, i32
  }
}

</mosaic_0001>

<bundles_post_ra>
// kernel: mse_loss.1
= control target key start
LH: loop header
LB: loop body
LE: loop exit
PB: predicated region body
PF: predicated region fallthrough
CT: control target
= control target key end

     0   :  { %11 = vsyncpa [#allocation5], 0  ;;  %vm2936_vm0 = vcmask 523264   ;;  %vm113_vm1 = vcmask 23552   ;;  %v9940_v62 = vmov 0.0   ;;  %s9934_s0 = inlined_call_operand.vmem [shape: f32[512,4], index: 0, kind: input, shape index: {}]   ;;  %s9935_s1 = inlined_call_operand.vmem [shape: f32[512,3], index: 1, kind: input, shape index: {}]   ;;  %s9936_s2 = inlined_call_operand.vmem [shape: f32[512,3], index: 2, kind: input, shape index: {}]   ;;  %s9937_s3 = inlined_call_operand.vmem [shape: f32[512,64], index: 3, kind: input, shape index: {}]   ;;  %s9938_s4 = inlined_call_operand.hbm [shape: f32[1,1,1], index: 4, kind: output, shape index: {0}]   ;;  %s9939_s5 = inlined_call_operand.hbm [shape: f32[1,1,1], index: 5, kind: output, shape index: {1}]  }
   0x1   :  { %v2874_v0 = vld [vmem:[%s9937_s3 + $0x10] sm:$0xff]  ;;  %v2872_v1 = vld [vmem:[%s9937_s3] sm:$0xff]  ;;  %v2875_v2 = vld [vmem:[%s9937_s3 + $0x18] sm:$0xff]  ;;  %116 = vst.msk [vmem:[#allocation2 + $0x10] sm:$0xff] %vm113_vm1, %v9940_v62 }
   0x2   :  { %v2943_v3 = vsel %vm2936_vm0, %v2874_v0, 0.0  ;;  %v2937_v4 = vsel %vm2936_vm0, %v2872_v1, 0.0  ;;  %v2873_v5 = vld [vmem:[%s9937_s3 + $0x8] sm:$0xff]  ;;  %v2946_v6 = vsel %vm2936_vm0, %v2875_v2, 0.0  ;;  %v2876_v9 = vld [vmem:[%s9937_s3 + $0x20] sm:$0xff]  ;;  %v2878_v12 = vld [vmem:[%s9937_s3 + $0x30] sm:$0xff] }
   0x3   :  { %2944 = vadd.xlane.f32.xlu1 %v2943_v3  ;;  %2938 = vadd.xlane.f32.xlu0 %v2937_v4  ;;  %v2940_v7 = vsel %vm2936_vm0, %v2873_v5, 0.0  ;;  %v2877_v8 = vld [vmem:[%s9937_s3 + $0x28] sm:$0xff]  ;;  %v2949_v11 = vsel %vm2936_vm0, %v2876_v9, 0.0  ;;  %v2879_v13 = vld [vmem:[%s9937_s3 + $0x38] sm:$0xff]  ;;  %v2955_v14 = vsel %vm2936_vm0, %v2878_v12, 0.0  ;;  %v2880_v15 = vld [vmem:[%s9937_s3 + $0x40] sm:$0xff] }
   0x4   :  { %v2952_v10 = vsel %vm2936_vm0, %v2877_v8, 0.0  ;;  %v2882_v16 = vld [vmem:[%s9937_s3 + $0x50] sm:$0xff]  ;;  %v2884_v17 = vld [vmem:[%s9937_s3 + $0x60] sm:$0xff]  ;;  %v2958_v18 = vsel %vm2936_vm0, %v2879_v13, 0.0  ;;  %v2881_v20 = vld [vmem:[%s9937_s3 + $0x48] sm:$0xff]  ;;  %v2961_v25 = vsel %vm2936_vm0, %v2880_v15, 0.0 }
   0x5   :  { %v2886_v19 = vld [vmem:[%s9937_s3 + $0x70] sm:$0xff]  ;;  %v2888_v21 = vld [vmem:[%s9937_s3 + $0x80] sm:$0xff]  ;;  %v2883_v22 = vld [vmem:[%s9937_s3 + $0x58] sm:$0xff]  ;;  %v5727_v26 = vsel %vm2936_vm0, %v2882_v16, 0.0  ;;  %v5739_v30 = vsel %vm2936_vm0, %v2884_v17, 0.0  ;;  %v2964_v32 = vsel %vm2936_vm0, %v2881_v20, 0.0 }
   0x6   :  { %v2890_v23 = vld [vmem:[%s9937_s3 + $0x90] sm:$0xff]  ;;  %v2885_v24 = vld [vmem:[%s9937_s3 + $0x68] sm:$0xff]  ;;  %v2892_v27 = vld [vmem:[%s9937_s3 + $0xa0] sm:$0xff]  ;;  %v5742_v31 = vsel %vm2936_vm0, %v2886_v19, 0.0  ;;  %v5746_v33 = vsel %vm2936_vm0, %v2888_v21, 0.0  ;;  %v5755_v36 = vsel %vm2936_vm0, %v2883_v22, 0.0 }
   0x7   :  { %2947 = vadd.xlane.f32.xlu1 %v2946_v6  ;;  %2941 = vadd.xlane.f32.xlu0 %v2940_v7  ;;  %v2887_v28 = vld [vmem:[%s9937_s3 + $0x78] sm:$0xff]  ;;  %v2894_v29 = vld [vmem:[%s9937_s3 + $0xb0] sm:$0xff]  ;;  %v2889_v34 = vld [vmem:[%s9937_s3 + $0x88] sm:$0xff]  ;;  %v5758_v37 = vsel %vm2936_vm0, %v2890_v23, 0.0  ;;  %v5761_v38 = vsel %vm2936_vm0, %v2885_v24, 0.0  ;;  %v5773_v42 = vsel %vm2936_vm0, %v2892_v27, 0.0 }
   0x8   :  { %v2896_v35 = vld [vmem:[%s9937_s3 + $0xc0] sm:$0xff]  ;;  %v2891_v39 = vld [vmem:[%s9937_s3 + $0x98] sm:$0xff]  ;;  %v2898_v40 = vld [vmem:[%s9937_s3 + $0xd0] sm:$0xff]  ;;  %v5776_v43 = vsel %vm2936_vm0, %v2887_v28, 0.0  ;;  %v5779_v44 = vsel %vm2936_vm0, %v2894_v29, 0.0  ;;  %v5793_v48 = vsel %vm2936_vm0, %v2889_v34, 0.0 }
   0x9   :  { %v2893_v41 = vld [vmem:[%s9937_s3 + $0xa8] sm:$0xff]  ;;  %v2900_v45 = vld [vmem:[%s9937_s3 + $0xe0] sm:$0xff]  ;;  %v2895_v46 = vld [vmem:[%s9937_s3 + $0xb8] sm:$0xff]  ;;  %v5796_v49 = vsel %vm2936_vm0, %v2896_v35, 0.0  ;;  %v5810_v53 = vsel %vm2936_vm0, %v2891_v39, 0.0  ;;  %v5813_v54 = vsel %vm2936_vm0, %v2898_v40, 0.0 }
   0xa   :  { %v5790_v47 = vld [vmem:[%s9937_s3 + $0xf0] sm:$0xff]  ;;  %v5801_v50 = vld [vmem:[%s9937_s3 + $0xc8] sm:$0xff]  ;;  %v5818_v55 = vld [vmem:[%s9937_s3 + $0x100] sm:$0xff]  ;;  %v5831_v59 = vsel %vm2936_vm0, %v2893_v41, 0.0  ;;  %v5834_v60 = vsel %vm2936_vm0, %v2900_v45, 0.0  ;;  %v5837_v61 = vsel %vm2936_vm0, %v2895_v46, 0.0 }
   0xb   :  { %2953 = vadd.xlane.f32.xlu1 %v2952_v10  ;;  %2950 = vadd.xlane.f32.xlu0 %v2949_v11  ;;  %v441_v51 = vld [vmem:[%s9934_s0 + $0x10] sm:$0xff]  ;;  %v5823_v56 = vld [vmem:[%s9937_s3 + $0xd8] sm:$0xff]  ;;  %114 = vst.msk [vmem:[#allocation2] sm:$0xff] %vm113_vm1, %v9940_v62  ;;  %115 = vst.msk [vmem:[#allocation2 + $0x8] sm:$0xff] %vm113_vm1, %v9940_v62  ;;  %v5980_v3 = vsel %vm2936_vm0, %v5790_v47, 0.0  ;;  %v5997_v10 = vsel %vm2936_vm0, %v5801_v50, 0.0 }
   0xc   :  { %v505_v52 = vld [vmem:[%s9935_s1 + $0x10] sm:$0xff]  ;;  %117 = vst.msk [vmem:[#allocation2 + $0x18] sm:$0xff] %vm113_vm1, %v9940_v62  ;;  %118 = vst.msk [vmem:[#allocation2 + $0x20] sm:$0xff] %vm113_vm1, %v9940_v62  ;;  %v439_v0 = vld [vmem:[%s9934_s0] sm:$0xff] }
   0xd   :  { %v5825_v57 = vsub.f32 %v505_v52, %v441_v51  ;;  %v1465_v58 = vld [vmem:[%s9936_s2 + $0x10] sm:$0xff]  ;;  %119 = vst.msk [vmem:[#allocation2 + $0x28] sm:$0xff] %vm113_vm1, %v9940_v62  ;;  %120 = vst.msk [vmem:[#allocation2 + $0x30] sm:$0xff] %vm113_vm1, %v9940_v62  ;;  %v503_v1 = vld [vmem:[%s9935_s1] sm:$0xff] }
   0xe   :  { %v5841_v63 = vsub.f32 %v1465_v58, %v441_v51  ;;  %121 = vst.msk [vmem:[#allocation2 + $0x38] sm:$0xff] %vm113_vm1, %v9940_v62  ;;  %122 = vst.msk [vmem:[#allocation2 + $0x40] sm:$0xff] %vm113_vm1, %v9940_v62  ;;  %v1463_v2 = vld [vmem:[%s9936_s2] sm:$0xff]  ;;  %v567_v5 = vsub.f32 %v503_v1, %v439_v0  ;;  %v442_v7 = vld [vmem:[%s9934_s0 + $0x18] sm:$0xff] }
   0xf   :  { %2956 = vadd.xlane.f32.xlu0 %v2955_v14  ;;  %2959 = vadd.xlane.f32.xlu1 %v2958_v18  ;;  %123 = vst.msk [vmem:[#allocation2 + $0x48] sm:$0xff] %vm113_vm1, %v9940_v62  ;;  %124 = vst.msk [vmem:[#allocation2 + $0x50] sm:$0xff] %vm113_vm1, %v9940_v62  ;;  %v633_v4 = vmul.f32 %v5825_v57, %v5825_v57  ;;  %v1527_v6 = vsub.f32 %v1463_v2, %v439_v0  ;;  %v506_v8 = vld [vmem:[%s9935_s1 + $0x18] sm:$0xff]  ;;  %v6003_v14 = vsel %vm2936_vm0, %v5818_v55, 0.0  ;;  %v2906_v15 = vld [vmem:[%s9937_s3 + $0x110] sm:$0xff] }
  0x10   :  { %125 = vst.msk [vmem:[#allocation2 + $0x58] sm:$0xff] %vm113_vm1, %v9940_v62  ;;  %126 = vst.msk [vmem:[#allocation2 + $0x60] sm:$0xff] %vm113_vm1, %v9940_v62  ;;  %v1466_v9 = vld [vmem:[%s9936_s2 + $0x18] sm:$0xff]  ;;  %v1593_v11 = vmul.f32 %v5841_v63, %v5841_v63  ;;  %v570_v12 = vsub.f32 %v506_v8, %v442_v7  ;;  %v631_v17 = vmul.f32 %v567_v5, %v567_v5 }
  0x11   :  { %127 = vst.msk [vmem:[#allocation2 + $0x68] sm:$0xff] %vm113_vm1, %v9940_v62  ;;  %128 = vst.msk [vmem:[#allocation2 + $0x70] sm:$0xff] %vm113_vm1, %v9940_v62  ;;  %v1530_v13 = vsub.f32 %v1466_v9, %v442_v7  ;;  %v697_v16 = vmul.f32 100.0, %v633_v4  ;;  %v1591_v18 = vmul.f32 %v1527_v6, %v1527_v6 }
  0x12   :  { %129 = vst.msk [vmem:[#allocation2 + $0x78] sm:$0xff] %vm113_vm1, %v9940_v62  ;;  %130 = vst.msk [vmem:[#allocation2 + $0x80] sm:$0xff] %vm113_vm1, %v9940_v62 }
  0x13   :  { %2962 = vadd.xlane.f32.xlu0 %v2961_v25  ;;  %2965 = vadd.xlane.f32.xlu1 %v2964_v32  ;;  %131 = vst.msk [vmem:[#allocation2 + $0x88] sm:$0xff] %vm113_vm1, %v9940_v62  ;;  %132 = vst.msk [vmem:[#allocation2 + $0x90] sm:$0xff] %vm113_vm1, %v9940_v62 }
  0x14   :  { %133 = vst.msk [vmem:[#allocation2 + $0x98] sm:$0xff] %vm113_vm1, %v9940_v62  ;;  %134 = vst.msk [vmem:[#allocation2 + $0xa0] sm:$0xff] %vm113_vm1, %v9940_v62 }
  0x15   :  { %135 = vst.msk [vmem:[#allocation2 + $0xa8] sm:$0xff] %vm113_vm1, %v9940_v62  ;;  %136 = vst.msk [vmem:[#allocation2 + $0xb0] sm:$0xff] %vm113_vm1, %v9940_v62 }
  0x16   :  { %137 = vst.msk [vmem:[#allocation2 + $0xb8] sm:$0xff] %vm113_vm1, %v9940_v62  ;;  %138 = vst.msk [vmem:[#allocation2 + $0xc0] sm:$0xff] %vm113_vm1, %v9940_v62 }
  0x17   :  { %139 = vst.msk [vmem:[#allocation2 + $0xc8] sm:$0xff] %vm113_vm1, %v9940_v62  ;;  %140 = vst.msk [vmem:[#allocation2 + $0xd0] sm:$0xff] %vm113_vm1, %v9940_v62  ;;  %2968 = vadd.xlane.f32.xlu0 %v5727_v26  ;;  %2971 = vadd.xlane.f32.xlu1 %v5755_v36 }
  0x18   :  { %141 = vst.msk [vmem:[#allocation2 + $0xd8] sm:$0xff] %vm113_vm1, %v9940_v62  ;;  %142 = vst.msk [vmem:[#allocation2 + $0xe0] sm:$0xff] %vm113_vm1, %v9940_v62 }
  0x19   :  { %143 = vst.msk [vmem:[#allocation2 + $0xe8] sm:$0xff] %vm113_vm1, %v9940_v62  ;;  %144 = vst.msk [vmem:[#allocation2 + $0xf0] sm:$0xff] %vm113_vm1, %v9940_v62 }
  0x1a   :  { %145 = vst.msk [vmem:[#allocation2 + $0xf8] sm:$0xff] %vm113_vm1, %v9940_v62  ;;  %146 = vst.msk [vmem:[#allocation2 + $0x100] sm:$0xff] %vm113_vm1, %v9940_v62 }
  0x1b   :  { %147 = vst.msk [vmem:[#allocation2 + $0x108] sm:$0xff] %vm113_vm1, %v9940_v62  ;;  %148 = vst.msk [vmem:[#allocation2 + $0x110] sm:$0xff] %vm113_vm1, %v9940_v62 }
  0x1c   :  { %149 = vst.msk [vmem:[#allocation2 + $0x118] sm:$0xff] %vm113_vm1, %v9940_v62  ;;  %150 = vst.msk [vmem:[#allocation2 + $0x120] sm:$0xff] %vm113_vm1, %v9940_v62 }
  0x1d   :  { %151 = vst.msk [vmem:[#allocation2 + $0x128] sm:$0xff] %vm113_vm1, %v9940_v62  ;;  %152 = vst.msk [vmem:[#allocation2 + $0x130] sm:$0xff] %vm113_vm1, %v9940_v62 }
  0x1e   :  { %153 = vst.msk [vmem:[#allocation2 + $0x138] sm:$0xff] %vm113_vm1, %v9940_v62  ;;  %154 = vst.msk [vmem:[#allocation2 + $0x140] sm:$0xff] %vm113_vm1, %v9940_v62 }
  0x1f   :  { %155 = vst.msk [vmem:[#allocation2 + $0x148] sm:$0xff] %vm113_vm1, %v9940_v62  ;;  %156 = vst.msk [vmem:[#allocation2 + $0x150] sm:$0xff] %vm113_vm1, %v9940_v62 }
  0x20   :  { %157 = vst.msk [vmem:[#allocation2 + $0x158] sm:$0xff] %vm113_vm1, %v9940_v62  ;;  %158 = vst.msk [vmem:[#allocation2 + $0x160] sm:$0xff] %vm113_vm1, %v9940_v62 }
  0x21   :  { %159 = vst.msk [vmem:[#allocation2 + $0x168] sm:$0xff] %vm113_vm1, %v9940_v62  ;;  %160 = vst.msk [vmem:[#allocation2 + $0x170] sm:$0xff] %vm113_vm1, %v9940_v62 }
  0x22   :  { %161 = vst.msk [vmem:[#allocation2 + $0x178] sm:$0xff] %vm113_vm1, %v9940_v62  ;;  %162 = vst.msk [vmem:[#allocation2 + $0x180] sm:$0xff] %vm113_vm1, %v9940_v62 }
  0x23   :  { %163 = vst.msk [vmem:[#allocation2 + $0x188] sm:$0xff] %vm113_vm1, %v9940_v62  ;;  %164 = vst.msk [vmem:[#allocation2 + $0x190] sm:$0xff] %vm113_vm1, %v9940_v62 }
  0x24   :  { %165 = vst.msk [vmem:[#allocation2 + $0x198] sm:$0xff] %vm113_vm1, %v9940_v62  ;;  %166 = vst.msk [vmem:[#allocation2 + $0x1a0] sm:$0xff] %vm113_vm1, %v9940_v62 }
  0x25   :  { %167 = vst.msk [vmem:[#allocation2 + $0x1a8] sm:$0xff] %vm113_vm1, %v9940_v62  ;;  %168 = vst.msk [vmem:[#allocation2 + $0x1b0] sm:$0xff] %vm113_vm1, %v9940_v62 }
  0x26   :  { %169 = vst.msk [vmem:[#allocation2 + $0x1b8] sm:$0xff] %vm113_vm1, %v9940_v62  ;;  %170 = vst.msk [vmem:[#allocation2 + $0x1c0] sm:$0xff] %vm113_vm1, %v9940_v62 }
  0x27   :  { %171 = vst.msk [vmem:[#allocation2 + $0x1c8] sm:$0xff] %vm113_vm1, %v9940_v62  ;;  %172 = vst.msk [vmem:[#allocation2 + $0x1d0] sm:$0xff] %vm113_vm1, %v9940_v62 }
  0x28   :  { %173 = vst.msk [vmem:[#allocation2 + $0x1d8] sm:$0xff] %vm113_vm1, %v9940_v62  ;;  %174 = vst.msk [vmem:[#allocation2 + $0x1e0] sm:$0xff] %vm113_vm1, %v9940_v62 }
  0x29   :  { %175 = vst.msk [vmem:[#allocation2 + $0x1e8] sm:$0xff] %vm113_vm1, %v9940_v62  ;;  %176 = vst.msk [vmem:[#allocation2 + $0x1f0] sm:$0xff] %vm113_vm1, %v9940_v62 }
  0x2a   :  { %177 = vst.msk [vmem:[#allocation2 + $0x1f8] sm:$0xff] %vm113_vm1, %v9940_v62 }
  0x2b   :  { %12 = vsyncpa [#allocation7], 0  ;;  %v6010_v19 = vsel %vm2936_vm0, %v5823_v56, 0.0  ;;  %v2901_v20 = vld [vmem:[%s9937_s3 + $0xe8] sm:$0xff]  ;;  %v1657_v21 = vmul.f32 100.0, %v1593_v11  ;;  %v634_v22 = vmul.f32 %v570_v12, %v570_v12  ;;  %v1594_v23 = vmul.f32 %v1530_v13, %v1530_v13  ;;  %v2908_v26 = vld [vmem:[%s9937_s3 + $0x120] sm:$0xff]  ;;  %2974 = vadd.xlane.f32.xlu0 %v5739_v30  ;;  %2977 = vadd.xlane.f32.xlu1 %v5761_v38 }
  0x2c   :  { %v504_v24 = vld [vmem:[%s9935_s1 + $0x8] sm:$0xff]  ;;  %v2903_v27 = vld [vmem:[%s9937_s3 + $0xf8] sm:$0xff]  ;;  %v2910_v28 = vld [vmem:[%s9937_s3 + $0x130] sm:$0xff]  ;;  %v6030_v29 = vadd.f32 1.0, %v697_v16  ;;  %v695_v32 = vmul.f32 100.0, %v631_v17  ;;  %v1655_v34 = vmul.f32 100.0, %v1591_v18 }
  0x2d   :  { %v1464_v25 = vld [vmem:[%s9936_s2 + $0x8] sm:$0xff]  ;;  %v6035_v35 = vsel %vm2936_vm0, %v2906_v15, 0.0  ;;  %v6037_v36 = vadd.f32 1.0, %v1657_v21  ;;  %v698_v39 = vmul.f32 100.0, %v634_v22  ;;  %v1658_v40 = vmul.f32 100.0, %v1594_v23  ;;  %v2912_v38 = vld [vmem:[%s9937_s3 + $0x140] sm:$0xff] }
  0x2e   :  { %v440_v41 = vld [vmem:[%s9934_s0 + $0x8] sm:$0xff]  ;;  %v6043_v45 = vsel %vm2936_vm0, %v2901_v20, 0.0  ;;  %5198 = vrsqrt.f32 %v6030_v29  ;;  %v6053_v50 = vsel %vm2936_vm0, %v2908_v26, 0.0  ;;  %v6056_v51 = vsel %vm2936_vm0, %v2903_v27, 0.0  ;;  %v2907_v55 = vld [vmem:[%s9937_s3 + $0x118] sm:$0xff]  ;;  %v2914_v57 = vld [vmem:[%s9937_s3 + $0x150] sm:$0xff] }
  0x2f   :  { %v2905_v30 = vld [vmem:[%s9937_s3 + $0x108] sm:$0xff]  ;;  %v568_v46 = vsub.f32 %v504_v24, %v440_v41  ;;  %v1528_v47 = vsub.f32 %v1464_v25, %v440_v41  ;;  %v6059_v52 = vsel %vm2936_vm0, %v2910_v28, 0.0  ;;  %5200 = vrsqrt.f32 %v6037_v36  ;;  %v2916_v63 = vld [vmem:[%s9937_s3 + $0x160] sm:$0xff]  ;;  %2980 = vadd.xlane.f32.xlu0 %v5742_v31  ;;  %2983 = vadd.xlane.f32.xlu1 %v5776_v43  ;;  %v2911_v6 = vld [vmem:[%s9937_s3 + $0x138] sm:$0xff]  ;;  %s5633_s23 = smov 125  }
  0x30   :  { %v508_v56 = vld [vmem:[%s9935_s1 + $0x28] sm:$0xff]  ;;  %v6077_v0 = vadd.f32 1.0, %v695_v32  ;;  %v6079_v1 = vadd.f32 1.0, %v1655_v34  ;;  %v6081_v2 = vadd.f32 1.0, %v698_v39  ;;  %v6086_v4 = vsel %vm2936_vm0, %v2905_v30, 0.0  ;;  %v2918_v7 = vld [vmem:[%s9937_s3 + $0x170] sm:$0xff] }
  0x31   :  { %v2909_v58 = vld [vmem:[%s9937_s3 + $0x128] sm:$0xff]  ;;  %v6089_v5 = vsel %vm2936_vm0, %v2912_v38, 0.0  ;;  %v6097_v8 = vadd.f32 1.0, %v1658_v40  ;;  %v632_v43 = vmul.f32 %v568_v46, %v568_v46  ;;  %v1592_v9 = vmul.f32 %v1528_v47, %v1528_v47  ;;  %v507_v21 = vld [vmem:[%s9935_s1 + $0x20] sm:$0xff] }
  0x32   :  { %v444_v31 = vld [vmem:[%s9934_s0 + $0x28] sm:$0xff]  ;;  %5202 = vrsqrt.f32 %v6077_v0  ;;  %v6104_v12 = vsel %vm2936_vm0, %v2907_v55, 0.0  ;;  %v6107_v13 = vsel %vm2936_vm0, %v2914_v57, 0.0  ;;  %v6110_v15 = vsel %vm2936_vm0, %v2909_v58, 0.0  ;;  %v443_v27 = vld [vmem:[%s9934_s0 + $0x20] sm:$0xff] }
  0x33   :  { %v572_v11 = vsub.f32 %v508_v56, %v444_v31  ;;  %5204 = vrsqrt.f32 %v6079_v1  ;;  %v1468_v16 = vld [vmem:[%s9936_s2 + $0x28] sm:$0xff]  ;;  %v6117_v17 = vsel %vm2936_vm0, %v2916_v63, 0.0  ;;  %v6120_v18 = vsel %vm2936_vm0, %v2911_v6, 0.0  ;;  %2986 = vadd.xlane.f32.xlu0 %v5746_v33  ;;  %2989 = vadd.xlane.f32.xlu1 %v5793_v48  ;;  %v1467_v33 = vld [vmem:[%s9936_s2 + $0x20] sm:$0xff] }
  0x34   :  { %v6123_v20 = vsel %vm2936_vm0, %v2918_v7, 0.0  ;;  %5206 = vrsqrt.f32 %v6081_v2  ;;  %vm839_vm2 = vcmp.eq.f32.partialorder %v6030_v29, inf  ;;  %vm841_vm3 = vcmp.eq.f32.partialorder %v6030_v29, 0.0 }
  0x35   :  { %v842_v22 = vand.u32 2147483648, %v6030_v29  ;;  %5208 = vrsqrt.f32 %v6097_v8  ;;  %v696_v23 = vmul.f32 100.0, %v632_v43  ;;  %v1656_v24 = vmul.f32 100.0, %v1592_v9 }
  0x36   :  { %v636_v25 = vmul.f32 %v572_v11, %v572_v11  ;;  %v1532_v26 = vsub.f32 %v1468_v16, %v444_v31  ;;  %vm1799_vm4 = vcmp.eq.f32.partialorder %v6037_v36, inf  ;;  %vm1801_vm5 = vcmp.eq.f32.partialorder %v6037_v36, 0.0 }
  0x37   :  { %v1802_v48 = vand.u32 2147483648, %v6037_v36  ;;  %v571_v28 = vsub.f32 %v507_v21, %v443_v27  ;;  %v6144_v32 = vadd.f32 1.0, %v696_v23  ;;  %v6146_v34 = vadd.f32 1.0, %v1656_v24  ;;  %2992 = vadd.xlane.f32.xlu0 %v5758_v37  ;;  %2995 = vadd.xlane.f32.xlu1 %v5810_v53 }
  0x38   :  { %v700_v39 = vmul.f32 100.0, %v636_v25  ;;  %v1596_v40 = vmul.f32 %v1532_v26, %v1532_v26  ;;  %vm825_vm6 = vcmp.eq.f32.partialorder %v6077_v0, inf  ;;  %vm827_vm7 = vcmp.eq.f32.partialorder %v6077_v0, 0.0 }
  0x39   :  { %v828_v41 = vand.u32 2147483648, %v6077_v0  ;;  %v1531_v30 = vsub.f32 %v1467_v33, %v443_v27  ;;  %vm1785_vm8 = vcmp.eq.f32.partialorder %v6079_v1, inf  ;;  %vm1787_vm9 = vcmp.eq.f32.partialorder %v6079_v1, 0.0 }
  0x3a   :  { %5210 = vrsqrt.f32 %v6144_v32  ;;  %v635_v38 = vmul.f32 %v571_v28, %v571_v28  ;;  %v1788_v47 = vand.u32 2147483648, %v6079_v1  ;;  %vm846_vm10 = vcmp.eq.f32.partialorder %v6081_v2, inf }
  0x3b   :  { %v5199_v46 = vpop.eup %5198  ;;  %vm848_vm11 = vcmp.eq.f32.partialorder %v6081_v2, 0.0  ;;  %5212 = vrsqrt.f32 %v6146_v34  ;;  %v849_v55 = vand.u32 2147483648, %v6081_v2  ;;  %v6162_v56 = vadd.f32 1.0, %v700_v39  ;;  %2998 = vadd.xlane.f32.xlu0 %v5773_v42  ;;  %3001 = vadd.xlane.f32.xlu1 %v5831_v59 }
  0x3c   :  { %v5201_v37 = vpop.eup %5200  ;;  %v838_v53 = vmul.f32 %v5199_v46, %v6030_v29  ;;  %v1660_v57 = vmul.f32 100.0, %v1596_v40  ;;  %vm1806_vm12 = vcmp.eq.f32.partialorder %v6097_v8, inf  ;;  %vm1808_vm13 = vcmp.eq.f32.partialorder %v6097_v8, 0.0 }
  0x3d   :  { %v1798_v58 = vmul.f32 %v5201_v37, %v6037_v36  ;;  %v1595_v63 = vmul.f32 %v1531_v30, %v1531_v30  ;;  %v1809_v7 = vand.u32 2147483648, %v6097_v8  ;;  %5214 = vrsqrt.f32 %v6162_v56 }
  0x3e   :  { %v840_v6 = vsel %vm839_vm2, %v6030_v29, %v838_v53  ;;  %v699_v31 = vmul.f32 100.0, %v635_v38  ;;  %vm832_vm14 = vcmp.eq.f32.partialorder %v6144_v32, inf  ;;  %v835_v9 = vand.u32 2147483648, %v6144_v32 }
  0x3f   :  { %v5203_v43 = vpop.eup %5202  ;;  %v843_v42 = vsel %vm841_vm3, %v842_v22, %v840_v6  ;;  %v1800_v59 = vsel %vm1799_vm4, %v6037_v36, %v1798_v58  ;;  %v6181_v11 = vadd.f32 1.0, %v1660_v57  ;;  %vm834_vm15 = vcmp.eq.f32.partialorder %v6144_v32, 0.0  ;;  %3004 = vadd.xlane.f32.xlu0 %v5779_v44  ;;  %3007 = vadd.xlane.f32.xlu1 %v5837_v61 }
  0x40   :  { %v5205_v16 = vpop.eup %5204  ;;  %v5000_v21 = vadd.f32 -1.0, %v843_v42  ;;  %v1803_v23 = vsel %vm1801_vm5, %v1802_v48, %v1800_v59  ;;  %v824_v24 = vmul.f32 %v5203_v43, %v6077_v0  ;;  %vm1792_vm2 = vcmp.eq.f32.partialorder %v6146_v34, inf }
  0x41   :  { %v1795_v29 = vand.u32 2147483648, %v6146_v34  ;;  %v5207_v22 = vpop.eup %5206  ;;  %v5064_v25 = vadd.f32 -1.0, %v1803_v23  ;;  %v1784_v26 = vmul.f32 %v5205_v16, %v6079_v1  ;;  %vm1794_vm3 = vcmp.eq.f32.partialorder %v6146_v34, 0.0 }
  0x42   :  { %5216 = vrsqrt.f32 %v6181_v11  ;;  %v1659_v36 = vmul.f32 100.0, %v1595_v63  ;;  %v5209_v27 = vpop.eup %5208  ;;  %v1337_v33 = vmul.f32 0.1, %v5000_v21  ;;  %v826_v48 = vsel %vm825_vm6, %v6077_v0, %v824_v24  ;;  %v2489_v63 = vld [vmem:[#allocation2 + $0x10] sm:$0xff]  ;;  %v2487_v24 = vld [vmem:[#allocation2] sm:$0xff] }
  0x43   :  { %v845_v28 = vmul.f32 %v5207_v22, %v6081_v2  ;;  %v6198_v39 = vadd.f32 1.0, %v699_v31  ;;  %v2297_v44 = vmul.f32 0.1, %v5064_v25  ;;  %v829_v61 = vsel %vm827_vm7, %v828_v41, %v826_v48  ;;  %3010 = vadd.xlane.f32.xlu0 %v5796_v49  ;;  %3013 = vadd.xlane.f32.xlu1 %v5997_v10 }
  0x44   :  { %v1786_v40 = vsel %vm1785_vm8, %v6079_v1, %v1784_v26  ;;  %v1805_v30 = vmul.f32 %v5209_v27, %v6097_v8  ;;  %vm860_vm4 = vcmp.eq.f32.partialorder %v6162_v56, inf  ;;  %v1401_v38 = vand.u32 2147483647, %v1337_v33 }
  0x45   :  { %v4998_v46 = vadd.f32 -1.0, %v829_v61  ;;  %v1789_v37 = vsel %vm1787_vm9, %v1788_v47, %v1786_v40  ;;  %v847_v53 = vsel %vm846_vm10, %v6081_v2, %v845_v28  ;;  %v2361_v0 = vand.u32 2147483647, %v2297_v44  ;;  %v2490_v28 = vld [vmem:[#allocation2 + $0x18] sm:$0xff] }
  0x46   :  { %v5062_v41 = vadd.f32 -1.0, %v1789_v37  ;;  %v850_v57 = vsel %vm848_vm11, %v849_v55, %v847_v53  ;;  %v1807_v58 = vsel %vm1806_vm12, %v6097_v8, %v1805_v30  ;;  %vm862_vm5 = vcmp.eq.f32.partialorder %v6162_v56, 0.0 }
  0x47   :  { %v1335_v1 = vmul.f32 0.1, %v4998_v46  ;;  %v5001_v47 = vadd.f32 -1.0, %v850_v57  ;;  %v1810_v6 = vsel %vm1808_vm13, %v1809_v7, %v1807_v58  ;;  %v5211_v49 = vpop.eup %5210  ;;  %v2425_v31 = vadd.f32 %v2361_v0, %v1401_v38  ;;  %3016 = vadd.xlane.f32.xlu0 %v5813_v54  ;;  %3019 = vadd.xlane.f32.xlu1 %v6010_v19  ;;  %v509_v54 = vld [vmem:[%s9935_s1 + $0x30] sm:$0xff]  ;;  %v511_v58 = vld [vmem:[%s9935_s1 + $0x40] sm:$0xff] }
  0x48   :  { %v2295_v10 = vmul.f32 0.1, %v5062_v41  ;;  %v5065_v43 = vadd.f32 -1.0, %v1810_v6  ;;  %5218 = vrsqrt.f32 %v6198_v39  ;;  %v5213_v2 = vpop.eup %5212  ;;  %v831_v59 = vmul.f32 %v5211_v49, %v6144_v32 }
  0x49   :  { %v1399_v55 = vand.u32 2147483647, %v1335_v1  ;;  %v1338_v42 = vmul.f32 0.1, %v5001_v47  ;;  %v863_v16 = vand.u32 2147483648, %v6162_v56  ;;  %v2745_v8 = vadd.f32 %v2489_v63, %v2425_v31  ;;  %v1471_v63 = vld [vmem:[%s9936_s2 + $0x40] sm:$0xff] }
  0x4a   :  { %v2359_v7 = vand.u32 2147483647, %v2295_v10  ;;  %v2298_v21 = vmul.f32 0.1, %v5065_v43  ;;  %v1791_v23 = vmul.f32 %v5213_v2, %v6146_v34  ;;  %v833_v25 = vsel %vm832_vm14, %v6144_v32, %v831_v59  ;;  %v5215_v19 = vpop.eup %5214  ;;  %v6254_v32 = vld [vmem:[%s9934_s0 + $0x30] sm:$0xff]  ;;  %v6289_v10 = vld [vmem:[%s9934_s0 + $0x40] sm:$0xff] }
  0x4b   :  { %v1402_v22 = vand.u32 2147483647, %v1338_v42  ;;  %vm1820_vm6 = vcmp.eq.f32.partialorder %v6181_v11, inf  ;;  %vm1822_vm7 = vcmp.eq.f32.partialorder %v6181_v11, 0.0  ;;  %2810 = vst.msk [vmem:[#allocation2 + $0x10] sm:$0xff] %vm113_vm1, %v2745_v8  ;;  %v836_v33 = vsel %vm834_vm15, %v835_v9, %v833_v25  ;;  %3022 = vadd.xlane.f32.xlu0 %v5834_v60  ;;  %3025 = vadd.xlane.f32.xlu1 %v6043_v45  ;;  %v1469_v60 = vld [vmem:[%s9936_s2 + $0x30] sm:$0xff] }
  0x4c   :  { %v2423_v26 = vadd.f32 %v2359_v7, %v1399_v55  ;;  %v2362_v27 = vand.u32 2147483647, %v2298_v21  ;;  %v1793_v48 = vsel %vm1792_vm2, %v6146_v34, %v1791_v23  ;;  %v4999_v44 = vadd.f32 -1.0, %v836_v33  ;;  %v2488_v43 = vld [vmem:[#allocation2 + $0x8] sm:$0xff]  ;;  %v513_v25 = vld [vmem:[%s9935_s1 + $0x50] sm:$0xff] }
  0x4d   :  { %v1796_v61 = vsel %vm1794_vm3, %v1795_v29, %v1793_v48  ;;  %v859_v40 = vmul.f32 %v5215_v19, %v6162_v56  ;;  %v6249_v30 = vadd.f32 1.0, %v1659_v36  ;;  %v573_v37 = vsub.f32 %v509_v54, %v6254_v32  ;;  %v2920_v54 = vld [vmem:[%s9937_s3 + $0x180] sm:$0xff]  ;;  %v2915_v19 = vld [vmem:[%s9937_s3 + $0x158] sm:$0xff] }
  0x4e   :  { %v2743_v9 = vadd.f32 %v2487_v24, %v2423_v26  ;;  %v2426_v38 = vadd.f32 %v2362_v27, %v1402_v22  ;;  %v5063_v46 = vadd.f32 -1.0, %v1796_v61  ;;  %v1336_v29 = vmul.f32 0.1, %v4999_v44 }
  0x4f   :  { %v5217_v34 = vpop.eup %5216  ;;  %v861_v36 = vsel %vm860_vm4, %v6162_v56, %v859_v40  ;;  %v1823_v53 = vand.u32 2147483648, %v6181_v11  ;;  %5220 = vrsqrt.f32 %v6249_v30  ;;  %vm853_vm8 = vcmp.eq.f32.partialorder %v6198_v39, inf  ;;  %3028 = vadd.xlane.f32.xlu0 %v5980_v3  ;;  %3031 = vadd.xlane.f32.xlu1 %v6056_v51  ;;  %v6322_v40 = vld [vmem:[%s9934_s0 + $0x50] sm:$0xff] }
  0x50   :  { %2808 = vst.msk [vmem:[#allocation2] sm:$0xff] %vm113_vm1, %v2743_v9  ;;  %v2746_v45 = vadd.f32 %v2490_v28, %v2426_v38  ;;  %v2296_v0 = vmul.f32 0.1, %v5063_v46  ;;  %v864_v41 = vsel %vm862_vm5, %v863_v16, %v861_v36  ;;  %v1819_v57 = vmul.f32 %v5217_v34, %v6181_v11  ;;  %v2492_v36 = vld [vmem:[#allocation2 + $0x28] sm:$0xff] }
  0x51   :  { %v1400_v1 = vand.u32 2147483647, %v1336_v29  ;;  %v5003_v47 = vadd.f32 -1.0, %v864_v41  ;;  %vm855_vm9 = vcmp.eq.f32.partialorder %v6198_v39, 0.0  ;;  %v637_v49 = vmul.f32 %v573_v37, %v573_v37  ;;  %v2919_v41 = vld [vmem:[%s9937_s3 + $0x178] sm:$0xff] }
  0x52   :  { %2811 = vst.msk [vmem:[#allocation2 + $0x18] sm:$0xff] %vm113_vm1, %v2746_v45  ;;  %v2360_v56 = vand.u32 2147483647, %v2296_v0  ;;  %v1821_v6 = vsel %vm1820_vm6, %v6181_v11, %v1819_v57  ;;  %v1533_v31 = vsub.f32 %v1469_v60, %v6254_v32  ;;  %v575_v51 = vsub.f32 %v511_v58, %v6289_v10  ;;  %v2913_v11 = vld [vmem:[%s9937_s3 + $0x148] sm:$0xff]  ;;  %v2924_v0 = vld [vmem:[%s9937_s3 + $0x1a0] sm:$0xff] }
  0x53   :  { %v1340_v2 = vmul.f32 0.1, %v5003_v47  ;;  %v1824_v3 = vsel %vm1822_vm7, %v1823_v53, %v1821_v6  ;;  %v1535_v55 = vsub.f32 %v1471_v63, %v6289_v10  ;;  %v856_v16 = vand.u32 2147483648, %v6198_v39  ;;  %3034 = vadd.xlane.f32.xlu0 %v6003_v14  ;;  %3037 = vadd.xlane.f32.xlu1 %v6086_v4  ;;  %v2922_v14 = vld [vmem:[%s9937_s3 + $0x190] sm:$0xff]  ;;  %v2917_v4 = vld [vmem:[%s9937_s3 + $0x168] sm:$0xff]  ;;  %v2923_v6 = vld [vmem:[%s9937_s3 + $0x198] sm:$0xff] }
  0x54   :  { %v2424_v42 = vadd.f32 %v2360_v56, %v1400_v1  ;;  %v5067_v59 = vadd.f32 -1.0, %v1824_v3  ;;  %v701_v8 = vmul.f32 100.0, %v637_v49  ;;  %v1597_v23 = vmul.f32 %v1533_v31, %v1533_v31  ;;  %v2921_v58 = vld [vmem:[%s9937_s3 + $0x188] sm:$0xff] }
  0x55   :  { %v5219_v7 = vpop.eup %5218  ;;  %v1404_v21 = vand.u32 2147483647, %v1340_v2  ;;  %v639_v24 = vmul.f32 %v575_v51, %v575_v51  ;;  %v1599_v22 = vmul.f32 %v1535_v55, %v1535_v55  ;;  %v577_v46 = vsub.f32 %v513_v25, %v6322_v40  ;;  %v2925_v3 = vld [vmem:[%s9937_s3 + $0x1a8] sm:$0xff] }
  0x56   :  { %v2744_v26 = vadd.f32 %v2488_v43, %v2424_v42  ;;  %v2300_v27 = vmul.f32 0.1, %v5067_v59  ;;  %v852_v33 = vmul.f32 %v5219_v7, %v6198_v39  ;;  %v6311_v48 = vadd.f32 1.0, %v701_v8 }
  0x57   :  { %v1661_v28 = vmul.f32 100.0, %v1597_v23  ;;  %v703_v44 = vmul.f32 100.0, %v639_v24  ;;  %v1663_v61 = vmul.f32 100.0, %v1599_v22  ;;  %v6331_v37 = vsel %vm2936_vm0, %v2913_v11, 0.0  ;;  %3040 = vadd.xlane.f32.xlu0 %v6035_v35  ;;  %3043 = vadd.xlane.f32.xlu1 %v6104_v12  ;;  %v1473_v35 = vld [vmem:[%s9936_s2 + $0x50] sm:$0xff]  ;;  %v4541_v2 = vld [vmem:[#allocation2] sm:$0xff] }
  0x58   :  { %2809 = vst.msk [vmem:[#allocation2 + $0x8] sm:$0xff] %vm113_vm1, %v2744_v26  ;;  %v2364_v9 = vand.u32 2147483647, %v2300_v27  ;;  %v854_v38 = vsel %vm853_vm8, %v6198_v39, %v852_v33  ;;  %5222 = vrsqrt.f32 %v6311_v48  ;;  %v6334_v34 = vsel %vm2936_vm0, %v2920_v54, 0.0  ;;  %v2926_v12 = vld [vmem:[%s9937_s3 + $0x1b0] sm:$0xff]  ;;  %v1475_v23 = vld [vmem:[%s9936_s2 + $0x60] sm:$0xff] }
  0x59   :  { %v6337_v29 = vsel %vm2936_vm0, %v2915_v19, 0.0  ;;  %v857_v53 = vsel %vm855_vm9, %v856_v16, %v854_v38  ;;  %v6344_v60 = vsel %vm2936_vm0, %v2922_v14, 0.0  ;;  %v6347_v45 = vsel %vm2936_vm0, %v2917_v4, 0.0  ;;  %v510_v24 = vld [vmem:[%s9935_s1 + $0x38] sm:$0xff]  ;;  %v6425_v19 = vld [vmem:[%s9934_s0 + $0x60] sm:$0xff] }
  0x5a   :  { %v2428_v39 = vadd.f32 %v2364_v9, %v1404_v21  ;;  %v6355_v57 = vadd.f32 1.0, %v1661_v28  ;;  %v5002_v63 = vadd.f32 -1.0, %v857_v53  ;;  %vm1813_vm10 = vcmp.eq.f32.partialorder %v6249_v30, inf  ;;  %v6432_v14 = vld [vmem:[%s9934_s0 + $0x38] sm:$0xff] }
  0x5b   :  { %v6367_v1 = vadd.f32 1.0, %v703_v44  ;;  %v6369_v47 = vadd.f32 1.0, %v1663_v61  ;;  %v1816_v31 = vand.u32 2147483648, %v6249_v30  ;;  %v641_v43 = vmul.f32 %v577_v46, %v577_v46  ;;  %3046 = vadd.xlane.f32.xlu0 %v6053_v50  ;;  %3049 = vadd.xlane.f32.xlu1 %v6110_v15  ;;  %v515_v50 = vld [vmem:[%s9935_s1 + $0x60] sm:$0xff]  ;;  %v1470_v44 = vld [vmem:[%s9936_s2 + $0x38] sm:$0xff] }
  0x5c   :  { %v5221_v56 = vpop.eup %5220  ;;  %v2748_v49 = vadd.f32 %v2492_v36, %v2428_v39  ;;  %5224 = vrsqrt.f32 %v6355_v57  ;;  %vm1815_vm11 = vcmp.eq.f32.partialorder %v6249_v30, 0.0  ;;  %v1537_v55 = vsub.f32 %v1473_v35, %v6322_v40  ;;  %v2491_v39 = vld [vmem:[#allocation2 + $0x20] sm:$0xff] }
  0x5d   :  { %v1812_v51 = vmul.f32 %v5221_v56, %v6249_v30  ;;  %5226 = vrsqrt.f32 %v6367_v1  ;;  %v6386_v42 = vsel %vm2936_vm0, %v2924_v0, 0.0  ;;  %v6389_v59 = vsel %vm2936_vm0, %v2919_v41, 0.0 }
  0x5e   :  { %v6392_v16 = vsel %vm2936_vm0, %v2926_v12, 0.0  ;;  %v6395_v8 = vsel %vm2936_vm0, %v2921_v58, 0.0  ;;  %2813 = vst.msk [vmem:[#allocation2 + $0x28] sm:$0xff] %vm113_vm1, %v2748_v49  ;;  %v6402_v15 = vsel %vm2936_vm0, %v2923_v6, 0.0  ;;  %v1339_v7 = vmul.f32 0.1, %v5002_v63 }
  0x5f   :  { %v1814_v21 = vsel %vm1813_vm10, %v6249_v30, %v1812_v51  ;;  %5228 = vrsqrt.f32 %v6369_v47  ;;  %v6415_v22 = vsel %vm113_vm1, %v4541_v2, 0.0  ;;  %v6418_v25 = vsel %vm2936_vm0, %v2925_v3, 0.0  ;;  %3052 = vadd.xlane.f32.xlu0 %v6059_v52  ;;  %3055 = vadd.xlane.f32.xlu1 %v6120_v18 }
  0x60   :  { %v1817_v11 = vsel %vm1815_vm11, %v1816_v31, %v1814_v21  ;;  %v705_v54 = vmul.f32 100.0, %v641_v43  ;;  %vm867_vm12 = vcmp.eq.f32.partialorder %v6311_v48, inf  ;;  %v1601_v27 = vmul.f32 %v1537_v55, %v1537_v55 }
  0x61   :  { %v5066_v26 = vadd.f32 -1.0, %v1817_v11  ;;  %v579_v33 = vsub.f32 %v515_v50, %v6425_v19  ;;  %vm869_vm13 = vcmp.eq.f32.partialorder %v6311_v48, 0.0  ;;  %v1539_v4 = vsub.f32 %v1475_v23, %v6425_v19 }
  0x62   :  { %v6437_v30 = vadd.f32 1.0, %v705_v54  ;;  %v574_v28 = vsub.f32 %v510_v24, %v6432_v14  ;;  %v1403_v61 = vand.u32 2147483647, %v1339_v7  ;;  %v1665_v38 = vmul.f32 100.0, %v1601_v27 }
  0x63   :  { %v2299_v9 = vmul.f32 0.1, %v5066_v26  ;;  %v643_v46 = vmul.f32 %v579_v33, %v579_v33  ;;  %v870_v52 = vand.u32 2147483648, %v6311_v48  ;;  %vm1827_vm14 = vcmp.eq.f32.partialorder %v6355_v57, inf  ;;  %3058 = vadd.xlane.f32.xlu0 %v6089_v5  ;;  %3061 = vadd.xlane.f32.xlu1 %v6331_v37 }
  0x64   :  { %vm1829_vm15 = vcmp.eq.f32.partialorder %v6355_v57, 0.0  ;;  %5230 = vrsqrt.f32 %v6437_v30  ;;  %v6448_v53 = vadd.f32 1.0, %v1665_v38  ;;  %v1534_v41 = vsub.f32 %v1470_v44, %v6432_v14 }
  0x65   :  { %v5223_v18 = vpop.eup %5222  ;;  %v2363_v36 = vand.u32 2147483647, %v2299_v9  ;;  %v707_v0 = vmul.f32 100.0, %v643_v46  ;;  %v1830_v12 = vand.u32 2147483648, %v6355_v57  ;;  %v1603_v58 = vmul.f32 %v1539_v4, %v1539_v4 }
  0x66   :  { %v866_v35 = vmul.f32 %v5223_v18, %v6311_v48  ;;  %v638_v63 = vmul.f32 %v574_v28, %v574_v28  ;;  %vm881_vm2 = vcmp.eq.f32.partialorder %v6367_v1, inf  ;;  %vm883_vm3 = vcmp.eq.f32.partialorder %v6367_v1, 0.0 }
  0x67   :  { %v2427_v56 = vadd.f32 %v2363_v36, %v1403_v61  ;;  %5232 = vrsqrt.f32 %v6448_v53  ;;  %v884_v37 = vand.u32 2147483648, %v6367_v1  ;;  %v6462_v6 = vadd.f32 1.0, %v707_v0  ;;  %3064 = vadd.xlane.f32.xlu0 %v6107_v13  ;;  %3067 = vadd.xlane.f32.xlu1 %v6337_v29  ;;  %v1477_v36 = vld [vmem:[%s9936_s2 + $0x70] sm:$0xff] }
  0x68   :  { %v868_v5 = vsel %vm867_vm12, %v6311_v48, %v866_v35  ;;  %v1667_v49 = vmul.f32 100.0, %v1603_v58  ;;  %vm1841_vm4 = vcmp.eq.f32.partialorder %v6369_v47, inf  ;;  %v702_v3 = vmul.f32 100.0, %v638_v63  ;;  %v2493_v35 = vld [vmem:[#allocation2 + $0x30] sm:$0xff] }
  0x69   :  { %v5225_v31 = vpop.eup %5224  ;;  %v2747_v43 = vadd.f32 %v2491_v39, %v2427_v56  ;;  %v871_v2 = vsel %vm869_vm13, %v870_v52, %v868_v5  ;;  %5234 = vrsqrt.f32 %v6462_v6  ;;  %v1598_v7 = vmul.f32 %v1534_v41, %v1534_v41  ;;  %v6520_v39 = vld [vmem:[%s9934_s0 + $0x70] sm:$0xff] }
  0x6a   :  { %v5227_v51 = vpop.eup %5226  ;;  %v5004_v55 = vadd.f32 -1.0, %v871_v2  ;;  %v1826_v50 = vmul.f32 %v5225_v31, %v6355_v57  ;;  %vm1843_vm5 = vcmp.eq.f32.partialorder %v6369_v47, 0.0  ;;  %v1844_v48 = vand.u32 2147483648, %v6369_v47 }
  0x6b   :  { %2812 = vst.msk [vmem:[#allocation2 + $0x20] sm:$0xff] %vm113_vm1, %v2747_v43  ;;  %v880_v21 = vmul.f32 %v5227_v51, %v6367_v1  ;;  %v6475_v23 = vadd.f32 1.0, %v1667_v49  ;;  %vm895_vm6 = vcmp.eq.f32.partialorder %v6437_v30, inf  ;;  %v6481_v11 = vadd.f32 1.0, %v702_v3  ;;  %3070 = vadd.xlane.f32.xlu0 %v6117_v17  ;;  %3073 = vadd.xlane.f32.xlu1 %v6347_v45  ;;  %v2495_v3 = vld [vmem:[#allocation2 + $0x40] sm:$0xff] }
  0x6c   :  { %v5229_v24 = vpop.eup %5228  ;;  %v1341_v13 = vmul.f32 0.1, %v5004_v55  ;;  %v1828_v29 = vsel %vm1827_vm14, %v6355_v57, %v1826_v50  ;;  %vm897_vm7 = vcmp.eq.f32.partialorder %v6437_v30, 0.0  ;;  %v1662_v57 = vmul.f32 100.0, %v1598_v7 }
  0x6d   :  { %v1831_v54 = vsel %vm1829_vm15, %v1830_v12, %v1828_v29  ;;  %v882_v26 = vsel %vm881_vm2, %v6367_v1, %v880_v21  ;;  %v1840_v27 = vmul.f32 %v5229_v24, %v6369_v47  ;;  %5236 = vrsqrt.f32 %v6475_v23  ;;  %v517_v1 = vld [vmem:[%s9935_s1 + $0x70] sm:$0xff]  ;;  %v1472_v21 = vld [vmem:[%s9936_s2 + $0x48] sm:$0xff] }
  0x6e   :  { %v5068_v33 = vadd.f32 -1.0, %v1831_v54  ;;  %v885_v4 = vsel %vm883_vm3, %v884_v37, %v882_v26  ;;  %v898_v61 = vand.u32 2147483648, %v6437_v30  ;;  %vm1855_vm8 = vcmp.eq.f32.partialorder %v6448_v53, inf  ;;  %v6554_v54 = vld [vmem:[%s9934_s0 + $0x48] sm:$0xff] }
  0x6f   :  { %v5006_v28 = vadd.f32 -1.0, %v885_v4  ;;  %v1842_v44 = vsel %vm1841_vm4, %v6369_v47, %v1840_v27  ;;  %v1405_v9 = vand.u32 2147483647, %v1341_v13  ;;  %5238 = vrsqrt.f32 %v6481_v11  ;;  %3076 = vadd.xlane.f32.xlu0 %v6123_v20  ;;  %3079 = vadd.xlane.f32.xlu1 %v6389_v59 }
  0x70   :  { %v2301_v17 = vmul.f32 0.1, %v5068_v33  ;;  %v1845_v45 = vsel %vm1843_vm5, %v1844_v48, %v1842_v44  ;;  %vm1857_vm9 = vcmp.eq.f32.partialorder %v6448_v53, 0.0  ;;  %v1858_v18 = vand.u32 2147483648, %v6448_v53 }
  0x71   :  { %v5231_v38 = vpop.eup %5230  ;;  %v1343_v46 = vmul.f32 0.1, %v5006_v28  ;;  %v5070_v52 = vadd.f32 -1.0, %v1845_v45  ;;  %vm909_vm10 = vcmp.eq.f32.partialorder %v6462_v6, inf  ;;  %v6515_v41 = vadd.f32 1.0, %v1662_v57 }
  0x72   :  { %v2365_v47 = vand.u32 2147483647, %v2301_v17  ;;  %v894_v0 = vmul.f32 %v5231_v38, %v6437_v30  ;;  %vm911_vm11 = vcmp.eq.f32.partialorder %v6462_v6, 0.0  ;;  %v581_v20 = vsub.f32 %v517_v1, %v6520_v39 }
  0x73   :  { %v1407_v12 = vand.u32 2147483647, %v1343_v46  ;;  %v2303_v58 = vmul.f32 0.1, %v5070_v52  ;;  %5240 = vrsqrt.f32 %v6515_v41  ;;  %v1541_v5 = vsub.f32 %v1477_v36, %v6520_v39  ;;  %3082 = vadd.xlane.f32.xlu0 %v6334_v34  ;;  %3085 = vadd.xlane.f32.xlu1 %v6395_v8  ;;  %v4542_v46 = vld [vmem:[#allocation2 + $0x8] sm:$0xff]  ;;  %v2497_v36 = vld [vmem:[#allocation2 + $0x50] sm:$0xff] }
  0x74   :  { %v5233_v59 = vpop.eup %5232  ;;  %v2429_v63 = vadd.f32 %v2365_v47, %v1405_v9  ;;  %v896_v56 = vsel %vm895_vm6, %v6437_v30, %v894_v0  ;;  %v912_v43 = vand.u32 2147483648, %v6462_v6  ;;  %vm1869_vm12 = vcmp.eq.f32.partialorder %v6475_v23, inf  ;;  %v512_v30 = vld [vmem:[%s9935_s1 + $0x48] sm:$0xff] }
  0x75   :  { %v2367_v37 = vand.u32 2147483647, %v2303_v58  ;;  %v899_v49 = vsel %vm897_vm7, %v898_v61, %v896_v56  ;;  %v1854_v31 = vmul.f32 %v5233_v59, %v6448_v53  ;;  %vm1871_vm13 = vcmp.eq.f32.partialorder %v6475_v23, 0.0  ;;  %v2927_v58 = vld [vmem:[%s9937_s3 + $0x1b8] sm:$0xff] }
  0x76   :  { %v2749_v2 = vadd.f32 %v2493_v35, %v2429_v63  ;;  %v5008_v51 = vadd.f32 -1.0, %v899_v49  ;;  %v5235_v55 = vpop.eup %5234  ;;  %v1872_v34 = vand.u32 2147483648, %v6475_v23  ;;  %v645_v8 = vmul.f32 %v581_v20, %v581_v20 }
  0x77   :  { %v2431_v50 = vadd.f32 %v2367_v37, %v1407_v12  ;;  %v1856_v7 = vsel %vm1855_vm8, %v6448_v53, %v1854_v31  ;;  %v908_v13 = vmul.f32 %v5235_v55, %v6462_v6  ;;  %v1605_v29 = vmul.f32 %v1541_v5, %v1541_v5  ;;  %3088 = vadd.xlane.f32.xlu0 %v6344_v60  ;;  %v4543_v55 = vld [vmem:[#allocation2 + $0x10] sm:$0xff] }
  0x78   :  { %2814 = vst.msk [vmem:[#allocation2 + $0x30] sm:$0xff] %vm113_vm1, %v2749_v2  ;;  %v1345_v48 = vmul.f32 0.1, %v5008_v51  ;;  %v1859_v24 = vsel %vm1857_vm9, %v1858_v18, %v1856_v7  ;;  %v709_v33 = vmul.f32 100.0, %v645_v8  ;;  %v576_v4 = vsub.f32 %v512_v30, %v6554_v54  ;;  %3091 = vadd.xlane.f32.xlu1 %v6402_v15  ;;  %v1479_v2 = vld [vmem:[%s9936_s2 + $0x80] sm:$0xff] }
  0x79   :  { %v2751_v26 = vadd.f32 %v2495_v3, %v2431_v50  ;;  %v5072_v27 = vadd.f32 -1.0, %v1859_v24  ;;  %v910_v28 = vsel %vm909_vm10, %v6462_v6, %v908_v13  ;;  %v1669_v44 = vmul.f32 100.0, %v1605_v29  ;;  %v6610_v8 = vld [vmem:[%s9934_s0 + $0x80] sm:$0xff]  ;;  %v4544_v13 = vld [vmem:[#allocation2 + $0x18] sm:$0xff] }
  0x7a   :  { %v5237_v57 = vpop.eup %5236  ;;  %v1409_v53 = vand.u32 2147483647, %v1345_v48  ;;  %v1536_v61 = vsub.f32 %v1472_v21, %v6554_v54  ;;  %v913_v17 = vsel %vm911_vm11, %v912_v43, %v910_v28  ;;  %v6567_v1 = vadd.f32 1.0, %v709_v33  ;;  %v519_v43 = vld [vmem:[%s9935_s1 + $0x80] sm:$0xff] }
  0x7b   :  { %2816 = vst.msk [vmem:[#allocation2 + $0x40] sm:$0xff] %vm113_vm1, %v2751_v26  ;;  %v2305_v9 = vmul.f32 0.1, %v5072_v27  ;;  %v1868_v45 = vmul.f32 %v5237_v57, %v6475_v23  ;;  %v5010_v60 = vadd.f32 -1.0, %v913_v17  ;;  %vm874_vm14 = vcmp.eq.f32.partialorder %v6481_v11, inf  ;;  %3094 = vadd.xlane.f32.xlu0 %v6386_v42 }
  0x7c   :  { %vm876_vm15 = vcmp.eq.f32.partialorder %v6481_v11, 0.0  ;;  %v6571_v15 = vadd.f32 1.0, %v1669_v44  ;;  %v5239_v38 = vpop.eup %5238  ;;  %v877_v6 = vand.u32 2147483648, %v6481_v11  ;;  %5242 = vrsqrt.f32 %v6567_v1  ;;  %3097 = vadd.xlane.f32.xlu1 %v6418_v25 }
  0x7d   :  { %v2369_v52 = vand.u32 2147483647, %v2305_v9  ;;  %v1870_v18 = vsel %vm1869_vm12, %v6475_v23, %v1868_v45  ;;  %v1347_v47 = vmul.f32 0.1, %v5010_v60  ;;  %v873_v35 = vmul.f32 %v5239_v38, %v6481_v11 }
  0x7e   :  { %v1873_v0 = vsel %vm1871_vm13, %v1872_v34, %v1870_v18  ;;  %v640_v12 = vmul.f32 %v576_v4, %v576_v4  ;;  %5244 = vrsqrt.f32 %v6571_v15  ;;  %v1600_v63 = vmul.f32 %v1536_v61, %v1536_v61  ;;  %v1474_v61 = vld [vmem:[%s9936_s2 + $0x58] sm:$0xff] }
  0x7f   :  { %v2433_v20 = vadd.f32 %v2369_v52, %v1409_v53  ;;  %v5074_v59 = vadd.f32 -1.0, %v1873_v0  ;;  %v4606_v42 = vsel %vm113_vm1, %v4542_v46, 0.0  ;;  %v875_v25 = vsel %vm874_vm14, %v6481_v11, %v873_v35  ;;  %3100 = vadd.xlane.f32.xlu0 %v6392_v16  ;;  %v2499_v16 = vld [vmem:[#allocation2 + $0x60] sm:$0xff]  ;;  %v6636_v52 = vld [vmem:[%s9934_s0 + $0x58] sm:$0xff] }
  0x80   :  { %vm1834_vm2 = vcmp.eq.f32.partialorder %v6515_v41, inf  ;;  %v1837_v23 = vand.u32 2147483648, %v6515_v41  ;;  %v5241_v56 = vpop.eup %5240  ;;  %v1411_v37 = vand.u32 2147483647, %v1347_v47  ;;  %v878_v31 = vsel %vm876_vm15, %v877_v6, %v875_v25  ;;  %v2494_v35 = vld [vmem:[#allocation2 + $0x38] sm:$0xff]  ;;  %v4545_v25 = vld [vmem:[#allocation2 + $0x20] sm:$0xff] }
  0x81   :  { %v2753_v5 = vadd.f32 %v2497_v36, %v2433_v20  ;;  %v2307_v49 = vmul.f32 0.1, %v5074_v59  ;;  %v3102_v3 = vsel %vm2936_vm0, %v2927_v58, 0.0  ;;  %v5005_v51 = vadd.f32 -1.0, %v878_v31 }
  0x82   :  { %v1833_v30 = vmul.f32 %v5241_v56, %v6515_v41  ;;  %vm1836_vm3 = vcmp.eq.f32.partialorder %v6515_v41, 0.0  ;;  %v4607_v11 = vadd.f32 %v4606_v42, %v6415_v22  ;;  %v704_v7 = vmul.f32 100.0, %v640_v12 }
  0x83   :  { %2818 = vst.msk [vmem:[#allocation2 + $0x50] sm:$0xff] %vm113_vm1, %v2753_v5  ;;  %v2371_v50 = vand.u32 2147483647, %v2307_v49  ;;  %v1664_v34 = vmul.f32 100.0, %v1600_v63  ;;  %v1342_v21 = vmul.f32 0.1, %v5005_v51  ;;  %v583_v24 = vsub.f32 %v519_v43, %v6610_v8  ;;  %3103 = vadd.xlane.f32.xlu0 %v3102_v3 }
  0x84   :  { %v1835_v48 = vsel %vm1834_vm2, %v6515_v41, %v1833_v30  ;;  %v1543_v22 = vsub.f32 %v1479_v2, %v6610_v8  ;;  %v6617_v27 = vadd.f32 1.0, %v704_v7  ;;  %v4608_v4 = vsel %vm113_vm1, %v4543_v55, 0.0  ;;  %v514_v41 = vld [vmem:[%s9935_s1 + $0x58] sm:$0xff]  ;;  %v521_v51 = vld [vmem:[%s9935_s1 + $0x90] sm:$0xff]  ;;  %v4546_v30 = vld [vmem:[#allocation2 + $0x28] sm:$0xff] }
  0x85   :  { %v2435_v29 = vadd.f32 %v2371_v50, %v1411_v37  ;;  %v1838_v26 = vsel %vm1836_vm3, %v1837_v23, %v1835_v48  ;;  %v6619_v33 = vadd.f32 1.0, %v1664_v34  ;;  %v647_v53 = vmul.f32 %v583_v24, %v583_v24  ;;  %v6667_v34 = vld [vmem:[%s9934_s0 + $0x90] sm:$0xff] }
  0x86   :  { %v5069_v57 = vadd.f32 -1.0, %v1838_v26  ;;  %v1607_v28 = vmul.f32 %v1543_v22, %v1543_v22  ;;  %5246 = vrsqrt.f32 %v6617_v27  ;;  %v4610_v9 = vsel %vm113_vm1, %v4544_v13, 0.0 }
  0x87   :  { %v2755_v44 = vadd.f32 %v2499_v16, %v2435_v29  ;;  %v1406_v17 = vand.u32 2147483647, %v1342_v21  ;;  %5248 = vrsqrt.f32 %v6619_v33  ;;  %v4609_v60 = vadd.f32 %v4608_v4, %v4607_v11 }
  0x88   :  { %v2302_v45 = vmul.f32 0.1, %v5069_v57  ;;  %vm923_vm4 = vcmp.eq.f32.partialorder %v6567_v1, inf  ;;  %v711_v38 = vmul.f32 100.0, %v647_v53  ;;  %v1671_v46 = vmul.f32 100.0, %v1607_v28 }
  0x89   :  { %2820 = vst.msk [vmem:[#allocation2 + $0x60] sm:$0xff] %vm113_vm1, %v2755_v44  ;;  %v5243_v18 = vpop.eup %5242  ;;  %v926_v36 = vand.u32 2147483648, %v6567_v1  ;;  %v578_v47 = vsub.f32 %v514_v41, %v6636_v52  ;;  %v1538_v0 = vsub.f32 %v1474_v61, %v6636_v52  ;;  %vm925_vm5 = vcmp.eq.f32.partialorder %v6567_v1, 0.0  ;;  %v2501_v44 = vld [vmem:[#allocation2 + $0x70] sm:$0xff] }
  0x8a   :  { %v2366_v6 = vand.u32 2147483647, %v2302_v45  ;;  %v922_v12 = vmul.f32 %v5243_v18, %v6567_v1  ;;  %v6643_v58 = vadd.f32 1.0, %v711_v38  ;;  %v6645_v20 = vadd.f32 1.0, %v1671_v46  ;;  %v1481_v18 = vld [vmem:[%s9936_s2 + $0x90] sm:$0xff] }
  0x8b   :  { %v5245_v59 = vpop.eup %5244  ;;  %vm1883_vm6 = vcmp.eq.f32.partialorder %v6571_v15, inf  ;;  %vm1885_vm7 = vcmp.eq.f32.partialorder %v6571_v15, 0.0  ;;  %v1886_v42 = vand.u32 2147483648, %v6571_v15  ;;  %v642_v5 = vmul.f32 %v578_v47, %v578_v47 }
  0x8c   :  { %v2430_v63 = vadd.f32 %v2366_v6, %v1406_v17  ;;  %v924_v23 = vsel %vm923_vm4, %v6567_v1, %v922_v12  ;;  %v1882_v56 = vmul.f32 %v5245_v59, %v6571_v15  ;;  %5250 = vrsqrt.f32 %v6643_v58  ;;  %v4547_v12 = vld [vmem:[#allocation2 + $0x30] sm:$0xff] }
  0x8d   :  { %v927_v49 = vsel %vm925_vm5, %v926_v36, %v924_v23  ;;  %v1602_v31 = vmul.f32 %v1538_v0, %v1538_v0  ;;  %v4611_v43 = vadd.f32 %v4610_v9, %v4609_v60  ;;  %5252 = vrsqrt.f32 %v6645_v20 }
  0x8e   :  { %v2750_v37 = vadd.f32 %v2494_v35, %v2430_v63  ;;  %v5012_v2 = vadd.f32 -1.0, %v927_v49  ;;  %v1884_v3 = vsel %vm1883_vm6, %v6571_v15, %v1882_v56  ;;  %v4612_v1 = vsel %vm113_vm1, %v4545_v25, 0.0 }
  0x8f   :  { %v1887_v55 = vsel %vm1885_vm7, %v1886_v42, %v1884_v3  ;;  %v706_v7 = vmul.f32 100.0, %v642_v5  ;;  %v1666_v16 = vmul.f32 100.0, %v1602_v31  ;;  %v585_v21 = vsub.f32 %v521_v51, %v6667_v34  ;;  %v4549_v51 = vld [vmem:[#allocation2 + $0x40] sm:$0xff] }
  0x90   :  { %2815 = vst.msk [vmem:[#allocation2 + $0x38] sm:$0xff] %vm113_vm1, %v2750_v37  ;;  %v1349_v11 = vmul.f32 0.1, %v5012_v2  ;;  %v5076_v50 = vadd.f32 -1.0, %v1887_v55  ;;  %v4614_v48 = vsel %vm113_vm1, %v4546_v30, 0.0  ;;  %v4613_v24 = vadd.f32 %v4612_v1, %v4611_v43  ;;  %v6707_v37 = vld [vmem:[%s9934_s0 + $0x68] sm:$0xff] }
  0x91   :  { %vm888_vm8 = vcmp.eq.f32.partialorder %v6617_v27, inf  ;;  %vm890_vm9 = vcmp.eq.f32.partialorder %v6617_v27, 0.0  ;;  %v891_v15 = vand.u32 2147483648, %v6617_v27  ;;  %vm1848_vm10 = vcmp.eq.f32.partialorder %v6619_v33, inf  ;;  %v1476_v55 = vld [vmem:[%s9936_s2 + $0x68] sm:$0xff] }
  0x92   :  { %v1413_v22 = vand.u32 2147483647, %v1349_v11  ;;  %v2309_v13 = vmul.f32 0.1, %v5076_v50  ;;  %v1851_v53 = vand.u32 2147483648, %v6619_v33  ;;  %v6677_v28 = vadd.f32 1.0, %v706_v7  ;;  %v2945_v11 = vpop.xlane.xlu1 %2944  ;;  %v2939_v50 = vpop.xlane.xlu0 %2938 }
  0x93   :  { %v5247_v29 = vpop.eup %5246  ;;  %vm1850_vm11 = vcmp.eq.f32.partialorder %v6619_v33, 0.0  ;;  %v6681_v61 = vadd.f32 1.0, %v1666_v16  ;;  %v649_v9 = vmul.f32 %v585_v21, %v585_v21  ;;  %v4615_v60 = vadd.f32 %v4614_v48, %v4613_v24  ;;  %v2496_v7 = vld [vmem:[#allocation2 + $0x48] sm:$0xff]  ;;  %v5582_v24 = vld [vmem:[%s9934_s0 + $0x10] sm:$0xff] }
  0x94   :  { %v5249_v26 = vpop.eup %5248  ;;  %v2373_v4 = vand.u32 2147483647, %v2309_v13  ;;  %v887_v57 = vmul.f32 %v5247_v29, %v6617_v27  ;;  %vm937_vm12 = vcmp.eq.f32.partialorder %v6643_v58, inf  ;;  %5254 = vrsqrt.f32 %v6677_v28  ;;  %v5583_v13 = vld [vmem:[%s9934_s0] sm:$0xff] }
  0x95   :  { %v1847_v41 = vmul.f32 %v5249_v26, %v6619_v33  ;;  %vm939_vm13 = vcmp.eq.f32.partialorder %v6643_v58, 0.0  ;;  %5256 = vrsqrt.f32 %v6681_v61  ;;  %v940_v42 = vand.u32 2147483648, %v6643_v58 }
  0x96   :  { %v2437_v17 = vadd.f32 %v2373_v4, %v1413_v22  ;;  %v889_v45 = vsel %vm888_vm8, %v6617_v27, %v887_v57  ;;  %v713_v27 = vmul.f32 100.0, %v649_v9  ;;  %v1545_v25 = vsub.f32 %v1481_v18, %v6667_v34 }
  0x97   :  { %v892_v38 = vsel %vm890_vm9, %v891_v15, %v889_v45  ;;  %v1849_v46 = vsel %vm1848_vm10, %v6619_v33, %v1847_v41  ;;  %v516_v33 = vld [vmem:[%s9935_s1 + $0x68] sm:$0xff]  ;;  %vm1897_vm14 = vcmp.eq.f32.partialorder %v6645_v20, inf  ;;  %vm1899_vm15 = vcmp.eq.f32.partialorder %v6645_v20, 0.0  ;;  %v4548_v15 = vld [vmem:[#allocation2 + $0x38] sm:$0xff]  ;;  %v2948_v45 = vpop.xlane.xlu1 %2947 }
  0x98   :  { %v2757_v6 = vadd.f32 %v2501_v44, %v2437_v17  ;;  %v5007_v36 = vadd.f32 -1.0, %v892_v38  ;;  %v1852_v47 = vsel %vm1850_vm11, %v1851_v53, %v1849_v46  ;;  %v1900_v5 = vand.u32 2147483648, %v6645_v20  ;;  %v2942_v38 = vpop.xlane.xlu0 %2941 }
  0x99   :  { %v5251_v0 = vpop.eup %5250  ;;  %v5071_v35 = vadd.f32 -1.0, %v1852_v47  ;;  %v580_v2 = vsub.f32 %v516_v33, %v6707_v37  ;;  %v4616_v3 = vsel %vm113_vm1, %v4547_v12, 0.0  ;;  %v6715_v1 = vadd.f32 1.0, %v713_v27  ;;  %v5584_v47 = vld [vmem:[%s9934_s0 + $0x18] sm:$0xff] }
  0x9a   :  { %2822 = vst.msk [vmem:[#allocation2 + $0x70] sm:$0xff] %vm113_vm1, %v2757_v6  ;;  %v1344_v59 = vmul.f32 0.1, %v5007_v36  ;;  %v936_v63 = vmul.f32 %v5251_v0, %v6643_v58  ;;  %v5253_v23 = vpop.eup %5252  ;;  %v1609_v48 = vmul.f32 %v1545_v25, %v1545_v25  ;;  %v3131_v22 = vsub.f32 %v2945_v11, %v5582_v24 }
  0x9b   :  { %v2304_v56 = vmul.f32 0.1, %v5071_v35  ;;  %v1896_v43 = vmul.f32 %v5253_v23, %v6645_v20  ;;  %v3129_v29 = vsub.f32 %v2939_v50, %v5583_v13  ;;  %v4617_v4 = vadd.f32 %v4616_v3, %v4615_v60  ;;  %v5585_v35 = vld [vmem:[%s9934_s0 + $0x8] sm:$0xff]  ;;  %v5587_v50 = vld [vmem:[%s9934_s0 + $0x20] sm:$0xff] }
  0x9c   :  { %v1408_v49 = vand.u32 2147483647, %v1344_v59  ;;  %v938_v31 = vsel %vm937_vm12, %v6643_v58, %v936_v63  ;;  %v6734_v57 = vsel %vm113_vm1, %v4549_v51, 0.0  ;;  %v644_v53 = vmul.f32 %v580_v2, %v580_v2 }
  0x9d   :  { %v2368_v30 = vand.u32 2147483647, %v2304_v56  ;;  %v941_v16 = vsel %vm939_vm13, %v940_v42, %v938_v31  ;;  %v1898_v21 = vsel %vm1897_vm14, %v6645_v20, %v1896_v43  ;;  %v1540_v44 = vsub.f32 %v1476_v55, %v6707_v37  ;;  %v5586_v55 = vld [vmem:[%s9934_s0 + $0x28] sm:$0xff] }
  0x9e   :  { %v1901_v58 = vsel %vm1899_vm15, %v1900_v5, %v1898_v21  ;;  %v3195_v41 = vmul.f32 %v3131_v22, %v3131_v22  ;;  %v3193_v9 = vmul.f32 %v3129_v29, %v3129_v29  ;;  %5258 = vrsqrt.f32 %v6715_v1  ;;  %v2954_v5 = vpop.xlane.xlu1 %2953 }
  0x9f   :  { %v2432_v26 = vadd.f32 %v2368_v30, %v1408_v49  ;;  %v4618_v46 = vsel %vm113_vm1, %v4548_v15, 0.0  ;;  %v5014_v18 = vadd.f32 -1.0, %v941_v16  ;;  %v5078_v6 = vadd.f32 -1.0, %v1901_v58  ;;  %v2951_v49 = vpop.xlane.xlu0 %2950 }
  0xa0   :  { %v1673_v20 = vmul.f32 100.0, %v1609_v48  ;;  %v3259_v36 = vmul.f32 100.0, %v3195_v41  ;;  %v3257_v60 = vmul.f32 100.0, %v3193_v9  ;;  %v3132_v0 = vsub.f32 %v2948_v45, %v5584_v47 }
  0xa1   :  { %v2752_v17 = vadd.f32 %v2496_v7, %v2432_v26  ;;  %v3130_v27 = vsub.f32 %v2942_v38, %v5585_v35  ;;  %vm902_vm2 = vcmp.eq.f32.partialorder %v6677_v28, inf  ;;  %v905_v33 = vand.u32 2147483648, %v6677_v28  ;;  %v5255_v59 = vpop.eup %5254  ;;  %v523_v38 = vld [vmem:[%s9935_s1 + $0xa0] sm:$0xff] }
  0xa2   :  { %vm1862_vm3 = vcmp.eq.f32.partialorder %v6681_v61, inf  ;;  %v708_v12 = vmul.f32 100.0, %v644_v53  ;;  %v6749_v63 = vadd.f32 1.0, %v3259_v36  ;;  %v6751_v42 = vadd.f32 1.0, %v3257_v60  ;;  %v5257_v56 = vpop.eup %5256 }
  0xa3   :  { %2817 = vst.msk [vmem:[#allocation2 + $0x48] sm:$0xff] %vm113_vm1, %v2752_v17  ;;  %v3196_v25 = vmul.f32 %v3132_v0, %v3132_v0  ;;  %v3194_v23 = vmul.f32 %v3130_v27, %v3130_v27  ;;  %vm904_vm4 = vcmp.eq.f32.partialorder %v6677_v28, 0.0  ;;  %vm1864_vm5 = vcmp.eq.f32.partialorder %v6681_v61, 0.0  ;;  %v2957_v15 = vpop.xlane.xlu0 %2956  ;;  %v6797_v0 = vld [vmem:[%s9934_s0 + $0xa0] sm:$0xff]  ;;  %v2960_v27 = vpop.xlane.xlu1 %2959 }
  0xa4   :  { %v4619_v31 = vadd.f32 %v4618_v46, %v4617_v4  ;;  %v1351_v43 = vmul.f32 0.1, %v5014_v18  ;;  %v2311_v2 = vmul.f32 0.1, %v5078_v6  ;;  %v6755_v3 = vadd.f32 1.0, %v1673_v20 }
  0xa5   :  { %5260 = vrsqrt.f32 %v6749_v63  ;;  %v3260_v51 = vmul.f32 100.0, %v3196_v25  ;;  %v3258_v30 = vmul.f32 100.0, %v3194_v23  ;;  %v3134_v11 = vsub.f32 %v2954_v5, %v5586_v55 }
  0xa6   :  { %5262 = vrsqrt.f32 %v6751_v42  ;;  %v3133_v7 = vsub.f32 %v2951_v49, %v5587_v50  ;;  %v901_v16 = vmul.f32 %v5255_v59, %v6677_v28  ;;  %v6766_v21 = vadd.f32 1.0, %v708_v12  ;;  %v2503_v12 = vld [vmem:[#allocation2 + $0x80] sm:$0xff] }
  0xa7   :  { %v6768_v48 = vadd.f32 1.0, %v3260_v51  ;;  %v6770_v24 = vadd.f32 1.0, %v3258_v30  ;;  %v3198_v22 = vmul.f32 %v3134_v11, %v3134_v11  ;;  %v1861_v13 = vmul.f32 %v5257_v56, %v6681_v61  ;;  %v2963_v36 = vpop.xlane.xlu0 %2962 }
  0xa8   :  { %v3197_v29 = vmul.f32 %v3133_v7, %v3133_v7  ;;  %v1415_v26 = vand.u32 2147483647, %v1351_v43  ;;  %v2375_v58 = vand.u32 2147483647, %v2311_v2  ;;  %5264 = vrsqrt.f32 %v6755_v3  ;;  %v2966_v7 = vpop.xlane.xlu1 %2965 }
  0xa9   :  { %5266 = vrsqrt.f32 %v6768_v48  ;;  %v3262_v4 = vmul.f32 100.0, %v3198_v22  ;;  %v3135_v53 = vsub.f32 %v2957_v15, %v6254_v32  ;;  %v1604_v41 = vmul.f32 %v1540_v44, %v1540_v44 }
  0xaa   :  { %5268 = vrsqrt.f32 %v6770_v24  ;;  %v3261_v9 = vmul.f32 100.0, %v3197_v29  ;;  %v1865_v17 = vand.u32 2147483648, %v6681_v61  ;;  %v954_v45 = vand.u32 2147483648, %v6715_v1 }
  0xab   :  { %v6782_v46 = vadd.f32 1.0, %v3262_v4  ;;  %v3199_v18 = vmul.f32 %v3135_v53, %v3135_v53  ;;  %v903_v6 = vsel %vm902_vm2, %v6677_v28, %v901_v16  ;;  %v1863_v32 = vsel %vm1862_vm3, %v6681_v61, %v1861_v13  ;;  %v5259_v44 = vpop.eup %5258 }
  0xac   :  { %v6790_v20 = vadd.f32 1.0, %v3261_v9  ;;  %v4621_v60 = vadd.f32 %v6734_v57, %v4619_v31  ;;  %v2439_v47 = vadd.f32 %v2375_v58, %v1415_v26  ;;  %5270 = vrsqrt.f32 %v6766_v21  ;;  %v2969_v31 = vpop.xlane.xlu0 %2968 }
  0xad   :  { %5272 = vrsqrt.f32 %v6782_v46  ;;  %v3137_v35 = vsub.f32 %v2963_v36, %v6289_v10  ;;  %v6801_v59 = vmul.f32 100.0, %v1604_v41  ;;  %v6804_v25 = vsub.f32 %v523_v38, %v6797_v0 }
  0xae   :  { %5274 = vrsqrt.f32 %v6790_v20  ;;  %v906_v57 = vsel %vm904_vm4, %v905_v33, %v903_v6  ;;  %v1866_v23 = vsel %vm1864_vm5, %v1865_v17, %v1863_v32  ;;  %v1914_v56 = vand.u32 2147483648, %v6755_v3  ;;  %v4550_v33 = vld [vmem:[#allocation2 + $0x48] sm:$0xff] }
  0xaf   :  { %vm3387_vm6 = vcmp.eq.f32.partialorder %v6751_v42, inf  ;;  %vm3389_vm7 = vcmp.eq.f32.partialorder %v6751_v42, 0.0  ;;  %v3263_v10 = vmul.f32 100.0, %v3199_v18  ;;  %v6817_v5 = vmul.f32 %v5259_v44, %v6715_v1 }
  0xb0   :  { %v3390_v49 = vand.u32 2147483648, %v6751_v42  ;;  %vm3401_vm8 = vcmp.eq.f32.partialorder %v6749_v63, inf  ;;  %v3136_v28 = vsub.f32 %v2960_v27, %v6432_v14  ;;  %v2759_v61 = vadd.f32 %v2503_v12, %v2439_v47 }
  0xb1   :  { %vm3394_vm9 = vcmp.eq.f32.partialorder %v6770_v24, inf  ;;  %v3201_v43 = vmul.f32 %v3137_v35, %v3137_v35  ;;  %vm3403_vm10 = vcmp.eq.f32.partialorder %v6749_v63, 0.0  ;;  %v3404_v2 = vand.u32 2147483648, %v6749_v63 }
  0xb2   :  { %v5261_v51 = vpop.eup %5260  ;;  %vm3396_vm11 = vcmp.eq.f32.partialorder %v6770_v24, 0.0  ;;  %v3397_v30 = vand.u32 2147483648, %v6770_v24  ;;  %vm3408_vm12 = vcmp.eq.f32.partialorder %v6768_v48, inf  ;;  %vm3410_vm13 = vcmp.eq.f32.partialorder %v6768_v48, 0.0  ;;  %2824 = vst.msk [vmem:[#allocation2 + $0x80] sm:$0xff] %vm113_vm1, %v2759_v61 }
  0xb3   :  { %v5263_v14 = vpop.eup %5262  ;;  %v6830_v55 = vadd.f32 1.0, %v3263_v10  ;;  %v3411_v11 = vand.u32 2147483648, %v6768_v48  ;;  %v3400_v50 = vmul.f32 %v5261_v51, %v6749_v63  ;;  %v4622_v16 = vsel %vm113_vm1, %v4550_v33, 0.0 }
  0xb4   :  { %v3386_v22 = vmul.f32 %v5263_v14, %v6751_v42  ;;  %v2975_v13 = vpop.xlane.xlu0 %2974  ;;  %vm3422_vm14 = vcmp.eq.f32.partialorder %v6782_v46, inf  ;;  %v3200_v29 = vmul.f32 %v3136_v28, %v3136_v28  ;;  %v3138_v15 = vsub.f32 %v2966_v7, %v6554_v54 }
  0xb5   :  { %v6838_v26 = vpop.eup %5264  ;;  %v3265_v58 = vmul.f32 100.0, %v3201_v43  ;;  %vm3415_vm15 = vcmp.eq.f32.partialorder %v6790_v20, inf  ;;  %v3418_v4 = vand.u32 2147483648, %v6790_v20  ;;  %v3425_v53 = vand.u32 2147483648, %v6782_v46 }
  0xb6   :  { %v5267_v41 = vpop.eup %5266  ;;  %v3388_v9 = vsel %vm3387_vm6, %v6751_v42, %v3386_v22  ;;  %v3402_v17 = vsel %vm3401_vm8, %v6749_v63, %v3400_v50  ;;  %v3139_v54 = vsub.f32 %v2969_v31, %v6322_v40  ;;  %vm3417_vm2 = vcmp.eq.f32.partialorder %v6790_v20, 0.0 }
  0xb7   :  { %v6851_v38 = vadd.f32 %v4622_v16, %v4621_v60  ;;  %v5269_v18 = vpop.eup %5268  ;;  %v3391_v6 = vsel %vm3389_vm7, %v3390_v49, %v3388_v9  ;;  %5276 = vrsqrt.f32 %v6830_v55  ;;  %v3407_v32 = vmul.f32 %v5267_v41, %v6768_v48 }
  0xb8   :  { %vm3424_vm3 = vcmp.eq.f32.partialorder %v6782_v46, 0.0  ;;  %v5009_v44 = vadd.f32 -1.0, %v906_v57  ;;  %v5126_v36 = vadd.f32 -1.0, %v3391_v6  ;;  %v3393_v47 = vmul.f32 %v5269_v18, %v6770_v24  ;;  %v2981_v10 = vpop.xlane.xlu0 %2980 }
  0xb9   :  { %v3264_v35 = vmul.f32 100.0, %v3200_v29  ;;  %v3202_v40 = vmul.f32 %v3138_v15, %v3138_v15  ;;  %vm951_vm4 = vcmp.eq.f32.partialorder %v6715_v1, inf  ;;  %v6860_v60 = vpop.eup %5270  ;;  %v3409_v42 = vsel %vm3408_vm12, %v6768_v48, %v3407_v32 }
  0xba   :  { %v6865_v27 = vadd.f32 1.0, %v3265_v58  ;;  %v3405_v12 = vsel %vm3403_vm10, %v3404_v2, %v3402_v17  ;;  %v5073_v57 = vadd.f32 -1.0, %v1866_v23  ;;  %vm953_vm5 = vcmp.eq.f32.partialorder %v6715_v1, 0.0  ;;  %v5273_v49 = vpop.eup %5272 }
  0xbb   :  { %v3897_v31 = vmul.f32 0.1, %v5126_v36  ;;  %v3395_v28 = vsel %vm3394_vm9, %v6770_v24, %v3393_v47  ;;  %v3412_v33 = vsel %vm3410_vm13, %v3411_v11, %v3409_v42  ;;  %v3203_v61 = vmul.f32 %v3139_v54, %v3139_v54  ;;  %v5275_v43 = vpop.eup %5274 }
  0xbc   :  { %v3398_v51 = vsel %vm3396_vm11, %v3397_v30, %v3395_v28  ;;  %v5129_v63 = vadd.f32 -1.0, %v3412_v33  ;;  %v3421_v2 = vmul.f32 %v5273_v49, %v6782_v46  ;;  %v1346_v23 = vmul.f32 0.1, %v5009_v44  ;;  %v2987_v17 = vpop.xlane.xlu0 %2986  ;;  %v2972_v44 = vpop.xlane.xlu1 %2971 }
  0xbd   :  { %v3961_v14 = vand.u32 2147483647, %v3897_v31  ;;  %v5127_v50 = vadd.f32 -1.0, %v3398_v51  ;;  %v5128_v7 = vadd.f32 -1.0, %v3405_v12  ;;  %v3414_v16 = vmul.f32 %v5275_v43, %v6790_v20 }
  0xbe   :  { %vm1911_vm6 = vcmp.eq.f32.partialorder %v6755_v3, inf  ;;  %v3900_v22 = vmul.f32 0.1, %v5129_v63  ;;  %v3141_v48 = vsub.f32 %v2975_v13, %v6425_v19  ;;  %v3423_v11 = vsel %vm3422_vm14, %v6782_v46, %v3421_v2 }
  0xbf   :  { %v3266_v24 = vmul.f32 100.0, %v3202_v40  ;;  %vm1913_vm7 = vcmp.eq.f32.partialorder %v6755_v3, 0.0  ;;  %4217 = vrot.lane.b32.xlu1 %v3961_v14, %s5633_s23  ;;  %v3898_v30 = vmul.f32 0.1, %v5127_v50  ;;  %v3267_v29 = vmul.f32 100.0, %v3203_v61 }
  0xc0   :  { %v3416_v15 = vsel %vm3415_vm15, %v6790_v20, %v3414_v16  ;;  %v2306_v58 = vmul.f32 0.1, %v5073_v57  ;;  %v3964_v41 = vand.u32 2147483647, %v3900_v22  ;;  %v6891_v13 = vadd.f32 1.0, %v3264_v35  ;;  %v2498_v35 = vld [vmem:[#allocation2 + $0x58] sm:$0xff]  ;;  %v2993_v28 = vpop.xlane.xlu0 %2992 }
  0xc1   :  { %v3419_v19 = vsel %vm3417_vm2, %v3418_v4, %v3416_v15  ;;  %v3143_v9 = vsub.f32 %v2981_v10, %v6520_v39  ;;  %v3962_v54 = vand.u32 2147483647, %v3898_v30  ;;  %v3899_v18 = vmul.f32 0.1, %v5128_v7 }
  0xc2   :  { %v5130_v6 = vadd.f32 -1.0, %v3419_v19  ;;  %v3426_v32 = vsel %vm3424_vm3, %v3425_v53, %v3423_v11  ;;  %v3205_v36 = vmul.f32 %v3141_v48, %v3141_v48  ;;  %v6896_v47 = vadd.f32 1.0, %v3266_v24  ;;  %v518_v19 = vld [vmem:[%s9935_s1 + $0x78] sm:$0xff] }
  0xc3   :  { %v1410_v40 = vand.u32 2147483647, %v1346_v23  ;;  %v3140_v42 = vsub.f32 %v2972_v44, %v6636_v52  ;;  %4219 = vrot.lane.b32.xlu0 %v3962_v54, %s5633_s23  ;;  %4223 = vrot.lane.b32.xlu1 %v3964_v41, %s5633_s23  ;;  %5278 = vrsqrt.f32 %v6865_v27  ;;  %v6902_v39 = vadd.f32 1.0, %v3267_v29  ;;  %v2505_v44 = vld [vmem:[#allocation2 + $0x90] sm:$0xff] }
  0xc4   :  { %v3145_v20 = vsub.f32 %v2987_v17, %v6610_v8  ;;  %v2370_v4 = vand.u32 2147483647, %v2306_v58  ;;  %v5131_v46 = vadd.f32 -1.0, %v3426_v32  ;;  %5280 = vrsqrt.f32 %v6891_v13  ;;  %v6910_v12 = vpop.eup %5276  ;;  %v2978_v58 = vpop.xlane.xlu1 %2977 }
  0xc5   :  { %v3207_v53 = vmul.f32 %v3143_v9, %v3143_v9  ;;  %v952_v52 = vsel %vm951_vm4, %v6715_v1, %v6817_v5  ;;  %v3963_v10 = vand.u32 2147483647, %v3899_v18  ;;  %v3901_v57 = vmul.f32 0.1, %v5130_v6  ;;  %v4551_v18 = vld [vmem:[#allocation2 + $0x50] sm:$0xff] }
  0xc6   :  { %v2434_v49 = vadd.f32 %v2370_v4, %v1410_v40  ;;  %v955_v8 = vsel %vm953_vm5, %v954_v45, %v952_v52  ;;  %v3269_v31 = vmul.f32 100.0, %v3205_v36  ;;  %5282 = vrsqrt.f32 %v6896_v47  ;;  %v1483_v45 = vld [vmem:[%s9936_s2 + $0xa0] sm:$0xff]  ;;  %v6967_v40 = vld [vmem:[%s9934_s0 + $0x78] sm:$0xff] }
  0xc7   :  { %v5016_v33 = vadd.f32 -1.0, %v955_v8  ;;  %v1910_v61 = vmul.f32 %v6838_v26, %v6755_v3  ;;  %4221 = vrot.lane.b32.xlu0 %v3963_v10, %s5633_s23  ;;  %5284 = vrsqrt.f32 %v6902_v39  ;;  %v3209_v5 = vmul.f32 %v3145_v20, %v3145_v20 }
  0xc8   :  { %v2754_v43 = vadd.f32 %v2498_v35, %v2434_v49  ;;  %v3204_v51 = vmul.f32 %v3140_v42, %v3140_v42  ;;  %v3902_v63 = vmul.f32 0.1, %v5131_v46  ;;  %v3271_v2 = vmul.f32 100.0, %v3207_v53 }
  0xc9   :  { %v1353_v23 = vmul.f32 0.1, %v5016_v33  ;;  %v1912_v1 = vsel %vm1911_vm6, %v6755_v3, %v1910_v61  ;;  %v3965_v14 = vand.u32 2147483647, %v3901_v57  ;;  %v3147_v50 = vsub.f32 %v2993_v28, %v6667_v34  ;;  %v2999_v61 = vpop.xlane.xlu0 %2998 }
  0xca   :  { %2819 = vst.msk [vmem:[#allocation2 + $0x58] sm:$0xff] %vm113_vm1, %v2754_v43  ;;  %v1915_v26 = vsel %vm1913_vm7, %v1914_v56, %v1912_v1  ;;  %v915_v7 = vmul.f32 %v6860_v60, %v6766_v21  ;;  %v6935_v16 = vadd.f32 1.0, %v3269_v31  ;;  %vm916_vm8 = vcmp.eq.f32.partialorder %v6766_v21, inf }
  0xcb   :  { %v5080_v22 = vadd.f32 -1.0, %v1915_v26  ;;  %v6939_v48 = vadd.f32 1.0, %v6801_v59  ;;  %4225 = vrot.lane.b32.xlu0 %v3965_v14, %s5633_s23  ;;  %v3273_v11 = vmul.f32 100.0, %v3209_v5  ;;  %v3268_v24 = vmul.f32 100.0, %v3204_v51  ;;  %v525_v51 = vld [vmem:[%s9935_s1 + $0xb0] sm:$0xff] }
  0xcc   :  { %v651_v3 = vmul.f32 %v6804_v25, %v6804_v25  ;;  %v1547_v34 = vsub.f32 %v1483_v45, %v6797_v0  ;;  %v6945_v56 = vadd.f32 1.0, %v3271_v2  ;;  %v1417_v60 = vand.u32 2147483647, %v1353_v23  ;;  %v1478_v25 = vld [vmem:[%s9936_s2 + $0x78] sm:$0xff]  ;;  %v520_v2 = vld [vmem:[%s9935_s1 + $0x88] sm:$0xff]  ;;  %v461_v45 = vld [vmem:[%s9934_s0 + $0xb0] sm:$0xff] }
  0xcd   :  { %v2313_v30 = vmul.f32 0.1, %v5080_v22  ;;  %5286 = vrsqrt.f32 %v6939_v48  ;;  %v3966_v29 = vand.u32 2147483647, %v3902_v63  ;;  %v3211_v15 = vmul.f32 %v3147_v50, %v3147_v50  ;;  %v1485_v63 = vld [vmem:[%s9936_s2 + $0xb0] sm:$0xff]  ;;  %v7011_v22 = vld [vmem:[%s9934_s0 + $0x88] sm:$0xff] }
  0xce   :  { %v917_v59 = vsel %vm916_vm8, %v6766_v21, %v915_v7  ;;  %v919_v41 = vand.u32 2147483648, %v6766_v21  ;;  %vm918_vm9 = vcmp.eq.f32.partialorder %v6766_v21, 0.0  ;;  %v3142_v17 = vsub.f32 %v2978_v58, %v6707_v37 }
  0xcf   :  { %v2377_v9 = vand.u32 2147483647, %v2313_v30  ;;  %v715_v54 = vmul.f32 100.0, %v651_v3  ;;  %5288 = vrsqrt.f32 %v6935_v16  ;;  %4227 = vrot.lane.b32.xlu0 %v3966_v29, %s5633_s23  ;;  %v6960_v6 = vadd.f32 1.0, %v3273_v11 }
  0xd0   :  { %v6962_v32 = vadd.f32 1.0, %v3268_v24  ;;  %v1611_v36 = vmul.f32 %v1547_v34, %v1547_v34  ;;  %v6969_v42 = vpop.eup %5278  ;;  %v582_v4 = vsub.f32 %v518_v19, %v6967_v40  ;;  %v1542_v46 = vsub.f32 %v1478_v25, %v6967_v40  ;;  %v4553_v34 = vld [vmem:[#allocation2 + $0x60] sm:$0xff] }
  0xd1   :  { %v2441_v37 = vadd.f32 %v2377_v9, %v1417_v60  ;;  %v6971_v20 = vadd.f32 1.0, %v715_v54  ;;  %v6975_v53 = vpop.eup %5280  ;;  %5290 = vrsqrt.f32 %v6945_v56  ;;  %v3275_v35 = vmul.f32 100.0, %v3211_v15  ;;  %v4552_v14 = vld [vmem:[#allocation2 + $0x58] sm:$0xff] }
  0xd2   :  { %v920_v52 = vsel %vm918_vm9, %v919_v41, %v917_v59  ;;  %v1675_v10 = vmul.f32 100.0, %v1611_v36  ;;  %v4624_v57 = vsel %vm113_vm1, %v4551_v18, 0.0  ;;  %v3206_v8 = vmul.f32 %v3142_v17, %v3142_v17 }
  0xd3   :  { %v2761_v49 = vadd.f32 %v2505_v44, %v2441_v37  ;;  %5292 = vrsqrt.f32 %v6971_v20  ;;  %v6982_v31 = vpop.eup %5282  ;;  %v5011_v21 = vadd.f32 -1.0, %v920_v52  ;;  %v646_v5 = vmul.f32 %v582_v4, %v582_v4 }
  0xd4   :  { %5294 = vrsqrt.f32 %v6960_v6  ;;  %v6985_v28 = vadd.f32 1.0, %v1675_v10  ;;  %v6987_v33 = vpop.eup %5284  ;;  %v1606_v43 = vmul.f32 %v1542_v46, %v1542_v46  ;;  %v4625_v23 = vadd.f32 %v4624_v57, %v6851_v38  ;;  %v3005_v46 = vpop.xlane.xlu0 %3004 }
  0xd5   :  { %5296 = vrsqrt.f32 %v6962_v32  ;;  %2826 = vst.msk [vmem:[#allocation2 + $0x90] sm:$0xff] %vm113_vm1, %v2761_v49  ;;  %v7001_v1 = vadd.f32 1.0, %v3275_v35  ;;  %vm1876_vm10 = vcmp.eq.f32.partialorder %v6939_v48, inf  ;;  %v3270_v26 = vmul.f32 100.0, %v3206_v8 }
  0xd6   :  { %5298 = vrsqrt.f32 %v6985_v28  ;;  %v710_v50 = vmul.f32 100.0, %v646_v5  ;;  %v1670_v7 = vmul.f32 100.0, %v1606_v43  ;;  %v3149_v38 = vsub.f32 %v2999_v61, %v6797_v0  ;;  %v2984_v5 = vpop.xlane.xlu1 %2983 }
  0xd7   :  { %9976 = vst [vmem:[#allocation10_spill] sm:$0xff] %v7001_v1  ;;  %v589_v11 = vsub.f32 %v525_v51, %v461_v45  ;;  %v1549_v24 = vsub.f32 %v1485_v63, %v461_v45  ;;  %v584_v3 = vsub.f32 %v520_v2, %v7011_v22  ;;  %v1348_v60 = vmul.f32 0.1, %v5011_v21  ;;  %v1480_v51 = vld [vmem:[%s9936_s2 + $0x88] sm:$0xff] }
  0xd8   :  { %vm1878_vm11 = vcmp.eq.f32.partialorder %v6939_v48, 0.0  ;;  %v7016_v30 = vadd.f32 1.0, %v710_v50  ;;  %v7018_v29 = vadd.f32 1.0, %v1670_v7  ;;  %v4626_v58 = vsel %vm113_vm1, %v4552_v14, 0.0 }
  0xd9   :  { %v1879_v59 = vand.u32 2147483648, %v6939_v48  ;;  %v653_v41 = vmul.f32 %v589_v11, %v589_v11  ;;  %v1613_v19 = vmul.f32 %v1549_v24, %v1549_v24  ;;  %v7023_v25 = vadd.f32 1.0, %v3270_v26 }
  0xda   :  { %v5287_v15 = vpop.eup %5286  ;;  %5300 = vrsqrt.f32 %v7016_v30  ;;  %v648_v9 = vmul.f32 %v584_v3, %v584_v3  ;;  %v7027_v17 = vsel %vm113_vm1, %v4553_v34, 0.0  ;;  %v3213_v54 = vmul.f32 %v3149_v38, %v3149_v38 }
  0xdb   :  { %v1875_v0 = vmul.f32 %v5287_v15, %v6939_v48  ;;  %5302 = vrsqrt.f32 %v7018_v29  ;;  %v7032_v44 = vadd.f32 %v4626_v58, %v4625_v23  ;;  %v1412_v36 = vand.u32 2147483647, %v1348_v60 }
  0xdc   :  { %v7030_v18 = vpop.eup %5288  ;;  %5304 = vrsqrt.f32 %v7001_v1  ;;  %vm965_vm12 = vcmp.eq.f32.partialorder %v6971_v20, inf  ;;  %v717_v35 = vmul.f32 100.0, %v653_v41  ;;  %v1677_v52 = vmul.f32 100.0, %v1613_v19 }
  0xdd   :  { %v1877_v37 = vsel %vm1876_vm10, %v6939_v48, %v1875_v0  ;;  %5306 = vrsqrt.f32 %v7023_v25  ;;  %vm967_vm13 = vcmp.eq.f32.partialorder %v6971_v20, 0.0  ;;  %v712_v49 = vmul.f32 100.0, %v648_v9  ;;  %v527_v0 = vld [vmem:[%s9935_s1 + $0xc0] sm:$0xff] }
  0xde   :  { %v1880_v4 = vsel %vm1878_vm11, %v1879_v59, %v1877_v37  ;;  %v7041_v10 = vpop.eup %5290  ;;  %v968_v21 = vand.u32 2147483648, %v6971_v20  ;;  %v3277_v61 = vmul.f32 100.0, %v3213_v54  ;;  %v7046_v48 = vadd.f32 1.0, %v717_v35 }
  0xdf   :  { %v5075_v57 = vadd.f32 -1.0, %v1880_v4  ;;  %v7048_v43 = vadd.f32 1.0, %v1677_v52  ;;  %v3144_v14 = vsub.f32 %v2984_v5, %v6967_v40  ;;  %v3151_v26 = vsub.f32 %v3005_v46, %v461_v45  ;;  %v2500_v45 = vld [vmem:[#allocation2 + $0x68] sm:$0xff]  ;;  %v7092_v46 = vld [vmem:[%s9934_s0 + $0xc0] sm:$0xff] }
  0xe0   :  { %v5293_v8 = vpop.eup %5292  ;;  %vm1925_vm14 = vcmp.eq.f32.partialorder %v6985_v28, inf  ;;  %v1928_v7 = vand.u32 2147483648, %v6985_v28  ;;  %5308 = vrsqrt.f32 %v7046_v48  ;;  %v7062_v38 = vadd.f32 1.0, %v712_v49 }
  0xe1   :  { %v7053_v63 = vpop.eup %5294  ;;  %v2308_v2 = vmul.f32 0.1, %v5075_v57  ;;  %v964_v23 = vmul.f32 %v5293_v8, %v6971_v20  ;;  %5310 = vrsqrt.f32 %v7048_v43  ;;  %v1544_v40 = vsub.f32 %v1480_v51, %v7011_v22 }
  0xe2   :  { %v7057_v50 = vpop.eup %5296  ;;  %vm1927_vm15 = vcmp.eq.f32.partialorder %v6985_v28, 0.0  ;;  %v7073_v15 = vadd.f32 1.0, %v3277_v61  ;;  %v3208_v41 = vmul.f32 %v3144_v14, %v3144_v14  ;;  %v7075_v19 = vmul.f32 %v3151_v26, %v3151_v26 }
  0xe3   :  { %v5299_v11 = vpop.eup %5298  ;;  %v2372_v24 = vand.u32 2147483647, %v2308_v2  ;;  %v966_v3 = vsel %vm965_vm12, %v6971_v20, %v964_v23  ;;  %v1487_v20 = vld [vmem:[%s9936_s2 + $0xc0] sm:$0xff]  ;;  %vm930_vm2 = vcmp.eq.f32.partialorder %v7016_v30, inf  ;;  %vm932_vm3 = vcmp.eq.f32.partialorder %v7016_v30, 0.0 }
  0xe4   :  { %v969_v34 = vsel %vm967_vm13, %v968_v21, %v966_v3  ;;  %v1924_v60 = vmul.f32 %v5299_v11, %v6985_v28  ;;  %5312 = vrsqrt.f32 %v7062_v38  ;;  %v1608_v4 = vmul.f32 %v1544_v40, %v1544_v40 }
  0xe5   :  { %v2436_v58 = vadd.f32 %v2372_v24, %v1412_v36  ;;  %v5018_v59 = vadd.f32 -1.0, %v969_v34  ;;  %v933_v57 = vand.u32 2147483648, %v7016_v30  ;;  %v1551_v49 = vsub.f32 %v1487_v20, %v7092_v46 }
  0xe6   :  { %v1926_v9 = vsel %vm1925_vm14, %v6985_v28, %v1924_v60  ;;  %v591_v28 = vsub.f32 %v527_v0, %v7092_v46  ;;  %vm1890_vm4 = vcmp.eq.f32.partialorder %v7018_v29, inf  ;;  %v1893_v61 = vand.u32 2147483648, %v7018_v29 }
  0xe7   :  { %v2756_v54 = vadd.f32 %v2500_v45, %v2436_v58  ;;  %v1355_v36 = vmul.f32 0.1, %v5018_v59  ;;  %v1929_v37 = vsel %vm1927_vm15, %v1928_v7, %v1926_v9  ;;  %v5301_v35 = vpop.eup %5300  ;;  %v1672_v5 = vmul.f32 100.0, %v1608_v4  ;;  %v2507_v58 = vld [vmem:[#allocation2 + $0xa0] sm:$0xff] }
  0xe8   :  { %v5082_v52 = vadd.f32 -1.0, %v1929_v37  ;;  %v5303_v8 = vpop.eup %5302  ;;  %v929_v21 = vmul.f32 %v5301_v35, %v7016_v30  ;;  %vm1892_vm5 = vcmp.eq.f32.partialorder %v7018_v29, 0.0  ;;  %v655_v11 = vmul.f32 %v591_v28, %v591_v28 }
  0xe9   :  { %2821 = vst.msk [vmem:[#allocation2 + $0x68] sm:$0xff] %vm113_vm1, %v2756_v54  ;;  %v7101_v51 = vpop.eup %5304  ;;  %v1419_v2 = vand.u32 2147483647, %v1355_v36  ;;  %v1889_v14 = vmul.f32 %v5303_v8, %v7018_v29  ;;  %v7108_v7 = vadd.f32 1.0, %v1672_v5  ;;  %v1615_v24 = vmul.f32 %v1551_v49, %v1551_v49  ;;  %v2990_v8 = vpop.xlane.xlu1 %2989 }
  0xea   :  { %9977 = vst [vmem:[#allocation11_spill] sm:$0xff] %v7101_v51  ;;  %v2315_v23 = vmul.f32 0.1, %v5082_v52  ;;  %v931_v26 = vsel %vm930_vm2, %v7016_v30, %v929_v21  ;;  %v7110_v3 = vpop.eup %5306  ;;  %v3272_v60 = vmul.f32 100.0, %v3208_v41  ;;  %vm979_vm6 = vcmp.eq.f32.partialorder %v7046_v48, inf }
  0xeb   :  { %v934_v45 = vsel %vm932_vm3, %v933_v57, %v931_v26  ;;  %v1891_v34 = vsel %vm1890_vm4, %v7018_v29, %v1889_v14  ;;  %5314 = vrsqrt.f32 %v7108_v7  ;;  %vm981_vm7 = vcmp.eq.f32.partialorder %v7046_v48, 0.0  ;;  %v2502_v26 = vld [vmem:[#allocation2 + $0x78] sm:$0xff] }
  0xec   :  { %v2379_v40 = vand.u32 2147483647, %v2315_v23  ;;  %v5013_v59 = vadd.f32 -1.0, %v934_v45  ;;  %v1894_v0 = vsel %vm1892_vm5, %v1893_v61, %v1891_v34  ;;  %v982_v54 = vand.u32 2147483648, %v7046_v48 }
  0xed   :  { %v5077_v9 = vadd.f32 -1.0, %v1894_v0  ;;  %v5309_v36 = vpop.eup %5308  ;;  %vm1939_vm8 = vcmp.eq.f32.partialorder %v7048_v43, inf  ;;  %v719_v30 = vmul.f32 100.0, %v655_v11  ;;  %v1679_v29 = vmul.f32 100.0, %v1615_v24 }
  0xee   :  { %v2443_v20 = vadd.f32 %v2379_v40, %v1419_v2  ;;  %v1350_v37 = vmul.f32 0.1, %v5013_v59  ;;  %v5311_v41 = vpop.eup %5310  ;;  %v978_v52 = vmul.f32 %v5309_v36, %v7046_v48  ;;  %v1942_v57 = vand.u32 2147483648, %v7048_v43  ;;  %v2928_v59 = vld [vmem:[%s9937_s3 + $0x1c0] sm:$0xff] }
  0xef   :  { %v2310_v35 = vmul.f32 0.1, %v5077_v9  ;;  %v1938_v49 = vmul.f32 %v5311_v41, %v7048_v43  ;;  %vm1941_vm9 = vcmp.eq.f32.partialorder %v7048_v43, 0.0  ;;  %v7124_v21 = vadd.f32 1.0, %v719_v30  ;;  %v522_v9 = vld [vmem:[%s9935_s1 + $0x98] sm:$0xff] }
  0xf0   :  { %v2763_v4 = vadd.f32 %v2507_v58, %v2443_v20  ;;  %v1414_v28 = vand.u32 2147483647, %v1350_v37  ;;  %v980_v5 = vsel %vm979_vm6, %v7046_v48, %v978_v52  ;;  %v3146_v2 = vsub.f32 %v2990_v8, %v7011_v22  ;;  %v7179_v8 = vld [vmem:[%s9934_s0 + $0xd0] sm:$0xff] }
  0xf1   :  { %v2374_v61 = vand.u32 2147483647, %v2310_v35  ;;  %v7131_v23 = vadd.f32 1.0, %v1679_v29  ;;  %v5313_v14 = vpop.eup %5312  ;;  %v983_v11 = vsel %vm981_vm7, %v982_v54, %v980_v5  ;;  %v1940_v24 = vsel %vm1939_vm8, %v7048_v43, %v1938_v49  ;;  %v1482_v54 = vld [vmem:[%s9936_s2 + $0x98] sm:$0xff]  ;;  %v529_v29 = vld [vmem:[%s9935_s1 + $0xd0] sm:$0xff] }
  0xf2   :  { %2828 = vst.msk [vmem:[#allocation2 + $0xa0] sm:$0xff] %vm113_vm1, %v2763_v4  ;;  %vm944_vm10 = vcmp.eq.f32.partialorder %v7062_v38, inf  ;;  %5316 = vrsqrt.f32 %v7124_v21  ;;  %v5020_v45 = vadd.f32 -1.0, %v983_v11  ;;  %v1943_v22 = vsel %vm1941_vm9, %v1942_v57, %v1940_v24 }
  0xf3   :  { %v2438_v40 = vadd.f32 %v2374_v61, %v1414_v28  ;;  %v947_v34 = vand.u32 2147483648, %v7062_v38  ;;  %5318 = vrsqrt.f32 %v7073_v15  ;;  %v5084_v58 = vadd.f32 -1.0, %v1943_v22 }
  0xf4   :  { %v943_v48 = vmul.f32 %v5313_v14, %v7062_v38  ;;  %vm946_vm11 = vcmp.eq.f32.partialorder %v7062_v38, 0.0  ;;  %v7151_v0 = vadd.f32 %v7027_v17, %v7032_v44  ;;  %v1357_v43 = vmul.f32 0.1, %v5020_v45  ;;  %v3011_v44 = vpop.xlane.xlu0 %3010 }
  0xf5   :  { %v2758_v20 = vadd.f32 %v2502_v26, %v2438_v40  ;;  %5320 = vrsqrt.f32 %v7131_v23  ;;  %v7160_v36 = vadd.f32 1.0, %v3272_v60  ;;  %v2317_v37 = vmul.f32 0.1, %v5084_v58 }
  0xf6   :  { %v3279_v30 = vmul.f32 100.0, %v7075_v19  ;;  %v945_v17 = vsel %vm944_vm10, %v7062_v38, %v943_v48  ;;  %v1421_v41 = vand.u32 2147483647, %v1357_v43  ;;  %v3210_v60 = vmul.f32 %v3146_v2, %v3146_v2  ;;  %v458_v19 = vld [vmem:[%s9934_s0 + $0x98] sm:$0xff]  ;;  %v2509_v38 = vld [vmem:[#allocation2 + $0xb0] sm:$0xff] }
  0xf7   :  { %2823 = vst.msk [vmem:[#allocation2 + $0x78] sm:$0xff] %vm113_vm1, %v2758_v20  ;;  %v948_v4 = vsel %vm946_vm11, %v947_v34, %v945_v17  ;;  %v3105_v35 = vsel %vm2936_vm0, %v2928_v59, 0.0  ;;  %v2381_v52 = vand.u32 2147483647, %v2317_v37  ;;  %v586_v28 = vsub.f32 %v522_v9, %v458_v19  ;;  %v4554_v37 = vld [vmem:[#allocation2 + $0x68] sm:$0xff] }
  0xf8   :  { %v5015_v57 = vadd.f32 -1.0, %v948_v4  ;;  %3106 = vadd.xlane.f32.xlu1 %v3105_v35  ;;  %v1546_v49 = vsub.f32 %v1482_v54, %v458_v19  ;;  %v5315_v61 = vpop.eup %5314  ;;  %vm1904_vm12 = vcmp.eq.f32.partialorder %v7108_v7, inf  ;;  %v1907_v5 = vand.u32 2147483648, %v7108_v7 }
  0xf9   :  { %v3153_v2 = vsub.f32 %v3011_v44, %v7092_v46  ;;  %v593_v14 = vsub.f32 %v529_v29, %v7179_v8  ;;  %v2445_v26 = vadd.f32 %v2381_v52, %v1421_v41  ;;  %v1903_v11 = vmul.f32 %v5315_v61, %v7108_v7  ;;  %v1489_v46 = vld [vmem:[%s9936_s2 + $0xd0] sm:$0xff] }
  0xfa   :  { %vm1906_vm13 = vcmp.eq.f32.partialorder %v7108_v7, 0.0  ;;  %v650_v24 = vmul.f32 %v586_v28, %v586_v28  ;;  %5322 = vrsqrt.f32 %v7160_v36  ;;  %v7188_v40 = vadd.f32 1.0, %v3279_v30 }
  0xfb   :  { %v1610_v45 = vmul.f32 %v1546_v49, %v1546_v49  ;;  %v657_v22 = vmul.f32 %v593_v14, %v593_v14  ;;  %v2765_v34 = vadd.f32 %v2509_v38, %v2445_v26  ;;  %v1352_v58 = vmul.f32 0.1, %v5015_v57  ;;  %v4555_v38 = vld [vmem:[#allocation2 + $0x70] sm:$0xff]  ;;  %v2996_v26 = vpop.xlane.xlu1 %2995 }
  0xfc   :  { %v1905_v48 = vsel %vm1904_vm12, %v7108_v7, %v1903_v11  ;;  %v714_v59 = vmul.f32 100.0, %v650_v24  ;;  %v3274_v43 = vmul.f32 100.0, %v3210_v60  ;;  %vm993_vm14 = vcmp.eq.f32.partialorder %v7124_v21, inf  ;;  %v2504_v11 = vld [vmem:[#allocation2 + $0x88] sm:$0xff] }
  0xfd   :  { %v1908_v20 = vsel %vm1906_vm13, %v1907_v5, %v1905_v48  ;;  %v1674_v9 = vmul.f32 100.0, %v1610_v45  ;;  %v721_v54 = vmul.f32 100.0, %v657_v22  ;;  %2830 = vst.msk [vmem:[#allocation2 + $0xb0] sm:$0xff] %vm113_vm1, %v2765_v34  ;;  %v3217_v17 = vmul.f32 %v3153_v2, %v3153_v2 }
  0xfe   :  { %v5079_v30 = vadd.f32 -1.0, %v1908_v20  ;;  %v7196_v44 = vadd.f32 1.0, %v714_v59  ;;  %vm995_vm15 = vcmp.eq.f32.partialorder %v7124_v21, 0.0  ;;  %v996_v7 = vand.u32 2147483648, %v7124_v21 }
  0xff   :  { %v5317_v29 = vpop.eup %5316  ;;  %v7200_v41 = vadd.f32 1.0, %v1674_v9  ;;  %v1553_v4 = vsub.f32 %v1489_v46, %v7179_v8  ;;  %v1416_v60 = vand.u32 2147483647, %v1352_v58  ;;  %v4630_v28 = vsel %vm113_vm1, %v4554_v37, 0.0  ;;  %v524_v46 = vld [vmem:[%s9935_s1 + $0xa8] sm:$0xff]  ;;  %v4557_v9 = vld [vmem:[#allocation2 + $0x80] sm:$0xff] }
 0x100   :  { %v2312_v35 = vmul.f32 0.1, %v5079_v30  ;;  %v992_v52 = vmul.f32 %v5317_v29, %v7124_v21  ;;  %5324 = vrsqrt.f32 %v7196_v44  ;;  %v7205_v57 = vpop.eup %5318  ;;  %vm1953_vm2 = vcmp.eq.f32.partialorder %v7131_v23, inf }
 0x101   :  { %5326 = vrsqrt.f32 %v7200_v41  ;;  %v7210_v49 = vadd.f32 1.0, %v721_v54  ;;  %vm1955_vm3 = vcmp.eq.f32.partialorder %v7131_v23, 0.0  ;;  %v1956_v14 = vand.u32 2147483648, %v7131_v23 }
 0x102   :  { %v5321_v61 = vpop.eup %5320  ;;  %v2376_v5 = vand.u32 2147483647, %v2312_v35  ;;  %v994_v2 = vsel %vm993_vm14, %v7124_v21, %v992_v52  ;;  %v3148_v22 = vsub.f32 %v2996_v26, %v458_v19  ;;  %v1617_v34 = vmul.f32 %v1553_v4, %v1553_v4  ;;  %v1484_v19 = vld [vmem:[%s9936_s2 + $0xa8] sm:$0xff] }
 0x103   :  { %v997_v24 = vsel %vm995_vm15, %v996_v7, %v994_v2  ;;  %v1952_v45 = vmul.f32 %v5321_v61, %v7131_v23  ;;  %5328 = vrsqrt.f32 %v7188_v40  ;;  %v7221_v48 = vadd.f32 1.0, %v3274_v43  ;;  %v531_v43 = vld [vmem:[%s9935_s1 + $0xe0] sm:$0xff] }
 0x104   :  { %v2440_v58 = vadd.f32 %v2376_v5, %v1416_v60  ;;  %v5022_v59 = vadd.f32 -1.0, %v997_v24  ;;  %v4632_v20 = vsel %vm113_vm1, %v4555_v38, 0.0  ;;  %v3281_v54 = vmul.f32 100.0, %v3217_v17  ;;  %v460_v17 = vld [vmem:[%s9934_s0 + $0xa8] sm:$0xff]  ;;  %v7246_v61 = vld [vmem:[%s9934_s0 + $0xe0] sm:$0xff] }
 0x105   :  { %v1954_v21 = vsel %vm1953_vm2, %v7131_v23, %v1952_v45  ;;  %5330 = vrsqrt.f32 %v7210_v49  ;;  %v4631_v37 = vadd.f32 %v4630_v28, %v7151_v0  ;;  %v3212_v60 = vmul.f32 %v3148_v22, %v3148_v22  ;;  %v3017_v23 = vpop.xlane.xlu0 %3016 }
 0x106   :  { %v2760_v30 = vadd.f32 %v2504_v11, %v2440_v58  ;;  %v1359_v29 = vmul.f32 0.1, %v5022_v59  ;;  %v1957_v7 = vsel %vm1955_vm3, %v1956_v14, %v1954_v21  ;;  %v1681_v35 = vmul.f32 100.0, %v1617_v34 }
 0x107   :  { %v5086_v4 = vadd.f32 -1.0, %v1957_v7  ;;  %v588_v52 = vsub.f32 %v524_v46, %v460_v17  ;;  %v7248_v38 = vpop.eup %5322  ;;  %v7251_v0 = vsel %vm113_vm1, %v4557_v9, 0.0  ;;  %5332 = vrsqrt.f32 %v7221_v48  ;;  %v2511_v9 = vld [vmem:[#allocation2 + $0xc0] sm:$0xff] }
 0x108   :  { %2825 = vst.msk [vmem:[#allocation2 + $0x88] sm:$0xff] %vm113_vm1, %v2760_v30  ;;  %v1548_v28 = vsub.f32 %v1484_v19, %v460_v17  ;;  %v595_v5 = vsub.f32 %v531_v43, %v7246_v61  ;;  %v1423_v2 = vand.u32 2147483647, %v1359_v29  ;;  %v7256_v26 = vadd.f32 1.0, %v1681_v35  ;;  %v4556_v43 = vld [vmem:[#allocation2 + $0x78] sm:$0xff] }
 0x109   :  { %v2319_v14 = vmul.f32 0.1, %v5086_v4  ;;  %v652_v11 = vmul.f32 %v588_v52, %v588_v52  ;;  %v4633_v24 = vadd.f32 %v4632_v20, %v4631_v37  ;;  %v7258_v45 = vadd.f32 1.0, %v3281_v54  ;;  %v1491_v20 = vld [vmem:[%s9936_s2 + $0xe0] sm:$0xff] }
 0x10a   :  { %v1612_v22 = vmul.f32 %v1548_v28, %v1548_v28  ;;  %v659_v34 = vmul.f32 %v595_v5, %v595_v5  ;;  %v3276_v59 = vmul.f32 100.0, %v3212_v60  ;;  %5334 = vrsqrt.f32 %v7256_v26 }
 0x10b   :  { %9978 = vst [vmem:[#allocation12_spill] sm:$0xff] %v7258_v45  ;;  %v2383_v58 = vand.u32 2147483647, %v2319_v14  ;;  %v3155_v46 = vsub.f32 %v3017_v23, %v7179_v8  ;;  %vm958_vm4 = vcmp.eq.f32.partialorder %v7196_v44, inf  ;;  %vm960_vm5 = vcmp.eq.f32.partialorder %v7196_v44, 0.0 }
 0x10c   :  { %v716_v21 = vmul.f32 100.0, %v652_v11  ;;  %v1676_v19 = vmul.f32 100.0, %v1612_v22  ;;  %v961_v30 = vand.u32 2147483648, %v7196_v44  ;;  %vm1918_vm6 = vcmp.eq.f32.partialorder %v7200_v41, inf  ;;  %v4559_v11 = vld [vmem:[#allocation2 + $0x90] sm:$0xff] }
 0x10d   :  { %v5325_v54 = vpop.eup %5324  ;;  %v2447_v37 = vadd.f32 %v2383_v58, %v1423_v2  ;;  %v723_v29 = vmul.f32 100.0, %v659_v34  ;;  %v1921_v4 = vand.u32 2147483648, %v7200_v41  ;;  %vm1920_vm7 = vcmp.eq.f32.partialorder %v7200_v41, 0.0 }
 0x10e   :  { %v5327_v8 = vpop.eup %5326  ;;  %v957_v7 = vmul.f32 %v5325_v54, %v7196_v44  ;;  %v7271_v60 = vadd.f32 1.0, %v716_v21  ;;  %v7273_v35 = vadd.f32 1.0, %v1676_v19  ;;  %v1555_v28 = vsub.f32 %v1491_v20, %v7246_v61 }
 0x10f   :  { %v2767_v52 = vadd.f32 %v2511_v9, %v2447_v37  ;;  %v1917_v23 = vmul.f32 %v5327_v8, %v7200_v41  ;;  %v4634_v5 = vsel %vm113_vm1, %v4556_v43, 0.0  ;;  %vm1007_vm8 = vcmp.eq.f32.partialorder %v7210_v49, inf  ;;  %v3002_v9 = vpop.xlane.xlu1 %3001 }
 0x110   :  { %v959_v2 = vsel %vm958_vm4, %v7196_v44, %v957_v7  ;;  %5336 = vrsqrt.f32 %v7271_v60  ;;  %v7284_v14 = vpop.eup %5328  ;;  %v1010_v58 = vand.u32 2147483648, %v7210_v49  ;;  %v7293_v21 = vadd.f32 1.0, %v723_v29 }
 0x111   :  { %2832 = vst.msk [vmem:[#allocation2 + $0xc0] sm:$0xff] %vm113_vm1, %v2767_v52  ;;  %v962_v22 = vsel %vm960_vm5, %v961_v30, %v959_v2  ;;  %v1919_v34 = vsel %vm1918_vm6, %v7200_v41, %v1917_v23  ;;  %5338 = vrsqrt.f32 %v7273_v35  ;;  %v3150_v43 = vsub.f32 %v3002_v9, %v460_v17  ;;  %v2929_v23 = vld [vmem:[%s9937_s3 + $0x1c8] sm:$0xff]  ;;  %v462_v9 = vld [vmem:[%s9934_s0 + $0xb8] sm:$0xff] }
 0x112   :  { %v5331_v19 = vpop.eup %5330  ;;  %v5017_v20 = vadd.f32 -1.0, %v962_v22  ;;  %v1922_v54 = vsel %vm1920_vm7, %v1921_v4, %v1919_v34  ;;  %vm1009_vm9 = vcmp.eq.f32.partialorder %v7210_v49, 0.0  ;;  %v1619_v30 = vmul.f32 %v1555_v28, %v1555_v28  ;;  %v526_v28 = vld [vmem:[%s9935_s1 + $0xb8] sm:$0xff] }
 0x113   :  { %v5081_v37 = vadd.f32 -1.0, %v1922_v54  ;;  %v1006_v44 = vmul.f32 %v5331_v19, %v7210_v49  ;;  %v7301_v8 = vsel %vm113_vm1, %v4559_v11, 0.0  ;;  %5340 = vrsqrt.f32 %v7258_v45 }
 0x114   :  { %v1354_v29 = vmul.f32 0.1, %v5017_v20  ;;  %v7304_v7 = vadd.f32 1.0, %v3276_v59  ;;  %v7306_v52 = vpop.eup %5332  ;;  %v4635_v41 = vadd.f32 %v4634_v5, %v4633_v24  ;;  %5342 = vrsqrt.f32 %v7293_v21  ;;  %v1486_v59 = vld [vmem:[%s9936_s2 + $0xb8] sm:$0xff] }
 0x115   :  { %v2314_v4 = vmul.f32 0.1, %v5081_v37  ;;  %v1008_v17 = vsel %vm1007_vm8, %v7210_v49, %v1006_v44  ;;  %v3219_v2 = vmul.f32 %v3155_v46, %v3155_v46  ;;  %v3214_v11 = vmul.f32 %v3150_v43, %v3150_v43  ;;  %v2506_v20 = vld [vmem:[#allocation2 + $0x98] sm:$0xff] }
 0x116   :  { %9979 = vst [vmem:[#allocation13_spill] sm:$0xff] %v7304_v7  ;;  %v1418_v24 = vand.u32 2147483647, %v1354_v29  ;;  %v1011_v5 = vsel %vm1009_vm9, %v1010_v58, %v1008_v17  ;;  %vm1967_vm10 = vcmp.eq.f32.partialorder %v7256_v26, inf  ;;  %v1683_v34 = vmul.f32 100.0, %v1619_v30 }
 0x117   :  { %v2378_v22 = vand.u32 2147483647, %v2314_v4  ;;  %v5024_v49 = vadd.f32 -1.0, %v1011_v5  ;;  %v5335_v19 = vpop.eup %5334  ;;  %v1970_v54 = vand.u32 2147483648, %v7256_v26  ;;  %v3108_v37 = vsel %vm2936_vm0, %v2929_v23, 0.0 }
 0x118   :  { %v590_v44 = vsub.f32 %v526_v28, %v462_v9  ;;  %v1550_v29 = vsub.f32 %v1486_v59, %v462_v9  ;;  %v7328_v46 = vadd.f32 %v7251_v0, %v4635_v41  ;;  %v1966_v43 = vmul.f32 %v5335_v19, %v7256_v26  ;;  %3109 = vadd.xlane.f32.xlu0 %v3108_v37 }
 0x119   :  { %v2442_v58 = vadd.f32 %v2378_v22, %v1418_v24  ;;  %vm1969_vm11 = vcmp.eq.f32.partialorder %v7256_v26, 0.0  ;;  %v3283_v30 = vmul.f32 100.0, %v3219_v2  ;;  %v7332_v4 = vadd.f32 1.0, %v1683_v34 }
 0x11a   :  { %v654_v17 = vmul.f32 %v590_v44, %v590_v44  ;;  %v1614_v5 = vmul.f32 %v1550_v29, %v1550_v29  ;;  %v1361_v45 = vmul.f32 0.1, %v5024_v49  ;;  %v1968_v23 = vsel %vm1967_vm10, %v7256_v26, %v1966_v43  ;;  %v533_v29 = vld [vmem:[%s9935_s1 + $0xf0] sm:$0xff] }
 0x11b   :  { %v2762_v62 = vadd.f32 %v2506_v20, %v2442_v58  ;;  %v3278_v28 = vmul.f32 100.0, %v3214_v11  ;;  %v1971_v0 = vsel %vm1969_vm11, %v1970_v54, %v1968_v23  ;;  %vm972_vm12 = vcmp.eq.f32.partialorder %v7271_v60, inf  ;;  %v3023_v11 = vpop.xlane.xlu0 %3022  ;;  %v3008_v23 = vpop.xlane.xlu1 %3007 }
 0x11c   :  { %vm974_vm13 = vcmp.eq.f32.partialorder %v7271_v60, 0.0  ;;  %5344 = vrsqrt.f32 %v7332_v4  ;;  %v5088_v59 = vadd.f32 -1.0, %v1971_v0  ;;  %v975_v24 = vand.u32 2147483648, %v7271_v60  ;;  %v1493_v0 = vld [vmem:[%s9936_s2 + $0xf0] sm:$0xff] }
 0x11d   :  { %v5337_v41 = vpop.eup %5336  ;;  %2827 = vst.msk [vmem:[#allocation2 + $0x98] sm:$0xff] %vm113_vm1, %v2762_v62  ;;  %vm1932_vm14 = vcmp.eq.f32.partialorder %v7273_v35, inf  ;;  %v718_v2 = vmul.f32 100.0, %v654_v17  ;;  %vm1934_vm15 = vcmp.eq.f32.partialorder %v7273_v35, 0.0  ;;  %v1935_v26 = vand.u32 2147483648, %v7273_v35 }
 0x11e   :  { %v971_v22 = vmul.f32 %v5337_v41, %v7271_v60  ;;  %v1678_v49 = vmul.f32 100.0, %v1614_v5  ;;  %v5339_v34 = vpop.eup %5338  ;;  %v1425_v19 = vand.u32 2147483647, %v1361_v45  ;;  %v2321_v20 = vmul.f32 0.1, %v5088_v59  ;;  %v2513_v59 = vld [vmem:[#allocation2 + $0xd0] sm:$0xff] }
 0x11f   :  { %vm1021_vm2 = vcmp.eq.f32.partialorder %v7293_v21, inf  ;;  %v7347_v62 = vadd.f32 1.0, %v718_v2  ;;  %v1931_v37 = vmul.f32 %v5339_v34, %v7273_v35  ;;  %vm1023_vm3 = vcmp.eq.f32.partialorder %v7293_v21, 0.0 }
 0x120   :  { %v973_v54 = vsel %vm972_vm12, %v7271_v60, %v971_v22  ;;  %v7354_v44 = vadd.f32 1.0, %v1678_v49  ;;  %v7359_v45 = vpop.eup %5340  ;;  %v2385_v58 = vand.u32 2147483647, %v2321_v20  ;;  %v1024_v17 = vand.u32 2147483648, %v7293_v21 }
 0x121   :  { %9980 = vst [vmem:[#allocation14_spill] sm:$0xff] %v7359_v45  ;;  %v976_v43 = vsel %vm974_vm13, %v975_v24, %v973_v54  ;;  %v3157_v5 = vsub.f32 %v3023_v11, %v7246_v61  ;;  %v5343_v41 = vpop.eup %5342  ;;  %v1933_v22 = vsel %vm1932_vm14, %v7273_v35, %v1931_v37  ;;  %5346 = vrsqrt.f32 %v7347_v62  ;;  %v469_v24 = vld [vmem:[%s9934_s0 + $0xf0] sm:$0xff] }
 0x122   :  { %v5019_v2 = vadd.f32 -1.0, %v976_v43  ;;  %v3152_v60 = vsub.f32 %v3008_v23, %v462_v9  ;;  %v2449_v61 = vadd.f32 %v2385_v58, %v1425_v19  ;;  %v1936_v11 = vsel %vm1934_vm15, %v1935_v26, %v1933_v22  ;;  %v2930_v23 = vld [vmem:[%s9937_s3 + $0x1d0] sm:$0xff]  ;;  %v4558_v22 = vld [vmem:[#allocation2 + $0x88] sm:$0xff] }
 0x123   :  { %v1020_v49 = vmul.f32 %v5343_v41, %v7293_v21  ;;  %v597_v34 = vsub.f32 %v533_v29, %v469_v24  ;;  %v5083_v54 = vadd.f32 -1.0, %v1936_v11  ;;  %5348 = vrsqrt.f32 %v7354_v44  ;;  %v2508_v11 = vld [vmem:[#allocation2 + $0xa8] sm:$0xff] }
 0x124   :  { %v1356_v20 = vmul.f32 0.1, %v5019_v2  ;;  %v1557_v43 = vsub.f32 %v1493_v0, %v469_v24  ;;  %5350 = vrsqrt.f32 %v7304_v7  ;;  %v2769_v37 = vadd.f32 %v2513_v59, %v2449_v61  ;;  %v528_v0 = vld [vmem:[%s9935_s1 + $0xc8] sm:$0xff] }
 0x125   :  { %v7380_v9 = vadd.f32 1.0, %v3283_v30  ;;  %v1022_v19 = vsel %vm1021_vm2, %v7293_v21, %v1020_v49  ;;  %v2316_v35 = vmul.f32 0.1, %v5083_v54  ;;  %v3221_v29 = vmul.f32 %v3157_v5, %v3157_v5 }
 0x126   :  { %v1420_v58 = vand.u32 2147483647, %v1356_v20  ;;  %v1025_v26 = vsel %vm1023_vm3, %v1024_v17, %v1022_v19  ;;  %2834 = vst.msk [vmem:[#allocation2 + $0xd0] sm:$0xff] %vm113_vm1, %v2769_v37  ;;  %v7394_v30 = vadd.f32 1.0, %v3278_v28  ;;  %v3216_v59 = vmul.f32 %v3152_v60, %v3152_v60  ;;  %v7401_v17 = vld [vmem:[%s9934_s0 + $0xc8] sm:$0xff]  ;;  %v3029_v19 = vpop.xlane.xlu0 %3028 }
 0x127   :  { %v5026_v41 = vadd.f32 -1.0, %v1025_v26  ;;  %v661_v2 = vmul.f32 %v597_v34, %v597_v34  ;;  %v2380_v61 = vand.u32 2147483647, %v2316_v35  ;;  %vm1981_vm4 = vcmp.eq.f32.partialorder %v7332_v4, inf  ;;  %v1488_v20 = vld [vmem:[%s9936_s2 + $0xc8] sm:$0xff] }
 0x128   :  { %9981 = vst [vmem:[#allocation15_spill] sm:$0xff] %v7394_v30  ;;  %vm1983_vm5 = vcmp.eq.f32.partialorder %v7332_v4, 0.0  ;;  %v1621_v21 = vmul.f32 %v1557_v43, %v1557_v43  ;;  %v1984_v28 = vand.u32 2147483648, %v7332_v4  ;;  %v3111_v60 = vsel %vm2936_vm0, %v2930_v23, 0.0 }
 0x129   :  { %v5345_v5 = vpop.eup %5344  ;;  %v725_v49 = vmul.f32 100.0, %v661_v2  ;;  %v592_v34 = vsub.f32 %v528_v0, %v7401_v17  ;;  %v2444_v54 = vadd.f32 %v2380_v61, %v1420_v58  ;;  %v3285_v37 = vmul.f32 100.0, %v3221_v29  ;;  %3112 = vadd.xlane.f32.xlu0 %v3111_v60 }
 0x12a   :  { %v1980_v43 = vmul.f32 %v5345_v5, %v7332_v4  ;;  %v1685_v35 = vmul.f32 100.0, %v1621_v21  ;;  %v4638_v26 = vsel %vm113_vm1, %v4558_v22, 0.0  ;;  %v1363_v7 = vmul.f32 0.1, %v5026_v41  ;;  %v535_v5 = vld [vmem:[%s9935_s1 + $0x100] sm:$0xff] }
 0x12b   :  { %v7411_v45 = vadd.f32 1.0, %v725_v49  ;;  %v656_v2 = vmul.f32 %v592_v34, %v592_v34  ;;  %v2764_v23 = vadd.f32 %v2508_v11, %v2444_v54  ;;  %v1552_v58 = vsub.f32 %v1488_v20, %v7401_v17  ;;  %v7437_v34 = vld [vmem:[%s9934_s0 + $0x100] sm:$0xff] }
 0x12c   :  { %v1982_v0 = vsel %vm1981_vm4, %v7332_v4, %v1980_v43  ;;  %v7416_v51 = vadd.f32 1.0, %v1685_v35  ;;  %v3280_v61 = vmul.f32 100.0, %v3216_v59  ;;  %v3159_v22 = vsub.f32 %v3029_v19, %v469_v24  ;;  %v4561_v35 = vld [vmem:[#allocation2 + $0xa0] sm:$0xff] }
 0x12d   :  { %v1985_v29 = vsel %vm1983_vm5, %v1984_v28, %v1982_v0  ;;  %5352 = vrsqrt.f32 %v7411_v45  ;;  %2829 = vst.msk [vmem:[#allocation2 + $0xa8] sm:$0xff] %vm113_vm1, %v2764_v23  ;;  %v7423_v21 = vadd.f32 1.0, %v3285_v37  ;;  %vm986_vm6 = vcmp.eq.f32.partialorder %v7347_v62, inf }
 0x12e   :  { %v5090_v41 = vadd.f32 -1.0, %v1985_v29  ;;  %5354 = vrsqrt.f32 %v7416_v51  ;;  %v5347_v11 = vpop.eup %5346  ;;  %v1427_v4 = vand.u32 2147483647, %v1363_v7  ;;  %vm988_vm7 = vcmp.eq.f32.partialorder %v7347_v62, 0.0  ;;  %v1495_v7 = vld [vmem:[%s9936_s2 + $0x100] sm:$0xff] }
 0x12f   :  { %9982 = vst [vmem:[#allocation16_spill] sm:$0xff] %v7423_v21  ;;  %v989_v59 = vand.u32 2147483648, %v7347_v62  ;;  %vm1946_vm8 = vcmp.eq.f32.partialorder %v7354_v44, inf  ;;  %v985_v28 = vmul.f32 %v5347_v11, %v7347_v62  ;;  %v720_v49 = vmul.f32 100.0, %v656_v2  ;;  %v2515_v29 = vld [vmem:[#allocation2 + $0xe0] sm:$0xff] }
 0x130   :  { %v2323_v24 = vmul.f32 0.1, %v5090_v41  ;;  %v1616_v60 = vmul.f32 %v1552_v58, %v1552_v58  ;;  %v5349_v20 = vpop.eup %5348  ;;  %vm1948_vm9 = vcmp.eq.f32.partialorder %v7354_v44, 0.0  ;;  %v1949_v54 = vand.u32 2147483648, %v7354_v44 }
 0x131   :  { %v3223_v43 = vmul.f32 %v3159_v22, %v3159_v22  ;;  %v599_v37 = vsub.f32 %v535_v5, %v7437_v34  ;;  %v7445_v19 = vpop.eup %5350  ;;  %v987_v23 = vsel %vm986_vm6, %v7347_v62, %v985_v28  ;;  %v1945_v0 = vmul.f32 %v5349_v20, %v7354_v44 }
 0x132   :  { %9983 = vst [vmem:[#allocation17_spill] sm:$0xff] %v7445_v19  ;;  %v2387_v2 = vand.u32 2147483647, %v2323_v24  ;;  %v7451_v58 = vadd.f32 1.0, %v720_v49  ;;  %v990_v41 = vsel %vm988_vm7, %v989_v59, %v987_v23  ;;  %v1680_v11 = vmul.f32 100.0, %v1616_v60 }
 0x133   :  { %v663_v22 = vmul.f32 %v599_v37, %v599_v37  ;;  %v1559_v5 = vsub.f32 %v1495_v7, %v7437_v34  ;;  %v5021_v19 = vadd.f32 -1.0, %v990_v41  ;;  %v1947_v24 = vsel %vm1946_vm8, %v7354_v44, %v1945_v0 }
 0x134   :  { %v2451_v1 = vadd.f32 %v2387_v2, %v1427_v4  ;;  %5356 = vrsqrt.f32 %v7451_v58  ;;  %v7461_v28 = vsel %vm113_vm1, %v4561_v35, 0.0  ;;  %v7464_v49 = vadd.f32 %v4638_v26, %v7328_v46  ;;  %v3014_v2 = vpop.xlane.xlu1 %3013 }
 0x135   :  { %5358 = vrsqrt.f32 %v7380_v9  ;;  %v1950_v62 = vsel %vm1948_vm9, %v1949_v54, %v1947_v24  ;;  %v1358_v59 = vmul.f32 0.1, %v5021_v19  ;;  %v7471_v7 = vadd.f32 1.0, %v3280_v61 }
 0x136   :  { %5360 = vrsqrt.f32 %v7394_v30  ;;  %v2771_v4 = vadd.f32 %v2515_v29, %v2451_v1  ;;  %v5085_v60 = vadd.f32 -1.0, %v1950_v62  ;;  %v7473_v20 = vadd.f32 1.0, %v1680_v11  ;;  %v2931_v1 = vld [vmem:[%s9937_s3 + $0x1d8] sm:$0xff] }
 0x137   :  { %5362 = vrsqrt.f32 %v7423_v21  ;;  %9984 = vst [vmem:[#allocation18_spill] sm:$0xff] %v7471_v7  ;;  %v727_v37 = vmul.f32 100.0, %v663_v22  ;;  %v1422_v46 = vand.u32 2147483647, %v1358_v59  ;;  %v3287_v35 = vmul.f32 100.0, %v3223_v43  ;;  %v2510_v29 = vld [vmem:[#allocation2 + $0xb8] sm:$0xff] }
 0x138   :  { %2836 = vst.msk [vmem:[#allocation2 + $0xe0] sm:$0xff] %vm113_vm1, %v2771_v4  ;;  %v2318_v26 = vmul.f32 0.1, %v5085_v60  ;;  %v1623_v44 = vmul.f32 %v1559_v5, %v1559_v5  ;;  %vm1035_vm10 = vcmp.eq.f32.partialorder %v7411_v45, inf  ;;  %vm1037_vm11 = vcmp.eq.f32.partialorder %v7411_v45, 0.0 }
 0x139   :  { %5364 = vrsqrt.f32 %v7473_v20  ;;  %v3154_v61 = vsub.f32 %v3014_v2, %v7401_v17  ;;  %v1038_v23 = vand.u32 2147483648, %v7411_v45  ;;  %vm1995_vm12 = vcmp.eq.f32.partialorder %v7416_v51, inf }
 0x13a   :  { %v5353_v54 = vpop.eup %5352  ;;  %v2382_v19 = vand.u32 2147483647, %v2318_v26  ;;  %v7485_v43 = vadd.f32 1.0, %v727_v37  ;;  %v1998_v11 = vand.u32 2147483648, %v7416_v51  ;;  %v1687_v22 = vmul.f32 100.0, %v1623_v44  ;;  %v3035_v26 = vpop.xlane.xlu0 %3034 }
 0x13b   :  { %v5355_v0 = vpop.eup %5354  ;;  %v1034_v41 = vmul.f32 %v5353_v54, %v7411_v45  ;;  %v3114_v5 = vsel %vm2936_vm0, %v2931_v1, 0.0  ;;  %5366 = vrsqrt.f32 %v7471_v7  ;;  %vm1997_vm13 = vcmp.eq.f32.partialorder %v7416_v51, 0.0 }
 0x13c   :  { %v2446_v24 = vadd.f32 %v2382_v19, %v1422_v46  ;;  %v1994_v17 = vmul.f32 %v5355_v0, %v7416_v51  ;;  %3115 = vadd.xlane.f32.xlu0 %v3114_v5  ;;  %v7496_v4 = vadd.f32 1.0, %v3287_v35  ;;  %v3218_v59 = vmul.f32 %v3154_v61, %v3154_v61  ;;  %v1490_v0 = vld [vmem:[%s9936_s2 + $0xd8] sm:$0xff] }
 0x13d   :  { %v1036_v62 = vsel %vm1035_vm10, %v7411_v45, %v1034_v41  ;;  %5368 = vrsqrt.f32 %v7485_v43  ;;  %v7504_v2 = vadd.f32 1.0, %v1687_v22  ;;  %vm1000_vm14 = vcmp.eq.f32.partialorder %v7451_v58, inf }
 0x13e   :  { %v2766_v60 = vadd.f32 %v2510_v29, %v2446_v24  ;;  %v1039_v37 = vsel %vm1037_vm11, %v1038_v23, %v1036_v62  ;;  %v1996_v46 = vsel %vm1995_vm12, %v7416_v51, %v1994_v17  ;;  %v3428_v35 = vmul.f32 %v6910_v12, %v6830_v55  ;;  %v530_v12 = vld [vmem:[%s9935_s1 + $0xd8] sm:$0xff] }
 0x13f   :  { %v5028_v44 = vadd.f32 -1.0, %v1039_v37  ;;  %v1999_v1 = vsel %vm1997_vm13, %v1998_v11, %v1996_v46  ;;  %vm1002_vm15 = vcmp.eq.f32.partialorder %v7451_v58, 0.0  ;;  %v1003_v45 = vand.u32 2147483648, %v7451_v58  ;;  %v466_v62 = vld [vmem:[%s9934_s0 + $0xd8] sm:$0xff] }
 0x140   :  { %2831 = vst.msk [vmem:[#allocation2 + $0xb8] sm:$0xff] %vm113_vm1, %v2766_v60  ;;  %v5092_v61 = vadd.f32 -1.0, %v1999_v1  ;;  %5370 = vrsqrt.f32 %v7504_v2  ;;  %vm1960_vm2 = vcmp.eq.f32.partialorder %v7473_v20, inf  ;;  %v3282_v19 = vmul.f32 100.0, %v3218_v59  ;;  %v2517_v1 = vld [vmem:[#allocation2 + $0xf0] sm:$0xff] }
 0x141   :  { %v5357_v51 = vpop.eup %5356  ;;  %v1365_v54 = vmul.f32 0.1, %v5028_v44  ;;  %v3161_v23 = vsub.f32 %v3035_v26, %v7437_v34  ;;  %vm3429_vm3 = vcmp.eq.f32.partialorder %v6830_v55, inf  ;;  %vm3431_vm4 = vcmp.eq.f32.partialorder %v6830_v55, 0.0  ;;  %v537_v34 = vld [vmem:[%s9935_s1 + $0x110] sm:$0xff] }
 0x142   :  { %v7521_v29 = vpop.eup %5358  ;;  %v2325_v41 = vmul.f32 0.1, %v5092_v61  ;;  %v999_v11 = vmul.f32 %v5357_v51, %v7451_v58  ;;  %vm1962_vm5 = vcmp.eq.f32.partialorder %v7473_v20, 0.0  ;;  %v3430_v24 = vsel %vm3429_vm3, %v6830_v55, %v3428_v35  ;;  %v7545_v44 = vld [vmem:[%s9934_s0 + $0x110] sm:$0xff] }
 0x143   :  { %v7529_v22 = vpop.eup %5360  ;;  %v1429_v5 = vand.u32 2147483647, %v1365_v54  ;;  %v3432_v17 = vand.u32 2147483648, %v6830_v55  ;;  %v594_v46 = vsub.f32 %v530_v12, %v466_v62  ;;  %v1554_v26 = vsub.f32 %v1490_v0, %v466_v62 }
 0x144   :  { %9985 = vst [vmem:[#allocation19_spill] sm:$0xff] %v7529_v22  ;;  %v7537_v59 = vpop.eup %5362  ;;  %v2389_v60 = vand.u32 2147483647, %v2325_v41  ;;  %v1001_v37 = vsel %vm1000_vm14, %v7451_v58, %v999_v11  ;;  %v1963_v61 = vand.u32 2147483648, %v7473_v20  ;;  %v601_v54 = vsub.f32 %v537_v34, %v7545_v44 }
 0x145   :  { %9986 = vst [vmem:[#allocation20_spill] sm:$0xff] %v7537_v59  ;;  %v1004_v35 = vsel %vm1002_vm15, %v1003_v45, %v1001_v37  ;;  %v3433_v51 = vsel %vm3431_vm4, %v3432_v17, %v3430_v24  ;;  %v658_v7 = vmul.f32 %v594_v46, %v594_v46  ;;  %v7554_v21 = vadd.f32 1.0, %v3282_v19 }
 0x146   :  { %v5365_v41 = vpop.eup %5364  ;;  %v2453_v11 = vadd.f32 %v2389_v60, %v1429_v5  ;;  %v5023_v12 = vadd.f32 -1.0, %v1004_v35  ;;  %v5132_v0 = vadd.f32 -1.0, %v3433_v51  ;;  %v3225_v22 = vmul.f32 %v3161_v23, %v3161_v23 }
 0x147   :  { %v1959_v59 = vmul.f32 %v5365_v41, %v7473_v20  ;;  %v1618_v30 = vmul.f32 %v1554_v26, %v1554_v26  ;;  %vm1049_vm6 = vcmp.eq.f32.partialorder %v7485_v43, inf  ;;  %v722_v5 = vmul.f32 100.0, %v658_v7  ;;  %v4563_v41 = vld [vmem:[#allocation2 + $0xb0] sm:$0xff] }
 0x148   :  { %v2773_v58 = vadd.f32 %v2517_v1, %v2453_v11  ;;  %v1360_v45 = vmul.f32 0.1, %v5023_v12  ;;  %v3903_v37 = vmul.f32 0.1, %v5132_v0  ;;  %v7557_v55 = vpop.eup %5366  ;;  %v665_v17 = vmul.f32 %v601_v54, %v601_v54 }
 0x149   :  { %v1961_v34 = vsel %vm1960_vm2, %v7473_v20, %v1959_v59  ;;  %v1682_v24 = vmul.f32 100.0, %v1618_v30  ;;  %vm1051_vm7 = vcmp.eq.f32.partialorder %v7485_v43, 0.0  ;;  %v1052_v23 = vand.u32 2147483648, %v7485_v43  ;;  %v3020_v59 = vpop.xlane.xlu1 %3019  ;;  %v1497_v30 = vld [vmem:[%s9936_s2 + $0x110] sm:$0xff] }
 0x14a   :  { %v5369_v60 = vpop.eup %5368  ;;  %2838 = vst.msk [vmem:[#allocation2 + $0xf0] sm:$0xff] %vm113_vm1, %v2773_v58  ;;  %v1964_v19 = vsel %vm1962_vm5, %v1963_v61, %v1961_v34  ;;  %v3967_v46 = vand.u32 2147483647, %v3903_v37  ;;  %vm2009_vm8 = vcmp.eq.f32.partialorder %v7504_v2, inf  ;;  %v7569_v7 = vadd.f32 1.0, %v722_v5 }
 0x14b   :  { %v5087_v26 = vadd.f32 -1.0, %v1964_v19  ;;  %v1048_v1 = vmul.f32 %v5369_v60, %v7485_v43  ;;  %v1424_v35 = vand.u32 2147483647, %v1360_v45  ;;  %v2012_v20 = vand.u32 2147483648, %v7504_v2  ;;  %v4565_v60 = vld [vmem:[#allocation2 + $0xc0] sm:$0xff] }
 0x14c   :  { %4229 = vrot.lane.b32.xlu1 %v3967_v46, %s5633_s23  ;;  %v7576_v61 = vadd.f32 1.0, %v1682_v24  ;;  %v3156_v51 = vsub.f32 %v3020_v59, %v466_v62  ;;  %5372 = vrsqrt.f32 %v7569_v7  ;;  %v729_v0 = vmul.f32 100.0, %v665_v17  ;;  %v2512_v17 = vld [vmem:[#allocation2 + $0xc8] sm:$0xff] }
 0x14d   :  { %v5371_v54 = vpop.eup %5370  ;;  %v2320_v11 = vmul.f32 0.1, %v5087_v26  ;;  %v1050_v12 = vsel %vm1049_vm6, %v7485_v43, %v1048_v1  ;;  %vm2011_vm9 = vcmp.eq.f32.partialorder %v7504_v2, 0.0  ;;  %v1561_v37 = vsub.f32 %v1497_v30, %v7545_v44  ;;  %v3041_v30 = vpop.xlane.xlu0 %3040 }
 0x14e   :  { %v1053_v58 = vsel %vm1051_vm7, %v1052_v23, %v1050_v12  ;;  %v2008_v45 = vmul.f32 %v5371_v54, %v7504_v2  ;;  %v3289_v5 = vmul.f32 100.0, %v3225_v22  ;;  %5374 = vrsqrt.f32 %v7576_v61 }
 0x14f   :  { %v2384_v62 = vand.u32 2147483647, %v2320_v11  ;;  %v5030_v34 = vadd.f32 -1.0, %v1053_v58  ;;  %v7589_v24 = vsel %vm113_vm1, %v4563_v41, 0.0  ;;  %5376 = vrsqrt.f32 %v7496_v4  ;;  %v2932_v41 = vld [vmem:[%s9937_s3 + $0x1e0] sm:$0xff] }
 0x150   :  { %v2010_v43 = vsel %vm2009_vm8, %v7504_v2, %v2008_v45  ;;  %v3220_v19 = vmul.f32 %v3156_v51, %v3156_v51  ;;  %v7595_v1 = vadd.f32 1.0, %v729_v0  ;;  %v7599_v22 = vadd.f32 %v7301_v8, %v7464_v49  ;;  %v532_v8 = vld [vmem:[%s9935_s1 + $0xe8] sm:$0xff] }
 0x151   :  { %v2448_v23 = vadd.f32 %v2384_v62, %v1424_v35  ;;  %v1367_v46 = vmul.f32 0.1, %v5030_v34  ;;  %v2013_v26 = vsel %vm2011_vm9, %v2012_v20, %v2010_v43  ;;  %5378 = vrsqrt.f32 %v7554_v21  ;;  %v1492_v49 = vld [vmem:[%s9936_s2 + $0xe8] sm:$0xff] }
 0x152   :  { %v5094_v59 = vadd.f32 -1.0, %v2013_v26  ;;  %v1625_v54 = vmul.f32 %v1561_v37, %v1561_v37  ;;  %v7606_v2 = vsel %vm113_vm1, %v4565_v60, 0.0  ;;  %v7608_v20 = vadd.f32 1.0, %v3289_v5  ;;  %v468_v60 = vld [vmem:[%s9934_s0 + $0xe8] sm:$0xff] }
 0x153   :  { %9987 = vst [vmem:[#allocation21_spill] sm:$0xff] %v7606_v2  ;;  %v2768_v35 = vadd.f32 %v2512_v17, %v2448_v23  ;;  %5380 = vrsqrt.f32 %v7595_v1  ;;  %v1431_v51 = vand.u32 2147483647, %v1367_v46  ;;  %v3284_v12 = vmul.f32 100.0, %v3220_v19 }
 0x154   :  { %v2327_v11 = vmul.f32 0.1, %v5094_v59  ;;  %v1689_v0 = vmul.f32 100.0, %v1625_v54  ;;  %v3163_v58 = vsub.f32 %v3041_v30, %v7545_v44  ;;  %v3117_v45 = vsel %vm2936_vm0, %v2932_v41, 0.0  ;;  %v2519_v44 = vld [vmem:[#allocation2 + $0x100] sm:$0xff] }
 0x155   :  { %2833 = vst.msk [vmem:[#allocation2 + $0xc8] sm:$0xff] %vm113_vm1, %v2768_v35  ;;  %v3435_v37 = vmul.f32 %v6975_v53, %v6891_v13  ;;  %vm3436_vm10 = vcmp.eq.f32.partialorder %v6891_v13, inf  ;;  %3118 = vadd.xlane.f32.xlu0 %v3117_v45  ;;  %vm3438_vm11 = vcmp.eq.f32.partialorder %v6891_v13, 0.0  ;;  %v3439_v5 = vand.u32 2147483648, %v6891_v13 }
 0x156   :  { %v2391_v62 = vand.u32 2147483647, %v2327_v11  ;;  %v7623_v34 = vadd.f32 1.0, %v1689_v0  ;;  %5382 = vrsqrt.f32 %v7608_v20  ;;  %v596_v53 = vsub.f32 %v532_v8, %v468_v60 }
 0x157   :  { %v3437_v17 = vsel %vm3436_vm10, %v6891_v13, %v3435_v37  ;;  %v1556_v43 = vsub.f32 %v1492_v49, %v468_v60  ;;  %vm1014_vm12 = vcmp.eq.f32.partialorder %v7569_v7, inf  ;;  %v7633_v23 = vadd.f32 1.0, %v3284_v12 }
 0x158   :  { %v2455_v19 = vadd.f32 %v2391_v62, %v1431_v51  ;;  %5384 = vrsqrt.f32 %v7623_v34  ;;  %vm1016_vm13 = vcmp.eq.f32.partialorder %v7569_v7, 0.0  ;;  %v3227_v46 = vmul.f32 %v3163_v58, %v3163_v58  ;;  %v539_v58 = vld [vmem:[%s9935_s1 + $0x120] sm:$0xff] }
 0x159   :  { %9988 = vst [vmem:[#allocation22_spill] sm:$0xff] %v7633_v23  ;;  %v3440_v26 = vsel %vm3438_vm11, %v3439_v5, %v3437_v17  ;;  %v660_v59 = vmul.f32 %v596_v53, %v596_v53  ;;  %v5373_v30 = vpop.eup %5372  ;;  %v1017_v41 = vand.u32 2147483648, %v7569_v7  ;;  %v1620_v13 = vmul.f32 %v1556_v43, %v1556_v43  ;;  %v1499_v53 = vld [vmem:[%s9936_s2 + $0x120] sm:$0xff] }
 0x15a   :  { %v2775_v54 = vadd.f32 %v2519_v44, %v2455_v19  ;;  %v5133_v35 = vadd.f32 -1.0, %v3440_v26  ;;  %v1013_v8 = vmul.f32 %v5373_v30, %v7569_v7  ;;  %vm1974_vm14 = vcmp.eq.f32.partialorder %v7576_v61, inf  ;;  %v3026_v44 = vpop.xlane.xlu1 %3025  ;;  %v475_v30 = vld [vmem:[%s9934_s0 + $0x120] sm:$0xff] }
 0x15b   :  { %vm1976_vm15 = vcmp.eq.f32.partialorder %v7576_v61, 0.0  ;;  %v724_v49 = vmul.f32 100.0, %v660_v59  ;;  %v5375_v51 = vpop.eup %5374  ;;  %v1977_v11 = vand.u32 2147483648, %v7576_v61  ;;  %vm1063_vm2 = vcmp.eq.f32.partialorder %v7595_v1, inf }
 0x15c   :  { %2840 = vst.msk [vmem:[#allocation2 + $0x100] sm:$0xff] %vm113_vm1, %v2775_v54  ;;  %v3904_v12 = vmul.f32 0.1, %v5133_v35  ;;  %v1684_v0 = vmul.f32 100.0, %v1620_v13  ;;  %v7647_v45 = vpop.eup %5376  ;;  %v1015_v37 = vsel %vm1014_vm12, %v7569_v7, %v1013_v8  ;;  %v1973_v62 = vmul.f32 %v5375_v51, %v7576_v61 }
 0x15d   :  { %v3291_v5 = vmul.f32 100.0, %v3227_v46  ;;  %v7653_v17 = vadd.f32 1.0, %v724_v49  ;;  %v1018_v43 = vsel %vm1016_vm13, %v1017_v41, %v1015_v37  ;;  %v3158_v59 = vsub.f32 %v3026_v44, %v468_v60  ;;  %v3047_v44 = vpop.xlane.xlu0 %3046 }
 0x15e   :  { %v3968_v19 = vand.u32 2147483647, %v3904_v12  ;;  %v7660_v26 = vadd.f32 1.0, %v1684_v0  ;;  %v7665_v54 = vpop.eup %5378  ;;  %v5025_v46 = vadd.f32 -1.0, %v1018_v43  ;;  %v1975_v35 = vsel %vm1974_vm14, %v7576_v61, %v1973_v62 }
 0x15f   :  { %5386 = vrsqrt.f32 %v7653_v17  ;;  %v603_v13 = vsub.f32 %v539_v58, %v475_v30  ;;  %v1978_v41 = vsel %vm1976_vm15, %v1977_v11, %v1975_v35  ;;  %vm1065_vm3 = vcmp.eq.f32.partialorder %v7595_v1, 0.0  ;;  %v2933_v11 = vld [vmem:[%s9937_s3 + $0x1e8] sm:$0xff] }
 0x160   :  { %v5381_v7 = vpop.eup %5380  ;;  %v1066_v60 = vand.u32 2147483648, %v7595_v1  ;;  %4231 = vrot.lane.b32.xlu1 %v3968_v19, %s5633_s23  ;;  %v1563_v8 = vsub.f32 %v1499_v53, %v475_v30  ;;  %v1362_v49 = vmul.f32 0.1, %v5025_v46  ;;  %v5089_v51 = vadd.f32 -1.0, %v1978_v41 }
 0x161   :  { %v1062_v12 = vmul.f32 %v5381_v7, %v7595_v1  ;;  %5388 = vrsqrt.f32 %v7660_v26  ;;  %vm2023_vm4 = vcmp.eq.f32.partialorder %v7623_v34, inf  ;;  %v7680_v0 = vadd.f32 1.0, %v3291_v5 }
 0x162   :  { %5390 = vrsqrt.f32 %v7633_v23  ;;  %v3222_v61 = vmul.f32 %v3158_v59, %v3158_v59  ;;  %v1426_v58 = vand.u32 2147483647, %v1362_v49  ;;  %v2322_v37 = vmul.f32 0.1, %v5089_v51  ;;  %v2514_v51 = vld [vmem:[#allocation2 + $0xd8] sm:$0xff] }
 0x163   :  { %9989 = vst [vmem:[#allocation23_spill] sm:$0xff] %v7680_v0  ;;  %v1064_v62 = vsel %vm1063_vm2, %v7595_v1, %v1062_v12  ;;  %v667_v53 = vmul.f32 %v603_v13, %v603_v13  ;;  %v7688_v43 = vpop.eup %5382  ;;  %vm2025_vm5 = vcmp.eq.f32.partialorder %v7623_v34, 0.0  ;;  %v2026_v5 = vand.u32 2147483648, %v7623_v34 }
 0x164   :  { %v1067_v19 = vsel %vm1065_vm3, %v1066_v60, %v1064_v62  ;;  %v1627_v59 = vmul.f32 %v1563_v8, %v1563_v8  ;;  %v2386_v35 = vand.u32 2147483647, %v2322_v37  ;;  %v3120_v49 = vsel %vm2936_vm0, %v2933_v11, 0.0 }
 0x165   :  { %v5385_v46 = vpop.eup %5384  ;;  %v5032_v7 = vadd.f32 -1.0, %v1067_v19  ;;  %v731_v41 = vmul.f32 100.0, %v667_v53  ;;  %v3286_v13 = vmul.f32 100.0, %v3222_v61  ;;  %v3165_v23 = vsub.f32 %v3047_v44, %v475_v30  ;;  %3121 = vadd.xlane.f32.xlu0 %v3120_v49 }
 0x166   :  { %v2022_v12 = vmul.f32 %v5385_v46, %v7623_v34  ;;  %v1691_v2 = vmul.f32 100.0, %v1627_v59  ;;  %v2450_v1 = vadd.f32 %v2386_v35, %v1426_v58  ;;  %5392 = vrsqrt.f32 %v7680_v0  ;;  %v470_v46 = vld [vmem:[%s9934_s0 + $0xf8] sm:$0xff] }
 0x167   :  { %vm1028_vm6 = vcmp.eq.f32.partialorder %v7653_v17, inf  ;;  %v7698_v60 = vadd.f32 1.0, %v731_v41  ;;  %v1369_v8 = vmul.f32 0.1, %v5032_v7  ;;  %v3442_v61 = vmul.f32 %v6969_v42, %v6865_v27  ;;  %v1494_v42 = vld [vmem:[%s9936_s2 + $0xf8] sm:$0xff] }
 0x168   :  { %v2024_v37 = vsel %vm2023_vm4, %v7623_v34, %v2022_v12  ;;  %v7703_v11 = vadd.f32 1.0, %v1691_v2  ;;  %v2770_v62 = vadd.f32 %v2514_v51, %v2450_v1  ;;  %vm3443_vm7 = vcmp.eq.f32.partialorder %v6865_v27, inf  ;;  %v534_v2 = vld [vmem:[%s9935_s1 + $0xf8] sm:$0xff] }
 0x169   :  { %v2027_v30 = vsel %vm2025_vm5, %v2026_v5, %v2024_v37  ;;  %5394 = vrsqrt.f32 %v7698_v60  ;;  %vm1030_vm8 = vcmp.eq.f32.partialorder %v7653_v17, 0.0  ;;  %v7712_v44 = vadd.f32 1.0, %v3286_v13  ;;  %v2521_v37 = vld [vmem:[#allocation2 + $0x110] sm:$0xff] }
 0x16a   :  { %v5096_v58 = vadd.f32 -1.0, %v2027_v30  ;;  %v3229_v53 = vmul.f32 %v3165_v23, %v3165_v23  ;;  %2835 = vst.msk [vmem:[#allocation2 + $0xd8] sm:$0xff] %vm113_vm1, %v2770_v62  ;;  %v1031_v34 = vand.u32 2147483648, %v7653_v17  ;;  %vm1988_vm9 = vcmp.eq.f32.partialorder %v7660_v26, inf }
 0x16b   :  { %9990 = vst [vmem:[#allocation24_spill] sm:$0xff] %v7712_v44  ;;  %vm1990_vm10 = vcmp.eq.f32.partialorder %v7660_v26, 0.0  ;;  %5396 = vrsqrt.f32 %v7703_v11  ;;  %v1433_v23 = vand.u32 2147483647, %v1369_v8  ;;  %v3444_v59 = vsel %vm3443_vm7, %v6865_v27, %v3442_v61 }
 0x16c   :  { %v5387_v19 = vpop.eup %5386  ;;  %v2329_v5 = vmul.f32 0.1, %v5096_v58  ;;  %vm3445_vm11 = vcmp.eq.f32.partialorder %v6865_v27, 0.0  ;;  %v3446_v7 = vand.u32 2147483648, %v6865_v27  ;;  %v598_v41 = vsub.f32 %v534_v2, %v470_v46 }
 0x16d   :  { %v1027_v35 = vmul.f32 %v5387_v19, %v7653_v17  ;;  %v1558_v49 = vsub.f32 %v1494_v42, %v470_v46  ;;  %v1991_v13 = vand.u32 2147483648, %v7660_v26  ;;  %5398 = vrsqrt.f32 %v7712_v44  ;;  %v3032_v19 = vpop.xlane.xlu1 %3031 }
 0x16e   :  { %v5389_v51 = vpop.eup %5388  ;;  %v2393_v12 = vand.u32 2147483647, %v2329_v5  ;;  %v3293_v1 = vmul.f32 100.0, %v3229_v53  ;;  %v3447_v30 = vsel %vm3445_vm11, %v3446_v7, %v3444_v59  ;;  %v662_v27 = vmul.f32 %v598_v41, %v598_v41 }
 0x16f   :  { %v7734_v8 = vpop.eup %5390  ;;  %v1029_v61 = vsel %vm1028_vm6, %v7653_v17, %v1027_v35  ;;  %v1987_v62 = vmul.f32 %v5389_v51, %v7660_v26  ;;  %v5134_v42 = vadd.f32 -1.0, %v3447_v30  ;;  %v1622_v5 = vmul.f32 %v1558_v49, %v1558_v49  ;;  %v541_v35 = vld [vmem:[%s9935_s1 + $0x130] sm:$0xff] }
 0x170   :  { %9991 = vst [vmem:[#allocation25_spill] sm:$0xff] %v7734_v8  ;;  %v2457_v58 = vadd.f32 %v2393_v12, %v1433_v23  ;;  %v1032_v2 = vsel %vm1030_vm8, %v1031_v34, %v1029_v61  ;;  %v726_v0 = vmul.f32 100.0, %v662_v27  ;;  %v3160_v8 = vsub.f32 %v3032_v19, %v470_v46  ;;  %v477_v46 = vld [vmem:[%s9934_s0 + $0x130] sm:$0xff] }
 0x171   :  { %v5027_v44 = vadd.f32 -1.0, %v1032_v2  ;;  %v1989_v53 = vsel %vm1988_vm9, %v7660_v26, %v1987_v62  ;;  %v3905_v17 = vmul.f32 0.1, %v5134_v42  ;;  %v1686_v34 = vmul.f32 100.0, %v1622_v5  ;;  %v1501_v62 = vld [vmem:[%s9936_s2 + $0x130] sm:$0xff] }
 0x172   :  { %v2777_v59 = vadd.f32 %v2521_v37, %v2457_v58  ;;  %v1992_v23 = vsel %vm1990_vm10, %v1991_v13, %v1989_v53  ;;  %vm1077_vm12 = vcmp.eq.f32.partialorder %v7698_v60, inf  ;;  %v7751_v49 = vadd.f32 1.0, %v726_v0  ;;  %v3053_v0 = vpop.xlane.xlu0 %3052  ;;  %v2934_v58 = vld [vmem:[%s9937_s3 + $0x1f0] sm:$0xff]  ;;  %v2516_v53 = vld [vmem:[#allocation2 + $0xe8] sm:$0xff] }
 0x173   :  { %v1364_v7 = vmul.f32 0.1, %v5027_v44  ;;  %v5091_v41 = vadd.f32 -1.0, %v1992_v23  ;;  %v7756_v51 = vpop.eup %5392  ;;  %v7759_v12 = vadd.f32 1.0, %v3293_v1  ;;  %v3969_v26 = vand.u32 2147483647, %v3905_v17 }
 0x174   :  { %2842 = vst.msk [vmem:[#allocation2 + $0x110] sm:$0xff] %vm113_vm1, %v2777_v59  ;;  %v7761_v13 = vadd.f32 1.0, %v1686_v34  ;;  %v605_v37 = vsub.f32 %v541_v35, %v477_v46  ;;  %vm1079_vm13 = vcmp.eq.f32.partialorder %v7698_v60, 0.0  ;;  %5400 = vrsqrt.f32 %v7751_v49 }
 0x175   :  { %9992 = vst [vmem:[#allocation26_spill] sm:$0xff] %v7759_v12  ;;  %v1428_v44 = vand.u32 2147483647, %v1364_v7  ;;  %v2324_v61 = vmul.f32 0.1, %v5091_v41  ;;  %v1080_v27 = vand.u32 2147483648, %v7698_v60  ;;  %4233 = vrot.lane.b32.xlu1 %v3969_v26, %s5633_s23  ;;  %v3224_v1 = vmul.f32 %v3160_v8, %v3160_v8 }
 0x176   :  { %v5395_v30 = vpop.eup %5394  ;;  %vm2037_vm14 = vcmp.eq.f32.partialorder %v7703_v11, inf  ;;  %5402 = vrsqrt.f32 %v7761_v13  ;;  %vm2039_vm15 = vcmp.eq.f32.partialorder %v7703_v11, 0.0  ;;  %v2040_v19 = vand.u32 2147483648, %v7703_v11 }
 0x177   :  { %v2388_v2 = vand.u32 2147483647, %v2324_v61  ;;  %v1076_v42 = vmul.f32 %v5395_v30, %v7698_v60  ;;  %5404 = vrsqrt.f32 %v7759_v12  ;;  %v669_v35 = vmul.f32 %v605_v37, %v605_v37 }
 0x178   :  { %v5397_v5 = vpop.eup %5396  ;;  %v1565_v59 = vsub.f32 %v1501_v62, %v477_v46  ;;  %v3167_v23 = vsub.f32 %v3053_v0, %v477_v46  ;;  %v3123_v7 = vsel %vm2936_vm0, %v2934_v58, 0.0  ;;  %v3288_v26 = vmul.f32 100.0, %v3224_v1 }
 0x179   :  { %v2452_v17 = vadd.f32 %v2388_v2, %v1428_v44  ;;  %v1078_v8 = vsel %vm1077_vm12, %v7698_v60, %v1076_v42  ;;  %v2036_v34 = vmul.f32 %v5397_v5, %v7703_v11  ;;  %v733_v61 = vmul.f32 100.0, %v669_v35  ;;  %3124 = vadd.xlane.f32.xlu0 %v3123_v7  ;;  %v536_v42 = vld [vmem:[%s9935_s1 + $0x108] sm:$0xff] }
 0x17a   :  { %v1081_v41 = vsel %vm1079_vm13, %v1080_v27, %v1078_v8  ;;  %v1629_v30 = vmul.f32 %v1565_v59, %v1565_v59  ;;  %v7786_v12 = vpop.eup %5398  ;;  %v3231_v0 = vmul.f32 %v3167_v23, %v3167_v23  ;;  %v3449_v27 = vmul.f32 %v6982_v31, %v6896_v47  ;;  %v472_v31 = vld [vmem:[%s9934_s0 + $0x108] sm:$0xff] }
 0x17b   :  { %9993 = vst [vmem:[#allocation27_spill] sm:$0xff] %v7786_v12  ;;  %v2772_v37 = vadd.f32 %v2516_v53, %v2452_v17  ;;  %v5034_v46 = vadd.f32 -1.0, %v1081_v41  ;;  %v2038_v44 = vsel %vm2037_vm14, %v7703_v11, %v2036_v34  ;;  %v7793_v58 = vadd.f32 1.0, %v733_v61  ;;  %v1496_v34 = vld [vmem:[%s9936_s2 + $0x108] sm:$0xff] }
 0x17c   :  { %v2041_v62 = vsel %vm2039_vm15, %v2040_v19, %v2038_v44  ;;  %v1693_v60 = vmul.f32 100.0, %v1629_v30  ;;  %vm1042_vm2 = vcmp.eq.f32.partialorder %v7751_v49, inf  ;;  %vm3450_vm3 = vcmp.eq.f32.partialorder %v6896_v47, inf }
 0x17d   :  { %2837 = vst.msk [vmem:[#allocation2 + $0xe8] sm:$0xff] %vm113_vm1, %v2772_v37  ;;  %v1371_v1 = vmul.f32 0.1, %v5034_v46  ;;  %v5098_v2 = vadd.f32 -1.0, %v2041_v62  ;;  %vm1044_vm4 = vcmp.eq.f32.partialorder %v7751_v49, 0.0  ;;  %v1045_v11 = vand.u32 2147483648, %v7751_v49 }
 0x17e   :  { %v7805_v19 = vadd.f32 1.0, %v3288_v26  ;;  %5406 = vrsqrt.f32 %v7793_v58  ;;  %v7811_v35 = vadd.f32 1.0, %v1693_v60  ;;  %v3295_v59 = vmul.f32 100.0, %v3231_v0  ;;  %v2523_v26 = vld [vmem:[#allocation2 + $0x120] sm:$0xff]  ;;  %v3038_v60 = vpop.xlane.xlu1 %3037 }
 0x17f   :  { %v1435_v5 = vand.u32 2147483647, %v1371_v1  ;;  %v2331_v53 = vmul.f32 0.1, %v5098_v2  ;;  %v3451_v23 = vsel %vm3450_vm3, %v6896_v47, %v3449_v27  ;;  %vm3452_vm5 = vcmp.eq.f32.partialorder %v6896_v47, 0.0  ;;  %v543_v37 = vld [vmem:[%s9935_s1 + $0x140] sm:$0xff] }
 0x180   :  { %9994 = vst [vmem:[#allocation28_spill] sm:$0xff] %v7805_v19  ;;  %v3453_v17 = vand.u32 2147483648, %v6896_v47  ;;  %v600_v8 = vsub.f32 %v536_v42, %v472_v31  ;;  %vm2002_vm6 = vcmp.eq.f32.partialorder %v7761_v13, inf  ;;  %vm2004_vm7 = vcmp.eq.f32.partialorder %v7761_v13, 0.0 }
 0x181   :  { %v2395_v7 = vand.u32 2147483647, %v2331_v53  ;;  %5408 = vrsqrt.f32 %v7811_v35  ;;  %v5401_v41 = vpop.eup %5400  ;;  %v2005_v61 = vand.u32 2147483648, %v7761_v13  ;;  %v1560_v27 = vsub.f32 %v1496_v34, %v472_v31 }
 0x182   :  { %5410 = vrsqrt.f32 %v7805_v19  ;;  %v3454_v30 = vsel %vm3452_vm5, %v3453_v17, %v3451_v23  ;;  %v664_v47 = vmul.f32 %v600_v8, %v600_v8  ;;  %v1041_v0 = vmul.f32 %v5401_v41, %v7751_v49  ;;  %v479_v23 = vld [vmem:[%s9934_s0 + $0x140] sm:$0xff]  ;;  %v4560_v8 = vld [vmem:[#allocation2 + $0x98] sm:$0xff] }
 0x183   :  { %v5403_v46 = vpop.eup %5402  ;;  %v2459_v44 = vadd.f32 %v2395_v7, %v1435_v5  ;;  %v5135_v62 = vadd.f32 -1.0, %v3454_v30  ;;  %v7829_v2 = vadd.f32 1.0, %v3295_v59  ;;  %v3162_v53 = vsub.f32 %v3038_v60, %v472_v31 }
 0x184   :  { %v2001_v1 = vmul.f32 %v5403_v46, %v7761_v13  ;;  %v728_v42 = vmul.f32 100.0, %v664_v47  ;;  %v7834_v17 = vpop.eup %5404  ;;  %v1043_v5 = vsel %vm1042_vm2, %v7751_v49, %v1041_v0  ;;  %v607_v34 = vsub.f32 %v543_v37, %v479_v23  ;;  %v1503_v49 = vld [vmem:[%s9936_s2 + $0x140] sm:$0xff] }
 0x185   :  { %9995 = vst [vmem:[#allocation29_spill] sm:$0xff] %v7829_v2  ;;  %9996 = vst [vmem:[#allocation30_spill] sm:$0xff] %v7834_v17  ;;  %v2779_v19 = vadd.f32 %v2523_v26, %v2459_v44  ;;  %v3906_v7 = vmul.f32 0.1, %v5135_v62  ;;  %v1046_v59 = vsel %vm1044_vm4, %v1045_v11, %v1043_v5  ;;  %v1624_v30 = vmul.f32 %v1560_v27, %v1560_v27  ;;  %v3059_v5 = vpop.xlane.xlu0 %3058 }
 0x186   :  { %v2003_v31 = vsel %vm2002_vm6, %v7761_v13, %v2001_v1  ;;  %v7844_v41 = vadd.f32 1.0, %v728_v42  ;;  %v5029_v47 = vadd.f32 -1.0, %v1046_v59  ;;  %v3226_v44 = vmul.f32 %v3162_v53, %v3162_v53 }
 0x187   :  { %2844 = vst.msk [vmem:[#allocation2 + $0x120] sm:$0xff] %vm113_vm1, %v2779_v19  ;;  %v2006_v26 = vsel %vm2004_vm7, %v2005_v61, %v2003_v31  ;;  %v3970_v46 = vand.u32 2147483647, %v3906_v7  ;;  %v7853_v11 = vsel %vm113_vm1, %v4560_v8, 0.0  ;;  %vm1091_vm8 = vcmp.eq.f32.partialorder %v7793_v58, inf  ;;  %v2935_v19 = vld [vmem:[%s9937_s3 + $0x1f8] sm:$0xff] }
 0x188   :  { %v5093_v37 = vadd.f32 -1.0, %v2006_v26  ;;  %5412 = vrsqrt.f32 %v7844_v41  ;;  %v1366_v13 = vmul.f32 0.1, %v5029_v47  ;;  %vm1093_vm9 = vcmp.eq.f32.partialorder %v7793_v58, 0.0 }
 0x189   :  { %v1094_v61 = vand.u32 2147483648, %v7793_v58  ;;  %4235 = vrot.lane.b32.xlu1 %v3970_v46, %s5633_s23  ;;  %v1688_v0 = vmul.f32 100.0, %v1624_v30  ;;  %5414 = vrsqrt.f32 %v7829_v2  ;;  %v671_v60 = vmul.f32 %v607_v34, %v607_v34  ;;  %v2518_v30 = vld [vmem:[#allocation2 + $0xf8] sm:$0xff]  ;;  %v2525_v2 = vld [vmem:[#allocation2 + $0x130] sm:$0xff] }
 0x18a   :  { %v2326_v62 = vmul.f32 0.1, %v5093_v37  ;;  %v1567_v27 = vsub.f32 %v1503_v49, %v479_v23  ;;  %v1430_v42 = vand.u32 2147483647, %v1366_v13  ;;  %v3290_v8 = vmul.f32 100.0, %v3226_v44 }
 0x18b   :  { %v5407_v1 = vpop.eup %5406  ;;  %v7864_v53 = vadd.f32 1.0, %v1688_v0  ;;  %v3126_v7 = vsel %vm2936_vm0, %v2935_v19, 0.0  ;;  %v735_v47 = vmul.f32 100.0, %v671_v60  ;;  %vm2051_vm10 = vcmp.eq.f32.partialorder %v7811_v35, inf }
 0x18c   :  { %v2390_v59 = vand.u32 2147483647, %v2326_v62  ;;  %v1090_v31 = vmul.f32 %v5407_v1, %v7793_v58  ;;  %v1631_v26 = vmul.f32 %v1567_v27, %v1567_v27  ;;  %3127 = vadd.xlane.f32.xlu0 %v3126_v7  ;;  %vm2053_vm11 = vcmp.eq.f32.partialorder %v7811_v35, 0.0 }
 0x18d   :  { %v2054_v34 = vand.u32 2147483648, %v7811_v35  ;;  %5416 = vrsqrt.f32 %v7864_v53  ;;  %v7875_v37 = vadd.f32 1.0, %v735_v47  ;;  %v3169_v19 = vsub.f32 %v3059_v5, %v479_v23  ;;  %v538_v47 = vld [vmem:[%s9935_s1 + $0x118] sm:$0xff] }
 0x18e   :  { %v5409_v46 = vpop.eup %5408  ;;  %v2454_v44 = vadd.f32 %v2390_v59, %v1430_v42  ;;  %v1092_v49 = vsel %vm1091_vm8, %v7793_v58, %v1090_v31  ;;  %vm1056_vm0 = vcmp.eq.f32.partialorder %v7844_v41, inf  ;;  %v1695_v60 = vmul.f32 100.0, %v1631_v26 }
 0x18f   :  { %v7877_v13 = vpop.eup %5410  ;;  %v1095_v0 = vsel %vm1093_vm9, %v1094_v61, %v1092_v49  ;;  %v2050_v62 = vmul.f32 %v5409_v46, %v7811_v35  ;;  %v7883_v42 = vadd.f32 1.0, %v3290_v8  ;;  %5418 = vrsqrt.f32 %v7875_v37 }
 0x190   :  { %9997 = vst [vmem:[#allocation31_spill] sm:$0xff] %v7877_v13  ;;  %v2774_v27 = vadd.f32 %v2518_v30, %v2454_v44  ;;  %v5036_v1 = vadd.f32 -1.0, %v1095_v0  ;;  %vm1058_vm12 = vcmp.eq.f32.partialorder %v7844_v41, 0.0  ;;  %v1059_v58 = vand.u32 2147483648, %v7844_v41 }
 0x191   :  { %9998 = vst [vmem:[#allocation32_spill] sm:$0xff] %v7883_v42  ;;  %v2052_v23 = vsel %vm2051_vm10, %v7811_v35, %v2050_v62  ;;  %v7891_v61 = vadd.f32 1.0, %v1695_v60  ;;  %v3233_v8 = vmul.f32 %v3169_v19, %v3169_v19  ;;  %v3456_v59 = vmul.f32 %v6987_v33, %v6902_v39  ;;  %v1498_v35 = vld [vmem:[%s9936_s2 + $0x118] sm:$0xff]  ;;  %v3044_v60 = vpop.xlane.xlu1 %3043 }
 0x192   :  { %2839 = vst.msk [vmem:[#allocation2 + $0xf8] sm:$0xff] %vm113_vm1, %v2774_v27  ;;  %v1373_v5 = vmul.f32 0.1, %v5036_v1  ;;  %v2055_v7 = vsel %vm2053_vm11, %v2054_v34, %v2052_v23  ;;  %vm2016_vm13 = vcmp.eq.f32.partialorder %v7864_v53, inf  ;;  %vm2018_vm14 = vcmp.eq.f32.partialorder %v7864_v53, 0.0  ;;  %v474_v33 = vld [vmem:[%s9934_s0 + $0x118] sm:$0xff] }
 0x193   :  { %v5100_v31 = vadd.f32 -1.0, %v2055_v7  ;;  %5420 = vrsqrt.f32 %v7891_v61  ;;  %v2019_v30 = vand.u32 2147483648, %v7864_v53  ;;  %vm3457_vm15 = vcmp.eq.f32.partialorder %v6902_v39, inf  ;;  %v545_v34 = vld [vmem:[%s9935_s1 + $0x150] sm:$0xff] }
 0x194   :  { %v1437_v26 = vand.u32 2147483647, %v1373_v5  ;;  %5422 = vrsqrt.f32 %v7883_v42  ;;  %v3458_v49 = vsel %vm3457_vm15, %v6902_v39, %v3456_v59  ;;  %vm3459_vm2 = vcmp.eq.f32.partialorder %v6902_v39, 0.0  ;;  %v7923_v23 = vld [vmem:[%s9934_s0 + $0x150] sm:$0xff] }
 0x195   :  { %v5413_v46 = vpop.eup %5412  ;;  %v2333_v44 = vmul.f32 0.1, %v5100_v31  ;;  %v3460_v19 = vand.u32 2147483648, %v6902_v39  ;;  %v3297_v62 = vmul.f32 100.0, %v3233_v8  ;;  %v602_v27 = vsub.f32 %v538_v47, %v474_v33 }
 0x196   :  { %v1055_v0 = vmul.f32 %v5413_v46, %v7844_v41  ;;  %v1562_v1 = vsub.f32 %v1498_v35, %v474_v33  ;;  %v7925_v5 = vpop.eup %5414  ;;  %v3164_v59 = vsub.f32 %v3044_v60, %v474_v33  ;;  %v609_v42 = vsub.f32 %v545_v34, %v7923_v23 }
 0x197   :  { %9999 = vst [vmem:[#allocation33_spill] sm:$0xff] %v7925_v5  ;;  %v2397_v7 = vand.u32 2147483647, %v2333_v44  ;;  %v3461_v31 = vsel %vm3459_vm2, %v3460_v19, %v3458_v49  ;;  %v666_v47 = vmul.f32 %v602_v27, %v602_v27  ;;  %vm1105_vm3 = vcmp.eq.f32.partialorder %v7875_v37, inf }
 0x198   :  { %v1057_v39 = vsel %vm1056_vm0, %v7844_v41, %v1055_v0  ;;  %v5136_v8 = vadd.f32 -1.0, %v3461_v31  ;;  %v1626_v35 = vmul.f32 %v1562_v1, %v1562_v1  ;;  %v3228_v17 = vmul.f32 %v3164_v59, %v3164_v59 }
 0x199   :  { %v2461_v46 = vadd.f32 %v2397_v7, %v1437_v26  ;;  %v1060_v13 = vsel %vm1058_vm12, %v1059_v58, %v1057_v39  ;;  %v673_v12 = vmul.f32 %v609_v42, %v609_v42  ;;  %v730_v33 = vmul.f32 100.0, %v666_v47 }
 0x19a   :  { %v5417_v5 = vpop.eup %5416  ;;  %v5031_v44 = vadd.f32 -1.0, %v1060_v13  ;;  %v3907_v49 = vmul.f32 0.1, %v5136_v8  ;;  %v1690_v19 = vmul.f32 100.0, %v1626_v35  ;;  %vm1107_vm4 = vcmp.eq.f32.partialorder %v7875_v37, 0.0 }
 0x19b   :  { %v2781_v34 = vadd.f32 %v2525_v2, %v2461_v46  ;;  %v2015_v60 = vmul.f32 %v5417_v5, %v7864_v53  ;;  %v737_v0 = vmul.f32 100.0, %v673_v12  ;;  %v7936_v26 = vadd.f32 1.0, %v730_v33  ;;  %v1505_v12 = vld [vmem:[%s9936_s2 + $0x150] sm:$0xff] }
 0x19c   :  { %v3971_v27 = vand.u32 2147483647, %v3907_v49  ;;  %v7938_v41 = vadd.f32 1.0, %v1690_v19  ;;  %v5419_v58 = vpop.eup %5418  ;;  %v1368_v13 = vmul.f32 0.1, %v5031_v44  ;;  %v1108_v42 = vand.u32 2147483648, %v7875_v37  ;;  %v3065_v49 = vpop.xlane.xlu0 %3064 }
 0x19d   :  { %2846 = vst.msk [vmem:[#allocation2 + $0x130] sm:$0xff] %vm113_vm1, %v2781_v34  ;;  %v2017_v2 = vsel %vm2016_vm13, %v7864_v53, %v2015_v60  ;;  %v7945_v1 = vadd.f32 1.0, %v3297_v62  ;;  %v1104_v7 = vmul.f32 %v5419_v58, %v7875_v37  ;;  %5424 = vrsqrt.f32 %v7936_v26 }
 0x19e   :  { %v2020_v5 = vsel %vm2018_vm14, %v2019_v30, %v2017_v2  ;;  %4237 = vrot.lane.b32.xlu1 %v3971_v27, %s5633_s23  ;;  %v3292_v31 = vmul.f32 100.0, %v3228_v17  ;;  %vm2065_vm5 = vcmp.eq.f32.partialorder %v7891_v61, inf  ;;  %vm2067_vm6 = vcmp.eq.f32.partialorder %v7891_v61, 0.0 }
 0x19f   :  { %v5095_v59 = vadd.f32 -1.0, %v2020_v5  ;;  %v7957_v62 = vadd.f32 1.0, %v737_v0  ;;  %v1106_v53 = vsel %vm1105_vm3, %v7875_v37, %v1104_v7  ;;  %v2068_v30 = vand.u32 2147483648, %v7891_v61  ;;  %v2520_v37 = vld [vmem:[#allocation2 + $0x108] sm:$0xff] }
 0x1a0   :  { %v5421_v39 = vpop.eup %5420  ;;  %5426 = vrsqrt.f32 %v7938_v41  ;;  %v1569_v8 = vsub.f32 %v1505_v12, %v7923_v23  ;;  %v1432_v17 = vand.u32 2147483647, %v1368_v13  ;;  %v1109_v46 = vsel %vm1107_vm4, %v1108_v42, %v1106_v53  ;;  %v540_v12 = vld [vmem:[%s9935_s1 + $0x128] sm:$0xff] }
 0x1a1   :  { %v7965_v47 = vpop.eup %5422  ;;  %v2328_v35 = vmul.f32 0.1, %v5095_v59  ;;  %v2064_v44 = vmul.f32 %v5421_v39, %v7891_v61  ;;  %v7972_v33 = vadd.f32 %v7853_v11, %v7599_v22  ;;  %v5038_v19 = vadd.f32 -1.0, %v1109_v46 }
 0x1a2   :  { %5428 = vrsqrt.f32 %v7945_v1  ;;  %v7975_v34 = vadd.f32 1.0, %v3292_v31  ;;  %vm1070_vm7 = vcmp.eq.f32.partialorder %v7936_v26, inf  ;;  %vm1072_vm8 = vcmp.eq.f32.partialorder %v7936_v26, 0.0 }
 0x1a3   :  { %v2392_v60 = vand.u32 2147483647, %v2328_v35  ;;  %v2066_v0 = vsel %vm2065_vm5, %v7891_v61, %v2064_v44  ;;  %5430 = vrsqrt.f32 %v7957_v62  ;;  %v1375_v27 = vmul.f32 0.1, %v5038_v19  ;;  %v1500_v61 = vld [vmem:[%s9936_s2 + $0x128] sm:$0xff]  ;;  %v8010_v44 = vld [vmem:[%s9934_s0 + $0x160] sm:$0xff]  ;;  %v3050_v19 = vpop.xlane.xlu1 %3049 }
 0x1a4   :  { %v2069_v22 = vsel %vm2067_vm6, %v2068_v30, %v2066_v0  ;;  %v1633_v11 = vmul.f32 %v1569_v8, %v1569_v8  ;;  %v3171_v58 = vsub.f32 %v3065_v49, %v7923_v23  ;;  %v3463_v42 = vmul.f32 %v7057_v50, %v6962_v32  ;;  %v547_v50 = vld [vmem:[%s9935_s1 + $0x160] sm:$0xff]  ;;  %v476_v30 = vld [vmem:[%s9934_s0 + $0x128] sm:$0xff] }
 0x1a5   :  { %v2456_v13 = vadd.f32 %v2392_v60, %v1432_v17  ;;  %v5102_v2 = vadd.f32 -1.0, %v2069_v22  ;;  %vm3464_vm9 = vcmp.eq.f32.partialorder %v6962_v32, inf  ;;  %v1439_v5 = vand.u32 2147483647, %v1375_v27  ;;  %v2527_v0 = vld [vmem:[#allocation2 + $0x140] sm:$0xff] }
 0x1a6   :  { %v1073_v7 = vand.u32 2147483648, %v7936_v26  ;;  %v1697_v31 = vmul.f32 100.0, %v1633_v11  ;;  %vm3466_vm10 = vcmp.eq.f32.partialorder %v6962_v32, 0.0  ;;  %v3465_v39 = vsel %vm3464_vm9, %v6962_v32, %v3463_v42 }
 0x1a7   :  { %v2776_v23 = vadd.f32 %v2520_v37, %v2456_v13  ;;  %v2335_v59 = vmul.f32 0.1, %v5102_v2  ;;  %v3467_v53 = vand.u32 2147483648, %v6962_v32  ;;  %v3235_v17 = vmul.f32 %v3171_v58, %v3171_v58 }
 0x1a8   :  { %v8005_v8 = vadd.f32 1.0, %v1697_v31  ;;  %v604_v35 = vsub.f32 %v540_v12, %v476_v30  ;;  %v1564_v46 = vsub.f32 %v1500_v61, %v476_v30  ;;  %vm2030_vm11 = vcmp.eq.f32.partialorder %v7938_v41, inf }
 0x1a9   :  { %2841 = vst.msk [vmem:[#allocation2 + $0x108] sm:$0xff] %vm113_vm1, %v2776_v23  ;;  %v2399_v49 = vand.u32 2147483647, %v2335_v59  ;;  %v3468_v32 = vsel %vm3466_vm10, %v3467_v53, %v3465_v39  ;;  %v611_v60 = vsub.f32 %v547_v50, %v8010_v44  ;;  %vm2032_vm0 = vcmp.eq.f32.partialorder %v7938_v41, 0.0 }
 0x1aa   :  { %v2033_v37 = vand.u32 2147483648, %v7938_v41  ;;  %5432 = vrsqrt.f32 %v8005_v8  ;;  %v3166_v27 = vsub.f32 %v3050_v19, %v476_v30  ;;  %v5425_v22 = vpop.eup %5424  ;;  %vm1119_vm12 = vcmp.eq.f32.partialorder %v7957_v62, inf }
 0x1ab   :  { %v2463_v11 = vadd.f32 %v2399_v49, %v1439_v5  ;;  %v5137_v58 = vadd.f32 -1.0, %v3468_v32  ;;  %v668_v13 = vmul.f32 %v604_v35, %v604_v35  ;;  %v1069_v2 = vmul.f32 %v5425_v22, %v7936_v26 }
 0x1ac   :  { %vm1121_vm13 = vcmp.eq.f32.partialorder %v7957_v62, 0.0  ;;  %v3299_v42 = vmul.f32 100.0, %v3235_v17  ;;  %v1628_v12 = vmul.f32 %v1564_v46, %v1564_v46  ;;  %v675_v59 = vmul.f32 %v611_v60, %v611_v60 }
 0x1ad   :  { %v5427_v61 = vpop.eup %5426  ;;  %v2783_v31 = vadd.f32 %v2527_v0, %v2463_v11  ;;  %v3908_v50 = vmul.f32 0.1, %v5137_v58  ;;  %v732_v23 = vmul.f32 100.0, %v668_v13  ;;  %v1071_v39 = vsel %vm1070_vm7, %v7936_v26, %v1069_v2 }
 0x1ae   :  { %v2029_v5 = vmul.f32 %v5427_v61, %v7938_v41  ;;  %v1692_v53 = vmul.f32 100.0, %v1628_v12  ;;  %v3230_v30 = vmul.f32 %v3166_v27, %v3166_v27  ;;  %v1074_v17 = vsel %vm1072_vm8, %v1073_v7, %v1071_v39 }
 0x1af   :  { %v8025_v35 = vpop.eup %5428  ;;  %2848 = vst.msk [vmem:[#allocation2 + $0x140] sm:$0xff] %vm113_vm1, %v2783_v31  ;;  %v1122_v46 = vand.u32 2147483648, %v7957_v62  ;;  %v3972_v49 = vand.u32 2147483647, %v3908_v50  ;;  %v8031_v32 = vadd.f32 1.0, %v732_v23  ;;  %v5033_v60 = vadd.f32 -1.0, %v1074_v17  ;;  %v3071_v23 = vpop.xlane.xlu0 %3070 }
 0x1b0   :  { %v5431_v19 = vpop.eup %5430  ;;  %v2031_v0 = vsel %vm2030_vm11, %v7938_v41, %v2029_v5  ;;  %v8036_v22 = vadd.f32 1.0, %v3299_v42  ;;  %v8038_v27 = vadd.f32 1.0, %v1692_v53  ;;  %v739_v7 = vmul.f32 100.0, %v675_v59  ;;  %v1507_v42 = vld [vmem:[%s9936_s2 + $0x160] sm:$0xff]  ;;  %v2522_v17 = vld [vmem:[#allocation2 + $0x118] sm:$0xff] }
 0x1b1   :  { %v2034_v11 = vsel %vm2032_vm0, %v2033_v37, %v2031_v0  ;;  %v1118_v26 = vmul.f32 %v5431_v19, %v7957_v62  ;;  %4239 = vrot.lane.b32.xlu1 %v3972_v49, %s5633_s23  ;;  %5434 = vrsqrt.f32 %v8031_v32  ;;  %v1370_v58 = vmul.f32 0.1, %v5033_v60  ;;  %v542_v0 = vld [vmem:[%s9935_s1 + $0x138] sm:$0xff] }
 0x1b2   :  { %v5097_v13 = vadd.f32 -1.0, %v2034_v11  ;;  %5436 = vrsqrt.f32 %v7975_v34  ;;  %v3294_v2 = vmul.f32 100.0, %v3230_v30  ;;  %vm2079_vm14 = vcmp.eq.f32.partialorder %v8005_v8, inf  ;;  %v1502_v11 = vld [vmem:[%s9936_s2 + $0x138] sm:$0xff] }
 0x1b3   :  { %v1120_v41 = vsel %vm1119_vm12, %v7957_v62, %v1118_v26  ;;  %vm2081_vm15 = vcmp.eq.f32.partialorder %v8005_v8, 0.0  ;;  %5438 = vrsqrt.f32 %v8038_v27  ;;  %v1434_v37 = vand.u32 2147483647, %v1370_v58 }
 0x1b4   :  { %v2330_v12 = vmul.f32 0.1, %v5097_v13  ;;  %v1123_v61 = vsel %vm1121_vm13, %v1122_v46, %v1120_v41  ;;  %v2082_v31 = vand.u32 2147483648, %v8005_v8  ;;  %5440 = vrsqrt.f32 %v8036_v22 }
 0x1b5   :  { %v5040_v50 = vadd.f32 -1.0, %v1123_v61  ;;  %v8059_v59 = vadd.f32 1.0, %v739_v7  ;;  %v1571_v39 = vsub.f32 %v1507_v42, %v8010_v44  ;;  %v8062_v53 = vadd.f32 1.0, %v3294_v2  ;;  %v478_v42 = vld [vmem:[%s9934_s0 + $0x138] sm:$0xff] }
 0x1b6   :  { %v2394_v5 = vand.u32 2147483647, %v2330_v12  ;;  %v3470_v30 = vmul.f32 %v7030_v18, %v6935_v16  ;;  %vm3471_vm2 = vcmp.eq.f32.partialorder %v6935_v16, inf  ;;  %vm1084_vm3 = vcmp.eq.f32.partialorder %v8031_v32, inf }
 0x1b7   :  { %v5433_v62 = vpop.eup %5432  ;;  %vm1086_vm4 = vcmp.eq.f32.partialorder %v8031_v32, 0.0  ;;  %v1087_v46 = vand.u32 2147483648, %v8031_v32  ;;  %5442 = vrsqrt.f32 %v8059_v59  ;;  %vm2044_vm5 = vcmp.eq.f32.partialorder %v8038_v27, inf }
 0x1b8   :  { %v2458_v49 = vadd.f32 %v2394_v5, %v1434_v37  ;;  %v2078_v19 = vmul.f32 %v5433_v62, %v8005_v8  ;;  %v1635_v60 = vmul.f32 %v1571_v39, %v1571_v39  ;;  %v3173_v18 = vsub.f32 %v3071_v23, %v8010_v44 }
 0x1b9   :  { %v1377_v26 = vmul.f32 0.1, %v5040_v50  ;;  %vm2046_vm6 = vcmp.eq.f32.partialorder %v8038_v27, 0.0  ;;  %v3472_v7 = vsel %vm3471_vm2, %v6935_v16, %v3470_v30  ;;  %vm3473_vm7 = vcmp.eq.f32.partialorder %v6935_v16, 0.0 }
 0x1ba   :  { %v2778_v58 = vadd.f32 %v2522_v17, %v2458_v49  ;;  %v2080_v44 = vsel %vm2079_vm14, %v8005_v8, %v2078_v19  ;;  %v1699_v13 = vmul.f32 100.0, %v1635_v60  ;;  %v3474_v2 = vand.u32 2147483648, %v6935_v16  ;;  %v549_v19 = vld [vmem:[%s9935_s1 + $0x170] sm:$0xff] }
 0x1bb   :  { %v2083_v41 = vsel %vm2081_vm15, %v2082_v31, %v2080_v44  ;;  %v2047_v37 = vand.u32 2147483648, %v8038_v27  ;;  %v606_v12 = vsub.f32 %v542_v0, %v478_v42  ;;  %v1566_v61 = vsub.f32 %v1502_v11, %v478_v42  ;;  %v3056_v31 = vpop.xlane.xlu1 %3055 }
 0x1bc   :  { %2843 = vst.msk [vmem:[#allocation2 + $0x118] sm:$0xff] %vm113_vm1, %v2778_v58  ;;  %v5104_v50 = vadd.f32 -1.0, %v2083_v41  ;;  %v8096_v23 = vadd.f32 1.0, %v1699_v13  ;;  %v3237_v39 = vmul.f32 %v3173_v18, %v3173_v18  ;;  %v3475_v5 = vsel %vm3473_vm7, %v3474_v2, %v3472_v7  ;;  %v8111_v2 = vld [vmem:[%s9934_s0 + $0x170] sm:$0xff] }
 0x1bd   :  { %5444 = vrsqrt.f32 %v8062_v53  ;;  %v5138_v16 = vadd.f32 -1.0, %v3475_v5  ;;  %v670_v30 = vmul.f32 %v606_v12, %v606_v12  ;;  %v1630_v62 = vmul.f32 %v1566_v61, %v1566_v61  ;;  %v2529_v41 = vld [vmem:[#allocation2 + $0x150] sm:$0xff] }
 0x1be   :  { %v5435_v17 = vpop.eup %5434  ;;  %v1441_v49 = vand.u32 2147483647, %v1377_v26  ;;  %v2337_v8 = vmul.f32 0.1, %v5104_v50  ;;  %vm1133_vm8 = vcmp.eq.f32.partialorder %v8059_v59, inf  ;;  %5446 = vrsqrt.f32 %v8096_v23 }
 0x1bf   :  { %v8104_v60 = vpop.eup %5436  ;;  %v1083_v18 = vmul.f32 %v5435_v17, %v8031_v32  ;;  %vm1135_vm9 = vcmp.eq.f32.partialorder %v8059_v59, 0.0  ;;  %v3909_v0 = vmul.f32 0.1, %v5138_v16  ;;  %v3168_v11 = vsub.f32 %v3056_v31, %v478_v42  ;;  %v4567_v17 = vld [vmem:[#allocation2 + $0xd0] sm:$0xff] }
 0x1c0   :  { %v5439_v7 = vpop.eup %5438  ;;  %v2401_v26 = vand.u32 2147483647, %v2337_v8  ;;  %v3301_v58 = vmul.f32 100.0, %v3237_v39  ;;  %v734_v44 = vmul.f32 100.0, %v670_v30  ;;  %v1694_v13 = vmul.f32 100.0, %v1630_v62 }
 0x1c1   :  { %v1085_v12 = vsel %vm1084_vm3, %v8031_v32, %v1083_v18  ;;  %v2043_v61 = vmul.f32 %v5439_v7, %v8038_v27  ;;  %v3973_v50 = vand.u32 2147483647, %v3909_v0  ;;  %v613_v42 = vsub.f32 %v549_v19, %v8111_v2  ;;  %v8118_v5 = vpop.eup %5440 }
 0x1c2   :  { %v2465_v39 = vadd.f32 %v2401_v26, %v1441_v49  ;;  %v1088_v16 = vsel %vm1086_vm4, %v1087_v46, %v1085_v12  ;;  %v8122_v30 = vadd.f32 1.0, %v734_v44  ;;  %v8124_v62 = vadd.f32 1.0, %v1694_v13  ;;  %v1509_v12 = vld [vmem:[%s9936_s2 + $0x170] sm:$0xff] }
 0x1c3   :  { %v5035_v8 = vadd.f32 -1.0, %v1088_v16  ;;  %v2045_v31 = vsel %vm2044_vm5, %v8038_v27, %v2043_v61  ;;  %v1136_v18 = vand.u32 2147483648, %v8059_v59  ;;  %4241 = vrot.lane.b32.xlu1 %v3973_v50, %s5633_s23  ;;  %v3232_v19 = vmul.f32 %v3168_v11, %v3168_v11 }
 0x1c4   :  { %v5443_v0 = vpop.eup %5442  ;;  %v2785_v49 = vadd.f32 %v2529_v41, %v2465_v39  ;;  %v2048_v32 = vsel %vm2046_vm6, %v2047_v37, %v2045_v31  ;;  %5448 = vrsqrt.f32 %v8122_v30  ;;  %v677_v46 = vmul.f32 %v613_v42, %v613_v42 }
 0x1c5   :  { %v1372_v7 = vmul.f32 0.1, %v5035_v8  ;;  %v5099_v26 = vadd.f32 -1.0, %v2048_v32  ;;  %v1132_v44 = vmul.f32 %v5443_v0, %v8059_v59  ;;  %v8135_v13 = vadd.f32 1.0, %v3301_v58  ;;  %v2524_v8 = vld [vmem:[#allocation2 + $0x128] sm:$0xff]  ;;  %v3077_v0 = vpop.xlane.xlu0 %3076 }
 0x1c6   :  { %v8141_v11 = vsel %vm113_vm1, %v4567_v17, 0.0  ;;  %v8145_v27 = vadd.f32 %v7461_v28, %v7972_v33  ;;  %2850 = vst.msk [vmem:[#allocation2 + $0x150] sm:$0xff] %vm113_vm1, %v2785_v49  ;;  %vm2093_vm10 = vcmp.eq.f32.partialorder %v8096_v23, inf  ;;  %5450 = vrsqrt.f32 %v8124_v62 }
 0x1c7   :  { %10000 = vst [vmem:[#allocation34_spill] sm:$0xff] %v8135_v13  ;;  %10001 = vst [vmem:[#allocation35_spill] sm:$0xff] %v8141_v11  ;;  %v1436_v37 = vand.u32 2147483647, %v1372_v7  ;;  %v2332_v58 = vmul.f32 0.1, %v5099_v26  ;;  %v1134_v41 = vsel %vm1133_vm8, %v8059_v59, %v1132_v44  ;;  %v1573_v33 = vsub.f32 %v1509_v12, %v8111_v2 }
 0x1c8   :  { %vm2095_vm11 = vcmp.eq.f32.partialorder %v8096_v23, 0.0  ;;  %v1137_v61 = vsel %vm1135_vm9, %v1136_v18, %v1134_v41  ;;  %v3296_v50 = vmul.f32 100.0, %v3232_v19  ;;  %v741_v28 = vmul.f32 100.0, %v677_v46  ;;  %v544_v7 = vld [vmem:[%s9935_s1 + $0x148] sm:$0xff] }
 0x1c9   :  { %v2396_v42 = vand.u32 2147483647, %v2332_v58  ;;  %v2096_v39 = vand.u32 2147483648, %v8096_v23  ;;  %5452 = vrsqrt.f32 %v8135_v13  ;;  %v3484_v16 = vmul.f32 %v7041_v10, %v6945_v56  ;;  %v1504_v26 = vld [vmem:[%s9936_s2 + $0x148] sm:$0xff] }
 0x1ca   :  { %v8161_v17 = vpop.eup %5444  ;;  %v5042_v31 = vadd.f32 -1.0, %v1137_v61  ;;  %v8163_v49 = vadd.f32 1.0, %v741_v28  ;;  %v1637_v59 = vmul.f32 %v1573_v33, %v1573_v33  ;;  %vm3485_vm0 = vcmp.eq.f32.partialorder %v6945_v56, inf  ;;  %v480_v28 = vld [vmem:[%s9934_s0 + $0x148] sm:$0xff] }
 0x1cb   :  { %10002 = vst [vmem:[#allocation36_spill] sm:$0xff] %v8161_v17  ;;  %v5447_v18 = vpop.eup %5446  ;;  %v2460_v19 = vadd.f32 %v2396_v42, %v1436_v37  ;;  %vm1098_vm12 = vcmp.eq.f32.partialorder %v8122_v30, inf  ;;  %vm1100_vm13 = vcmp.eq.f32.partialorder %v8122_v30, 0.0  ;;  %v1101_v32 = vand.u32 2147483648, %v8122_v30 }
 0x1cc   :  { %v2092_v10 = vmul.f32 %v5447_v18, %v8096_v23  ;;  %vm2058_vm14 = vcmp.eq.f32.partialorder %v8124_v62, inf  ;;  %v8171_v46 = vadd.f32 1.0, %v3296_v50  ;;  %5454 = vrsqrt.f32 %v8163_v49 }
 0x1cd   :  { %v2780_v44 = vadd.f32 %v2524_v8, %v2460_v19  ;;  %v1701_v12 = vmul.f32 100.0, %v1637_v59  ;;  %v3175_v37 = vsub.f32 %v3077_v0, %v8111_v2  ;;  %v3486_v58 = vsel %vm3485_vm0, %v6945_v56, %v3484_v16 }
 0x1ce   :  { %10003 = vst [vmem:[#allocation37_spill] sm:$0xff] %v8171_v46  ;;  %v1379_v41 = vmul.f32 0.1, %v5042_v31  ;;  %v2094_v61 = vsel %vm2093_vm10, %v8096_v23, %v2092_v10  ;;  %vm3487_vm15 = vcmp.eq.f32.partialorder %v6945_v56, 0.0  ;;  %v3488_v50 = vand.u32 2147483648, %v6945_v56  ;;  %v551_v56 = vld [vmem:[%s9935_s1 + $0x180] sm:$0xff] }
 0x1cf   :  { %2845 = vst.msk [vmem:[#allocation2 + $0x128] sm:$0xff] %vm113_vm1, %v2780_v44  ;;  %v2097_v2 = vsel %vm2095_vm11, %v2096_v39, %v2094_v61  ;;  %v8193_v33 = vadd.f32 1.0, %v1701_v12  ;;  %v608_v42 = vsub.f32 %v544_v7, %v480_v28  ;;  %v1568_v16 = vsub.f32 %v1504_v26, %v480_v28  ;;  %v3062_v7 = vpop.xlane.xlu1 %3061  ;;  %v487_v26 = vld [vmem:[%s9934_s0 + $0x180] sm:$0xff] }
 0x1d0   :  { %v5106_v8 = vadd.f32 -1.0, %v2097_v2  ;;  %vm2060_vm2 = vcmp.eq.f32.partialorder %v8124_v62, 0.0  ;;  %5456 = vrsqrt.f32 %v8171_v46  ;;  %v3489_v31 = vsel %vm3487_vm15, %v3488_v50, %v3486_v58 }
 0x1d1   :  { %v5449_v0 = vpop.eup %5448  ;;  %v2061_v59 = vand.u32 2147483648, %v8124_v62  ;;  %vm1147_vm3 = vcmp.eq.f32.partialorder %v8163_v49, inf  ;;  %5458 = vrsqrt.f32 %v8193_v33  ;;  %v3239_v23 = vmul.f32 %v3175_v37, %v3175_v37 }
 0x1d2   :  { %v1443_v39 = vand.u32 2147483647, %v1379_v41  ;;  %v2339_v18 = vmul.f32 0.1, %v5106_v8  ;;  %v1097_v19 = vmul.f32 %v5449_v0, %v8122_v30  ;;  %v5140_v10 = vadd.f32 -1.0, %v3489_v31  ;;  %v2531_v0 = vld [vmem:[#allocation2 + $0x160] sm:$0xff] }
 0x1d3   :  { %v5451_v44 = vpop.eup %5450  ;;  %v672_v12 = vmul.f32 %v608_v42, %v608_v42  ;;  %v1632_v58 = vmul.f32 %v1568_v16, %v1568_v16  ;;  %v3170_v61 = vsub.f32 %v3062_v7, %v480_v28  ;;  %v615_v50 = vsub.f32 %v551_v56, %v487_v26 }
 0x1d4   :  { %v2403_v2 = vand.u32 2147483647, %v2339_v18  ;;  %v1099_v37 = vsel %vm1098_vm12, %v8122_v30, %v1097_v19  ;;  %v2057_v41 = vmul.f32 %v5451_v44, %v8124_v62  ;;  %v3911_v8 = vmul.f32 0.1, %v5140_v10 }
 0x1d5   :  { %v1102_v31 = vsel %vm1100_vm13, %v1101_v32, %v1099_v37  ;;  %v3303_v11 = vmul.f32 100.0, %v3239_v23  ;;  %v736_v46 = vmul.f32 100.0, %v672_v12  ;;  %v1696_v13 = vmul.f32 100.0, %v1632_v58 }
 0x1d6   :  { %v8213_v17 = vpop.eup %5452  ;;  %v2467_v42 = vadd.f32 %v2403_v2, %v1443_v39  ;;  %v5037_v28 = vadd.f32 -1.0, %v1102_v31  ;;  %v2059_v16 = vsel %vm2058_vm14, %v8124_v62, %v2057_v41  ;;  %v3975_v56 = vand.u32 2147483647, %v3911_v8  ;;  %v1511_v62 = vld [vmem:[%s9936_s2 + $0x180] sm:$0xff]  ;;  %v2526_v31 = vld [vmem:[#allocation2 + $0x138] sm:$0xff] }
 0x1d7   :  { %v2062_v18 = vsel %vm2060_vm2, %v2061_v59, %v2059_v16  ;;  %v8220_v19 = vadd.f32 1.0, %v736_v46  ;;  %v8222_v10 = vadd.f32 1.0, %v1696_v13  ;;  %v3234_v30 = vmul.f32 %v3170_v61, %v3170_v61  ;;  %v3083_v61 = vpop.xlane.xlu0 %3082 }
 0x1d8   :  { %v2787_v32 = vadd.f32 %v2531_v0, %v2467_v42  ;;  %v1374_v23 = vmul.f32 0.1, %v5037_v28  ;;  %v5101_v7 = vadd.f32 -1.0, %v2062_v18  ;;  %4245 = vrot.lane.b32.xlu1 %v3975_v56, %s5633_s23  ;;  %v679_v39 = vmul.f32 %v615_v50, %v615_v50 }
 0x1d9   :  { %v5455_v44 = vpop.eup %5454  ;;  %vm1149_vm4 = vcmp.eq.f32.partialorder %v8163_v49, 0.0  ;;  %v1150_v12 = vand.u32 2147483648, %v8163_v49  ;;  %v8227_v58 = vadd.f32 1.0, %v3303_v11  ;;  %5460 = vrsqrt.f32 %v8220_v19 }
 0x1da   :  { %2852 = vst.msk [vmem:[#allocation2 + $0x160] sm:$0xff] %vm113_vm1, %v2787_v32  ;;  %v1438_v13 = vand.u32 2147483647, %v1374_v23  ;;  %v2334_v46 = vmul.f32 0.1, %v5101_v7  ;;  %v1146_v59 = vmul.f32 %v5455_v44, %v8163_v49  ;;  %5462 = vrsqrt.f32 %v8222_v10  ;;  %v1506_v44 = vld [vmem:[%s9936_s2 + $0x158] sm:$0xff] }
 0x1db   :  { %vm2107_vm5 = vcmp.eq.f32.partialorder %v8193_v33, inf  ;;  %vm2109_vm6 = vcmp.eq.f32.partialorder %v8193_v33, 0.0  ;;  %v2110_v11 = vand.u32 2147483648, %v8193_v33  ;;  %v3298_v50 = vmul.f32 100.0, %v3234_v30 }
 0x1dc   :  { %v2398_v2 = vand.u32 2147483647, %v2334_v46  ;;  %v1148_v37 = vsel %vm1147_vm3, %v8163_v49, %v1146_v59  ;;  %v743_v41 = vmul.f32 100.0, %v679_v39  ;;  %v1575_v8 = vsub.f32 %v1511_v62, %v487_v26  ;;  %v546_v39 = vld [vmem:[%s9935_s1 + $0x158] sm:$0xff] }
 0x1dd   :  { %v8242_v0 = vpop.eup %5456  ;;  %v1151_v42 = vsel %vm1149_vm4, %v1150_v12, %v1148_v37  ;;  %v3177_v28 = vsub.f32 %v3083_v61, %v487_v26  ;;  %v3491_v16 = vmul.f32 %v7248_v38, %v7160_v36  ;;  %vm3492_vm7 = vcmp.eq.f32.partialorder %v7160_v36, inf  ;;  %v553_v37 = vld [vmem:[%s9935_s1 + $0x190] sm:$0xff] }
 0x1de   :  { %v5459_v56 = vpop.eup %5458  ;;  %v2462_v18 = vadd.f32 %v2398_v2, %v1438_v13  ;;  %v5044_v30 = vadd.f32 -1.0, %v1151_v42  ;;  %v8249_v32 = vadd.f32 1.0, %v743_v41  ;;  %v1639_v23 = vmul.f32 %v1575_v8, %v1575_v8  ;;  %v482_v2 = vld [vmem:[%s9934_s0 + $0x158] sm:$0xff] }
 0x1df   :  { %v2106_v7 = vmul.f32 %v5459_v56, %v8193_v33  ;;  %5464 = vrsqrt.f32 %v8227_v58  ;;  %vm1112_vm8 = vcmp.eq.f32.partialorder %v8220_v19, inf  ;;  %v8254_v49 = vadd.f32 1.0, %v3298_v50 }
 0x1e0   :  { %v2782_v26 = vadd.f32 %v2526_v31, %v2462_v18  ;;  %vm1114_vm9 = vcmp.eq.f32.partialorder %v8220_v19, 0.0  ;;  %5466 = vrsqrt.f32 %v8249_v32  ;;  %v3493_v38 = vsel %vm3492_vm7, %v7160_v36, %v3491_v16 }
 0x1e1   :  { %10004 = vst [vmem:[#allocation38_spill] sm:$0xff] %v8254_v49  ;;  %v1381_v12 = vmul.f32 0.1, %v5044_v30  ;;  %v2108_v62 = vsel %vm2107_vm5, %v8193_v33, %v2106_v7  ;;  %v1703_v13 = vmul.f32 100.0, %v1639_v23  ;;  %vm3494_vm10 = vcmp.eq.f32.partialorder %v7160_v36, 0.0 }
 0x1e2   :  { %2847 = vst.msk [vmem:[#allocation2 + $0x138] sm:$0xff] %vm113_vm1, %v2782_v26  ;;  %v2111_v46 = vsel %vm2109_vm6, %v2110_v11, %v2108_v62  ;;  %v1115_v59 = vand.u32 2147483648, %v8220_v19  ;;  %v3241_v61 = vmul.f32 %v3177_v28, %v3177_v28  ;;  %v3495_v50 = vand.u32 2147483648, %v7160_v36  ;;  %v489_v11 = vld [vmem:[%s9934_s0 + $0x190] sm:$0xff] }
 0x1e3   :  { %v5108_v41 = vadd.f32 -1.0, %v2111_v46  ;;  %v8280_v8 = vadd.f32 1.0, %v1703_v13  ;;  %v610_v31 = vsub.f32 %v546_v39, %v482_v2  ;;  %v1570_v42 = vsub.f32 %v1506_v44, %v482_v2  ;;  %v3068_v44 = vpop.xlane.xlu1 %3067  ;;  %v2533_v13 = vld [vmem:[#allocation2 + $0x170] sm:$0xff] }
 0x1e4   :  { %vm2072_vm11 = vcmp.eq.f32.partialorder %v8222_v10, inf  ;;  %vm2074_vm0 = vcmp.eq.f32.partialorder %v8222_v10, 0.0  ;;  %v2075_v33 = vand.u32 2147483648, %v8222_v10  ;;  %v3496_v36 = vsel %vm3494_vm10, %v3495_v50, %v3493_v38 }
 0x1e5   :  { %v1445_v28 = vand.u32 2147483647, %v1381_v12  ;;  %v2341_v16 = vmul.f32 0.1, %v5108_v41  ;;  %5468 = vrsqrt.f32 %v8280_v8  ;;  %v617_v56 = vsub.f32 %v553_v37, %v489_v11 }
 0x1e6   :  { %v5461_v18 = vpop.eup %5460  ;;  %5470 = vrsqrt.f32 %v8254_v49  ;;  %vm1161_vm12 = vcmp.eq.f32.partialorder %v8249_v32, inf  ;;  %v5141_v30 = vadd.f32 -1.0, %v3496_v36  ;;  %v674_v23 = vmul.f32 %v610_v31, %v610_v31 }
 0x1e7   :  { %v5463_v7 = vpop.eup %5462  ;;  %v2405_v26 = vand.u32 2147483647, %v2341_v16  ;;  %v1111_v38 = vmul.f32 %v5461_v18, %v8220_v19  ;;  %v3305_v39 = vmul.f32 100.0, %v3241_v61  ;;  %v1634_v62 = vmul.f32 %v1570_v42, %v1570_v42 }
 0x1e8   :  { %v2071_v12 = vmul.f32 %v5463_v7, %v8222_v10  ;;  %v3912_v46 = vmul.f32 0.1, %v5141_v30  ;;  %v738_v50 = vmul.f32 100.0, %v674_v23  ;;  %v3172_v37 = vsub.f32 %v3068_v44, %v482_v2 }
 0x1e9   :  { %v2469_v41 = vadd.f32 %v2405_v26, %v1445_v28  ;;  %v1113_v49 = vsel %vm1112_vm8, %v8220_v19, %v1111_v38  ;;  %v1698_v36 = vmul.f32 100.0, %v1634_v62  ;;  %v681_v31 = vmul.f32 %v617_v56, %v617_v56  ;;  %v3089_v38 = vpop.xlane.xlu0 %3088 }
 0x1ea   :  { %v1116_v16 = vsel %vm1114_vm9, %v1115_v59, %v1113_v49  ;;  %v2073_v61 = vsel %vm2072_vm11, %v8222_v10, %v2071_v12  ;;  %v3976_v42 = vand.u32 2147483647, %v3912_v46  ;;  %v8301_v18 = vadd.f32 1.0, %v738_v50  ;;  %v1513_v49 = vld [vmem:[%s9936_s2 + $0x190] sm:$0xff] }
 0x1eb   :  { %v2789_v30 = vadd.f32 %v2533_v13, %v2469_v41  ;;  %v5039_v23 = vadd.f32 -1.0, %v1116_v16  ;;  %v2076_v2 = vsel %vm2074_vm0, %v2075_v33, %v2073_v61  ;;  %v8305_v28 = vadd.f32 1.0, %v1698_v36  ;;  %v2528_v16 = vld [vmem:[#allocation2 + $0x148] sm:$0xff] }
 0x1ec   :  { %v8307_v7 = vpop.eup %5464  ;;  %v5103_v56 = vadd.f32 -1.0, %v2076_v2  ;;  %vm1163_vm13 = vcmp.eq.f32.partialorder %v8249_v32, 0.0  ;;  %4247 = vrot.lane.b32.xlu1 %v3976_v42, %s5633_s23  ;;  %5472 = vrsqrt.f32 %v8301_v18  ;;  %v3236_v19 = vmul.f32 %v3172_v37, %v3172_v37 }
 0x1ed   :  { %v5467_v59 = vpop.eup %5466  ;;  %2854 = vst.msk [vmem:[#allocation2 + $0x170] sm:$0xff] %vm113_vm1, %v2789_v30  ;;  %v1376_v10 = vmul.f32 0.1, %v5039_v23  ;;  %v1164_v33 = vand.u32 2147483648, %v8249_v32  ;;  %v8317_v26 = vadd.f32 1.0, %v3305_v39  ;;  %5474 = vrsqrt.f32 %v8305_v28 }
 0x1ee   :  { %v2336_v44 = vmul.f32 0.1, %v5103_v56  ;;  %v1160_v62 = vmul.f32 %v5467_v59, %v8249_v32  ;;  %vm2121_vm14 = vcmp.eq.f32.partialorder %v8280_v8, inf  ;;  %vm2123_vm15 = vcmp.eq.f32.partialorder %v8280_v8, 0.0 }
 0x1ef   :  { %v1440_v13 = vand.u32 2147483647, %v1376_v10  ;;  %v2124_v12 = vand.u32 2147483648, %v8280_v8  ;;  %v745_v46 = vmul.f32 100.0, %v681_v31  ;;  %v1577_v50 = vsub.f32 %v1513_v49, %v489_v11 }
 0x1f0   :  { %v2400_v37 = vand.u32 2147483647, %v2336_v44  ;;  %v1162_v39 = vsel %vm1161_vm12, %v8249_v32, %v1160_v62  ;;  %v3300_v41 = vmul.f32 100.0, %v3236_v19  ;;  %v3179_v36 = vsub.f32 %v3089_v38, %v489_v11 }
 0x1f1   :  { %v1165_v61 = vsel %vm1163_vm13, %v1164_v33, %v1162_v39  ;;  %v8329_v42 = vadd.f32 1.0, %v745_v46  ;;  %v1641_v30 = vmul.f32 %v1577_v50, %v1577_v50  ;;  %v3477_v23 = vmul.f32 %v7110_v3, %v7023_v25 }
 0x1f2   :  { %v5469_v2 = vpop.eup %5468  ;;  %v2464_v31 = vadd.f32 %v2400_v37, %v1440_v13  ;;  %v5046_v56 = vadd.f32 -1.0, %v1165_v61  ;;  %vm1126_vm2 = vcmp.eq.f32.partialorder %v8301_v18, inf  ;;  %vm3478_vm3 = vcmp.eq.f32.partialorder %v7023_v25, inf }
 0x1f3   :  { %v8335_v49 = vpop.eup %5470  ;;  %v2120_v11 = vmul.f32 %v5469_v2, %v8280_v8  ;;  %vm1128_vm4 = vcmp.eq.f32.partialorder %v8301_v18, 0.0  ;;  %v1129_v32 = vand.u32 2147483648, %v8301_v18  ;;  %5476 = vrsqrt.f32 %v8329_v42 }
 0x1f4   :  { %v2784_v19 = vadd.f32 %v2528_v16, %v2464_v31  ;;  %vm2086_vm5 = vcmp.eq.f32.partialorder %v8305_v28, inf  ;;  %v1705_v3 = vmul.f32 100.0, %v1641_v30  ;;  %v3243_v59 = vmul.f32 %v3179_v36, %v3179_v36  ;;  %v1508_v36 = vld [vmem:[%s9936_s2 + $0x168] sm:$0xff] }
 0x1f5   :  { %v1383_v10 = vmul.f32 0.1, %v5046_v56  ;;  %v2122_v33 = vsel %vm2121_vm14, %v8280_v8, %v2120_v11  ;;  %vm2088_vm6 = vcmp.eq.f32.partialorder %v8305_v28, 0.0  ;;  %v3479_v38 = vsel %vm3478_vm3, %v7023_v25, %v3477_v23  ;;  %v484_v23 = vld [vmem:[%s9934_s0 + $0x168] sm:$0xff] }
 0x1f6   :  { %2849 = vst.msk [vmem:[#allocation2 + $0x148] sm:$0xff] %vm113_vm1, %v2784_v19  ;;  %v2125_v44 = vsel %vm2123_vm15, %v2124_v12, %v2122_v33  ;;  %v8350_v62 = vadd.f32 1.0, %v1705_v3  ;;  %vm3480_vm7 = vcmp.eq.f32.partialorder %v7023_v25, 0.0  ;;  %v3481_v13 = vand.u32 2147483648, %v7023_v25  ;;  %v548_v12 = vld [vmem:[%s9935_s1 + $0x168] sm:$0xff]  ;;  %v2535_v33 = vld [vmem:[#allocation2 + $0x180] sm:$0xff] }
 0x1f7   :  { %v5110_v46 = vadd.f32 -1.0, %v2125_v44  ;;  %v2089_v50 = vand.u32 2147483648, %v8305_v28  ;;  %v3498_v37 = vmul.f32 %v7053_v63, %v6960_v6  ;;  %vm3499_vm8 = vcmp.eq.f32.partialorder %v6960_v6, inf }
 0x1f8   :  { %v8358_v39 = vadd.f32 1.0, %v3300_v41  ;;  %vm1175_vm9 = vcmp.eq.f32.partialorder %v8329_v42, inf  ;;  %5478 = vrsqrt.f32 %v8350_v62  ;;  %v3307_v8 = vmul.f32 100.0, %v3243_v59  ;;  %v3074_v59 = vpop.xlane.xlu1 %3073 }
 0x1f9   :  { %v5473_v16 = vpop.eup %5472  ;;  %v1447_v61 = vand.u32 2147483647, %v1383_v10  ;;  %v2343_v63 = vmul.f32 0.1, %v5110_v46  ;;  %vm1177_vm10 = vcmp.eq.f32.partialorder %v8329_v42, 0.0  ;;  %v3482_v41 = vsel %vm3480_vm7, %v3481_v13, %v3479_v38 }
 0x1fa   :  { %v3500_v30 = vsel %vm3499_vm8, %v6960_v6, %v3498_v37  ;;  %v5475_v2 = vpop.eup %5474  ;;  %v1125_v31 = vmul.f32 %v5473_v16, %v8301_v18  ;;  %v5139_v56 = vadd.f32 -1.0, %v3482_v41  ;;  %vm3501_vm11 = vcmp.eq.f32.partialorder %v6960_v6, 0.0 }
 0x1fb   :  { %v3502_v11 = vand.u32 2147483648, %v6960_v6  ;;  %v2407_v19 = vand.u32 2147483647, %v2343_v63  ;;  %v2085_v3 = vmul.f32 %v5475_v2, %v8305_v28  ;;  %v612_v25 = vsub.f32 %v548_v12, %v484_v23  ;;  %v555_v12 = vld [vmem:[%s9935_s1 + $0x1a0] sm:$0xff] }
 0x1fc   :  { %v1572_v10 = vsub.f32 %v1508_v36, %v484_v23  ;;  %v1127_v38 = vsel %vm1126_vm2, %v8301_v18, %v1125_v31  ;;  %v3910_v44 = vmul.f32 0.1, %v5139_v56  ;;  %v3174_v46 = vsub.f32 %v3074_v59, %v484_v23 }
 0x1fd   :  { %v3503_v13 = vsel %vm3501_vm11, %v3502_v11, %v3500_v30  ;;  %v2471_v37 = vadd.f32 %v2407_v19, %v1447_v61  ;;  %v1130_v16 = vsel %vm1128_vm4, %v1129_v32, %v1127_v38  ;;  %v2087_v6 = vsel %vm2086_vm5, %v8305_v28, %v2085_v3  ;;  %v491_v32 = vld [vmem:[%s9934_s0 + $0x1a0] sm:$0xff] }
 0x1fe   :  { %v5142_v63 = vadd.f32 -1.0, %v3503_v13  ;;  %v5041_v36 = vadd.f32 -1.0, %v1130_v16  ;;  %v2090_v41 = vsel %vm2088_vm6, %v2089_v50, %v2087_v6  ;;  %v3974_v2 = vand.u32 2147483647, %v3910_v44  ;;  %v4562_v16 = vld [vmem:[#allocation2 + $0xa8] sm:$0xff] }
 0x1ff   :  { %v676_v30 = vmul.f32 %v612_v25, %v612_v25  ;;  %v2791_v23 = vadd.f32 %v2535_v33, %v2471_v37  ;;  %v5105_v61 = vadd.f32 -1.0, %v2090_v41  ;;  %v1636_v18 = vmul.f32 %v1572_v10, %v1572_v10  ;;  %v1515_v10 = vld [vmem:[%s9936_s2 + $0x1a0] sm:$0xff]  ;;  %v2530_v41 = vld [vmem:[#allocation2 + $0x158] sm:$0xff] }
 0x200   :  { %v3913_v31 = vmul.f32 0.1, %v5142_v63  ;;  %v5477_v56 = vpop.eup %5476  ;;  %v1378_v11 = vmul.f32 0.1, %v5041_v36  ;;  %v1178_v19 = vand.u32 2147483648, %v8329_v42  ;;  %4243 = vrot.lane.b32.xlu0 %v3974_v2, %s5633_s23  ;;  %v619_v59 = vsub.f32 %v555_v12, %v491_v32 }
 0x201   :  { %v740_v3 = vmul.f32 100.0, %v676_v30  ;;  %2856 = vst.msk [vmem:[#allocation2 + $0x180] sm:$0xff] %vm113_vm1, %v2791_v23  ;;  %v2338_v28 = vmul.f32 0.1, %v5105_v61  ;;  %v1174_v50 = vmul.f32 %v5477_v56, %v8329_v42  ;;  %v1700_v33 = vmul.f32 100.0, %v1636_v18 }
 0x202   :  { %v3977_v25 = vand.u32 2147483647, %v3913_v31  ;;  %v1442_v38 = vand.u32 2147483647, %v1378_v11  ;;  %v8402_v44 = vadd.f32 1.0, %v3307_v8  ;;  %v3238_v37 = vmul.f32 %v3174_v46, %v3174_v46 }
 0x203   :  { %v8404_v13 = vadd.f32 1.0, %v740_v3  ;;  %v2402_v6 = vand.u32 2147483647, %v2338_v28  ;;  %v1176_v63 = vsel %vm1175_vm9, %v8329_v42, %v1174_v50  ;;  %v8410_v12 = vadd.f32 1.0, %v1700_v33 }
 0x204   :  { %4249 = vrot.lane.b32.xlu1 %v3977_v25, %s5633_s23  ;;  %v683_v36 = vmul.f32 %v619_v59, %v619_v59  ;;  %v1179_v2 = vsel %vm1177_vm10, %v1178_v19, %v1176_v63  ;;  %vm2135_vm0 = vcmp.eq.f32.partialorder %v8350_v62, inf  ;;  %v1579_v8 = vsub.f32 %v1515_v10, %v491_v32  ;;  %v3095_v59 = vpop.xlane.xlu0 %3094 }
 0x205   :  { %5480 = vrsqrt.f32 %v8404_v13  ;;  %v5479_v46 = vpop.eup %5478  ;;  %v2466_v30 = vadd.f32 %v2402_v6, %v1442_v38  ;;  %v5048_v23 = vadd.f32 -1.0, %v1179_v2  ;;  %v2138_v61 = vand.u32 2147483648, %v8350_v62 }
 0x206   :  { %5482 = vrsqrt.f32 %v8410_v12  ;;  %v8419_v31 = vsel %vm113_vm1, %v4562_v16, 0.0  ;;  %v2134_v42 = vmul.f32 %v5479_v46, %v8350_v62  ;;  %vm2137_vm12 = vcmp.eq.f32.partialorder %v8350_v62, 0.0  ;;  %v2537_v46 = vld [vmem:[#allocation2 + $0x190] sm:$0xff] }
 0x207   :  { %5484 = vrsqrt.f32 %v8317_v26  ;;  %v2786_v18 = vadd.f32 %v2530_v41, %v2466_v30  ;;  %v3302_v56 = vmul.f32 100.0, %v3238_v37  ;;  %v747_v11 = vmul.f32 100.0, %v683_v36 }
 0x208   :  { %5486 = vrsqrt.f32 %v8358_v39  ;;  %v1385_v19 = vmul.f32 0.1, %v5048_v23  ;;  %v2136_v3 = vsel %vm2135_vm0, %v8350_v62, %v2134_v42  ;;  %v1643_v28 = vmul.f32 %v1579_v8, %v1579_v8 }
 0x209   :  { %v3526_v50 = vmul.f32 %v7205_v57, %v7073_v15  ;;  %2851 = vst.msk [vmem:[#allocation2 + $0x158] sm:$0xff] %vm113_vm1, %v2786_v18  ;;  %v2139_v25 = vsel %vm2137_vm12, %v2138_v61, %v2136_v3  ;;  %5488 = vrsqrt.f32 %v8402_v44  ;;  %vm1140_vm13 = vcmp.eq.f32.partialorder %v8404_v13, inf }
 0x20a   :  { %v8433_v33 = vadd.f32 1.0, %v747_v11  ;;  %v5112_v10 = vadd.f32 -1.0, %v2139_v25  ;;  %vm1142_vm14 = vcmp.eq.f32.partialorder %v8404_v13, 0.0  ;;  %v1707_v38 = vmul.f32 100.0, %v1643_v28  ;;  %v557_v28 = vld [vmem:[%s9935_s1 + $0x1b0] sm:$0xff] }
 0x20b   :  { %vm3527_vm15 = vcmp.eq.f32.partialorder %v7073_v15, inf  ;;  %v1143_v62 = vand.u32 2147483648, %v8404_v13  ;;  %v8438_v37 = vadd.f32 1.0, %v3302_v56  ;;  %v3181_v57 = vsub.f32 %v3095_v59, %v491_v32  ;;  %v550_v32 = vld [vmem:[%s9935_s1 + $0x178] sm:$0xff] }
 0x20c   :  { %5490 = vrsqrt.f32 %v8433_v33  ;;  %v1449_v16 = vand.u32 2147483647, %v1385_v19  ;;  %v2345_v6 = vmul.f32 0.1, %v5112_v10  ;;  %v8441_v63 = vadd.f32 1.0, %v1707_v38  ;;  %v486_v56 = vld [vmem:[%s9934_s0 + $0x178] sm:$0xff] }
 0x20d   :  { %v3528_v36 = vsel %vm3527_vm15, %v7073_v15, %v3526_v50  ;;  %vm3529_vm2 = vcmp.eq.f32.partialorder %v7073_v15, 0.0  ;;  %v3530_v41 = vand.u32 2147483648, %v7073_v15  ;;  %v3505_v2 = vmul.f32 %v7306_v52, %v7221_v48  ;;  %v1510_v15 = vld [vmem:[%s9936_s2 + $0x178] sm:$0xff] }
 0x20e   :  { %vm3506_vm3 = vcmp.eq.f32.partialorder %v7221_v48, inf  ;;  %v2409_v8 = vand.u32 2147483647, %v2345_v6  ;;  %vm2100_vm4 = vcmp.eq.f32.partialorder %v8410_v12, inf  ;;  %vm2102_vm5 = vcmp.eq.f32.partialorder %v8410_v12, 0.0 }
 0x20f   :  { %5492 = vrsqrt.f32 %v8441_v63  ;;  %v2103_v52 = vand.u32 2147483648, %v8410_v12  ;;  %v3531_v30 = vsel %vm3529_vm2, %v3530_v41, %v3528_v36  ;;  %v3507_v23 = vsel %vm3506_vm3, %v7221_v48, %v3505_v2 }
 0x210   :  { %5494 = vrsqrt.f32 %v8438_v37  ;;  %v2473_v61 = vadd.f32 %v2409_v8, %v1449_v16  ;;  %v5146_v42 = vadd.f32 -1.0, %v3531_v30  ;;  %vm3508_vm6 = vcmp.eq.f32.partialorder %v7221_v48, 0.0 }
 0x211   :  { %v3509_v18 = vand.u32 2147483648, %v7221_v48  ;;  %vm1189_vm7 = vcmp.eq.f32.partialorder %v8433_v33, inf  ;;  %v3245_v19 = vmul.f32 %v3181_v57, %v3181_v57  ;;  %v614_v3 = vsub.f32 %v550_v32, %v486_v56  ;;  %v8477_v57 = vld [vmem:[%s9934_s0 + $0x1b0] sm:$0xff] }
 0x212   :  { %v5481_v11 = vpop.eup %5480  ;;  %v1574_v59 = vsub.f32 %v1510_v15, %v486_v56  ;;  %v2793_v25 = vadd.f32 %v2537_v46, %v2473_v61  ;;  %v3917_v38 = vmul.f32 0.1, %v5146_v42  ;;  %vm1191_vm8 = vcmp.eq.f32.partialorder %v8433_v33, 0.0 }
 0x213   :  { %v5483_v50 = vpop.eup %5482  ;;  %v1139_v10 = vmul.f32 %v5481_v11, %v8404_v13  ;;  %v3510_v48 = vsel %vm3508_vm6, %v3509_v18, %v3507_v23  ;;  %v678_v41 = vmul.f32 %v614_v3, %v614_v3  ;;  %v621_v46 = vsub.f32 %v557_v28, %v8477_v57 }
 0x214   :  { %v8471_v16 = vpop.eup %5484  ;;  %v2099_v6 = vmul.f32 %v5483_v50, %v8410_v12  ;;  %v5143_v36 = vadd.f32 -1.0, %v3510_v48  ;;  %v1638_v2 = vmul.f32 %v1574_v59, %v1574_v59  ;;  %2858 = vst.msk [vmem:[#allocation2 + $0x190] sm:$0xff] %vm113_vm1, %v2793_v25  ;;  %v3981_v15 = vand.u32 2147483647, %v3917_v38 }
 0x215   :  { %v8479_v8 = vpop.eup %5486  ;;  %v1141_v32 = vsel %vm1140_vm13, %v8404_v13, %v1139_v10  ;;  %v742_v42 = vmul.f32 100.0, %v678_v41  ;;  %v3309_v59 = vmul.f32 100.0, %v3245_v19  ;;  %v1517_v13 = vld [vmem:[%s9936_s2 + $0x1b0] sm:$0xff]  ;;  %v1192_v28 = vand.u32 2147483648, %v8433_v33  ;;  %v3080_v10 = vpop.xlane.xlu1 %3079 }
 0x216   :  { %v1144_v30 = vsel %vm1142_vm14, %v1143_v62, %v1141_v32  ;;  %v2101_v23 = vsel %vm2100_vm4, %v8410_v12, %v2099_v6  ;;  %v3914_v61 = vmul.f32 0.1, %v5143_v36  ;;  %v8492_v18 = vpop.eup %5488  ;;  %4257 = vrot.lane.b32.xlu0 %v3981_v15, %s5633_s23  ;;  %v1702_v50 = vmul.f32 100.0, %v1638_v2 }
 0x217   :  { %v5043_v11 = vadd.f32 -1.0, %v1144_v30  ;;  %v2104_v3 = vsel %vm2102_vm5, %v2103_v52, %v2101_v23  ;;  %v8501_v38 = vadd.f32 1.0, %v742_v42  ;;  %v3176_v12 = vsub.f32 %v3080_v10, %v486_v56  ;;  %v3101_v10 = vpop.xlane.xlu0 %3100 }
 0x218   :  { %v5107_v62 = vadd.f32 -1.0, %v2104_v3  ;;  %v3978_v25 = vand.u32 2147483647, %v3914_v61  ;;  %v8503_v36 = vadd.f32 1.0, %v1702_v50  ;;  %v685_v52 = vmul.f32 %v621_v46, %v621_v46 }
 0x219   :  { %v5491_v48 = vpop.eup %5490  ;;  %v1380_v6 = vmul.f32 0.1, %v5043_v11  ;;  %5496 = vrsqrt.f32 %v8501_v38  ;;  %v1581_v2 = vsub.f32 %v1517_v13, %v8477_v57  ;;  %v8511_v32 = vadd.f32 %v8419_v31, %v8145_v27  ;;  %v2532_v11 = vld [vmem:[#allocation2 + $0x168] sm:$0xff] }
 0x21a   :  { %v2340_v19 = vmul.f32 0.1, %v5107_v62  ;;  %v1188_v41 = vmul.f32 %v5491_v48, %v8433_v33  ;;  %4251 = vrot.lane.b32.xlu1 %v3978_v25, %s5633_s23  ;;  %v8513_v30 = vadd.f32 1.0, %v3309_v59  ;;  %5498 = vrsqrt.f32 %v8503_v36 }
 0x21b   :  { %v1444_v15 = vand.u32 2147483647, %v1380_v6  ;;  %vm2149_vm9 = vcmp.eq.f32.partialorder %v8441_v63, inf  ;;  %v2152_v61 = vand.u32 2147483648, %v8441_v63  ;;  %vm2151_vm10 = vcmp.eq.f32.partialorder %v8441_v63, 0.0 }
 0x21c   :  { %v5493_v56 = vpop.eup %5492  ;;  %v2404_v46 = vand.u32 2147483647, %v2340_v19  ;;  %v1190_v23 = vsel %vm1189_vm7, %v8433_v33, %v1188_v41  ;;  %v3240_v3 = vmul.f32 %v3176_v12, %v3176_v12  ;;  %v749_v13 = vmul.f32 100.0, %v685_v52 }
 0x21d   :  { %v8521_v42 = vpop.eup %5494  ;;  %v1193_v27 = vsel %vm1191_vm8, %v1192_v28, %v1190_v23  ;;  %v2148_v31 = vmul.f32 %v5493_v56, %v8441_v63  ;;  %v1645_v62 = vmul.f32 %v1581_v2, %v1581_v2  ;;  %5500 = vrsqrt.f32 %v8513_v30 }
 0x21e   :  { %v2468_v59 = vadd.f32 %v2404_v46, %v1444_v15  ;;  %v5050_v50 = vadd.f32 -1.0, %v1193_v27  ;;  %v3540_v48 = vmul.f32 %v7284_v14, %v7188_v40  ;;  %vm3541_vm11 = vcmp.eq.f32.partialorder %v7188_v40, inf }
 0x21f   :  { %v2150_v25 = vsel %vm2149_vm9, %v8441_v63, %v2148_v31  ;;  %v8532_v19 = vadd.f32 1.0, %v749_v13  ;;  %vm1154_vm0 = vcmp.eq.f32.partialorder %v8501_v38, inf  ;;  %v8535_v52 = vmul.f32 100.0, %v3240_v3  ;;  %v2539_v3 = vld [vmem:[#allocation2 + $0x1a0] sm:$0xff] }
 0x220   :  { %v2788_v33 = vadd.f32 %v2532_v11, %v2468_v59  ;;  %v1387_v28 = vmul.f32 0.1, %v5050_v50  ;;  %v2153_v6 = vsel %vm2151_vm10, %v2152_v61, %v2150_v25  ;;  %v1709_v41 = vmul.f32 100.0, %v1645_v62  ;;  %v10005_v61 = vld [vmem:[#allocation10_spill] sm:$0xff]  ;;  %v10006_v11 = vld [vmem:[#allocation11_spill] sm:$0xff] }
 0x221   :  { %v5114_v12 = vadd.f32 -1.0, %v2153_v6  ;;  %vm1156_vm12 = vcmp.eq.f32.partialorder %v8501_v38, 0.0  ;;  %v1157_v63 = vand.u32 2147483648, %v8501_v38  ;;  %5502 = vrsqrt.f32 %v8532_v19 }
 0x222   :  { %2853 = vst.msk [vmem:[#allocation2 + $0x168] sm:$0xff] %vm113_vm1, %v2788_v33  ;;  %v3183_v14 = vsub.f32 %v3101_v10, %v8477_v57  ;;  %v1451_v2 = vand.u32 2147483647, %v1387_v28  ;;  %v8542_v56 = vadd.f32 1.0, %v1709_v41  ;;  %v3542_v46 = vsel %vm3541_vm11, %v7188_v40, %v3540_v48  ;;  %v552_v57 = vld [vmem:[%s9935_s1 + $0x188] sm:$0xff] }
 0x223   :  { %v2347_v15 = vmul.f32 0.1, %v5114_v12  ;;  %vm3543_vm13 = vcmp.eq.f32.partialorder %v7188_v40, 0.0  ;;  %v3544_v23 = vand.u32 2147483648, %v7188_v40  ;;  %v3512_v27 = vmul.f32 %v10006_v11, %v10005_v61  ;;  %v1512_v40 = vld [vmem:[%s9936_s2 + $0x188] sm:$0xff] }
 0x224   :  { %vm3513_vm14 = vcmp.eq.f32.partialorder %v10005_v61, inf  ;;  %vm2114_vm15 = vcmp.eq.f32.partialorder %v8503_v36, inf  ;;  %vm2116_vm2 = vcmp.eq.f32.partialorder %v8503_v36, 0.0  ;;  %5504 = vrsqrt.f32 %v8542_v56  ;;  %v488_v28 = vld [vmem:[%s9934_s0 + $0x188] sm:$0xff] }
 0x225   :  { %v2411_v31 = vand.u32 2147483647, %v2347_v15  ;;  %v2117_v59 = vand.u32 2147483648, %v8503_v36  ;;  %v3247_v50 = vmul.f32 %v3183_v14, %v3183_v14  ;;  %v3545_v13 = vsel %vm3543_vm13, %v3544_v23, %v3542_v46 }
 0x226   :  { %v3514_v62 = vsel %vm3513_vm14, %v10005_v61, %v3512_v27  ;;  %v5497_v25 = vpop.eup %5496  ;;  %v5148_v48 = vadd.f32 -1.0, %v3545_v13  ;;  %vm3515_vm3 = vcmp.eq.f32.partialorder %v10005_v61, 0.0  ;;  %v3516_v33 = vand.u32 2147483648, %v10005_v61  ;;  %v558_v13 = vld [vmem:[%s9935_s1 + $0x1b8] sm:$0xff] }
 0x227   :  { %v2475_v10 = vadd.f32 %v2411_v31, %v1451_v2  ;;  %v5499_v6 = vpop.eup %5498  ;;  %v1153_v12 = vmul.f32 %v5497_v25, %v8501_v38  ;;  %vm1203_vm4 = vcmp.eq.f32.partialorder %v8532_v19, inf  ;;  %v616_v41 = vsub.f32 %v552_v57, %v488_v28 }
 0x228   :  { %v1576_v14 = vsub.f32 %v1512_v40, %v488_v28  ;;  %v2113_v46 = vmul.f32 %v5499_v6, %v8503_v36  ;;  %v3919_v2 = vmul.f32 0.1, %v5148_v48  ;;  %v3517_v23 = vsel %vm3515_vm3, %v3516_v33, %v3514_v62 }
 0x229   :  { %v2795_v15 = vadd.f32 %v2539_v3, %v2475_v10  ;;  %v1155_v61 = vsel %vm1154_vm0, %v8501_v38, %v1153_v12  ;;  %v5144_v11 = vadd.f32 -1.0, %v3517_v23  ;;  %v680_v27 = vmul.f32 %v616_v41, %v616_v41  ;;  %v8591_v38 = vld [vmem:[%s9934_s0 + $0x1b8] sm:$0xff] }
 0x22a   :  { %v1640_v31 = vmul.f32 %v1576_v14, %v1576_v14  ;;  %v1158_v57 = vsel %vm1156_vm12, %v1157_v63, %v1155_v61  ;;  %v2115_v40 = vsel %vm2114_vm15, %v8503_v36, %v2113_v46  ;;  %vm1205_vm5 = vcmp.eq.f32.partialorder %v8532_v19, 0.0  ;;  %v8584_v62 = vpop.eup %5500  ;;  %v1518_v63 = vld [vmem:[%s9936_s2 + $0x1b8] sm:$0xff]  ;;  %v3086_v46 = vpop.xlane.xlu1 %3085 }
 0x22b   :  { %2860 = vst.msk [vmem:[#allocation2 + $0x1a0] sm:$0xff] %vm113_vm1, %v2795_v15  ;;  %v3983_v3 = vand.u32 2147483647, %v3919_v2  ;;  %v5045_v25 = vadd.f32 -1.0, %v1158_v57  ;;  %v2118_v10 = vsel %vm2116_vm2, %v2117_v59, %v2115_v40  ;;  %v3915_v48 = vmul.f32 0.1, %v5144_v11 }
 0x22c   :  { %v744_v33 = vmul.f32 100.0, %v680_v27  ;;  %v5109_v6 = vadd.f32 -1.0, %v2118_v10  ;;  %v1206_v12 = vand.u32 2147483648, %v8532_v19  ;;  %v1704_v41 = vmul.f32 100.0, %v1640_v31 }
 0x22d   :  { %4261 = vrot.lane.b32.xlu0 %v3983_v3, %s5633_s23  ;;  %v622_v36 = vsub.f32 %v558_v13, %v8591_v38  ;;  %v1382_v59 = vmul.f32 0.1, %v5045_v25  ;;  %v3311_v14 = vmul.f32 100.0, %v3247_v50  ;;  %v3979_v15 = vand.u32 2147483647, %v3915_v48  ;;  %v2534_v25 = vld [vmem:[#allocation2 + $0x178] sm:$0xff] }
 0x22e   :  { %v8599_v2 = vadd.f32 1.0, %v744_v33  ;;  %v5503_v23 = vpop.eup %5502  ;;  %v2342_v61 = vmul.f32 0.1, %v5109_v6  ;;  %v8601_v11 = vadd.f32 1.0, %v1704_v41  ;;  %v3178_v27 = vsub.f32 %v3086_v46, %v488_v28  ;;  %v4564_v6 = vld [vmem:[#allocation2 + $0xb8] sm:$0xff] }
 0x22f   :  { %v1582_v57 = vsub.f32 %v1518_v63, %v8591_v38  ;;  %v1446_v40 = vand.u32 2147483647, %v1382_v59  ;;  %v1202_v10 = vmul.f32 %v5503_v23, %v8532_v19  ;;  %4253 = vrot.lane.b32.xlu1 %v3979_v15, %s5633_s23  ;;  %v686_v31 = vmul.f32 %v622_v36, %v622_v36 }
 0x230   :  { %5506 = vrsqrt.f32 %v8599_v2  ;;  %v8609_v50 = vadd.f32 %v7589_v24, %v8511_v32  ;;  %v2406_v13 = vand.u32 2147483647, %v2342_v61  ;;  %v8612_v3 = vadd.f32 1.0, %v8535_v52  ;;  %v10009_v61 = vld [vmem:[#allocation12_spill] sm:$0xff] }
 0x231   :  { %5508 = vrsqrt.f32 %v8601_v11  ;;  %v5505_v28 = vpop.eup %5504  ;;  %v1204_v48 = vsel %vm1203_vm4, %v8532_v19, %v1202_v10  ;;  %vm2163_vm6 = vcmp.eq.f32.partialorder %v8542_v56, inf  ;;  %vm2165_vm7 = vcmp.eq.f32.partialorder %v8542_v56, 0.0  ;;  %v10010_v10 = vld [vmem:[#allocation14_spill] sm:$0xff] }
 0x232   :  { %10007 = vst [vmem:[#allocation10_spill] sm:$0xff] %v8609_v50  ;;  %v2166_v33 = vand.u32 2147483648, %v8542_v56  ;;  %v2470_v24 = vadd.f32 %v2406_v13, %v1446_v40  ;;  %v1207_v32 = vsel %vm1205_vm5, %v1206_v12, %v1204_v48  ;;  %v2162_v52 = vmul.f32 %v5505_v28, %v8542_v56 }
 0x233   :  { %v8624_v63 = vadd.f32 1.0, %v3311_v14  ;;  %v5052_v41 = vadd.f32 -1.0, %v1207_v32  ;;  %v3242_v36 = vmul.f32 %v3178_v27, %v3178_v27  ;;  %v750_v59 = vmul.f32 100.0, %v686_v31  ;;  %v10012_v32 = vld [vmem:[#allocation13_spill] sm:$0xff] }
 0x234   :  { %v1646_v15 = vmul.f32 %v1582_v57, %v1582_v57  ;;  %v2790_v46 = vadd.f32 %v2534_v25, %v2470_v24  ;;  %5510 = vrsqrt.f32 %v8612_v3  ;;  %v2164_v23 = vsel %vm2163_vm6, %v8542_v56, %v2162_v52  ;;  %v3104_v25 = vpop.xlane.xlu0 %3103  ;;  %v10013_v52 = vld [vmem:[#allocation17_spill] sm:$0xff] }
 0x235   :  { %10008 = vst [vmem:[#allocation11_spill] sm:$0xff] %v8624_v63  ;;  %v3554_v40 = vmul.f32 %v10010_v10, %v10009_v61  ;;  %v1389_v13 = vmul.f32 0.1, %v5052_v41  ;;  %v2167_v19 = vsel %vm2165_vm7, %v2166_v33, %v2164_v23  ;;  %v8632_v12 = vadd.f32 1.0, %v750_v59  ;;  %v554_v59 = vld [vmem:[%s9935_s1 + $0x198] sm:$0xff] }
 0x236   :  { %v1710_v14 = vmul.f32 100.0, %v1646_v15  ;;  %v8635_v28 = vsel %vm113_vm1, %v4564_v6, 0.0  ;;  %2855 = vst.msk [vmem:[#allocation2 + $0x178] sm:$0xff] %vm113_vm1, %v2790_v46  ;;  %v5116_v27 = vadd.f32 -1.0, %v2167_v19  ;;  %5512 = vrsqrt.f32 %v8624_v63  ;;  %v1514_v15 = vld [vmem:[%s9936_s2 + $0x198] sm:$0xff]  ;;  %v2541_v46 = vld [vmem:[#allocation2 + $0x1b0] sm:$0xff] }
 0x237   :  { %10011 = vst [vmem:[#allocation12_spill] sm:$0xff] %v8635_v28  ;;  %vm3555_vm8 = vcmp.eq.f32.partialorder %v10009_v61, inf  ;;  %vm1168_vm9 = vcmp.eq.f32.partialorder %v8599_v2, inf  ;;  %vm1170_vm10 = vcmp.eq.f32.partialorder %v8599_v2, 0.0  ;;  %v8642_v57 = vmul.f32 100.0, %v3242_v36 }
 0x238   :  { %5514 = vrsqrt.f32 %v8632_v12  ;;  %v1453_v56 = vand.u32 2147483647, %v1389_v13  ;;  %v2349_v31 = vmul.f32 0.1, %v5116_v27  ;;  %v8645_v48 = vadd.f32 1.0, %v1710_v14  ;;  %v490_v27 = vld [vmem:[%s9934_s0 + $0x198] sm:$0xff] }
 0x239   :  { %vm3557_vm11 = vcmp.eq.f32.partialorder %v10009_v61, 0.0  ;;  %v3556_v33 = vsel %vm3555_vm8, %v10009_v61, %v3554_v40  ;;  %v3558_v24 = vand.u32 2147483648, %v10009_v61  ;;  %v3519_v6 = vmul.f32 %v10013_v52, %v10012_v32 }
 0x23a   :  { %vm3520_vm0 = vcmp.eq.f32.partialorder %v10012_v32, inf  ;;  %v2413_v41 = vand.u32 2147483647, %v2349_v31  ;;  %v1171_v36 = vand.u32 2147483648, %v8599_v2  ;;  %vm2128_vm12 = vcmp.eq.f32.partialorder %v8601_v11, inf }
 0x23b   :  { %5516 = vrsqrt.f32 %v8645_v48  ;;  %vm2130_vm13 = vcmp.eq.f32.partialorder %v8601_v11, 0.0  ;;  %v3184_v23 = vsub.f32 %v3104_v25, %v8591_v38  ;;  %v3559_v61 = vsel %vm3557_vm11, %v3558_v24, %v3556_v33 }
 0x23c   :  { %v3521_v10 = vsel %vm3520_vm0, %v10012_v32, %v3519_v6  ;;  %v2477_v13 = vadd.f32 %v2413_v41, %v1453_v56  ;;  %v5150_v19 = vadd.f32 -1.0, %v3559_v61  ;;  %vm3522_vm14 = vcmp.eq.f32.partialorder %v10012_v32, 0.0 }
 0x23d   :  { %v5507_v40 = vpop.eup %5506  ;;  %v3523_v14 = vand.u32 2147483648, %v10012_v32  ;;  %v2131_v28 = vand.u32 2147483648, %v8601_v11  ;;  %v618_v38 = vsub.f32 %v554_v59, %v490_v27  ;;  %v1578_v25 = vsub.f32 %v1514_v15, %v490_v27 }
 0x23e   :  { %v5509_v31 = vpop.eup %5508  ;;  %v1167_v52 = vmul.f32 %v5507_v40, %v8599_v2  ;;  %v2797_v33 = vadd.f32 %v2541_v46, %v2477_v13  ;;  %v3921_v56 = vmul.f32 0.1, %v5150_v19  ;;  %v3248_v15 = vmul.f32 %v3184_v23, %v3184_v23 }
 0x23f   :  { %v2127_v24 = vmul.f32 %v5509_v31, %v8601_v11  ;;  %v3524_v6 = vsel %vm3522_vm14, %v3523_v14, %v3521_v10  ;;  %v682_v61 = vmul.f32 %v618_v38, %v618_v38  ;;  %v1642_v50 = vmul.f32 %v1578_v25, %v1578_v25 }
 0x240   :  { %v1169_v32 = vsel %vm1168_vm9, %v8599_v2, %v1167_v52  ;;  %v5145_v41 = vadd.f32 -1.0, %v3524_v6  ;;  %2862 = vst.msk [vmem:[#allocation2 + $0x1b0] sm:$0xff] %vm113_vm1, %v2797_v33  ;;  %v3985_v46 = vand.u32 2147483647, %v3921_v56  ;;  %vm1210_vm15 = vcmp.eq.f32.partialorder %v8632_v12, inf  ;;  %v3092_v2 = vpop.xlane.xlu1 %3091 }
 0x241   :  { %v1172_v40 = vsel %vm1170_vm10, %v1171_v36, %v1169_v32  ;;  %v2129_v59 = vsel %vm2128_vm12, %v8601_v11, %v2127_v24  ;;  %v8682_v13 = vpop.eup %5510  ;;  %v746_v31 = vmul.f32 100.0, %v682_v61  ;;  %vm1212_vm2 = vcmp.eq.f32.partialorder %v8632_v12, 0.0 }
 0x242   :  { %v5047_v10 = vadd.f32 -1.0, %v1172_v40  ;;  %v2132_v19 = vsel %vm2130_vm13, %v2131_v28, %v2129_v59  ;;  %v3916_v14 = vmul.f32 0.1, %v5145_v41  ;;  %4265 = vrot.lane.b32.xlu0 %v3985_v46, %s5633_s23  ;;  %v1706_v36 = vmul.f32 100.0, %v1642_v50  ;;  %v2536_v59 = vld [vmem:[#allocation2 + $0x188] sm:$0xff] }
 0x243   :  { %v5111_v52 = vadd.f32 -1.0, %v2132_v19  ;;  %v8689_v38 = vpop.eup %5512  ;;  %v8691_v33 = vadd.f32 1.0, %v746_v31  ;;  %v3180_v24 = vsub.f32 %v3092_v2, %v490_v27  ;;  %v1213_v56 = vand.u32 2147483648, %v8632_v12 }
 0x244   :  { %10014 = vst [vmem:[#allocation14_spill] sm:$0xff] %v8689_v38  ;;  %v1384_v23 = vmul.f32 0.1, %v5047_v10  ;;  %v3980_v25 = vand.u32 2147483647, %v3916_v14  ;;  %v8694_v6 = vadd.f32 1.0, %v1706_v36  ;;  %v3568_v32 = vmul.f32 %v7521_v29, %v7380_v9 }
 0x245   :  { %v5515_v11 = vpop.eup %5514  ;;  %v2344_v28 = vmul.f32 0.1, %v5111_v52  ;;  %5518 = vrsqrt.f32 %v8691_v33  ;;  %vm3569_vm3 = vcmp.eq.f32.partialorder %v7380_v9, inf  ;;  %vm2170_vm4 = vcmp.eq.f32.partialorder %v8645_v48, inf  ;;  %v10015_v36 = vld [vmem:[#allocation15_spill] sm:$0xff]  ;;  %v10017_v38 = vld [vmem:[#allocation16_spill] sm:$0xff] }
 0x246   :  { %v1448_v41 = vand.u32 2147483647, %v1384_v23  ;;  %v1209_v61 = vmul.f32 %v5515_v11, %v8632_v12  ;;  %4255 = vrot.lane.b32.xlu1 %v3980_v25, %s5633_s23  ;;  %v8703_v27 = vmul.f32 100.0, %v3248_v15  ;;  %5520 = vrsqrt.f32 %v8694_v6  ;;  %v10016_v23 = vld [vmem:[#allocation19_spill] sm:$0xff] }
 0x247   :  { %v2408_v50 = vand.u32 2147483647, %v2344_v28  ;;  %vm2172_vm5 = vcmp.eq.f32.partialorder %v8645_v48, 0.0  ;;  %v2173_v46 = vand.u32 2147483648, %v8645_v48  ;;  %v8711_v10 = vmul.f32 %v3180_v24, %v3180_v24  ;;  %v492_v28 = vld [vmem:[%s9934_s0 + $0x1a8] sm:$0xff] }
 0x248   :  { %v5517_v40 = vpop.eup %5516  ;;  %v1211_v29 = vsel %vm1210_vm15, %v8632_v12, %v1209_v61  ;;  %v3570_v31 = vsel %vm3569_vm3, %v7380_v9, %v3568_v32  ;;  %vm3571_vm6 = vcmp.eq.f32.partialorder %v7380_v9, 0.0  ;;  %v3572_v2 = vand.u32 2147483648, %v7380_v9  ;;  %v556_v9 = vld [vmem:[%s9935_s1 + $0x1a8] sm:$0xff] }
 0x249   :  { %v2472_v19 = vadd.f32 %v2408_v50, %v1448_v41  ;;  %v1214_v14 = vsel %vm1212_vm2, %v1213_v56, %v1211_v29  ;;  %v2169_v15 = vmul.f32 %v5517_v40, %v8645_v48  ;;  %v3533_v25 = vmul.f32 %v10016_v23, %v10015_v36  ;;  %v1516_v56 = vld [vmem:[%s9936_s2 + $0x1a8] sm:$0xff] }
 0x24a   :  { %v5053_v52 = vadd.f32 -1.0, %v1214_v14  ;;  %vm1182_vm7 = vcmp.eq.f32.partialorder %v8691_v33, inf  ;;  %v1185_v12 = vand.u32 2147483648, %v8691_v33  ;;  %vm3534_vm8 = vcmp.eq.f32.partialorder %v10015_v36, inf }
 0x24b   :  { %v2792_v11 = vadd.f32 %v2536_v59, %v2472_v19  ;;  %v2171_v24 = vsel %vm2170_vm4, %v8645_v48, %v2169_v15  ;;  %vm1184_vm9 = vcmp.eq.f32.partialorder %v8691_v33, 0.0  ;;  %v3573_v61 = vsel %vm3571_vm6, %v3572_v2, %v3570_v31  ;;  %v3098_v19 = vpop.xlane.xlu1 %3097  ;;  %v10018_v31 = vld [vmem:[#allocation20_spill] sm:$0xff] }
 0x24c   :  { %v1390_v32 = vmul.f32 0.1, %v5053_v52  ;;  %v2174_v41 = vsel %vm2172_vm5, %v2173_v46, %v2171_v24  ;;  %v3535_v50 = vsel %vm3534_vm8, %v10015_v36, %v3533_v25  ;;  %v5152_v59 = vadd.f32 -1.0, %v3573_v61 }
 0x24d   :  { %2857 = vst.msk [vmem:[#allocation2 + $0x188] sm:$0xff] %vm113_vm1, %v2792_v11  ;;  %v5117_v40 = vadd.f32 -1.0, %v2174_v41  ;;  %vm3536_vm10 = vcmp.eq.f32.partialorder %v10015_v36, 0.0  ;;  %v3537_v29 = vand.u32 2147483648, %v10015_v36  ;;  %v620_v15 = vsub.f32 %v556_v9, %v492_v28  ;;  %v2542_v9 = vld [vmem:[#allocation2 + $0x1b8] sm:$0xff] }
 0x24e   :  { %v1454_v14 = vand.u32 2147483647, %v1390_v32  ;;  %v1580_v52 = vsub.f32 %v1516_v56, %v492_v28  ;;  %v3182_v23 = vsub.f32 %v3098_v19, %v492_v28  ;;  %v3923_v46 = vmul.f32 0.1, %v5152_v59 }
 0x24f   :  { %v2350_v48 = vmul.f32 0.1, %v5117_v40  ;;  %v3538_v24 = vsel %vm3536_vm10, %v3537_v29, %v3535_v50  ;;  %v3582_v2 = vmul.f32 %v10018_v31, %v10017_v38  ;;  %vm2142_vm11 = vcmp.eq.f32.partialorder %v8694_v6, inf }
 0x250   :  { %v5147_v25 = vadd.f32 -1.0, %v3538_v24  ;;  %v684_v11 = vmul.f32 %v620_v15, %v620_v15  ;;  %v1644_v41 = vmul.f32 %v1580_v52, %v1580_v52  ;;  %v2145_v63 = vand.u32 2147483648, %v8694_v6 }
 0x251   :  { %v2414_v61 = vand.u32 2147483647, %v2350_v48  ;;  %v3987_v36 = vand.u32 2147483647, %v3923_v46  ;;  %vm3583_vm0 = vcmp.eq.f32.partialorder %v10017_v38, inf  ;;  %v3246_v40 = vmul.f32 %v3182_v23, %v3182_v23 }
 0x252   :  { %v3918_v56 = vmul.f32 0.1, %v5147_v25  ;;  %v748_v28 = vmul.f32 100.0, %v684_v11  ;;  %v1708_v32 = vmul.f32 100.0, %v1644_v41  ;;  %v5519_v50 = vpop.eup %5518  ;;  %v3584_v29 = vsel %vm3583_vm0, %v10017_v38, %v3582_v2 }
 0x253   :  { %v2478_v59 = vadd.f32 %v2414_v61, %v1454_v14  ;;  %4269 = vrot.lane.b32.xlu0 %v3987_v36, %s5633_s23  ;;  %vm3585_vm12 = vcmp.eq.f32.partialorder %v10017_v38, 0.0  ;;  %v3586_v19 = vand.u32 2147483648, %v10017_v38  ;;  %v5521_v15 = vpop.eup %5520  ;;  %v1181_v52 = vmul.f32 %v5519_v50, %v8691_v33 }
 0x254   :  { %v3982_v48 = vand.u32 2147483647, %v3918_v56  ;;  %v8753_v46 = vadd.f32 1.0, %v748_v28  ;;  %v8755_v24 = vadd.f32 1.0, %v1708_v32  ;;  %v8758_v23 = vadd.f32 1.0, %v8642_v57 }
 0x255   :  { %v2798_v14 = vadd.f32 %v2542_v9, %v2478_v59  ;;  %v2141_v31 = vmul.f32 %v5521_v15, %v8694_v6  ;;  %vm2144_vm13 = vcmp.eq.f32.partialorder %v8694_v6, 0.0  ;;  %v8763_v2 = vadd.f32 1.0, %v8703_v27  ;;  %v10019_v27 = vld [vmem:[#allocation18_spill] sm:$0xff] }
 0x256   :  { %v1183_v38 = vsel %vm1182_vm7, %v8691_v33, %v1181_v52  ;;  %4259 = vrot.lane.b32.xlu1 %v3982_v48, %s5633_s23  ;;  %5522 = vrsqrt.f32 %v8753_v46  ;;  %v3587_v25 = vsel %vm3585_vm12, %v3586_v19, %v3584_v29  ;;  %v3547_v41 = vmul.f32 %v7557_v55, %v10019_v27  ;;  %v8802_v29 = vpop.permute.xlu1 %4217 }
 0x257   :  { %2863 = vst.msk [vmem:[#allocation2 + $0x1b8] sm:$0xff] %vm113_vm1, %v2798_v14  ;;  %v1186_v57 = vsel %vm1184_vm9, %v1185_v12, %v1183_v38  ;;  %v2143_v11 = vsel %vm2142_vm11, %v8694_v6, %v2141_v31  ;;  %5524 = vrsqrt.f32 %v8755_v24  ;;  %v8780_v9 = vmul.f32 100.0, %v8711_v10  ;;  %v2538_v31 = vld [vmem:[#allocation2 + $0x198] sm:$0xff] }
 0x258   :  { %v5049_v61 = vadd.f32 -1.0, %v1186_v57  ;;  %v2146_v36 = vsel %vm2144_vm13, %v2145_v63, %v2143_v11  ;;  %v8782_v56 = vmul.f32 100.0, %v3246_v40  ;;  %v1199_v33 = vand.u32 2147483648, %v8753_v46  ;;  %v4220_v57 = vpop.permute.xlu0 %4219 }
 0x259   :  { %v5113_v28 = vadd.f32 -1.0, %v2146_v36  ;;  %v2159_v12 = vand.u32 2147483648, %v8755_v24  ;;  %v5154_v32 = vadd.f32 -1.0, %v3587_v25  ;;  %vm3548_vm14 = vcmp.eq.f32.partialorder %v10019_v27, inf }
 0x25a   :  { %v8786_v50 = vmul.f32 0.1, %v5049_v61  ;;  %vm3550_vm15 = vcmp.eq.f32.partialorder %v10019_v27, 0.0  ;;  %v3551_v55 = vand.u32 2147483648, %v10019_v27  ;;  %vm1196_vm2 = vcmp.eq.f32.partialorder %v8753_v46, inf }
 0x25b   :  { %v8791_v63 = vmul.f32 0.1, %v5113_v28  ;;  %v8794_v6 = vmul.f32 0.1, %v5154_v32  ;;  %v3549_v10 = vsel %vm3548_vm14, %v10019_v27, %v3547_v41  ;;  %vm178_vm3 = vcmask 7168  }
 0x25c   :  { %v1450_v40 = vand.u32 2147483647, %v8786_v50  ;;  %vm1198_vm4 = vcmp.eq.f32.partialorder %v8753_v46, 0.0  ;;  %vm2156_vm5 = vcmp.eq.f32.partialorder %v8755_v24, inf  ;;  %v8800_v59 = vsel %vm3550_vm15, %v3551_v55, %v3549_v10 }
 0x25d   :  { %v10020_v19 = vmov 0.0   ;;  %v3596_v15 = vmul.f32 %v7647_v45, %v7496_v4  ;;  %vm3597_vm6 = vcmp.eq.f32.partialorder %v7496_v4, inf  ;;  %v2410_v52 = vand.u32 2147483647, %v8791_v63  ;;  %v4224_v63 = vpop.permute.xlu1 %4223 }
 0x25e   :  { %179 = vst.msk [vmem:[#allocation3] sm:$0xff] %vm178_vm3, %v10020_v19  ;;  %180 = vst.msk [vmem:[#allocation3 + $0x8] sm:$0xff] %vm178_vm3, %v10020_v19  ;;  %vm2158_vm7 = vcmp.eq.f32.partialorder %v8755_v24, 0.0  ;;  %v3989_v48 = vand.u32 2147483647, %v8794_v6  ;;  %v5149_v14 = vadd.f32 -1.0, %v8800_v59  ;;  %v3561_v45 = vmul.f32 %v7665_v54, %v7554_v21 }
 0x25f   :  { %181 = vst.msk [vmem:[#allocation3 + $0x10] sm:$0xff] %vm178_vm3, %v10020_v19  ;;  %182 = vst.msk [vmem:[#allocation3 + $0x18] sm:$0xff] %vm178_vm3, %v10020_v19  ;;  %vm3599_vm8 = vcmp.eq.f32.partialorder %v7496_v4, 0.0  ;;  %v3598_v38 = vsel %vm3597_vm6, %v7496_v4, %v3596_v15  ;;  %v3600_v25 = vand.u32 2147483648, %v7496_v4  ;;  %vm3562_vm9 = vcmp.eq.f32.partialorder %v7554_v21, inf  ;;  %v10021_v15 = vld [vmem:[#allocation22_spill] sm:$0xff] }
 0x260   :  { %183 = vst.msk [vmem:[#allocation3 + $0x20] sm:$0xff] %vm178_vm3, %v10020_v19  ;;  %184 = vst.msk [vmem:[#allocation3 + $0x28] sm:$0xff] %vm178_vm3, %v10020_v19  ;;  %v2474_v11 = vadd.f32 %v2410_v52, %v1450_v40  ;;  %4273 = vrot.lane.b32.xlu0 %v3989_v48, %s5633_s23  ;;  %v3920_v27 = vmul.f32 0.1, %v5149_v14  ;;  %vm3564_vm10 = vcmp.eq.f32.partialorder %v7554_v21, 0.0  ;;  %v3565_v41 = vand.u32 2147483648, %v7554_v21 }
 0x261   :  { %185 = vst.msk [vmem:[#allocation3 + $0x30] sm:$0xff] %vm178_vm3, %v10020_v19  ;;  %186 = vst.msk [vmem:[#allocation3 + $0x38] sm:$0xff] %vm178_vm3, %v10020_v19  ;;  %v3601_v61 = vsel %vm3599_vm8, %v3600_v25, %v3598_v38  ;;  %v3563_v36 = vsel %vm3562_vm9, %v7554_v21, %v3561_v45  ;;  %v3610_v4 = vmul.f32 %v7688_v43, %v7608_v20  ;;  %vm3611_vm11 = vcmp.eq.f32.partialorder %v7608_v20, inf  ;;  %v10022_v52 = vld [vmem:[#allocation25_spill] sm:$0xff]  ;;  %v10023_v14 = vld [vmem:[#allocation23_spill] sm:$0xff] }
 0x262   :  { %187 = vst.msk [vmem:[#allocation3 + $0x40] sm:$0xff] %vm178_vm3, %v10020_v19  ;;  %188 = vst.msk [vmem:[#allocation3 + $0x48] sm:$0xff] %vm178_vm3, %v10020_v19  ;;  %v2794_v54 = vadd.f32 %v2538_v31, %v2474_v11  ;;  %v3984_v28 = vand.u32 2147483647, %v3920_v27  ;;  %v5156_v32 = vadd.f32 -1.0, %v3601_v61  ;;  %v3566_v50 = vsel %vm3564_vm10, %v3565_v41, %v3563_v36  ;;  %v4222_v41 = vpop.permute.xlu0 %4221 }
 0x263   :  { %189 = vst.msk [vmem:[#allocation3 + $0x50] sm:$0xff] %vm178_vm3, %v10020_v19  ;;  %190 = vst.msk [vmem:[#allocation3 + $0x58] sm:$0xff] %vm178_vm3, %v10020_v19  ;;  %v5151_v55 = vadd.f32 -1.0, %v3566_v50  ;;  %v3612_v6 = vsel %vm3611_vm11, %v7608_v20, %v3610_v4  ;;  %vm3613_vm0 = vcmp.eq.f32.partialorder %v7608_v20, 0.0  ;;  %v3614_v10 = vand.u32 2147483648, %v7608_v20  ;;  %v5523_v40 = vpop.eup %5522 }
 0x264   :  { %191 = vst.msk [vmem:[#allocation3 + $0x60] sm:$0xff] %vm178_vm3, %v10020_v19  ;;  %192 = vst.msk [vmem:[#allocation3 + $0x68] sm:$0xff] %vm178_vm3, %v10020_v19  ;;  %4263 = vrot.lane.b32.xlu1 %v3984_v28, %s5633_s23  ;;  %v3927_v43 = vmul.f32 0.1, %v5156_v32  ;;  %v3575_v48 = vmul.f32 %v10022_v52, %v10021_v15  ;;  %vm3576_vm12 = vcmp.eq.f32.partialorder %v10021_v15, inf  ;;  %v3624_v31 = vmul.f32 %v7756_v51, %v10023_v14  ;;  %v5525_v38 = vpop.eup %5524 }
 0x265   :  { %193 = vst.msk [vmem:[#allocation3 + $0x70] sm:$0xff] %vm178_vm3, %v10020_v19  ;;  %194 = vst.msk [vmem:[#allocation3 + $0x78] sm:$0xff] %vm178_vm3, %v10020_v19  ;;  %v4025_v21 = vld [vmem:[#allocation3] sm:$0xff]  ;;  %v4026_v59 = vld [vmem:[#allocation3 + $0x8] sm:$0xff]  ;;  %v1195_v25 = vmul.f32 %v5523_v40, %v8753_v46  ;;  %v3922_v11 = vmul.f32 0.1, %v5151_v55  ;;  %v2155_v61 = vmul.f32 %v5525_v38, %v8755_v24  ;;  %5526 = vrsqrt.f32 %v8758_v23 }
 0x266   :  { %195 = vst.msk [vmem:[#allocation3 + $0x80] sm:$0xff] %vm178_vm3, %v10020_v19  ;;  %196 = vst.msk [vmem:[#allocation3 + $0x88] sm:$0xff] %vm178_vm3, %v10020_v19  ;;  %v4409_v45 = vadd.f32 %v8802_v29, %v4025_v21  ;;  %v4410_v27 = vadd.f32 %v4220_v57, %v4026_v59  ;;  %v3991_v36 = vand.u32 2147483647, %v3927_v43  ;;  %v4027_v28 = vld [vmem:[#allocation3 + $0x10] sm:$0xff]  ;;  %v3577_v57 = vsel %vm3576_vm12, %v10021_v15, %v3575_v48 }
 0x267   :  { %197 = vst.msk [vmem:[#allocation3 + $0x90] sm:$0xff] %vm178_vm3, %v10020_v19  ;;  %198 = vst.msk [vmem:[#allocation3 + $0x98] sm:$0xff] %vm178_vm3, %v10020_v19  ;;  %v1197_v51 = vsel %vm1196_vm2, %v8753_v46, %v1195_v25  ;;  %v3986_v32 = vand.u32 2147483647, %v3922_v11  ;;  %v2157_v50 = vsel %vm2156_vm5, %v8755_v24, %v2155_v61  ;;  %vm3578_vm13 = vcmp.eq.f32.partialorder %v10021_v15, 0.0  ;;  %v4029_v24 = vld [vmem:[#allocation3 + $0x20] sm:$0xff] }
 0x268   :  { %199 = vst.msk [vmem:[#allocation3 + $0xa0] sm:$0xff] %vm178_vm3, %v10020_v19  ;;  %200 = vst.msk [vmem:[#allocation3 + $0xa8] sm:$0xff] %vm178_vm3, %v10020_v19  ;;  %v1200_v20 = vsel %vm1198_vm4, %v1199_v33, %v1197_v51  ;;  %4277 = vrot.lane.b32.xlu0 %v3991_v36, %s5633_s23  ;;  %v3579_v55 = vand.u32 2147483648, %v10021_v15  ;;  %v4411_v33 = vadd.f32 %v4222_v41, %v4027_v28  ;;  %vm3625_vm14 = vcmp.eq.f32.partialorder %v10023_v14, inf  ;;  %v4226_v15 = vpop.permute.xlu0 %4225  ;;  %v10024_v48 = vld [vmem:[#allocation24_spill] sm:$0xff]  ;;  %v10025_v38 = vld [vmem:[#allocation27_spill] sm:$0xff] }
 0x269   :  { %201 = vst.msk [vmem:[#allocation3 + $0xb0] sm:$0xff] %vm178_vm3, %v10020_v19  ;;  %202 = vst.msk [vmem:[#allocation3 + $0xb8] sm:$0xff] %vm178_vm3, %v10020_v19  ;;  %4267 = vrot.lane.b32.xlu1 %v3986_v32, %s5633_s23  ;;  %vm3627_vm15 = vcmp.eq.f32.partialorder %v10023_v14, 0.0  ;;  %v3628_v52 = vand.u32 2147483648, %v10023_v14  ;;  %v3589_v25 = vmul.f32 %v10025_v38, %v10024_v48  ;;  %vm3590_vm2 = vcmp.eq.f32.partialorder %v10024_v48, inf }
 0x26a   :  { %203 = vst.msk [vmem:[#allocation3 + $0xc0] sm:$0xff] %vm178_vm3, %v10020_v19  ;;  %204 = vst.msk [vmem:[#allocation3 + $0xc8] sm:$0xff] %vm178_vm3, %v10020_v19  ;;  %v3580_v40 = vsel %vm3578_vm13, %v3579_v55, %v3577_v57  ;;  %vm3592_vm4 = vcmp.eq.f32.partialorder %v10024_v48, 0.0  ;;  %v4413_v36 = vadd.f32 %v4226_v15, %v4029_v24  ;;  %5528 = vrsqrt.f32 %v8763_v2  ;;  %v10026_v55 = vld [vmem:[#allocation26_spill] sm:$0xff] }
 0x26b   :  { %205 = vst.msk [vmem:[#allocation3 + $0xd0] sm:$0xff] %vm178_vm3, %v10020_v19  ;;  %206 = vst.msk [vmem:[#allocation3 + $0xd8] sm:$0xff] %vm178_vm3, %v10020_v19  ;;  %v5153_v59 = vadd.f32 -1.0, %v3580_v40  ;;  %v3591_v61 = vsel %vm3590_vm2, %v10024_v48, %v3589_v25  ;;  %vm3639_vm5 = vcmp.eq.f32.partialorder %v10026_v55, inf  ;;  %vm3641_vm6 = vcmp.eq.f32.partialorder %v10026_v55, 0.0  ;;  %v4030_v15 = vld [vmem:[#allocation3 + $0x28] sm:$0xff] }
 0x26c   :  { %207 = vst.msk [vmem:[#allocation3 + $0xe0] sm:$0xff] %vm178_vm3, %v10020_v19  ;;  %208 = vst.msk [vmem:[#allocation3 + $0xe8] sm:$0xff] %vm178_vm3, %v10020_v19  ;;  %vm3667_vm12 = vcmp.eq.f32.partialorder %v7945_v1, inf  ;;  %vm3669_vm13 = vcmp.eq.f32.partialorder %v7945_v1, 0.0  ;;  %vm3681_vm2 = vcmp.eq.f32.partialorder %v8036_v22, inf }
 0x26d   :  { %209 = vst.msk [vmem:[#allocation3 + $0xf0] sm:$0xff] %vm178_vm3, %v10020_v19  ;;  %210 = vst.msk [vmem:[#allocation3 + $0xf8] sm:$0xff] %vm178_vm3, %v10020_v19  ;;  %v3924_v11 = vmul.f32 0.1, %v5153_v59 }
 0x26e   :  { %211 = vst.msk [vmem:[#allocation3 + $0x100] sm:$0xff] %vm178_vm3, %v10020_v19  ;;  %212 = vst.msk [vmem:[#allocation3 + $0x108] sm:$0xff] %vm178_vm3, %v10020_v19 }
 0x26f   :  { %213 = vst.msk [vmem:[#allocation3 + $0x110] sm:$0xff] %vm178_vm3, %v10020_v19  ;;  %214 = vst.msk [vmem:[#allocation3 + $0x118] sm:$0xff] %vm178_vm3, %v10020_v19  ;;  %v3988_v28 = vand.u32 2147483647, %v3924_v11 }
 0x270   :  { %215 = vst.msk [vmem:[#allocation3 + $0x120] sm:$0xff] %vm178_vm3, %v10020_v19  ;;  %216 = vst.msk [vmem:[#allocation3 + $0x128] sm:$0xff] %vm178_vm3, %v10020_v19 }
 0x271   :  { %217 = vst.msk [vmem:[#allocation3 + $0x130] sm:$0xff] %vm178_vm3, %v10020_v19  ;;  %218 = vst.msk [vmem:[#allocation3 + $0x138] sm:$0xff] %vm178_vm3, %v10020_v19  ;;  %4271 = vrot.lane.b32.xlu1 %v3988_v28, %s5633_s23 }
 0x272   :  { %219 = vst.msk [vmem:[#allocation3 + $0x140] sm:$0xff] %vm178_vm3, %v10020_v19  ;;  %220 = vst.msk [vmem:[#allocation3 + $0x148] sm:$0xff] %vm178_vm3, %v10020_v19 }
 0x273   :  { %221 = vst.msk [vmem:[#allocation3 + $0x150] sm:$0xff] %vm178_vm3, %v10020_v19  ;;  %222 = vst.msk [vmem:[#allocation3 + $0x158] sm:$0xff] %vm178_vm3, %v10020_v19 }
 0x274   :  { %223 = vst.msk [vmem:[#allocation3 + $0x160] sm:$0xff] %vm178_vm3, %v10020_v19  ;;  %224 = vst.msk [vmem:[#allocation3 + $0x168] sm:$0xff] %vm178_vm3, %v10020_v19 }
 0x275   :  { %225 = vst.msk [vmem:[#allocation3 + $0x170] sm:$0xff] %vm178_vm3, %v10020_v19  ;;  %226 = vst.msk [vmem:[#allocation3 + $0x178] sm:$0xff] %vm178_vm3, %v10020_v19 }
 0x276   :  { %227 = vst.msk [vmem:[#allocation3 + $0x180] sm:$0xff] %vm178_vm3, %v10020_v19  ;;  %228 = vst.msk [vmem:[#allocation3 + $0x188] sm:$0xff] %vm178_vm3, %v10020_v19 }
 0x277   :  { %229 = vst.msk [vmem:[#allocation3 + $0x190] sm:$0xff] %vm178_vm3, %v10020_v19  ;;  %230 = vst.msk [vmem:[#allocation3 + $0x198] sm:$0xff] %vm178_vm3, %v10020_v19 }
 0x278   :  { %231 = vst.msk [vmem:[#allocation3 + $0x1a0] sm:$0xff] %vm178_vm3, %v10020_v19  ;;  %232 = vst.msk [vmem:[#allocation3 + $0x1a8] sm:$0xff] %vm178_vm3, %v10020_v19 }
 0x279   :  { %233 = vst.msk [vmem:[#allocation3 + $0x1b0] sm:$0xff] %vm178_vm3, %v10020_v19  ;;  %234 = vst.msk [vmem:[#allocation3 + $0x1b8] sm:$0xff] %vm178_vm3, %v10020_v19 }
 0x27a   :  { %235 = vst.msk [vmem:[#allocation3 + $0x1c0] sm:$0xff] %vm178_vm3, %v10020_v19  ;;  %236 = vst.msk [vmem:[#allocation3 + $0x1c8] sm:$0xff] %vm178_vm3, %v10020_v19 }
 0x27b   :  { %237 = vst.msk [vmem:[#allocation3 + $0x1d0] sm:$0xff] %vm178_vm3, %v10020_v19  ;;  %238 = vst.msk [vmem:[#allocation3 + $0x1d8] sm:$0xff] %vm178_vm3, %v10020_v19 }
 0x27c   :  { %239 = vst.msk [vmem:[#allocation3 + $0x1e0] sm:$0xff] %vm178_vm3, %v10020_v19  ;;  %240 = vst.msk [vmem:[#allocation3 + $0x1e8] sm:$0xff] %vm178_vm3, %v10020_v19 }
 0x27d   :  { %241 = vst.msk [vmem:[#allocation3 + $0x1f0] sm:$0xff] %vm178_vm3, %v10020_v19  ;;  %242 = vst.msk [vmem:[#allocation3 + $0x1f8] sm:$0xff] %vm178_vm3, %v10020_v19  ;;  %v4028_v19 = vld [vmem:[#allocation3 + $0x18] sm:$0xff] }
 0x27e   :  { %2859 = vst.msk [vmem:[#allocation2 + $0x198] sm:$0xff] %vm113_vm1, %v2794_v54  ;;  %v4412_v4 = vadd.f32 %v4224_v63, %v4028_v19  ;;  %v3615_v54 = vsel %vm3613_vm0, %v3614_v10, %v3612_v6  ;;  %v5051_v63 = vadd.f32 -1.0, %v1200_v20  ;;  %v2160_v6 = vsel %vm2158_vm7, %v2159_v12, %v2157_v50 }
 0x27f   :  { %4474 = vst.msk [vmem:[#allocation3] sm:$0xff] %vm178_vm3, %v4409_v45  ;;  %4475 = vst.msk [vmem:[#allocation3 + $0x8] sm:$0xff] %vm178_vm3, %v4410_v27  ;;  %v5158_v29 = vadd.f32 -1.0, %v3615_v54  ;;  %v5115_v10 = vadd.f32 -1.0, %v2160_v6  ;;  %v3626_v19 = vsel %vm3625_vm14, %v10023_v14, %v3624_v31  ;;  %v3593_v27 = vand.u32 2147483648, %v10024_v48  ;;  %v2540_v54 = vld [vmem:[#allocation2 + $0x1a8] sm:$0xff] }
 0x280   :  { %4477 = vst.msk [vmem:[#allocation3 + $0x18] sm:$0xff] %vm178_vm3, %v4412_v4  ;;  %v1388_v21 = vmul.f32 0.1, %v5051_v63  ;;  %4476 = vst.msk [vmem:[#allocation3 + $0x10] sm:$0xff] %vm178_vm3, %v4411_v33  ;;  %v3629_v31 = vsel %vm3627_vm15, %v3628_v52, %v3626_v19  ;;  %v9009_v4 = vadd.f32 1.0, %v8780_v9  ;;  %v10027_v9 = vld [vmem:[#allocation30_spill] sm:$0xff]  ;;  %v4228_v19 = vpop.permute.xlu0 %4227 }
 0x281   :  { %v3929_v46 = vmul.f32 0.1, %v5158_v29  ;;  %v2348_v12 = vmul.f32 0.1, %v5115_v10  ;;  %v5160_v51 = vadd.f32 -1.0, %v3629_v31  ;;  %v9013_v29 = vadd.f32 1.0, %v8782_v56 }
 0x282   :  { %v1452_v45 = vand.u32 2147483647, %v1388_v21  ;;  %v3594_v57 = vsel %vm3592_vm4, %v3593_v27, %v3591_v61  ;;  %4478 = vst.msk [vmem:[#allocation3 + $0x20] sm:$0xff] %vm178_vm3, %v4413_v36  ;;  %v3638_v63 = vmul.f32 %v10027_v9, %v10026_v55  ;;  %v10028_v56 = vld [vmem:[#allocation28_spill] sm:$0xff]  ;;  %v10029_v33 = vld [vmem:[#allocation31_spill] sm:$0xff]  ;;  %5530 = vrsqrt.f32 %v9009_v4  ;;  %v10031_v31 = vld [vmem:[#allocation33_spill] sm:$0xff] }
 0x283   :  { %v3993_v43 = vand.u32 2147483647, %v3929_v46  ;;  %v2412_v41 = vand.u32 2147483647, %v2348_v12  ;;  %v3931_v20 = vmul.f32 0.1, %v5160_v51  ;;  %v3603_v10 = vmul.f32 %v10029_v33, %v10028_v56 }
 0x284   :  { %v5155_v50 = vadd.f32 -1.0, %v3594_v57  ;;  %v3642_v46 = vand.u32 2147483648, %v10026_v55  ;;  %v3640_v59 = vsel %vm3639_vm5, %v10026_v55, %v3638_v63  ;;  %vm3604_vm7 = vcmp.eq.f32.partialorder %v10028_v56, inf }
 0x285   :  { %4281 = vrot.lane.b32.xlu0 %v3993_v43, %s5633_s23  ;;  %v2476_v32 = vadd.f32 %v2412_v41, %v1452_v45  ;;  %v3995_v21 = vand.u32 2147483647, %v3931_v20  ;;  %vm3606_vm8 = vcmp.eq.f32.partialorder %v10028_v56, 0.0  ;;  %v3605_v38 = vsel %vm3604_vm7, %v10028_v56, %v3603_v10  ;;  %v10030_v41 = vld [vmem:[#allocation29_spill] sm:$0xff] }
 0x286   :  { %v4745_v14 = vld [vmem:[#allocation3 + $0x8] sm:$0xff]  ;;  %v4744_v40 = vld [vmem:[#allocation3] sm:$0xff]  ;;  %v3926_v43 = vmul.f32 0.1, %v5155_v50  ;;  %v3643_v12 = vsel %vm3641_vm6, %v3642_v46, %v3640_v59  ;;  %v3607_v25 = vand.u32 2147483648, %v10028_v56  ;;  %v4414_v27 = vadd.f32 %v4228_v19, %v4030_v15 }
 0x287   :  { %v2796_v6 = vadd.f32 %v2540_v54, %v2476_v32  ;;  %v4809_v24 = vsel %vm178_vm3, %v4745_v14, 0.0  ;;  %v5162_v48 = vadd.f32 -1.0, %v3643_v12  ;;  %v4808_v45 = vsel %vm178_vm3, %v4744_v40, 0.0  ;;  %v4746_v11 = vld [vmem:[#allocation3 + $0x10] sm:$0xff] }
 0x288   :  { %v3990_v52 = vand.u32 2147483647, %v3926_v43  ;;  %v3652_v61 = vmul.f32 %v10031_v31, %v10030_v41  ;;  %vm3653_vm9 = vcmp.eq.f32.partialorder %v10030_v41, inf  ;;  %v3608_v54 = vsel %vm3606_vm8, %v3607_v25, %v3605_v38  ;;  %4479 = vst.msk [vmem:[#allocation3 + $0x28] sm:$0xff] %vm178_vm3, %v4414_v27  ;;  %v10032_v14 = vld [vmem:[#allocation32_spill] sm:$0xff] }
 0x289   :  { %2861 = vst.msk [vmem:[#allocation2 + $0x1a8] sm:$0xff] %vm113_vm1, %v2796_v6  ;;  %4285 = vrot.lane.b32.xlu0 %v3995_v21, %s5633_s23  ;;  %v3933_v36 = vmul.f32 0.1, %v5162_v48  ;;  %vm3655_vm10 = vcmp.eq.f32.partialorder %v10030_v41, 0.0  ;;  %v3656_v28 = vand.u32 2147483648, %v10030_v41  ;;  %v4810_v51 = vadd.f32 %v4809_v24, %v4808_v45  ;;  %v9066_v48 = vpop.xlane.xlu1 %3106 }
 0x28a   :  { %4275 = vrot.lane.b32.xlu1 %v3990_v52, %s5633_s23  ;;  %v5157_v32 = vadd.f32 -1.0, %v3608_v54  ;;  %v3654_v57 = vsel %vm3653_vm9, %v10030_v41, %v3652_v61  ;;  %v3617_v20 = vmul.f32 %v7965_v47, %v10032_v14  ;;  %v4811_v50 = vsel %vm178_vm3, %v4746_v11, 0.0  ;;  %v9054_v47 = vpop.eup %5526 }
 0x28b   :  { %v3997_v55 = vand.u32 2147483647, %v3933_v36  ;;  %v3657_v9 = vsel %vm3655_vm10, %v3656_v28, %v3654_v57  ;;  %vm3618_vm11 = vcmp.eq.f32.partialorder %v10032_v14, inf  ;;  %vm3620_vm0 = vcmp.eq.f32.partialorder %v10032_v14, 0.0  ;;  %v9059_v59 = vpop.eup %5528  ;;  %v10033_v28 = vld [vmem:[#allocation36_spill] sm:$0xff] }
 0x28c   :  { %v3928_v63 = vmul.f32 0.1, %v5157_v32  ;;  %v5164_v6 = vadd.f32 -1.0, %v3657_v9  ;;  %v3619_v46 = vsel %vm3618_vm11, %v10032_v14, %v3617_v20  ;;  %v3621_v56 = vand.u32 2147483648, %v10032_v14 }
 0x28d   :  { %4289 = vrot.lane.b32.xlu0 %v3997_v55, %s5633_s23  ;;  %v3666_v33 = vmul.f32 %v8025_v35, %v7945_v1  ;;  %v3670_v21 = vand.u32 2147483648, %v7945_v1  ;;  %v3631_v43 = vmul.f32 %v8104_v60, %v7975_v34  ;;  %vm3632_vm14 = vcmp.eq.f32.partialorder %v7975_v34, inf  ;;  %v9092_v55 = vpop.permute.xlu1 %4229 }
 0x28e   :  { %v3992_v10 = vand.u32 2147483647, %v3928_v63  ;;  %v3935_v40 = vmul.f32 0.1, %v5164_v6  ;;  %v3622_v19 = vsel %vm3620_vm0, %v3621_v56, %v3619_v46  ;;  %vm3634_vm15 = vcmp.eq.f32.partialorder %v7975_v34, 0.0 }
 0x28f   :  { %v3668_v15 = vsel %vm3667_vm12, %v7945_v1, %v3666_v33  ;;  %v5159_v24 = vadd.f32 -1.0, %v3622_v19  ;;  %v3633_v52 = vsel %vm3632_vm14, %v7975_v34, %v3631_v43  ;;  %v3635_v60 = vand.u32 2147483648, %v7975_v34  ;;  %v9072_v1 = vpop.eup %5530  ;;  %v10035_v33 = vld [vmem:[#allocation37_spill] sm:$0xff] }
 0x290   :  { %4279 = vrot.lane.b32.xlu1 %v3992_v10, %s5633_s23  ;;  %v3999_v35 = vand.u32 2147483647, %v3935_v40  ;;  %v3671_v12 = vsel %vm3669_vm13, %v3670_v21, %v3668_v15  ;;  %v3680_v25 = vmul.f32 %v8118_v5, %v8036_v22  ;;  %5532 = vrsqrt.f32 %v9013_v29 }
 0x291   :  { %v5166_v38 = vadd.f32 -1.0, %v3671_v12  ;;  %v3930_v45 = vmul.f32 0.1, %v5159_v24  ;;  %vm3683_vm4 = vcmp.eq.f32.partialorder %v8036_v22, 0.0  ;;  %v3684_v11 = vand.u32 2147483648, %v8036_v22 }
 0x292   :  { %4293 = vrot.lane.b32.xlu0 %v3999_v35, %s5633_s23  ;;  %v9078_v27 = vadd.f32 %v4811_v50, %v4810_v51  ;;  %v3636_v31 = vsel %vm3634_vm15, %v3635_v60, %v3633_v52  ;;  %v3682_v5 = vsel %vm3681_vm2, %v8036_v22, %v3680_v25  ;;  %v3645_v32 = vmul.f32 %v10033_v28, %v8062_v53  ;;  %v10034_v22 = vld [vmem:[#allocation34_spill] sm:$0xff]  ;;  %v9114_v60 = vpop.permute.xlu1 %4231 }
 0x293   :  { %v3937_v41 = vmul.f32 0.1, %v5166_v38  ;;  %v3994_v61 = vand.u32 2147483647, %v3930_v45  ;;  %v5161_v36 = vadd.f32 -1.0, %v3636_v31  ;;  %v3685_v54 = vsel %vm3683_vm4, %v3684_v11, %v3682_v5  ;;  %v10036_v52 = vld [vmem:[#allocation38_spill] sm:$0xff] }
 0x294   :  { %v5168_v14 = vadd.f32 -1.0, %v3685_v54  ;;  %vm3646_vm5 = vcmp.eq.f32.partialorder %v8062_v53, inf  ;;  %vm3648_vm6 = vcmp.eq.f32.partialorder %v8062_v53, 0.0  ;;  %v3649_v20 = vand.u32 2147483648, %v8062_v53 }
 0x295   :  { %v4001_v57 = vand.u32 2147483647, %v3937_v41  ;;  %4283 = vrot.lane.b32.xlu1 %v3994_v61, %s5633_s23  ;;  %v3932_v51 = vmul.f32 0.1, %v5161_v36  ;;  %v3647_v34 = vsel %vm3646_vm5, %v8062_v53, %v3645_v32  ;;  %v3694_v50 = vmul.f32 %v8213_v17, %v10034_v22 }
 0x296   :  { %v3939_v9 = vmul.f32 0.1, %v5168_v14  ;;  %vm3695_vm7 = vcmp.eq.f32.partialorder %v10034_v22, inf  ;;  %vm3697_vm8 = vcmp.eq.f32.partialorder %v10034_v22, 0.0  ;;  %v3698_v63 = vand.u32 2147483648, %v10034_v22 }
 0x297   :  { %4297 = vrot.lane.b32.xlu0 %v4001_v57, %s5633_s23  ;;  %v3996_v6 = vand.u32 2147483647, %v3932_v51  ;;  %v3650_v46 = vsel %vm3648_vm6, %v3649_v20, %v3647_v34  ;;  %v3696_v56 = vsel %vm3695_vm7, %v10034_v22, %v3694_v50  ;;  %v3659_v53 = vmul.f32 %v8242_v0, %v10035_v33  ;;  %v9137_v22 = vpop.permute.xlu1 %4233 }
 0x298   :  { %v4003_v10 = vand.u32 2147483647, %v3939_v9  ;;  %v5163_v17 = vadd.f32 -1.0, %v3650_v46  ;;  %v3699_v40 = vsel %vm3697_vm8, %v3698_v63, %v3696_v56  ;;  %vm3660_vm9 = vcmp.eq.f32.partialorder %v10035_v33, inf }
 0x299   :  { %4287 = vrot.lane.b32.xlu1 %v3996_v6, %s5633_s23  ;;  %v5170_v21 = vadd.f32 -1.0, %v3699_v40  ;;  %v3661_v43 = vsel %vm3660_vm9, %v10035_v33, %v3659_v53  ;;  %vm3662_vm10 = vcmp.eq.f32.partialorder %v10035_v33, 0.0  ;;  %v3663_v19 = vand.u32 2147483648, %v10035_v33 }
 0x29a   :  { %v3934_v15 = vmul.f32 0.1, %v5163_v17  ;;  %v3708_v0 = vmul.f32 %v8307_v7, %v8227_v58  ;;  %vm3709_vm11 = vcmp.eq.f32.partialorder %v8227_v58, inf  ;;  %vm3711_vm0 = vcmp.eq.f32.partialorder %v8227_v58, 0.0 }
 0x29b   :  { %4301 = vrot.lane.b32.xlu0 %v4003_v10, %s5633_s23  ;;  %v3941_v35 = vmul.f32 0.1, %v5170_v21  ;;  %v3664_v24 = vsel %vm3662_vm10, %v3663_v19, %v3661_v43  ;;  %v3712_v12 = vand.u32 2147483648, %v8227_v58  ;;  %v3673_v38 = vmul.f32 %v8335_v49, %v10036_v52 }
 0x29c   :  { %v3998_v25 = vand.u32 2147483647, %v3934_v15  ;;  %v5165_v45 = vadd.f32 -1.0, %v3664_v24  ;;  %v3710_v11 = vsel %vm3709_vm11, %v8227_v58, %v3708_v0  ;;  %vm3674_vm12 = vcmp.eq.f32.partialorder %v10036_v52, inf  ;;  %v9126_v58 = vpop.xlane.xlu0 %3109 }
 0x29d   :  { %v4005_v7 = vand.u32 2147483647, %v3941_v35  ;;  %v3713_v41 = vsel %vm3711_vm0, %v3712_v12, %v3710_v11  ;;  %v3675_v31 = vsel %vm3674_vm12, %v10036_v52, %v3673_v38  ;;  %vm3676_vm13 = vcmp.eq.f32.partialorder %v10036_v52, 0.0  ;;  %v9120_v5 = vpop.eup %5532  ;;  %v9160_v35 = vpop.permute.xlu1 %4235 }
 0x29e   :  { %4291 = vrot.lane.b32.xlu1 %v3998_v25, %s5633_s23  ;;  %v3936_v61 = vmul.f32 0.1, %v5165_v45  ;;  %v5172_v49 = vadd.f32 -1.0, %v3713_v41  ;;  %v3677_v36 = vand.u32 2147483648, %v10036_v52  ;;  %v3722_v54 = vmul.f32 %v8471_v16, %v8317_v26 }
 0x29f   :  { %4305 = vrot.lane.b32.xlu0 %v4005_v7, %s5633_s23  ;;  %vm3723_vm14 = vcmp.eq.f32.partialorder %v8317_v26, inf  ;;  %vm3725_vm15 = vcmp.eq.f32.partialorder %v8317_v26, 0.0  ;;  %v3726_v28 = vand.u32 2147483648, %v8317_v26  ;;  %v3687_v32 = vmul.f32 %v8479_v8, %v8358_v39 }
 0x2a0   :  { %v4000_v57 = vand.u32 2147483647, %v3936_v61  ;;  %v3943_v14 = vmul.f32 0.1, %v5172_v49  ;;  %v3678_v51 = vsel %vm3676_vm13, %v3677_v36, %v3675_v31  ;;  %v3724_v34 = vsel %vm3723_vm14, %v8317_v26, %v3722_v54  ;;  %v9150_v10 = vpop.xlane.xlu0 %3112  ;;  %v10037_v61 = vld [vmem:[#allocation11_spill] sm:$0xff]  ;;  %v10038_v49 = vld [vmem:[#allocation14_spill] sm:$0xff] }
 0x2a1   :  { %v5167_v20 = vadd.f32 -1.0, %v3678_v51  ;;  %v3727_v16 = vsel %vm3725_vm15, %v3726_v28, %v3724_v34  ;;  %vm3688_vm2 = vcmp.eq.f32.partialorder %v8358_v39, inf  ;;  %vm3690_vm4 = vcmp.eq.f32.partialorder %v8358_v39, 0.0 }
 0x2a2   :  { %4295 = vrot.lane.b32.xlu1 %v4000_v57, %s5633_s23  ;;  %v4007_v50 = vand.u32 2147483647, %v3943_v14  ;;  %v5174_v9 = vadd.f32 -1.0, %v3727_v16  ;;  %v3689_v63 = vsel %vm3688_vm2, %v8358_v39, %v3687_v32  ;;  %v3691_v8 = vand.u32 2147483648, %v8358_v39  ;;  %v9184_v57 = vpop.permute.xlu1 %4237 }
 0x2a3   :  { %v3938_v6 = vmul.f32 0.1, %v5167_v20  ;;  %v3736_v26 = vmul.f32 %v8492_v18, %v8402_v44  ;;  %vm3737_vm5 = vcmp.eq.f32.partialorder %v8402_v44, inf  ;;  %vm3739_vm6 = vcmp.eq.f32.partialorder %v8402_v44, 0.0 }
 0x2a4   :  { %4309 = vrot.lane.b32.xlu0 %v4007_v50, %s5633_s23  ;;  %v3945_v46 = vmul.f32 0.1, %v5174_v9  ;;  %v3692_v56 = vsel %vm3690_vm4, %v3691_v8, %v3689_v63  ;;  %v3740_v33 = vand.u32 2147483648, %v8402_v44  ;;  %v3701_v53 = vmul.f32 %v8521_v42, %v8438_v37  ;;  %v9171_v45 = vpop.xlane.xlu0 %3115 }
 0x2a5   :  { %v4002_v39 = vand.u32 2147483647, %v3938_v6  ;;  %v5169_v17 = vadd.f32 -1.0, %v3692_v56  ;;  %v3738_v40 = vsel %vm3737_vm5, %v8402_v44, %v3736_v26  ;;  %vm3702_vm7 = vcmp.eq.f32.partialorder %v8438_v37, inf }
 0x2a6   :  { %v4009_v18 = vand.u32 2147483647, %v3945_v46  ;;  %v3741_v21 = vsel %vm3739_vm6, %v3740_v33, %v3738_v40  ;;  %v3703_v43 = vsel %vm3702_vm7, %v8438_v37, %v3701_v53  ;;  %vm3704_vm8 = vcmp.eq.f32.partialorder %v8438_v37, 0.0 }
 0x2a7   :  { %4299 = vrot.lane.b32.xlu1 %v4002_v39, %s5633_s23  ;;  %v3940_v19 = vmul.f32 0.1, %v5169_v17  ;;  %v5176_v15 = vadd.f32 -1.0, %v3741_v21  ;;  %v3705_v42 = vand.u32 2147483648, %v8438_v37  ;;  %v3750_v0 = vmul.f32 %v8584_v62, %v8513_v30  ;;  %v559_v39 = vld [vmem:[%s9935_s1 + $0x1c0] sm:$0xff]  ;;  %v9208_v17 = vpop.permute.xlu1 %4239 }
 0x2a8   :  { %4313 = vrot.lane.b32.xlu0 %v4009_v18, %s5633_s23  ;;  %vm3751_vm9 = vcmp.eq.f32.partialorder %v8513_v30, inf  ;;  %vm3753_vm10 = vcmp.eq.f32.partialorder %v8513_v30, 0.0  ;;  %v3754_v44 = vand.u32 2147483648, %v8513_v30  ;;  %v3715_v24 = vmul.f32 %v8682_v13, %v8612_v3  ;;  %v9194_v8 = vpop.xlane.xlu0 %3118  ;;  %v1519_v21 = vld [vmem:[%s9936_s2 + $0x1c0] sm:$0xff] }
 0x2a9   :  { %v4004_v12 = vand.u32 2147483647, %v3940_v19  ;;  %v3947_v52 = vmul.f32 0.1, %v5176_v15  ;;  %v3706_v38 = vsel %vm3704_vm8, %v3705_v42, %v3703_v43  ;;  %v3752_v37 = vsel %vm3751_vm9, %v8513_v30, %v3750_v0  ;;  %v4747_v43 = vld [vmem:[#allocation3 + $0x18] sm:$0xff]  ;;  %v495_v42 = vld [vmem:[%s9934_s0 + $0x1c0] sm:$0xff] }
 0x2aa   :  { %v5171_v25 = vadd.f32 -1.0, %v3706_v38  ;;  %v3755_v62 = vsel %vm3753_vm10, %v3754_v44, %v3752_v37  ;;  %vm3716_vm11 = vcmp.eq.f32.partialorder %v8612_v3, inf  ;;  %vm3718_vm0 = vcmp.eq.f32.partialorder %v8612_v3, 0.0 }
 0x2ab   :  { %4303 = vrot.lane.b32.xlu1 %v4004_v12, %s5633_s23  ;;  %v4011_v11 = vand.u32 2147483647, %v3947_v52  ;;  %v5178_v7 = vadd.f32 -1.0, %v3755_v62  ;;  %v3717_v41 = vsel %vm3716_vm11, %v8612_v3, %v3715_v24  ;;  %v3719_v13 = vand.u32 2147483648, %v8612_v3  ;;  %v4031_v52 = vld [vmem:[#allocation3 + $0x30] sm:$0xff] }
 0x2ac   :  { %v3942_v31 = vmul.f32 0.1, %v5171_v25  ;;  %v3764_v30 = vmul.f32 %v10038_v49, %v10037_v61  ;;  %vm3765_vm12 = vcmp.eq.f32.partialorder %v10037_v61, inf  ;;  %vm3767_vm13 = vcmp.eq.f32.partialorder %v10037_v61, 0.0  ;;  %v9227_v38 = vpop.xlane.xlu0 %3121  ;;  %v10040_v49 = vld [vmem:[#allocation12_spill] sm:$0xff] }
 0x2ad   :  { %4317 = vrot.lane.b32.xlu0 %v4011_v11, %s5633_s23  ;;  %v3949_v36 = vmul.f32 0.1, %v5178_v7  ;;  %v3720_v54 = vsel %vm3718_vm0, %v3719_v13, %v3717_v41  ;;  %v3768_v28 = vand.u32 2147483648, %v10037_v61  ;;  %v3729_v32 = vmul.f32 %v9054_v47, %v8758_v23  ;;  %v560_v11 = vld [vmem:[%s9935_s1 + $0x1c8] sm:$0xff] }
 0x2ae   :  { %v4006_v3 = vand.u32 2147483647, %v3942_v31  ;;  %v5173_v14 = vadd.f32 -1.0, %v3720_v54  ;;  %v3766_v51 = vsel %vm3765_vm12, %v10037_v61, %v3764_v30  ;;  %vm3730_vm14 = vcmp.eq.f32.partialorder %v8758_v23, inf  ;;  %v10039_v61 = vld [vmem:[#allocation10_spill] sm:$0xff] }
 0x2af   :  { %v4013_v34 = vand.u32 2147483647, %v3949_v36  ;;  %v3769_v20 = vsel %vm3767_vm13, %v3768_v28, %v3766_v51  ;;  %v3731_v16 = vsel %vm3730_vm14, %v8758_v23, %v3729_v32  ;;  %vm3732_vm15 = vcmp.eq.f32.partialorder %v8758_v23, 0.0  ;;  %v496_v32 = vld [vmem:[%s9934_s0 + $0x1c8] sm:$0xff] }
 0x2b0   :  { %4307 = vrot.lane.b32.xlu1 %v4006_v3, %s5633_s23  ;;  %v3944_v50 = vmul.f32 0.1, %v5173_v14  ;;  %v5180_v9 = vadd.f32 -1.0, %v3769_v20  ;;  %v3733_v47 = vand.u32 2147483648, %v8758_v23  ;;  %v3743_v63 = vmul.f32 %v9072_v1, %v9009_v4  ;;  %v9248_v3 = vpop.permute.xlu1 %4241  ;;  %v4748_v14 = vld [vmem:[#allocation3 + $0x20] sm:$0xff] }
 0x2b1   :  { %4321 = vrot.lane.b32.xlu0 %v4013_v34, %s5633_s23  ;;  %vm3744_vm2 = vcmp.eq.f32.partialorder %v9009_v4, inf  ;;  %vm3746_vm4 = vcmp.eq.f32.partialorder %v9009_v4, 0.0  ;;  %v3747_v6 = vand.u32 2147483648, %v9009_v4  ;;  %v3757_v26 = vmul.f32 %v9120_v5, %v9013_v29 }
 0x2b2   :  { %v4008_v46 = vand.u32 2147483647, %v3944_v50  ;;  %v3951_v56 = vmul.f32 0.1, %v5180_v9  ;;  %v3734_v33 = vsel %vm3732_vm15, %v3733_v47, %v3731_v16  ;;  %v3745_v23 = vsel %vm3744_vm2, %v9009_v4, %v3743_v63  ;;  %v4032_v16 = vld [vmem:[#allocation3 + $0x38] sm:$0xff]  ;;  %v4566_v50 = vld [vmem:[#allocation2 + $0xc8] sm:$0xff] }
 0x2b3   :  { %v5175_v53 = vadd.f32 -1.0, %v3734_v33  ;;  %v3748_v1 = vsel %vm3746_vm4, %v3747_v6, %v3745_v23  ;;  %vm3758_vm5 = vcmp.eq.f32.partialorder %v9013_v29, inf  ;;  %vm3760_vm6 = vcmp.eq.f32.partialorder %v9013_v29, 0.0  ;;  %v9254_v33 = vpop.xlane.xlu0 %3124  ;;  %v10041_v23 = vld [vmem:[#allocation21_spill] sm:$0xff] }
 0x2b4   :  { %4311 = vrot.lane.b32.xlu1 %v4008_v46, %s5633_s23  ;;  %v4015_v5 = vand.u32 2147483647, %v3951_v56  ;;  %v5177_v40 = vadd.f32 -1.0, %v3748_v1  ;;  %v3759_v18 = vsel %vm3758_vm5, %v9013_v29, %v3757_v26  ;;  %v3761_v4 = vand.u32 2147483648, %v9013_v29  ;;  %v1520_v29 = vld [vmem:[%s9936_s2 + $0x1c8] sm:$0xff] }
 0x2b5   :  { %v3946_v19 = vmul.f32 0.1, %v5175_v53  ;;  %v3771_v15 = vmul.f32 %v9059_v59, %v8763_v2  ;;  %vm3772_vm7 = vcmp.eq.f32.partialorder %v8763_v2, inf  ;;  %vm3774_vm8 = vcmp.eq.f32.partialorder %v8763_v2, 0.0 }
 0x2b6   :  { %4325 = vrot.lane.b32.xlu0 %v4015_v5, %s5633_s23  ;;  %v3948_v0 = vmul.f32 0.1, %v5177_v40  ;;  %v3762_v44 = vsel %vm3760_vm6, %v3761_v4, %v3759_v18  ;;  %v3775_v24 = vand.u32 2147483648, %v8763_v2  ;;  %v623_v12 = vsub.f32 %v559_v39, %v495_v42 }
 0x2b7   :  { %v4010_v59 = vand.u32 2147483647, %v3946_v19  ;;  %v5179_v37 = vadd.f32 -1.0, %v3762_v44  ;;  %v3773_v25 = vsel %vm3772_vm7, %v8763_v2, %v3771_v15  ;;  %v1583_v62 = vsub.f32 %v1519_v21, %v495_v42  ;;  %v4569_v2 = vld [vmem:[#allocation2 + $0xe0] sm:$0xff]  ;;  %v1521_v21 = vld [vmem:[%s9936_s2 + $0x1d0] sm:$0xff] }
 0x2b8   :  { %v4813_v7 = vsel %vm178_vm3, %v4747_v43, 0.0  ;;  %v3776_v41 = vsel %vm3774_vm8, %v3775_v24, %v3773_v25  ;;  %v687_v13 = vmul.f32 %v623_v12, %v623_v12  ;;  %v3185_v31 = vsub.f32 %v9066_v48, %v495_v42  ;;  %v4033_v43 = vld [vmem:[#allocation3 + $0x40] sm:$0xff]  ;;  %v497_v42 = vld [vmem:[%s9934_s0 + $0x1d0] sm:$0xff] }
 0x2b9   :  { %v4651_v30 = vadd.f32 %v10040_v49, %v10039_v61  ;;  %v4814_v36 = vadd.f32 %v4813_v7, %v9078_v27  ;;  %4315 = vrot.lane.b32.xlu1 %v4010_v59, %s5633_s23  ;;  %v1647_v54 = vmul.f32 %v1583_v62, %v1583_v62  ;;  %v4415_v28 = vadd.f32 %v9092_v55, %v4031_v52  ;;  %v4749_v27 = vld [vmem:[#allocation3 + $0x28] sm:$0xff] }
 0x2ba   :  { %v4012_v51 = vand.u32 2147483647, %v3948_v0  ;;  %v751_v48 = vmul.f32 100.0, %v687_v13  ;;  %v624_v34 = vsub.f32 %v560_v11, %v496_v32  ;;  %v1584_v20 = vsub.f32 %v1520_v29, %v496_v32  ;;  %v9279_v0 = vpop.permute.xlu1 %4245 }
 0x2bb   :  { %v3950_v9 = vmul.f32 0.1, %v5179_v37  ;;  %v5181_v47 = vadd.f32 -1.0, %v3776_v41  ;;  %v1711_v63 = vmul.f32 100.0, %v1647_v54  ;;  %v3249_v6 = vmul.f32 %v3185_v31, %v3185_v31  ;;  %4480 = vst.msk [vmem:[#allocation3 + $0x30] sm:$0xff] %vm178_vm3, %v4415_v28  ;;  %v9290_v31 = vpop.xlane.xlu0 %3127  ;;  %v1522_v54 = vld [vmem:[%s9936_s2 + $0x1d8] sm:$0xff] }
 0x2bc   :  { %v9251_v55 = vadd.f32 1.0, %v751_v48  ;;  %v688_v26 = vmul.f32 %v624_v34, %v624_v34  ;;  %v1648_v46 = vmul.f32 %v1584_v20, %v1584_v20  ;;  %v3186_v56 = vsub.f32 %v9126_v58, %v496_v32  ;;  %v561_v58 = vld [vmem:[%s9935_s1 + $0x1d0] sm:$0xff]  ;;  %v498_v34 = vld [vmem:[%s9934_s0 + $0x1d8] sm:$0xff]  ;;  %v4034_v20 = vld [vmem:[#allocation3 + $0x48] sm:$0xff] }
 0x2bd   :  { %v4653_v53 = vadd.f32 %v10041_v23, %v4651_v30  ;;  %v4815_v1 = vsel %vm178_vm3, %v4748_v14, 0.0  ;;  %4319 = vrot.lane.b32.xlu1 %v4012_v51, %s5633_s23  ;;  %v9259_v39 = vadd.f32 1.0, %v1711_v63  ;;  %v4416_v5 = vadd.f32 %v9114_v60, %v4032_v16 }
 0x2be   :  { %v9263_v40 = vsel %vm113_vm1, %v4569_v2, 0.0  ;;  %v4654_v18 = vsel %vm113_vm1, %v4566_v50, 0.0  ;;  %v4817_v4 = vsel %vm178_vm3, %v4749_v27, 0.0  ;;  %5534 = vrsqrt.f32 %v9251_v55  ;;  %v9309_v2 = vpop.permute.xlu1 %4247 }
 0x2bf   :  { %v4014_v19 = vand.u32 2147483647, %v3950_v9  ;;  %v3952_v60 = vmul.f32 0.1, %v5181_v47  ;;  %5536 = vrsqrt.f32 %v9259_v39  ;;  %v3313_v15 = vmul.f32 100.0, %v3249_v6  ;;  %4481 = vst.msk [vmem:[#allocation3 + $0x38] sm:$0xff] %vm178_vm3, %v4416_v5 }
 0x2c0   :  { %v4816_v44 = vadd.f32 %v4815_v1, %v4814_v36  ;;  %v752_v24 = vmul.f32 100.0, %v688_v26  ;;  %v1712_v12 = vmul.f32 100.0, %v1648_v46  ;;  %v3250_v52 = vmul.f32 %v3186_v56, %v3186_v56  ;;  %v9323_v46 = vpop.permute.xlu0 %4243 }
 0x2c1   :  { %v9281_v59 = vadd.f32 %v4654_v18, %v4653_v53  ;;  %4323 = vrot.lane.b32.xlu1 %v4014_v19, %s5633_s23  ;;  %v625_v37 = vsub.f32 %v561_v58, %v497_v42  ;;  %v1585_v25 = vsub.f32 %v1521_v21, %v497_v42  ;;  %v4417_v62 = vadd.f32 %v9137_v22, %v4033_v43 }
 0x2c2   :  { %v4818_v11 = vadd.f32 %v4817_v4, %v4816_v44  ;;  %v4750_v29 = vld [vmem:[#allocation3 + $0x30] sm:$0xff]  ;;  %v9285_v7 = vadd.f32 1.0, %v752_v24  ;;  %v9287_v41 = vadd.f32 1.0, %v1712_v12  ;;  %v3187_v13 = vsub.f32 %v9150_v10, %v497_v42  ;;  %v562_v10 = vld [vmem:[%s9935_s1 + $0x1d8] sm:$0xff]  ;;  %v9335_v21 = vpop.permute.xlu1 %4249 }
 0x2c3   :  { %v4016_v61 = vand.u32 2147483647, %v3952_v60  ;;  %v9292_v49 = vadd.f32 1.0, %v3313_v15  ;;  %v689_v30 = vmul.f32 %v625_v37, %v625_v37  ;;  %v1649_v36 = vmul.f32 %v1585_v25, %v1585_v25  ;;  %4482 = vst.msk [vmem:[#allocation3 + $0x40] sm:$0xff] %vm178_vm3, %v4417_v62 }
 0x2c4   :  { %vm1217_vm9 = vcmp.eq.f32.partialorder %v9251_v55, inf  ;;  %vm1219_vm10 = vcmp.eq.f32.partialorder %v9251_v55, 0.0  ;;  %5538 = vrsqrt.f32 %v9285_v7  ;;  %v3314_v22 = vmul.f32 100.0, %v3250_v52  ;;  %v9353_v62 = vpop.permute.xlu0 %4257 }
 0x2c5   :  { %4327 = vrot.lane.b32.xlu1 %v4016_v61, %s5633_s23  ;;  %v1220_v28 = vand.u32 2147483648, %v9251_v55  ;;  %vm2177_vm11 = vcmp.eq.f32.partialorder %v9259_v39, inf  ;;  %v4819_v32 = vsel %vm178_vm3, %v4750_v29, 0.0  ;;  %5540 = vrsqrt.f32 %v9287_v41 }
 0x2c6   :  { %vm2179_vm0 = vcmp.eq.f32.partialorder %v9259_v39, 0.0  ;;  %v753_v14 = vmul.f32 100.0, %v689_v30  ;;  %v1713_v51 = vmul.f32 100.0, %v1649_v36  ;;  %v3251_v48 = vmul.f32 %v3187_v13, %v3187_v13  ;;  %v4751_v50 = vld [vmem:[#allocation3 + $0x38] sm:$0xff]  ;;  %v9366_v30 = vld [vmem:[%s9934_s0 + $0x1e0] sm:$0xff] }
 0x2c7   :  { %v2180_v16 = vand.u32 2147483648, %v9259_v39  ;;  %5542 = vrsqrt.f32 %v9292_v49  ;;  %v626_v27 = vsub.f32 %v562_v10, %v498_v34  ;;  %v1586_v9 = vsub.f32 %v1522_v54, %v498_v34  ;;  %v1523_v10 = vld [vmem:[%s9936_s2 + $0x1e0] sm:$0xff] }
 0x2c8   :  { %v4820_v47 = vadd.f32 %v4819_v32, %v4818_v11  ;;  %v9317_v63 = vadd.f32 1.0, %v3314_v22  ;;  %v9319_v6 = vadd.f32 1.0, %v753_v14  ;;  %v9321_v26 = vadd.f32 1.0, %v1713_v51 }
 0x2c9   :  { %vm1224_vm12 = vcmp.eq.f32.partialorder %v9285_v7, inf  ;;  %v690_v56 = vmul.f32 %v626_v27, %v626_v27  ;;  %v1650_v23 = vmul.f32 %v1586_v9, %v1586_v9  ;;  %v4418_v53 = vadd.f32 %v9160_v35, %v4034_v20 }
 0x2ca   :  { %vm1226_vm13 = vcmp.eq.f32.partialorder %v9285_v7, 0.0  ;;  %v4821_v1 = vsel %vm178_vm3, %v4751_v50, 0.0  ;;  %5544 = vrsqrt.f32 %v9319_v6  ;;  %v3315_v5 = vmul.f32 100.0, %v3251_v48  ;;  %v4752_v37 = vld [vmem:[#allocation3 + $0x40] sm:$0xff] }
 0x2cb   :  { %v5535_v18 = vpop.eup %5534  ;;  %v1227_v4 = vand.u32 2147483648, %v9285_v7  ;;  %vm2184_vm14 = vcmp.eq.f32.partialorder %v9287_v41, inf  ;;  %5546 = vrsqrt.f32 %v9321_v26  ;;  %v3188_v58 = vsub.f32 %v9171_v45, %v498_v34  ;;  %4483 = vst.msk [vmem:[#allocation3 + $0x48] sm:$0xff] %vm178_vm3, %v4418_v53  ;;  %v563_v45 = vld [vmem:[%s9935_s1 + $0x1e0] sm:$0xff] }
 0x2cc   :  { %v5537_v35 = vpop.eup %5536  ;;  %v1216_v43 = vmul.f32 %v5535_v18, %v9251_v55  ;;  %vm2186_vm15 = vcmp.eq.f32.partialorder %v9287_v41, 0.0  ;;  %v2187_v19 = vand.u32 2147483648, %v9287_v41  ;;  %v754_v60 = vmul.f32 100.0, %v690_v56 }
 0x2cd   :  { %v2176_v15 = vmul.f32 %v5537_v35, %v9259_v39  ;;  %5548 = vrsqrt.f32 %v9317_v63  ;;  %v4822_v42 = vadd.f32 %v4821_v1, %v4820_v47  ;;  %v1714_v44 = vmul.f32 100.0, %v1650_v23  ;;  %v9394_v1 = vpop.permute.xlu0 %4261 }
 0x2ce   :  { %v1218_v24 = vsel %vm1217_vm9, %v9251_v55, %v1216_v43  ;;  %v1234_v12 = vand.u32 2147483648, %v9319_v6  ;;  %v9349_v52 = vadd.f32 1.0, %v3315_v5  ;;  %v9351_v25 = vadd.f32 1.0, %v754_v60  ;;  %v4035_v43 = vld [vmem:[#allocation3 + $0x50] sm:$0xff]  ;;  %v2543_v60 = vld [vmem:[#allocation2 + $0x1c0] sm:$0xff] }
 0x2cf   :  { %v1221_v11 = vsel %vm1219_vm10, %v1220_v28, %v1218_v24  ;;  %v2178_v29 = vsel %vm2177_vm11, %v9259_v39, %v2176_v15  ;;  %vm1231_vm2 = vcmp.eq.f32.partialorder %v9319_v6, inf  ;;  %v9361_v13 = vadd.f32 1.0, %v1714_v44  ;;  %v9380_v39 = vpop.permute.xlu1 %4251 }
 0x2d0   :  { %v3252_v61 = vmul.f32 %v3188_v58, %v3188_v58  ;;  %v5054_v36 = vadd.f32 -1.0, %v1221_v11  ;;  %v2181_v22 = vsel %vm2179_vm0, %v2180_v16, %v2178_v29  ;;  %vm1233_vm4 = vcmp.eq.f32.partialorder %v9319_v6, 0.0 }
 0x2d1   :  { %vm2191_vm5 = vcmp.eq.f32.partialorder %v9321_v26, inf  ;;  %5550 = vrsqrt.f32 %v9351_v25  ;;  %v627_v55 = vsub.f32 %v563_v45, %v9366_v30  ;;  %v5539_v54 = vpop.eup %5538  ;;  %v5118_v28 = vadd.f32 -1.0, %v2181_v22 }
 0x2d2   :  { %vm2193_vm6 = vcmp.eq.f32.partialorder %v9321_v26, 0.0  ;;  %v4823_v32 = vsel %vm178_vm3, %v4752_v37, 0.0  ;;  %5552 = vrsqrt.f32 %v9361_v13  ;;  %v5541_v14 = vpop.eup %5540  ;;  %v1391_v51 = vmul.f32 0.1, %v5054_v36  ;;  %v4753_v22 = vld [vmem:[#allocation3 + $0x48] sm:$0xff] }
 0x2d3   :  { %v1223_v48 = vmul.f32 %v5539_v54, %v9285_v7  ;;  %v2194_v34 = vand.u32 2147483648, %v9321_v26  ;;  %5554 = vrsqrt.f32 %v9349_v52  ;;  %v2351_v20 = vmul.f32 0.1, %v5118_v28  ;;  %v9409_v11 = vpop.permute.xlu1 %4253 }
 0x2d4   :  { %v2183_v16 = vmul.f32 %v5541_v14, %v9287_v41  ;;  %v3316_v50 = vmul.f32 100.0, %v3252_v61  ;;  %v1587_v27 = vsub.f32 %v1523_v10, %v9366_v30  ;;  %v9387_v9 = vpop.eup %5542  ;;  %v1455_v47 = vand.u32 2147483647, %v1391_v51 }
 0x2d5   :  { %v1225_v56 = vsel %vm1224_vm12, %v9285_v7, %v1223_v48  ;;  %v9392_v23 = vadd.f32 %v4823_v32, %v4822_v42  ;;  %v691_v53 = vmul.f32 %v627_v55, %v627_v55  ;;  %v2415_v5 = vand.u32 2147483647, %v2351_v20  ;;  %v9427_v48 = vpop.permute.xlu0 %4265 }
 0x2d6   :  { %v1228_v18 = vsel %vm1226_vm13, %v1227_v4, %v1225_v56  ;;  %v2185_v58 = vsel %vm2184_vm14, %v9287_v41, %v2183_v16  ;;  %vm1238_vm7 = vcmp.eq.f32.partialorder %v9351_v25, inf  ;;  %v1241_v35 = vand.u32 2147483648, %v9351_v25 }
 0x2d7   :  { %v5055_v15 = vadd.f32 -1.0, %v1228_v18  ;;  %v2188_v42 = vsel %vm2186_vm15, %v2187_v19, %v2185_v58  ;;  %vm1240_vm8 = vcmp.eq.f32.partialorder %v9351_v25, 0.0  ;;  %vm2198_vm9 = vcmp.eq.f32.partialorder %v9361_v13, inf  ;;  %v5545_v4 = vpop.eup %5544 }
 0x2d8   :  { %v755_v7 = vmul.f32 100.0, %v691_v53  ;;  %v2479_v44 = vadd.f32 %v2415_v5, %v1455_v47  ;;  %v5119_v45 = vadd.f32 -1.0, %v2188_v42  ;;  %v9407_v24 = vadd.f32 1.0, %v3316_v50  ;;  %v5547_v29 = vpop.eup %5546  ;;  %v2544_v47 = vld [vmem:[#allocation2 + $0x1c8] sm:$0xff] }
 0x2d9   :  { %v1651_v37 = vmul.f32 %v1587_v27, %v1587_v27  ;;  %v1392_v61 = vmul.f32 0.1, %v5055_v15  ;;  %v1230_v36 = vmul.f32 %v5545_v4, %v9319_v6  ;;  %v4419_v19 = vadd.f32 %v9184_v57, %v4035_v43  ;;  %v564_v57 = vld [vmem:[%s9935_s1 + $0x1e8] sm:$0xff]  ;;  %v9448_v15 = vpop.permute.xlu1 %4255 }
 0x2da   :  { %v9412_v41 = vadd.f32 1.0, %v755_v7  ;;  %v2799_v55 = vadd.f32 %v2543_v60, %v2479_v44  ;;  %v2352_v10 = vmul.f32 0.1, %v5119_v45  ;;  %v2190_v54 = vmul.f32 %v5547_v29, %v9321_v26  ;;  %v9416_v32 = vpop.eup %5548 }
 0x2db   :  { %v1715_v28 = vmul.f32 100.0, %v1651_v37  ;;  %v1456_v14 = vand.u32 2147483647, %v1392_v61  ;;  %v1232_v51 = vsel %vm1231_vm2, %v9319_v6, %v1230_v36  ;;  %vm2200_vm10 = vcmp.eq.f32.partialorder %v9361_v13, 0.0  ;;  %4484 = vst.msk [vmem:[#allocation3 + $0x50] sm:$0xff] %vm178_vm3, %v4419_v19  ;;  %v500_v6 = vld [vmem:[%s9934_s0 + $0x1e8] sm:$0xff]  ;;  %v9463_v36 = vpop.permute.xlu0 %4269 }
 0x2dc   :  { %5556 = vrsqrt.f32 %v9412_v41  ;;  %2864 = vst.msk [vmem:[#allocation2 + $0x1c0] sm:$0xff] %vm113_vm1, %v2799_v55  ;;  %v2416_v20 = vand.u32 2147483647, %v2352_v10  ;;  %v1235_v16 = vsel %vm1233_vm4, %v1234_v12, %v1232_v51  ;;  %v2192_v50 = vsel %vm2191_vm5, %v9321_v26, %v2190_v54  ;;  %v1524_v10 = vld [vmem:[%s9936_s2 + $0x1e8] sm:$0xff]  ;;  %v2545_v54 = vld [vmem:[#allocation2 + $0x1d0] sm:$0xff] }
 0x2dd   :  { %v4825_v27 = vsel %vm178_vm3, %v4753_v22, 0.0  ;;  %v5056_v56 = vadd.f32 -1.0, %v1235_v16  ;;  %v2195_v53 = vsel %vm2193_vm6, %v2194_v34, %v2192_v50  ;;  %v9440_v5 = vadd.f32 1.0, %v1715_v28  ;;  %v565_v16 = vld [vmem:[%s9935_s1 + $0x1f0] sm:$0xff]  ;;  %v9484_v50 = vpop.permute.xlu1 %4259 }
 0x2de   :  { %v3189_v18 = vsub.f32 %v9194_v8, %v9366_v30  ;;  %v5551_v12 = vpop.eup %5550  ;;  %v2480_v58 = vadd.f32 %v2416_v20, %v1456_v14  ;;  %v5120_v43 = vadd.f32 -1.0, %v2195_v53  ;;  %5558 = vrsqrt.f32 %v9407_v24 }
 0x2df   :  { %v628_v60 = vsub.f32 %v564_v57, %v500_v6  ;;  %v5553_v42 = vpop.eup %5552  ;;  %v1393_v26 = vmul.f32 0.1, %v5056_v56  ;;  %v1237_v34 = vmul.f32 %v5551_v12, %v9351_v25  ;;  %v2201_v7 = vand.u32 2147483648, %v9361_v13 }
 0x2e0   :  { %5560 = vrsqrt.f32 %v9440_v5  ;;  %v9453_v8 = vpop.eup %5554  ;;  %v2800_v30 = vadd.f32 %v2544_v47, %v2480_v58  ;;  %v2353_v4 = vmul.f32 0.1, %v5120_v43  ;;  %v2197_v44 = vmul.f32 %v5553_v42, %v9361_v13  ;;  %v501_v43 = vld [vmem:[%s9934_s0 + $0x1f0] sm:$0xff] }
 0x2e1   :  { %v9457_v45 = vadd.f32 %v4825_v27, %v9392_v23  ;;  %v1457_v37 = vand.u32 2147483647, %v1393_v26  ;;  %v1239_v29 = vsel %vm1238_vm7, %v9351_v25, %v1237_v34  ;;  %vm1245_vm11 = vcmp.eq.f32.partialorder %v9412_v41, inf  ;;  %v4036_v25 = vld [vmem:[#allocation3 + $0x58] sm:$0xff] }
 0x2e2   :  { %v3253_v61 = vmul.f32 %v3189_v18, %v3189_v18  ;;  %2865 = vst.msk [vmem:[#allocation2 + $0x1c8] sm:$0xff] %vm113_vm1, %v2800_v30  ;;  %v2417_v22 = vand.u32 2147483647, %v2353_v4  ;;  %v1242_v19 = vsel %vm1240_vm8, %v1241_v35, %v1239_v29  ;;  %v2199_v23 = vsel %vm2198_vm9, %v9361_v13, %v2197_v44  ;;  %v4754_v42 = vld [vmem:[#allocation3 + $0x50] sm:$0xff]  ;;  %v4037_v44 = vld [vmem:[#allocation3 + $0x60] sm:$0xff] }
 0x2e3   :  { %v692_v55 = vmul.f32 %v628_v60, %v628_v60  ;;  %v5057_v28 = vadd.f32 -1.0, %v1242_v19  ;;  %v2202_v14 = vsel %vm2200_vm10, %v2201_v7, %v2199_v23  ;;  %vm1247_vm0 = vcmp.eq.f32.partialorder %v9412_v41, 0.0  ;;  %v1525_v30 = vld [vmem:[%s9936_s2 + $0x1f0] sm:$0xff] }
 0x2e4   :  { %v1248_v51 = vand.u32 2147483648, %v9412_v41  ;;  %v2481_v35 = vadd.f32 %v2417_v22, %v1457_v37  ;;  %v5121_v57 = vadd.f32 -1.0, %v2202_v14  ;;  %vm2205_vm12 = vcmp.eq.f32.partialorder %v9440_v5, inf  ;;  %v2546_v37 = vld [vmem:[#allocation2 + $0x1d8] sm:$0xff] }
 0x2e5   :  { %v756_v20 = vmul.f32 100.0, %v692_v55  ;;  %v1394_v27 = vmul.f32 0.1, %v5057_v28  ;;  %v3317_v47 = vmul.f32 100.0, %v3253_v61  ;;  %v1588_v13 = vsub.f32 %v1524_v10, %v500_v6  ;;  %v9507_v28 = vpop.permute.xlu1 %4263 }
 0x2e6   :  { %v3190_v56 = vsub.f32 %v9227_v38, %v500_v6  ;;  %v2801_v53 = vadd.f32 %v2545_v54, %v2481_v35  ;;  %v2354_v18 = vmul.f32 0.1, %v5121_v57  ;;  %v4420_v58 = vadd.f32 %v9208_v17, %v4036_v25  ;;  %v9496_v38 = vpop.permute.xlu0 %4273 }
 0x2e7   :  { %v9487_v12 = vadd.f32 1.0, %v756_v20  ;;  %v1458_v60 = vand.u32 2147483647, %v1394_v27  ;;  %v1652_v26 = vmul.f32 %v1588_v13, %v1588_v13  ;;  %v629_v7 = vsub.f32 %v565_v16, %v501_v43 }
 0x2e8   :  { %v3254_v34 = vmul.f32 %v3190_v56, %v3190_v56  ;;  %2866 = vst.msk [vmem:[#allocation2 + $0x1d0] sm:$0xff] %vm113_vm1, %v2801_v53  ;;  %v2418_v4 = vand.u32 2147483647, %v2354_v18  ;;  %vm2207_vm13 = vcmp.eq.f32.partialorder %v9440_v5, 0.0  ;;  %v2208_v17 = vand.u32 2147483648, %v9440_v5 }
 0x2e9   :  { %v5557_v6 = vpop.eup %5556  ;;  %5562 = vrsqrt.f32 %v9487_v12  ;;  %4485 = vst.msk [vmem:[#allocation3 + $0x58] sm:$0xff] %vm178_vm3, %v4420_v58  ;;  %v9504_v61 = vadd.f32 1.0, %v3317_v47  ;;  %v1716_v22 = vmul.f32 100.0, %v1652_v26  ;;  %v4827_v55 = vsel %vm178_vm3, %v4754_v42, 0.0 }
 0x2ea   :  { %v1244_v29 = vmul.f32 %v5557_v6, %v9412_v41  ;;  %v3318_v19 = vmul.f32 100.0, %v3254_v34  ;;  %v2482_v23 = vadd.f32 %v2418_v4, %v1458_v60  ;;  %v693_v10 = vmul.f32 %v629_v7, %v629_v7  ;;  %v9525_v60 = vpop.permute.xlu0 %4277  ;;  %v1526_v6 = vld [vmem:[%s9936_s2 + $0x1f8] sm:$0xff]  ;;  %v4039_v4 = vld [vmem:[#allocation3 + $0x70] sm:$0xff] }
 0x2eb   :  { %v1589_v54 = vsub.f32 %v1525_v30, %v501_v43  ;;  %v9509_v14 = vpop.eup %5558  ;;  %v9514_v35 = vadd.f32 1.0, %v1716_v22  ;;  %v3191_v57 = vsub.f32 %v9254_v33, %v501_v43  ;;  %v4421_v20 = vadd.f32 %v9248_v3, %v4037_v44  ;;  %v10042_v3 = vld [vmem:[#allocation35_spill] sm:$0xff]  ;;  %v9553_v44 = vpop.permute.xlu1 %4267 }
 0x2ec   :  { %v1246_v25 = vsel %vm1245_vm11, %v9412_v41, %v1244_v29  ;;  %v2802_v27 = vadd.f32 %v2546_v37, %v2482_v23  ;;  %v757_v13 = vmul.f32 100.0, %v693_v10  ;;  %v9522_v58 = vadd.f32 1.0, %v3318_v19 }
 0x2ed   :  { %v5561_v16 = vpop.eup %5560  ;;  %v1249_v47 = vsel %vm1247_vm0, %v1248_v51, %v1246_v25  ;;  %v1653_v56 = vmul.f32 %v1589_v54, %v1589_v54  ;;  %5564 = vrsqrt.f32 %v9514_v35  ;;  %4486 = vst.msk [vmem:[#allocation3 + $0x60] sm:$0xff] %vm178_vm3, %v4421_v20  ;;  %v9529_v33 = vadd.f32 %v10042_v3, %v9281_v59  ;;  %v566_v59 = vld [vmem:[%s9935_s1 + $0x1f8] sm:$0xff] }
 0x2ee   :  { %v5058_v53 = vadd.f32 -1.0, %v1249_v47  ;;  %v2204_v18 = vmul.f32 %v5561_v16, %v9440_v5  ;;  %2867 = vst.msk [vmem:[#allocation2 + $0x1d8] sm:$0xff] %vm113_vm1, %v2802_v27  ;;  %5566 = vrsqrt.f32 %v9504_v61  ;;  %v4828_v41 = vadd.f32 %v4827_v55, %v9457_v45  ;;  %v502_v45 = vld [vmem:[%s9934_s0 + $0x1f8] sm:$0xff]  ;;  %s5634_s0 = smov [#allocation4]  }
 0x2ef   :  { %v9534_v51 = vadd.f32 1.0, %v757_v13  ;;  %v1717_v34 = vmul.f32 100.0, %v1653_v56  ;;  %v3255_v7 = vmul.f32 %v3191_v57, %v3191_v57  ;;  %vm1252_vm14 = vcmp.eq.f32.partialorder %v9487_v12, inf  ;;  %s4952_s1 = sshll.u32 %s5634_s0, 4  ;;  %s4953_s1 = int_to_ptr.vmem [resolvable:$true] %s4952_s1 }
 0x2f0   :  { %v1395_v43 = vmul.f32 0.1, %v5058_v53  ;;  %v2206_v42 = vsel %vm2205_vm12, %v9440_v5, %v2204_v18  ;;  %v4755_v26 = vld [vmem:[#allocation3 + $0x58] sm:$0xff]  ;;  %vm1254_vm15 = vcmp.eq.f32.partialorder %v9487_v12, 0.0  ;;  %v1255_v5 = vand.u32 2147483648, %v9487_v12  ;;  %s5592_s22 = scalar_lea.vmem %s4953_s1, 32  ;;  %p5593_p1 = scmp.lt.s32.totalorder %s4953_s1, %s4953_s1 }
 0x2f1   :  { %v2209_v30 = vsel %vm2207_vm13, %v2208_v17, %v2206_v42  ;;  %5568 = vrsqrt.f32 %v9534_v51  ;;  %v4829_v17 = vsel %vm178_vm3, %v4755_v26, 0.0  ;;  %v9558_v22 = vadd.f32 1.0, %v1717_v34 }
 0x2f2   :  { %v5122_v37 = vadd.f32 -1.0, %v2209_v30  ;;  %5570 = vrsqrt.f32 %v9522_v58  ;;  %v1459_v29 = vand.u32 2147483647, %v1395_v43  ;;  %v3319_v19 = vmul.f32 100.0, %v3255_v7  ;;  %v9574_v43 = vpop.permute.xlu1 %4271 }
 0x2f3   :  { %v630_v23 = vsub.f32 %v566_v59, %v502_v45  ;;  %v1590_v10 = vsub.f32 %v1526_v6, %v502_v45  ;;  %v3192_v54 = vsub.f32 %v9290_v31, %v502_v45  ;;  %v4423_v25 = vadd.f32 %v9279_v0, %v4039_v4  ;;  %v2547_v0 = vld [vmem:[#allocation2 + $0x1e0] sm:$0xff] }
 0x2f4   :  { %v2355_v55 = vmul.f32 0.1, %v5122_v37  ;;  %vm2212_vm2 = vcmp.eq.f32.partialorder %v9514_v35, inf  ;;  %vm2214_vm4 = vcmp.eq.f32.partialorder %v9514_v35, 0.0  ;;  %v2215_v20 = vand.u32 2147483648, %v9514_v35  ;;  %v4756_v16 = vld [vmem:[#allocation3 + $0x60] sm:$0xff] }
 0x2f5   :  { %5572 = vrsqrt.f32 %v9558_v22  ;;  %v4830_v13 = vadd.f32 %v4829_v17, %v4828_v41  ;;  %vm1259_vm5 = vcmp.eq.f32.partialorder %v9534_v51, inf  ;;  %v694_v56 = vmul.f32 %v630_v23, %v630_v23  ;;  %4488 = vst.msk [vmem:[#allocation3 + $0x70] sm:$0xff] %vm178_vm3, %v4423_v25  ;;  %v4038_v25 = vld [vmem:[#allocation3 + $0x68] sm:$0xff] }
 0x2f6   :  { %v5563_v27 = vpop.eup %5562  ;;  %v2419_v47 = vand.u32 2147483647, %v2355_v55  ;;  %vm1261_vm6 = vcmp.eq.f32.partialorder %v9534_v51, 0.0  ;;  %v9572_v53 = vadd.f32 1.0, %v3319_v19  ;;  %v1654_v18 = vmul.f32 %v1590_v10, %v1590_v10 }
 0x2f7   :  { %v9562_v57 = vpop.permute.xlu0 %4281  ;;  %v1251_v31 = vmul.f32 %v5563_v27, %v9487_v12  ;;  %v3256_v3 = vmul.f32 %v3192_v54, %v3192_v54  ;;  %v1262_v26 = vand.u32 2147483648, %v9534_v51  ;;  %v4831_v41 = vsel %vm178_vm3, %v4756_v16, 0.0  ;;  %v4040_v16 = vld [vmem:[#allocation3 + $0x78] sm:$0xff] }
 0x2f8   :  { %v2483_v42 = vadd.f32 %v2419_v47, %v1459_v29  ;;  %v758_v34 = vmul.f32 100.0, %v694_v56  ;;  %v1718_v59 = vmul.f32 100.0, %v1654_v18  ;;  %v3778_v45 = vmul.f32 %v9387_v9, %v9292_v49 }
 0x2f9   :  { %v1253_v7 = vsel %vm1252_vm14, %v9487_v12, %v1251_v31  ;;  %v3320_v30 = vmul.f32 100.0, %v3256_v3  ;;  %vm3779_vm7 = vcmp.eq.f32.partialorder %v9292_v49, inf  ;;  %vm2219_vm8 = vcmp.eq.f32.partialorder %v9558_v22, inf }
 0x2fa   :  { %v2803_v6 = vadd.f32 %v2547_v0, %v2483_v42  ;;  %v1256_v4 = vsel %vm1254_vm15, %v1255_v5, %v1253_v7  ;;  %v9585_v37 = vadd.f32 1.0, %v758_v34  ;;  %v5565_v29 = vpop.eup %5564  ;;  %5574 = vrsqrt.f32 %v9572_v53 }
 0x2fb   :  { %v9588_v17 = vpop.permute.xlu0 %4285  ;;  %v5059_v19 = vadd.f32 -1.0, %v1256_v4  ;;  %v9592_v23 = vadd.f32 1.0, %v1718_v59  ;;  %v9594_v55 = vpop.eup %5566  ;;  %v2211_v9 = vmul.f32 %v5565_v29, %v9514_v35  ;;  %vm2221_vm9 = vcmp.eq.f32.partialorder %v9558_v22, 0.0  ;;  %v4041_v29 = vld [vmem:[#allocation3 + $0x80] sm:$0xff] }
 0x2fc   :  { %2868 = vst.msk [vmem:[#allocation2 + $0x1e0] sm:$0xff] %vm113_vm1, %v2803_v6  ;;  %v2222_v12 = vand.u32 2147483648, %v9558_v22  ;;  %5576 = vrsqrt.f32 %v9585_v37  ;;  %v9601_v10 = vadd.f32 %v4831_v41, %v4830_v13  ;;  %v3780_v54 = vsel %vm3779_vm7, %v9292_v49, %v3778_v45  ;;  %v9607_v27 = vpop.permute.xlu1 %4275  ;;  %v4045_v13 = vld [vmem:[#allocation3 + $0xa0] sm:$0xff] }
 0x2fd   :  { %v1396_v5 = vmul.f32 0.1, %v5059_v19  ;;  %5578 = vrsqrt.f32 %v9592_v23  ;;  %v2213_v56 = vsel %vm2212_vm2, %v9514_v35, %v2211_v9  ;;  %v1269_v0 = vand.u32 2147483648, %v9585_v37  ;;  %v4047_v19 = vld [vmem:[#allocation3 + $0xb0] sm:$0xff] }
 0x2fe   :  { %v5569_v47 = vpop.eup %5568  ;;  %v9613_v31 = vadd.f32 1.0, %v3320_v30  ;;  %vm3781_vm10 = vcmp.eq.f32.partialorder %v9292_v49, 0.0  ;;  %v2216_v42 = vsel %vm2214_vm4, %v2215_v20, %v2213_v56  ;;  %v2229_v34 = vand.u32 2147483648, %v9592_v23  ;;  %v2548_v56 = vld [vmem:[#allocation2 + $0x1e8] sm:$0xff] }
 0x2ff   :  { %v9616_v18 = vpop.eup %5570  ;;  %v1460_v3 = vand.u32 2147483647, %v1396_v5  ;;  %v1258_v41 = vmul.f32 %v5569_v47, %v9534_v51  ;;  %v5123_v7 = vadd.f32 -1.0, %v2216_v42  ;;  %v3782_v59 = vand.u32 2147483648, %v9292_v49  ;;  %v9625_v6 = vpop.permute.xlu0 %4289 }
 0x300   :  { %v4422_v45 = vadd.f32 %v9323_v46, %v4038_v25  ;;  %v4424_v30 = vadd.f32 %v9309_v2, %v4040_v16  ;;  %vm1266_vm11 = vcmp.eq.f32.partialorder %v9585_v37, inf  ;;  %v4429_v35 = vadd.f32 %v9353_v62, %v4045_v13 }
 0x301   :  { %v1260_v4 = vsel %vm1259_vm5, %v9534_v51, %v1258_v41  ;;  %v3785_v20 = vmul.f32 %v9416_v32, %v9317_v63  ;;  %vm3786_vm0 = vcmp.eq.f32.partialorder %v9317_v63, inf  ;;  %v2356_v9 = vmul.f32 0.1, %v5123_v7 }
 0x302   :  { %v5573_v46 = vpop.eup %5572  ;;  %v1263_v2 = vsel %vm1261_vm6, %v1262_v26, %v1260_v4  ;;  %vm1268_vm12 = vcmp.eq.f32.partialorder %v9585_v37, 0.0  ;;  %vm2226_vm13 = vcmp.eq.f32.partialorder %v9592_v23, inf  ;;  %v3783_v5 = vsel %vm3781_vm10, %v3782_v59, %v3780_v54  ;;  %4487 = vst.msk [vmem:[#allocation3 + $0x68] sm:$0xff] %vm178_vm3, %v4422_v45  ;;  %4489 = vst.msk [vmem:[#allocation3 + $0x78] sm:$0xff] %vm178_vm3, %v4424_v30  ;;  %v9650_v49 = vpop.permute.xlu1 %4279  ;;  %v4049_v4 = vld [vmem:[#allocation3 + $0xc0] sm:$0xff] }
 0x303   :  { %vm3788_vm14 = vcmp.eq.f32.partialorder %v9317_v63, 0.0  ;;  %v5060_v62 = vadd.f32 -1.0, %v1263_v2  ;;  %v2218_v32 = vmul.f32 %v5573_v46, %v9558_v22  ;;  %vm2228_vm15 = vcmp.eq.f32.partialorder %v9592_v23, 0.0  ;;  %4494 = vst.msk [vmem:[#allocation3 + $0xa0] sm:$0xff] %vm178_vm3, %v4429_v35 }
 0x304   :  { %v5182_v51 = vadd.f32 -1.0, %v3783_v5  ;;  %v3787_v26 = vsel %vm3786_vm0, %v9317_v63, %v3785_v20  ;;  %v2420_v54 = vand.u32 2147483647, %v2356_v9  ;;  %v3789_v25 = vand.u32 2147483648, %v9317_v63  ;;  %v9660_v59 = vpop.permute.xlu0 %4293 }
 0x305   :  { %v4425_v16 = vadd.f32 %v9335_v21, %v4041_v29  ;;  %v4431_v47 = vadd.f32 %v9394_v1, %v4047_v19  ;;  %v1397_v13 = vmul.f32 0.1, %v5060_v62  ;;  %v2220_v42 = vsel %vm2219_vm8, %v9558_v22, %v2218_v32  ;;  %v4042_v1 = vld [vmem:[#allocation3 + $0x88] sm:$0xff]  ;;  %v4758_v22 = vld [vmem:[#allocation3 + $0x70] sm:$0xff] }
 0x306   :  { %v3953_v41 = vmul.f32 0.1, %v5182_v51  ;;  %v3792_v7 = vmul.f32 %v9453_v8, %v9349_v52  ;;  %v2484_v45 = vadd.f32 %v2420_v54, %v1460_v3  ;;  %v2223_v30 = vsel %vm2221_vm9, %v2222_v12, %v2220_v42  ;;  %v2549_v42 = vld [vmem:[#allocation2 + $0x1f0] sm:$0xff] }
 0x307   :  { %v3790_v21 = vsel %vm3788_vm14, %v3789_v25, %v3787_v26  ;;  %4490 = vst.msk [vmem:[#allocation3 + $0x80] sm:$0xff] %vm178_vm3, %v4425_v16  ;;  %4496 = vst.msk [vmem:[#allocation3 + $0xb0] sm:$0xff] %vm178_vm3, %v4431_v47  ;;  %vm3793_vm2 = vcmp.eq.f32.partialorder %v9349_v52, inf  ;;  %v1461_v35 = vand.u32 2147483647, %v1397_v13  ;;  %v5124_v20 = vadd.f32 -1.0, %v2223_v30  ;;  %v9669_v19 = vpop.eup %5574  ;;  %v9677_v51 = vpop.permute.xlu1 %4283 }
 0x308   :  { %v4017_v8 = vand.u32 2147483647, %v3953_v41  ;;  %v5183_v29 = vadd.f32 -1.0, %v3790_v21  ;;  %v2804_v3 = vadd.f32 %v2548_v56, %v2484_v45  ;;  %v3794_v12 = vsel %vm3793_vm2, %v9349_v52, %v3792_v7 }
 0x309   :  { %vm3795_vm4 = vcmp.eq.f32.partialorder %v9349_v52, 0.0  ;;  %v3796_v63 = vand.u32 2147483648, %v9349_v52  ;;  %v5577_v46 = vpop.eup %5576  ;;  %v2357_v9 = vmul.f32 0.1, %v5124_v20  ;;  %v4757_v2 = vld [vmem:[#allocation3 + $0x68] sm:$0xff]  ;;  %v4426_v62 = vadd.f32 %v9380_v39, %v4042_v1  ;;  %v9683_v16 = vpop.permute.xlu0 %4297  ;;  %v4759_v13 = vld [vmem:[#allocation3 + $0x78] sm:$0xff] }
 0x30a   :  { %4329 = vrot.lane.b32.xlu0 %v4017_v8, %s5633_s23  ;;  %v3954_v5 = vmul.f32 0.1, %v5183_v29  ;;  %v4433_v32 = vadd.f32 %v9427_v48, %v4049_v4  ;;  %v5579_v26 = vpop.eup %5578  ;;  %2869 = vst.msk [vmem:[#allocation2 + $0x1e8] sm:$0xff] %vm113_vm1, %v2804_v3  ;;  %v1265_v54 = vmul.f32 %v5577_v46, %v9585_v37  ;;  %5580 = vrsqrt.f32 %v9613_v31  ;;  %v4043_v46 = vld [vmem:[#allocation3 + $0x90] sm:$0xff] }
 0x30b   :  { %v4833_v52 = vsel %vm178_vm3, %v4757_v2, 0.0  ;;  %v3797_v25 = vsel %vm3795_vm4, %v3796_v63, %v3794_v12  ;;  %v2421_v47 = vand.u32 2147483647, %v2357_v9  ;;  %v2225_v56 = vmul.f32 %v5579_v26, %v9592_v23  ;;  %4491 = vst.msk [vmem:[#allocation3 + $0x88] sm:$0xff] %vm178_vm3, %v4426_v62  ;;  %v9702_v8 = vpop.permute.xlu1 %4287  ;;  %v4051_v9 = vld [vmem:[#allocation3 + $0xd0] sm:$0xff]  ;;  %v4568_v2 = vld [vmem:[#allocation2 + $0xd8] sm:$0xff] }
 0x30c   :  { %v4835_v39 = vsel %vm178_vm3, %v4758_v22, 0.0  ;;  %v4834_v48 = vadd.f32 %v4833_v52, %v9601_v10  ;;  %4498 = vst.msk [vmem:[#allocation3 + $0xc0] sm:$0xff] %vm178_vm3, %v4433_v32  ;;  %v1267_v41 = vsel %vm1266_vm11, %v9585_v37, %v1265_v54  ;;  %v4018_v7 = vand.u32 2147483647, %v3954_v5 }
 0x30d   :  { %v5184_v45 = vadd.f32 -1.0, %v3797_v25  ;;  %v3799_v30 = vmul.f32 %v9509_v14, %v9407_v24  ;;  %v2485_v21 = vadd.f32 %v2421_v47, %v1461_v35  ;;  %v1270_v10 = vsel %vm1268_vm12, %v1269_v0, %v1267_v41  ;;  %v9711_v0 = vpop.permute.xlu0 %4301 }
 0x30e   :  { %v2227_v1 = vsel %vm2226_vm13, %v9592_v23, %v2225_v56  ;;  %v4836_v4 = vadd.f32 %v4835_v39, %v4834_v48  ;;  %v4760_v20 = vld [vmem:[#allocation3 + $0x80] sm:$0xff]  ;;  %v5061_v29 = vadd.f32 -1.0, %v1270_v10  ;;  %v4837_v35 = vsel %vm178_vm3, %v4759_v13, 0.0  ;;  %4331 = vrot.lane.b32.xlu1 %v4018_v7, %s5633_s23  ;;  %v4044_v39 = vld [vmem:[#allocation3 + $0x98] sm:$0xff] }
 0x30f   :  { %v2230_v14 = vsel %vm2228_vm15, %v2229_v34, %v2227_v1  ;;  %v4839_v37 = vsel %vm178_vm3, %v4760_v20, 0.0  ;;  %v2805_v3 = vadd.f32 %v2549_v42, %v2485_v21  ;;  %v3955_v63 = vmul.f32 0.1, %v5184_v45  ;;  %v4053_v45 = vld [vmem:[#allocation3 + $0xe0] sm:$0xff]  ;;  %v4046_v20 = vld [vmem:[#allocation3 + $0xa8] sm:$0xff] }
 0x310   :  { %v5125_v22 = vadd.f32 -1.0, %v2230_v14  ;;  %v4838_v12 = vadd.f32 %v4837_v35, %v4836_v4  ;;  %v1398_v5 = vmul.f32 0.1, %v5061_v29  ;;  %vm3800_vm5 = vcmp.eq.f32.partialorder %v9407_v24, inf  ;;  %v9720_v48 = vpop.permute.xlu1 %4291 }
 0x311   :  { %vm3802_vm6 = vcmp.eq.f32.partialorder %v9407_v24, 0.0  ;;  %v3803_v23 = vand.u32 2147483648, %v9407_v24  ;;  %2870 = vst.msk [vmem:[#allocation2 + $0x1f0] sm:$0xff] %vm113_vm1, %v2805_v3  ;;  %v4019_v32 = vand.u32 2147483647, %v3955_v63  ;;  %v3801_v26 = vsel %vm3800_vm5, %v9407_v24, %v3799_v30  ;;  %v9725_v24 = vpop.permute.xlu0 %4305  ;;  %v2550_v30 = vld [vmem:[#allocation2 + $0x1f8] sm:$0xff] }
 0x312   :  { %v2358_v34 = vmul.f32 0.1, %v5125_v22  ;;  %v4840_v62 = vadd.f32 %v4839_v37, %v4838_v12  ;;  %v1462_v54 = vand.u32 2147483647, %v1398_v5  ;;  %v4761_v52 = vld [vmem:[#allocation3 + $0x88] sm:$0xff]  ;;  %v4427_v47 = vadd.f32 %v9409_v11, %v4043_v46 }
 0x313   :  { %v3804_v25 = vsel %vm3802_vm6, %v3803_v23, %v3801_v26  ;;  %v4435_v56 = vadd.f32 %v9463_v36, %v4051_v9  ;;  %v4658_v13 = vsel %vm113_vm1, %v4568_v2, 0.0  ;;  %4333 = vrot.lane.b32.xlu0 %v4019_v32, %s5633_s23  ;;  %v4841_v41 = vsel %vm178_vm3, %v4761_v52, 0.0  ;;  %v4057_v9 = vld [vmem:[#allocation3 + $0x100] sm:$0xff] }
 0x314   :  { %v2422_v42 = vand.u32 2147483647, %v2358_v34  ;;  %v5185_v7 = vadd.f32 -1.0, %v3804_v25  ;;  %v4842_v21 = vadd.f32 %v4841_v41, %v4840_v62  ;;  %4492 = vst.msk [vmem:[#allocation3 + $0x90] sm:$0xff] %vm178_vm3, %v4427_v47  ;;  %v3806_v11 = vmul.f32 %v9594_v55, %v9504_v61  ;;  %v4055_v55 = vld [vmem:[#allocation3 + $0xf0] sm:$0xff]  ;;  %v9740_v37 = vpop.permute.xlu1 %4295  ;;  %v4050_v25 = vld [vmem:[#allocation3 + $0xc8] sm:$0xff] }
 0x315   :  { %4500 = vst.msk [vmem:[#allocation3 + $0xd0] sm:$0xff] %vm178_vm3, %v4435_v56  ;;  %vm3807_vm7 = vcmp.eq.f32.partialorder %v9504_v61, inf  ;;  %vm3809_vm8 = vcmp.eq.f32.partialorder %v9504_v61, 0.0  ;;  %v3810_v1 = vand.u32 2147483648, %v9504_v61  ;;  %v4428_v4 = vadd.f32 %v9448_v15, %v4044_v39  ;;  %v4048_v15 = vld [vmem:[#allocation3 + $0xb8] sm:$0xff] }
 0x316   :  { %v2486_v36 = vadd.f32 %v2422_v42, %v1462_v54  ;;  %v3956_v10 = vmul.f32 0.1, %v5185_v7  ;;  %v3808_v29 = vsel %vm3807_vm7, %v9504_v61, %v3806_v11  ;;  %v4437_v14 = vadd.f32 %v9496_v38, %v4053_v45  ;;  %v9748_v2 = vpop.permute.xlu0 %4309  ;;  %v4059_v42 = vld [vmem:[#allocation3 + $0x110] sm:$0xff]  ;;  %v4052_v41 = vld [vmem:[#allocation3 + $0xd8] sm:$0xff]  ;;  %v4061_v7 = vld [vmem:[#allocation3 + $0x120] sm:$0xff] }
 0x317   :  { %v3813_v35 = vmul.f32 %v9616_v18, %v9522_v58  ;;  %vm3814_vm9 = vcmp.eq.f32.partialorder %v9522_v58, inf  ;;  %v5581_v3 = vpop.eup %5580  ;;  %v3811_v63 = vsel %vm3809_vm8, %v3810_v1, %v3808_v29  ;;  %4493 = vst.msk [vmem:[#allocation3 + $0x98] sm:$0xff] %vm178_vm3, %v4428_v4  ;;  %vm3816_vm10 = vcmp.eq.f32.partialorder %v9522_v58, 0.0  ;;  %v4764_v45 = vld [vmem:[#allocation3 + $0xa0] sm:$0xff] }
 0x318   :  { %v2806_v22 = vadd.f32 %v2550_v30, %v2486_v36  ;;  %v4020_v12 = vand.u32 2147483647, %v3956_v10  ;;  %v5186_v61 = vadd.f32 -1.0, %v3811_v63  ;;  %4502 = vst.msk [vmem:[#allocation3 + $0xe0] sm:$0xff] %vm178_vm3, %v4437_v14  ;;  %v3817_v18 = vand.u32 2147483648, %v9522_v58 }
 0x319   :  { %v3815_v38 = vsel %vm3814_vm9, %v9522_v58, %v3813_v35  ;;  %v4430_v46 = vadd.f32 %v9484_v50, %v4046_v20  ;;  %v4439_v5 = vadd.f32 %v9525_v60, %v4055_v55  ;;  %v3820_v23 = vmul.f32 %v9669_v19, %v9572_v53  ;;  %v9766_v47 = vpop.permute.xlu1 %4299  ;;  %v4056_v20 = vld [vmem:[#allocation3 + $0xf8] sm:$0xff] }
 0x31a   :  { %2871 = vst.msk [vmem:[#allocation2 + $0x1f8] sm:$0xff] %vm113_vm1, %v2806_v22  ;;  %4335 = vrot.lane.b32.xlu1 %v4020_v12, %s5633_s23  ;;  %vm3821_vm11 = vcmp.eq.f32.partialorder %v9572_v53, inf  ;;  %vm3823_vm0 = vcmp.eq.f32.partialorder %v9572_v53, 0.0  ;;  %v3957_v34 = vmul.f32 0.1, %v5186_v61  ;;  %v3818_v50 = vsel %vm3816_vm10, %v3817_v18, %v3815_v38  ;;  %v4067_v61 = vld [vmem:[#allocation3 + $0x150] sm:$0xff] }
 0x31b   :  { %4495 = vst.msk [vmem:[#allocation3 + $0xa8] sm:$0xff] %vm178_vm3, %v4430_v46  ;;  %v3824_v62 = vand.u32 2147483648, %v9572_v53  ;;  %v4432_v32 = vadd.f32 %v9507_v28, %v4048_v15  ;;  %v4762_v26 = vld [vmem:[#allocation3 + $0x90] sm:$0xff]  ;;  %v5187_v54 = vadd.f32 -1.0, %v3818_v50  ;;  %4504 = vst.msk [vmem:[#allocation3 + $0xf0] sm:$0xff] %vm178_vm3, %v4439_v5  ;;  %v3822_v60 = vsel %vm3821_vm11, %v9572_v53, %v3820_v23  ;;  %v4060_v38 = vld [vmem:[#allocation3 + $0x118] sm:$0xff] }
 0x31c   :  { %v4441_v19 = vadd.f32 %v9562_v57, %v4057_v9  ;;  %v3827_v52 = vmul.f32 %v5581_v3, %v9613_v31  ;;  %v9769_v58 = vadd.f32 %v4658_v13, %v9529_v33  ;;  %v4843_v56 = vsel %vm178_vm3, %v4762_v26, 0.0  ;;  %v9775_v57 = vpop.permute.xlu0 %4313  ;;  %v4054_v33 = vld [vmem:[#allocation3 + $0xe8] sm:$0xff]  ;;  %v4065_v3 = vld [vmem:[#allocation3 + $0x140] sm:$0xff]  ;;  %v4766_v18 = vld [vmem:[#allocation3 + $0xb0] sm:$0xff] }
 0x31d   :  { %v4021_v39 = vand.u32 2147483647, %v3957_v34  ;;  %v3825_v28 = vsel %vm3823_vm0, %v3824_v62, %v3822_v60  ;;  %4497 = vst.msk [vmem:[#allocation3 + $0xb8] sm:$0xff] %vm178_vm3, %v4432_v32  ;;  %v4844_v30 = vadd.f32 %v4843_v56, %v4842_v21  ;;  %v3958_v11 = vmul.f32 0.1, %v5187_v54  ;;  %v4570_v13 = vld [vmem:[#allocation2 + $0xe8] sm:$0xff]  ;;  %v9786_v22 = vpop.permute.xlu1 %4303 }
 0x31e   :  { %v5188_v36 = vadd.f32 -1.0, %v3825_v28  ;;  %4506 = vst.msk [vmem:[#allocation3 + $0x100] sm:$0xff] %vm178_vm3, %v4441_v19  ;;  %vm3828_vm12 = vcmp.eq.f32.partialorder %v9613_v31, inf  ;;  %v4763_v53 = vld [vmem:[#allocation3 + $0x98] sm:$0xff]  ;;  %vm3830_vm13 = vcmp.eq.f32.partialorder %v9613_v31, 0.0  ;;  %v3831_v1 = vand.u32 2147483648, %v9613_v31 }
 0x31f   :  { %4337 = vrot.lane.b32.xlu0 %v4021_v39, %s5633_s23  ;;  %v3829_v10 = vsel %vm3828_vm12, %v9613_v31, %v3827_v52  ;;  %v4434_v4 = vadd.f32 %v9553_v44, %v4050_v25  ;;  %v4063_v21 = vld [vmem:[#allocation3 + $0x130] sm:$0xff]  ;;  %v4845_v29 = vsel %vm178_vm3, %v4763_v53, 0.0  ;;  %v4022_v14 = vand.u32 2147483647, %v3958_v11  ;;  %v4058_v44 = vld [vmem:[#allocation3 + $0x108] sm:$0xff]  ;;  %v4069_v34 = vld [vmem:[#allocation3 + $0x160] sm:$0xff] }
 0x320   :  { %v3959_v35 = vmul.f32 0.1, %v5188_v36  ;;  %v4443_v55 = vadd.f32 %v9588_v17, %v4059_v42  ;;  %v4847_v12 = vsel %vm178_vm3, %v4764_v45, 0.0  ;;  %v4846_v63 = vadd.f32 %v4845_v29, %v4844_v30  ;;  %v4318_v50 = vpop.permute.xlu0 %4317  ;;  %v4062_v54 = vld [vmem:[#allocation3 + $0x128] sm:$0xff]  ;;  %v4071_v60 = vld [vmem:[#allocation3 + $0x170] sm:$0xff]  ;;  %v4064_v19 = vld [vmem:[#allocation3 + $0x138] sm:$0xff] }
 0x321   :  { %v3832_v15 = vsel %vm3830_vm13, %v3831_v1, %v3829_v10  ;;  %4499 = vst.msk [vmem:[#allocation3 + $0xc8] sm:$0xff] %vm178_vm3, %v4434_v4  ;;  %v4436_v31 = vadd.f32 %v9574_v43, %v4052_v41  ;;  %4339 = vrot.lane.b32.xlu1 %v4022_v14, %s5633_s23  ;;  %v4445_v5 = vadd.f32 %v9625_v6, %v4061_v7  ;;  %v9800_v52 = vsel %vm113_vm1, %v4570_v13, 0.0  ;;  %v4073_v56 = vld [vmem:[#allocation3 + $0x180] sm:$0xff]  ;;  %v4075_v7 = vld [vmem:[#allocation3 + $0x190] sm:$0xff]  ;;  %v4068_v45 = vld [vmem:[#allocation3 + $0x158] sm:$0xff] }
 0x322   :  { %v4765_v46 = vld [vmem:[#allocation3 + $0xa8] sm:$0xff]  ;;  %v4023_v9 = vand.u32 2147483647, %v3959_v35  ;;  %v5189_v17 = vadd.f32 -1.0, %v3832_v15  ;;  %4508 = vst.msk [vmem:[#allocation3 + $0x110] sm:$0xff] %vm178_vm3, %v4443_v55  ;;  %v4438_v23 = vadd.f32 %v9607_v27, %v4054_v33  ;;  %v4848_v62 = vadd.f32 %v4847_v12, %v4846_v63  ;;  %v4077_v30 = vld [vmem:[#allocation3 + $0x1a0] sm:$0xff]  ;;  %v4308_v11 = vpop.permute.xlu1 %4307 }
 0x323   :  { %v4849_v43 = vsel %vm178_vm3, %v4765_v46, 0.0  ;;  %4501 = vst.msk [vmem:[#allocation3 + $0xd8] sm:$0xff] %vm178_vm3, %v4436_v31  ;;  %v4447_v32 = vadd.f32 %v9660_v59, %v4063_v21  ;;  %v4440_v26 = vadd.f32 %v9650_v49, %v4056_v20  ;;  %4510 = vst.msk [vmem:[#allocation3 + $0x120] sm:$0xff] %vm178_vm3, %v4445_v5  ;;  %v4449_v25 = vadd.f32 %v9683_v16, %v4065_v3  ;;  %v4066_v49 = vld [vmem:[#allocation3 + $0x148] sm:$0xff]  ;;  %v4768_v10 = vld [vmem:[#allocation3 + $0xc0] sm:$0xff] }
 0x324   :  { %4341 = vrot.lane.b32.xlu0 %v4023_v9, %s5633_s23  ;;  %v4767_v27 = vld [vmem:[#allocation3 + $0xb8] sm:$0xff]  ;;  %v3960_v6 = vmul.f32 0.1, %v5189_v17  ;;  %4503 = vst.msk [vmem:[#allocation3 + $0xe8] sm:$0xff] %vm178_vm3, %v4438_v23  ;;  %v4442_v59 = vadd.f32 %v9677_v51, %v4058_v44  ;;  %v4851_v39 = vsel %vm178_vm3, %v4766_v18, 0.0  ;;  %v4850_v28 = vadd.f32 %v4849_v43, %v4848_v62  ;;  %v4322_v13 = vpop.permute.xlu0 %4321  ;;  %v4070_v53 = vld [vmem:[#allocation3 + $0x168] sm:$0xff] }
 0x325   :  { %4512 = vst.msk [vmem:[#allocation3 + $0x130] sm:$0xff] %vm178_vm3, %v4447_v32  ;;  %4505 = vst.msk [vmem:[#allocation3 + $0xf8] sm:$0xff] %vm178_vm3, %v4440_v26  ;;  %v4451_v42 = vadd.f32 %v9711_v0, %v4067_v61  ;;  %v4444_v41 = vadd.f32 %v9702_v8, %v4060_v38  ;;  %v4853_v16 = vsel %vm178_vm3, %v4767_v27, 0.0  ;;  %v4453_v36 = vadd.f32 %v9725_v24, %v4069_v34  ;;  %v4571_v0 = vld [vmem:[#allocation2 + $0xf0] sm:$0xff]  ;;  %v4072_v20 = vld [vmem:[#allocation3 + $0x178] sm:$0xff] }
 0x326   :  { %v4024_v51 = vand.u32 2147483647, %v3960_v6  ;;  %4514 = vst.msk [vmem:[#allocation3 + $0x140] sm:$0xff] %vm178_vm3, %v4449_v25  ;;  %4507 = vst.msk [vmem:[#allocation3 + $0x108] sm:$0xff] %vm178_vm3, %v4442_v59  ;;  %v4446_v33 = vadd.f32 %v9720_v48, %v4062_v54  ;;  %v4852_v8 = vadd.f32 %v4851_v39, %v4850_v28  ;;  %v4455_v1 = vadd.f32 %v9748_v2, %v4071_v60  ;;  %v4079_v2 = vld [vmem:[#allocation3 + $0x1b0] sm:$0xff]  ;;  %v4572_v15 = vld [vmem:[#allocation2 + $0xf8] sm:$0xff] }
 0x327   :  { %4516 = vst.msk [vmem:[#allocation3 + $0x150] sm:$0xff] %vm178_vm3, %v4451_v42  ;;  %4509 = vst.msk [vmem:[#allocation3 + $0x118] sm:$0xff] %vm178_vm3, %v4444_v41  ;;  %v4448_v4 = vadd.f32 %v9740_v37, %v4064_v19  ;;  %v4457_v21 = vadd.f32 %v9775_v57, %v4073_v56  ;;  %v4450_v48 = vadd.f32 %v9766_v47, %v4066_v49  ;;  %v4312_v57 = vpop.permute.xlu1 %4311  ;;  %v4664_v12 = vsel %vm113_vm1, %v4571_v0, 0.0  ;;  %v4770_v31 = vld [vmem:[#allocation3 + $0xd0] sm:$0xff]  ;;  %v4074_v18 = vld [vmem:[#allocation3 + $0x188] sm:$0xff] }
 0x328   :  { %4343 = vrot.lane.b32.xlu1 %v4024_v51, %s5633_s23  ;;  %v4769_v24 = vld [vmem:[#allocation3 + $0xc8] sm:$0xff]  ;;  %4518 = vst.msk [vmem:[#allocation3 + $0x160] sm:$0xff] %vm178_vm3, %v4453_v36  ;;  %4511 = vst.msk [vmem:[#allocation3 + $0x128] sm:$0xff] %vm178_vm3, %v4446_v33  ;;  %v4459_v29 = vadd.f32 %v4318_v50, %v4075_v7  ;;  %v4452_v14 = vadd.f32 %v9786_v22, %v4068_v45  ;;  %v4461_v35 = vadd.f32 %v4322_v13, %v4077_v30  ;;  %v4573_v46 = vld [vmem:[#allocation2 + $0x100] sm:$0xff]  ;;  %s5588_s23 = scalar_lea.vmem %s4953_s1, 16 }
 0x329   :  { %v4854_v55 = vadd.f32 %v4853_v16, %v4852_v8  ;;  %4520 = vst.msk [vmem:[#allocation3 + $0x170] sm:$0xff] %vm178_vm3, %v4455_v1  ;;  %4513 = vst.msk [vmem:[#allocation3 + $0x138] sm:$0xff] %vm178_vm3, %v4448_v4  ;;  %v4454_v37 = vadd.f32 %v4308_v11, %v4070_v53  ;;  %v4661_v3 = vadd.f32 %v9263_v40, %v9769_v58  ;;  %v4855_v47 = vsel %vm178_vm3, %v4768_v10, 0.0  ;;  %v4326_v40 = vpop.permute.xlu0 %4325  ;;  %v4574_v62 = vld [vmem:[#allocation2 + $0x108] sm:$0xff]  ;;  %v4772_v43 = vld [vmem:[#allocation3 + $0xe0] sm:$0xff]  ;;  %p5589_p0 = scmp.ne.s32.totalorder %s4953_s1, %s5588_s23  ;;  %p5594_p2 = scmp.lt.s32.totalorder %s5592_s22, %s5588_s23 }
 0x32a   :  { %4522 = vst.msk [vmem:[#allocation3 + $0x180] sm:$0xff] %vm178_vm3, %v4457_v21  ;;  %v4857_v22 = vsel %vm178_vm3, %v4769_v24, 0.0  ;;  %4515 = vst.msk [vmem:[#allocation3 + $0x148] sm:$0xff] %vm178_vm3, %v4450_v48  ;;  %v4456_v63 = vadd.f32 %v4312_v57, %v4072_v20  ;;  %v4771_v61 = vld [vmem:[#allocation3 + $0xd8] sm:$0xff]  ;;  %v4463_v38 = vadd.f32 %v4326_v40, %v4079_v2  ;;  %v4666_v5 = vsel %vm113_vm1, %v4572_v15, 0.0  ;;  %v4774_v42 = vld [vmem:[#allocation3 + $0xf0] sm:$0xff] }
 0x32b   :  { %4524 = vst.msk [vmem:[#allocation3 + $0x190] sm:$0xff] %vm178_vm3, %v4459_v29  ;;  %4517 = vst.msk [vmem:[#allocation3 + $0x158] sm:$0xff] %vm178_vm3, %v4452_v14  ;;  %v4856_v44 = vadd.f32 %v4855_v47, %v4854_v55  ;;  %v4663_v58 = vadd.f32 %v9800_v52, %v4661_v3  ;;  %v4859_v23 = vsel %vm178_vm3, %v4770_v31, 0.0  ;;  %v4861_v34 = vsel %vm178_vm3, %v4771_v61, 0.0  ;;  %v4316_v50 = vpop.permute.xlu1 %4315  ;;  %v4773_v26 = vld [vmem:[#allocation3 + $0xe8] sm:$0xff]  ;;  %v4076_v19 = vld [vmem:[#allocation3 + $0x198] sm:$0xff]  ;;  %p5595_p3 = por %p5594_p2, %p5593_p1 }
 0x32c   :  { %4526 = vst.msk [vmem:[#allocation3 + $0x1a0] sm:$0xff] %vm178_vm3, %v4461_v35  ;;  %4519 = vst.msk [vmem:[#allocation3 + $0x168] sm:$0xff] %vm178_vm3, %v4454_v37  ;;  %v4458_v54 = vadd.f32 %v4316_v50, %v4074_v18  ;;  %v4668_v60 = vsel %vm113_vm1, %v4573_v46, 0.0  ;;  %v4575_v52 = vld [vmem:[#allocation2 + $0x110] sm:$0xff]  ;;  %v4670_v25 = vsel %vm113_vm1, %v4574_v62, 0.0  ;;  %v4863_v59 = vsel %vm178_vm3, %v4772_v43, 0.0 }
 0x32d   :  { %4521 = vst.msk [vmem:[#allocation3 + $0x178] sm:$0xff] %vm178_vm3, %v4456_v63  ;;  %v4858_v9 = vadd.f32 %v4857_v22, %v4856_v44  ;;  %v4665_v17 = vadd.f32 %v4664_v12, %v4663_v58  ;;  %4528 = vst.msk [vmem:[#allocation3 + $0x1b0] sm:$0xff] %vm178_vm3, %v4463_v38  ;;  %v4865_v56 = vsel %vm178_vm3, %v4773_v26, 0.0  ;;  %v4576_v39 = vld [vmem:[#allocation2 + $0x118] sm:$0xff]  ;;  %v4672_v30 = vsel %vm113_vm1, %v4575_v52, 0.0  ;;  %v4078_v11 = vld [vmem:[#allocation3 + $0x1a8] sm:$0xff]  ;;  %p5596_p4 = pnand %p5595_p3, %p5589_p0 }
 0x32e   :  { %4523 = vst.msk [vmem:[#allocation3 + $0x188] sm:$0xff] %vm178_vm3, %v4458_v54  ;;  %v4775_v7 = vld [vmem:[#allocation3 + $0xf8] sm:$0xff]  ;;  %v4577_v16 = vld [vmem:[#allocation2 + $0x120] sm:$0xff]  ;;  %v4674_v33 = vsel %vm113_vm1, %v4576_v39, 0.0  ;;  %v4867_v13 = vsel %vm178_vm3, %v4774_v42, 0.0  ;;  %v4578_v10 = vld [vmem:[#allocation2 + $0x128] sm:$0xff] }
 0x32f   :  { %v4860_v32 = vadd.f32 %v4859_v23, %v4858_v9  ;;  %v4667_v27 = vadd.f32 %v4666_v5, %v4665_v17  ;;  %v4320_v49 = vpop.permute.xlu1 %4319  ;;  %v4869_v53 = vsel %vm178_vm3, %v4775_v7, 0.0  ;;  %v4776_v1 = vld [vmem:[#allocation3 + $0x100] sm:$0xff]  ;;  %v4676_v20 = vsel %vm113_vm1, %v4577_v16, 0.0  ;;  %v4777_v24 = vld [vmem:[#allocation3 + $0x108] sm:$0xff]  ;;  %v4080_v48 = vld [vmem:[#allocation3 + $0x1b8] sm:$0xff] }
 0x330   :  { %v4460_v45 = vadd.f32 %v4320_v49, %v4076_v19  ;;  %v4579_v29 = vld [vmem:[#allocation2 + $0x130] sm:$0xff]  ;;  %v4678_v55 = vsel %vm113_vm1, %v4578_v10, 0.0  ;;  %v4871_v37 = vsel %vm178_vm3, %v4776_v1, 0.0  ;;  %v4580_v57 = vld [vmem:[#allocation2 + $0x138] sm:$0xff]  ;;  %v4873_v47 = vsel %vm178_vm3, %v4777_v24, 0.0  ;;  %v4581_v15 = vld [vmem:[#allocation2 + $0x140] sm:$0xff] }
 0x331   :  { %v4862_v6 = vadd.f32 %v4861_v34, %v4860_v32  ;;  %v4669_v28 = vadd.f32 %v4668_v60, %v4667_v27  ;;  %v4680_v63 = vsel %vm113_vm1, %v4579_v29, 0.0  ;;  %v4682_v44 = vsel %vm113_vm1, %v4580_v57, 0.0  ;;  %v4778_v61 = vld [vmem:[#allocation3 + $0x110] sm:$0xff]  ;;  %v4582_v58 = vld [vmem:[#allocation2 + $0x148] sm:$0xff]  ;;  %v4779_v46 = vld [vmem:[#allocation3 + $0x118] sm:$0xff] }
 0x332   :  { %4525 = vst.msk [vmem:[#allocation3 + $0x198] sm:$0xff] %vm178_vm3, %v4460_v45  ;;  %v4684_v18 = vsel %vm113_vm1, %v4581_v15, 0.0  ;;  %v4583_v9 = vld [vmem:[#allocation2 + $0x150] sm:$0xff]  ;;  %v4875_v5 = vsel %vm178_vm3, %v4778_v61, 0.0  ;;  %v4686_v23 = vsel %vm113_vm1, %v4582_v58, 0.0  ;;  %v4584_v50 = vld [vmem:[#allocation2 + $0x158] sm:$0xff] }
 0x333   :  { %v4864_v41 = vadd.f32 %v4863_v59, %v4862_v6  ;;  %v4671_v51 = vadd.f32 %v4670_v25, %v4669_v28  ;;  %v4324_v0 = vpop.permute.xlu1 %4323  ;;  %v4877_v43 = vsel %vm178_vm3, %v4779_v46, 0.0  ;;  %v4688_v32 = vsel %vm113_vm1, %v4583_v9, 0.0  ;;  %v4585_v26 = vld [vmem:[#allocation2 + $0x160] sm:$0xff]  ;;  %v4586_v27 = vld [vmem:[#allocation2 + $0x168] sm:$0xff]  ;;  %v4783_v10 = vld [vmem:[#allocation3 + $0x138] sm:$0xff] }
 0x334   :  { %v4462_v21 = vadd.f32 %v4324_v0, %v4078_v11  ;;  %v4690_v60 = vsel %vm113_vm1, %v4584_v50, 0.0  ;;  %v4780_v19 = vld [vmem:[#allocation3 + $0x120] sm:$0xff]  ;;  %v4692_v25 = vsel %vm113_vm1, %v4585_v26, 0.0  ;;  %v4781_v59 = vld [vmem:[#allocation3 + $0x128] sm:$0xff]  ;;  %v4694_v28 = vsel %vm113_vm1, %v4586_v27, 0.0  ;;  %v4592_v24 = vld [vmem:[#allocation2 + $0x198] sm:$0xff] }
 0x335   :  { %v4866_v36 = vadd.f32 %v4865_v56, %v4864_v41  ;;  %v4673_v8 = vadd.f32 %v4672_v30, %v4671_v51  ;;  %v4587_v56 = vld [vmem:[#allocation2 + $0x170] sm:$0xff]  ;;  %v4879_v39 = vsel %vm178_vm3, %v4780_v19, 0.0  ;;  %v4588_v41 = vld [vmem:[#allocation2 + $0x178] sm:$0xff]  ;;  %v4881_v45 = vsel %vm178_vm3, %v4781_v59, 0.0  ;;  %v4589_v11 = vld [vmem:[#allocation2 + $0x180] sm:$0xff] }
 0x336   :  { %4527 = vst.msk [vmem:[#allocation3 + $0x1a8] sm:$0xff] %vm178_vm3, %v4462_v21  ;;  %v4696_v30 = vsel %vm113_vm1, %v4587_v56, 0.0  ;;  %v4698_v51 = vsel %vm113_vm1, %v4588_v41, 0.0  ;;  %v4700_v0 = vsel %vm113_vm1, %v4589_v11, 0.0  ;;  %v4885_v29 = vsel %vm178_vm3, %v4783_v10, 0.0  ;;  %v4597_v46 = vld [vmem:[#allocation2 + $0x1c0] sm:$0xff] }
 0x337   :  { %v4868_v4 = vadd.f32 %v4867_v13, %v4866_v36  ;;  %v4675_v14 = vadd.f32 %v4674_v33, %v4673_v8  ;;  %v4328_v2 = vpop.permute.xlu1 %4327  ;;  %v4782_v36 = vld [vmem:[#allocation3 + $0x130] sm:$0xff]  ;;  %v4590_v13 = vld [vmem:[#allocation2 + $0x188] sm:$0xff]  ;;  %v4601_v59 = vld [vmem:[#allocation2 + $0x1e0] sm:$0xff] }
 0x338   :  { %v4464_v22 = vadd.f32 %v4328_v2, %v4080_v48  ;;  %v4591_v8 = vld [vmem:[#allocation2 + $0x190] sm:$0xff]  ;;  %v4702_v21 = vsel %vm113_vm1, %v4590_v13, 0.0  ;;  %v4784_v2 = vld [vmem:[#allocation3 + $0x140] sm:$0xff] }
 0x339   :  { %v4870_v35 = vadd.f32 %v4869_v53, %v4868_v4  ;;  %v4677_v3 = vadd.f32 %v4676_v20, %v4675_v14  ;;  %v4883_v4 = vsel %vm178_vm3, %v4782_v36, 0.0  ;;  %v4704_v14 = vsel %vm113_vm1, %v4591_v8, 0.0 }
 0x33a   :  { %4529 = vst.msk [vmem:[#allocation3 + $0x1b8] sm:$0xff] %vm178_vm3, %v4464_v22  ;;  %v4785_v22 = vld [vmem:[#allocation3 + $0x148] sm:$0xff] }
 0x33b   :  { %v4872_v12 = vadd.f32 %v4871_v37, %v4870_v35  ;;  %v4679_v31 = vadd.f32 %v4678_v55, %v4677_v3  ;;  %v4593_v35 = vld [vmem:[#allocation2 + $0x1a0] sm:$0xff]  ;;  %v4706_v37 = vsel %vm113_vm1, %v4592_v24, 0.0  ;;  %v4594_v3 = vld [vmem:[#allocation2 + $0x1a8] sm:$0xff] }
 0x33d   :  { %v4874_v40 = vadd.f32 %v4873_v47, %v4872_v12  ;;  %v4681_v38 = vadd.f32 %v4680_v63, %v4679_v31  ;;  %v4708_v47 = vsel %vm113_vm1, %v4593_v35, 0.0  ;;  %v4595_v63 = vld [vmem:[#allocation2 + $0x1b0] sm:$0xff]  ;;  %v4887_v31 = vsel %vm178_vm3, %v4784_v2, 0.0  ;;  %v4792_v35 = vld [vmem:[#allocation3 + $0x180] sm:$0xff] }
 0x33e   :  { %v4903_v2 = vsel %vm178_vm3, %v4792_v35, 0.0 }
 0x33f   :  { %v4683_v17 = vadd.f32 %v4682_v44, %v4681_v38  ;;  %v4876_v34 = vadd.f32 %v4875_v5, %v4874_v40  ;;  %v4710_v44 = vsel %vm113_vm1, %v4594_v3, 0.0  ;;  %v4596_v40 = vld [vmem:[#allocation2 + $0x1b8] sm:$0xff]  ;;  %v4889_v38 = vsel %vm178_vm3, %v4785_v22, 0.0  ;;  %v4786_v5 = vld [vmem:[#allocation3 + $0x150] sm:$0xff] }
 0x341   :  { %v4685_v62 = vadd.f32 %v4684_v18, %v4683_v17  ;;  %v4878_v52 = vadd.f32 %v4877_v43, %v4876_v34  ;;  %v4712_v18 = vsel %vm113_vm1, %v4595_v63, 0.0  ;;  %v4714_v17 = vsel %vm113_vm1, %v4596_v40, 0.0  ;;  %v4598_v34 = vld [vmem:[#allocation2 + $0x1c8] sm:$0xff]  ;;  %v4787_v43 = vld [vmem:[#allocation3 + $0x158] sm:$0xff]  ;;  %v4794_v63 = vld [vmem:[#allocation3 + $0x190] sm:$0xff] }
 0x342   :  { %v4907_v40 = vsel %vm178_vm3, %v4794_v63, 0.0 }
 0x343   :  { %v4687_v54 = vadd.f32 %v4686_v23, %v4685_v62  ;;  %v4880_v42 = vadd.f32 %v4879_v39, %v4878_v52  ;;  %v4716_v62 = vsel %vm113_vm1, %v4597_v46, 0.0  ;;  %v4600_v52 = vld [vmem:[#allocation2 + $0x1d8] sm:$0xff]  ;;  %v4788_v39 = vld [vmem:[#allocation3 + $0x160] sm:$0xff]  ;;  %v4083_v46 = vld [vmem:[#allocation3 + $0x1d0] sm:$0xff] }
 0x345   :  { %v4689_v6 = vadd.f32 %v4688_v32, %v4687_v54  ;;  %v4882_v33 = vadd.f32 %v4881_v45, %v4880_v42  ;;  %v4599_v32 = vld [vmem:[#allocation2 + $0x1d0] sm:$0xff]  ;;  %v4891_v54 = vsel %vm178_vm3, %v4786_v5, 0.0  ;;  %v4602_v42 = vld [vmem:[#allocation2 + $0x1e8] sm:$0xff] }
 0x346   :  { %v4789_v45 = vld [vmem:[#allocation3 + $0x168] sm:$0xff] }
 0x347   :  { %v4691_v49 = vadd.f32 %v4690_v60, %v4689_v6  ;;  %v4884_v20 = vadd.f32 %v4883_v4, %v4882_v33  ;;  %v4718_v60 = vsel %vm113_vm1, %v4598_v34, 0.0  ;;  %v4893_v6 = vsel %vm178_vm3, %v4787_v43, 0.0  ;;  %v4604_v33 = vld [vmem:[#allocation2 + $0x1f8] sm:$0xff]  ;;  %v4797_v34 = vld [vmem:[#allocation3 + $0x1a8] sm:$0xff] }
 0x348   :  { %v4730_v8 = vsel %vm113_vm1, %v4604_v33, 0.0 }
 0x349   :  { %v4693_v7 = vadd.f32 %v4692_v25, %v4691_v49  ;;  %v4886_v57 = vadd.f32 %v4885_v29, %v4884_v20  ;;  %v4720_v25 = vsel %vm113_vm1, %v4599_v32, 0.0  ;;  %v4722_v49 = vsel %vm113_vm1, %v4600_v52, 0.0  ;;  %v4791_v20 = vld [vmem:[#allocation3 + $0x178] sm:$0xff]  ;;  %v4085_v52 = vld [vmem:[#allocation3 + $0x1e0] sm:$0xff] }
 0x34a   :  { %v4913_v32 = vsel %vm178_vm3, %v4797_v34, 0.0 }
 0x34b   :  { %v4695_v16 = vadd.f32 %v4694_v28, %v4693_v7  ;;  %v4888_v61 = vadd.f32 %v4887_v31, %v4886_v57  ;;  %v4724_v7 = vsel %vm113_vm1, %v4601_v59, 0.0  ;;  %v4081_v57 = vld [vmem:[#allocation3 + $0x1c0] sm:$0xff]  ;;  %v4082_v31 = vld [vmem:[#allocation3 + $0x1c8] sm:$0xff] }
 0x34d   :  { %v4697_v53 = vadd.f32 %v4696_v30, %v4695_v16  ;;  %v4890_v23 = vadd.f32 %v4889_v38, %v4888_v61  ;;  %v4603_v30 = vld [vmem:[#allocation2 + $0x1f0] sm:$0xff]  ;;  %v4895_v16 = vsel %vm178_vm3, %v4788_v39, 0.0 }
 0x34f   :  { %v4699_v1 = vadd.f32 %v4698_v51, %v4697_v53  ;;  %v4892_v19 = vadd.f32 %v4891_v54, %v4890_v23  ;;  %v4726_v51 = vsel %vm113_vm1, %v4602_v42, 0.0  ;;  %v4897_v53 = vsel %vm178_vm3, %v4789_v45, 0.0 }
 0x351   :  { %v4701_v48 = vadd.f32 %v4700_v0, %v4699_v1  ;;  %v4894_v28 = vadd.f32 %v4893_v6, %v4892_v19  ;;  %v4728_v0 = vsel %vm113_vm1, %v4603_v30, 0.0  ;;  %v4790_v1 = vld [vmem:[#allocation3 + $0x170] sm:$0xff]  ;;  %vm4742_vm1 = vcmask 0  }
 0x353   :  { %v4703_v55 = vadd.f32 %v4702_v21, %v4701_v48  ;;  %v4896_v36 = vadd.f32 %v4895_v16, %v4894_v28  ;;  %v4899_v48 = vsel %vm178_vm3, %v4790_v1, 0.0 }
 0x355   :  { %v4705_v12 = vadd.f32 %v4704_v14, %v4703_v55  ;;  %v4898_v4 = vadd.f32 %v4897_v53, %v4896_v36  ;;  %v4901_v14 = vsel %vm178_vm3, %v4791_v20, 0.0 }
 0x357   :  { %v4707_v15 = vadd.f32 %v4706_v37, %v4705_v12  ;;  %v4900_v29 = vadd.f32 %v4899_v48, %v4898_v4  ;;  %v4793_v37 = vld [vmem:[#allocation3 + $0x188] sm:$0xff] }
 0x358   :  { %v4905_v12 = vsel %vm178_vm3, %v4793_v37, 0.0 }
 0x359   :  { %v4709_v58 = vadd.f32 %v4708_v47, %v4707_v15  ;;  %v4902_v55 = vadd.f32 %v4901_v14, %v4900_v29 }
 0x35b   :  { %v4711_v9 = vadd.f32 %v4710_v44, %v4709_v58  ;;  %v4904_v3 = vadd.f32 %v4903_v2, %v4902_v55  ;;  %v4795_v44 = vld [vmem:[#allocation3 + $0x198] sm:$0xff] }
 0x35d   :  { %v4713_v50 = vadd.f32 %v4712_v18, %v4711_v9  ;;  %v4906_v15 = vadd.f32 %v4905_v12, %v4904_v3  ;;  %v4909_v18 = vsel %vm178_vm3, %v4795_v44, 0.0 }
 0x35f   :  { %v4715_v26 = vadd.f32 %v4714_v17, %v4713_v50  ;;  %v4908_v38 = vadd.f32 %v4907_v40, %v4906_v15  ;;  %v4796_v17 = vld [vmem:[#allocation3 + $0x1a0] sm:$0xff] }
 0x360   :  { %v4911_v50 = vsel %vm178_vm3, %v4796_v17, 0.0 }
 0x361   :  { %v4717_v27 = vadd.f32 %v4716_v62, %v4715_v26  ;;  %v4910_v5 = vadd.f32 %v4909_v18, %v4908_v38  ;;  %v4084_v62 = vld [vmem:[#allocation3 + $0x1d8] sm:$0xff] }
 0x363   :  { %v4719_v56 = vadd.f32 %v4718_v60, %v4717_v27  ;;  %v4912_v43 = vadd.f32 %v4911_v50, %v4910_v5  ;;  %v4798_v60 = vld [vmem:[#allocation3 + $0x1b0] sm:$0xff]  ;;  %v4799_v27 = vld [vmem:[#allocation3 + $0x1b8] sm:$0xff] }
 0x364   :  { %v4917_v28 = vsel %vm178_vm3, %v4799_v27, 0.0 }
 0x365   :  { %v4721_v41 = vadd.f32 %v4720_v25, %v4719_v56  ;;  %v4914_v19 = vadd.f32 %v4913_v32, %v4912_v43  ;;  %v4915_v25 = vsel %vm178_vm3, %v4798_v60, 0.0  ;;  %v4086_v56 = vld [vmem:[#allocation3 + $0x1e8] sm:$0xff] }
 0x367   :  { %v4723_v11 = vadd.f32 %v4722_v49, %v4721_v41  ;;  %v4916_v39 = vadd.f32 %v4915_v25, %v4914_v19  ;;  %v4087_v41 = vld [vmem:[#allocation3 + $0x1f0] sm:$0xff] }
 0x369   :  { %v4725_v13 = vadd.f32 %v4724_v7, %v4723_v11 }
 0x36b   :  { %v4727_v10 = vadd.f32 %v4726_v51, %v4725_v13  ;;  %v4918_v51 = vadd.f32 %v4917_v28, %v4916_v39  ;;  %v4088_v13 = vld [vmem:[#allocation3 + $0x1f8] sm:$0xff] }
 0x36d   :  { %v4729_v21 = vadd.f32 %v4728_v0, %v4727_v10 }
 0x36f   :  { %v4731_v24 = vadd.f32 %v4730_v8, %v4729_v21 }
 0x371   :  { %4732 = vadd.xlane.f32.xlu0 %v4731_v24 }
 0x37c   :  { %v4330_v47 = vpop.permute.xlu0 %4329 }
 0x37d   :  { %v4465_v22 = vadd.f32 %v4330_v47, %v4081_v57 }
 0x37f   :  { %4530 = vst.msk [vmem:[#allocation3 + $0x1c0] sm:$0xff] %vm178_vm3, %v4465_v22 }
 0x380   :  { %v4332_v61 = vpop.permute.xlu1 %4331 }
 0x381   :  { %v4466_v58 = vadd.f32 %v4332_v61, %v4082_v31 }
 0x383   :  { %4531 = vst.msk [vmem:[#allocation3 + $0x1c8] sm:$0xff] %vm178_vm3, %v4466_v58 }
 0x385   :  { %v4334_v9 = vpop.permute.xlu0 %4333 }
 0x386   :  { %v4467_v23 = vadd.f32 %v4334_v9, %v4083_v46  ;;  %v4800_v49 = vld [vmem:[#allocation3 + $0x1c0] sm:$0xff] }
 0x387   :  { %v4919_v30 = vsel %vm178_vm3, %v4800_v49, 0.0 }
 0x388   :  { %4532 = vst.msk [vmem:[#allocation3 + $0x1d0] sm:$0xff] %vm178_vm3, %v4467_v23  ;;  %v4920_v0 = vadd.f32 %v4919_v30, %v4918_v51 }
 0x38a   :  { %v4801_v7 = vld [vmem:[#allocation3 + $0x1c8] sm:$0xff] }
 0x38b   :  { %v4921_v33 = vsel %vm178_vm3, %v4801_v7, 0.0 }
 0x38c   :  { %v4336_v26 = vpop.permute.xlu1 %4335  ;;  %v4922_v1 = vadd.f32 %v4921_v33, %v4920_v0 }
 0x38d   :  { %v4468_v54 = vadd.f32 %v4336_v26, %v4084_v62 }
 0x38f   :  { %4533 = vst.msk [vmem:[#allocation3 + $0x1d8] sm:$0xff] %vm178_vm3, %v4468_v54  ;;  %v4802_v16 = vld [vmem:[#allocation3 + $0x1d0] sm:$0xff] }
 0x390   :  { %v4923_v10 = vsel %vm178_vm3, %v4802_v16, 0.0 }
 0x391   :  { %v4338_v6 = vpop.permute.xlu0 %4337  ;;  %v4924_v24 = vadd.f32 %v4923_v10, %v4922_v1 }
 0x392   :  { %v4469_v59 = vadd.f32 %v4338_v6, %v4085_v52 }
 0x393   :  { %v4340_v42 = vpop.permute.xlu1 %4339 }
 0x394   :  { %4534 = vst.msk [vmem:[#allocation3 + $0x1e0] sm:$0xff] %vm178_vm3, %v4469_v59  ;;  %v4470_v45 = vadd.f32 %v4340_v42, %v4086_v56 }
 0x396   :  { %v4342_v11 = vpop.permute.xlu0 %4341  ;;  %4535 = vst.msk [vmem:[#allocation3 + $0x1e8] sm:$0xff] %vm178_vm3, %v4470_v45  ;;  %v4803_v53 = vld [vmem:[#allocation3 + $0x1d8] sm:$0xff] }
 0x397   :  { %v4471_v36 = vadd.f32 %v4342_v11, %v4087_v41  ;;  %v4925_v20 = vsel %vm178_vm3, %v4803_v53, 0.0 }
 0x398   :  { %v4926_v14 = vadd.f32 %v4925_v20, %v4924_v24 }
 0x399   :  { %4536 = vst.msk [vmem:[#allocation3 + $0x1f0] sm:$0xff] %vm178_vm3, %v4471_v36 }
 0x39a   :  { %v4344_v8 = vpop.permute.xlu1 %4343 }
 0x39b   :  { %v4472_v4 = vadd.f32 %v4344_v8, %v4088_v13  ;;  %v4804_v21 = vld [vmem:[#allocation3 + $0x1e0] sm:$0xff] }
 0x39c   :  { %v4927_v48 = vsel %vm178_vm3, %v4804_v21, 0.0 }
 0x39d   :  { %4537 = vst.msk [vmem:[#allocation3 + $0x1f8] sm:$0xff] %vm178_vm3, %v4472_v4  ;;  %v4805_v29 = vld [vmem:[#allocation3 + $0x1e8] sm:$0xff]  ;;  %v4928_v37 = vadd.f32 %v4927_v48, %v4926_v14 }
 0x39e   :  { %v4929_v35 = vsel %vm178_vm3, %v4805_v29, 0.0 }
 0x39f   :  { %v4930_v57 = vadd.f32 %v4929_v35, %v4928_v37 }
 0x3a0   :  { %v4806_v55 = vld [vmem:[#allocation3 + $0x1f0] sm:$0xff] }
 0x3a1   :  { %v4931_v2 = vsel %vm178_vm3, %v4806_v55, 0.0 }
 0x3a2   :  { %v4932_v12 = vadd.f32 %v4931_v2, %v4930_v57 }
 0x3a4   :  { %v4807_v3 = vld [vmem:[#allocation3 + $0x1f8] sm:$0xff] }
 0x3a5   :  { %v4933_v47 = vsel %vm178_vm3, %v4807_v3, 0.0 }
 0x3a6   :  { %v4934_v22 = vadd.f32 %v4933_v47, %v4932_v12 }
 0x3a8   :  { %4935 = vadd.xlane.f32.xlu1 %v4934_v22 }
 0x3fa   :  { %v4733_v63 = vpop.xlane.xlu0 %4732 }
 0x3fb   :  { %v4734_v15 = vrot.slane %v4733_v63, 4 }
 0x3fd   :  { %v4735_v31 = vadd.f32 %v4734_v15, %v4733_v63 }
 0x3ff   :  { %v4736_v44 = vrot.slane %v4735_v31, 2 }
 0x401   :  { %v4737_v61 = vadd.f32 %v4736_v44, %v4735_v31 }
 0x403   :  { %v4738_v40 = vrot.slane %v4737_v61, 1 }
 0x405   :  { %v4739_v58 = vadd.f32 %v4738_v40, %v4737_v61 }
 0x407   :  { %5190 = vpush %v4739_v58 }
 0x431   :  { %v4936_v38 = vpop.xlane.xlu1 %4935 }
 0x432   :  { %v4937_v18 = vrot.slane %v4936_v38, 4 }
 0x434   :  { %v4938_v46 = vadd.f32 %v4937_v18, %v4936_v38 }
 0x436   :  { %v4939_v9 = vrot.slane %v4938_v46, 2 }
 0x438   :  { %v4940_v17 = vadd.f32 %v4939_v9, %v4938_v46  ;;  %s5191_s2 = spop %5190 }
 0x439   :  { %v4741_v23 = vstv %s5191_s2 }
 0x43a   :  { %v4941_v5 = vrot.slane %v4940_v17, 1  ;;  %4743 = vst.msk [vmem:[#allocation4] sm:$0x1] %vm4742_vm1, %v4741_v23 }
 0x43c   :  { %v4942_v34 = vadd.f32 %v4941_v5, %v4940_v17 }
 0x43d   :  { %5599 = shalt.err (!%p5596_p4)
}
 0x43e   :  { %4955 = dma.vmem_to_hbm [thread:$0]  %s4953_s1, 16, %s9938_s4, [#allocation5]   ;;  %5192 = vpush %v4942_v34 }
 0x43f   :  { %s5635_s26 = smov [#allocation6]  }
 0x440   :  { %s4962_s27 = sshll.u32 %s5635_s26, 4  ;;  %s4963_s27 = int_to_ptr.vmem [resolvable:$true] %s4962_s27 }
 0x441   :  { %s5608_s29 = scalar_lea.vmem %s4963_s27, 16  ;;  %s5612_s30 = scalar_lea.vmem %s4963_s27, 32 }
 0x442   :  { %p5609_p5 = scmp.ne.s32.totalorder %s4963_s27, %s5608_s29  ;;  %p5613_p6 = scmp.lt.s32.totalorder %s4963_s27, %s4963_s27 }
 0x443   :  { %p5614_p7 = scmp.lt.s32.totalorder %s5612_s30, %s5608_s29 }
 0x445   :  { %p5615_p8 = por %p5614_p7, %p5613_p6 }
 0x447   :  { %p5616_p9 = pnand %p5615_p8, %p5609_p5 }
 0x46f   :  { %s5193_s28 = spop %5192 }
 0x470   :  { %v4944_v50 = vstv %s5193_s28 }
 0x471   :  { %4945 = vst.msk [vmem:[#allocation6] sm:$0x1] %vm4742_vm1, %v4944_v50 }
 0x472   :  { %5619 = shalt.err (!%p5616_p9)
}
 0x473   :  { %4965 = dma.vmem_to_hbm [thread:$0]  %s4963_s27, 16, %s9939_s5, [#allocation7]  }
 0x474   :  { %5628 = dma.done.wait [#allocation5], 16  }
 0x475   :  { %5629 = vsyncadd [#allocation5], 4294967280 }
 0x476   :  { %5630 = dma.done.wait [#allocation7], 16  }
 0x477   :  { %5631 = vsyncadd [#allocation7], 4294967280 }
 0x478   :  { %4972 = vsyncpa [#allocation5], 1 }
 0x479   :  { %4973 = vsyncpa [#allocation7], 1 }

</bundles_post_ra>
